<compile_context>
chip_gen: v6e
topology: v6e:2x2x1
jax: 0.10.0
libtpu: 0.0.40
codegen_flags: <defaults>
</compile_context>

<pallas_src>
import functools
import math

import numpy as np
import jax
import jax.numpy as jnp
from jax.experimental import pallas as pl
from jax.experimental.pallas import tpu as pltpu


_MM_DTYPE = jnp.bfloat16  # dtype fed to the MXU (accumulation stays f32)

_STACKED_NAMES = [
    "wq1", "bq1", "wk1", "bk1", "wv1", "bv1", "wo1", "bo1", "g1", "be1",
    "wq2", "bq2", "wk2", "bk2", "wv2", "bv2", "wo2", "bo2", "g2", "be2",
    "wf1", "bf1", "wf2", "bf2", "g3", "be3",
]


# ----------------------------------------------------------------------------
# Sinusoid positional table (same math as the PyTorch reference)
# ----------------------------------------------------------------------------
def get_sinusoid_table(max_len, emb_dim):
    table = np.zeros((max_len, emb_dim), dtype=np.float32)
    for pos in range(max_len):
        for i in range(0, emb_dim, 2):
            angle = pos / 10000 ** (2 * (i // 2) / emb_dim)
            table[pos, i] = math.sin(angle)
            if i + 1 < emb_dim:
                table[pos, i + 1] = math.cos(angle)
    return jnp.asarray(table)


# ----------------------------------------------------------------------------
# Single fused Pallas kernel: all decoder layers + LM head, whole batch.
# ----------------------------------------------------------------------------
def decoder_kernel(x_ref, enc_ref, tbias_ref, sbias_ref, *rest,
                   num_layers, num_heads, head_dim, batch):
    out_ref = rest[-1]
    refs = dict(zip(_STACKED_NAMES + ["fc_w", "fc_b"], rest[:-1]))

    H = num_heads
    scale = 1.0 / math.sqrt(head_dim)
    mm = _MM_DTYPE

    def mha(q_in, kv_in, bias, wq, bq, wk, bk, wv, bv, wo, bo):
        # q_in: (Lq, D) f32   kv_in: (Lk, D) f32   bias: (Lq, Lk) f32 additive
        # wq/wk/wv: (H, D, hd) bf16   bq/bk/bv: (H, 1, hd) f32
        # wo: (H, hd, D) bf16         bo: (1, D) f32
        Lq, D = q_in.shape
        Lk = kv_in.shape[0]
        qb = jnp.broadcast_to(q_in.astype(mm)[None], (H, Lq, D))
        kb = qb if q_in is kv_in else jnp.broadcast_to(kv_in.astype(mm)[None], (H, Lk, D))
        # head-batched projections (batch dim = heads, standard batched-matmul patterns)
        q = jnp.einsum('hnd,hdk->hnk', qb, wq, preferred_element_type=jnp.float32) + bq
        k = jnp.einsum('hnd,hdk->hnk', kb, wk, preferred_element_type=jnp.float32) + bk
        v = jnp.einsum('hnd,hdk->hnk', kb, wv, preferred_element_type=jnp.float32) + bv
        # scores for all heads at once
        s = jnp.einsum('hqd,hkd->hqk', q.astype(mm), k.astype(mm),
                       preferred_element_type=jnp.float32) * scale
        s = s + bias[None]                                   # additive mask bias
        s = s - jnp.max(s, axis=-1, keepdims=True)
        p = jnp.exp(s)
        p = p * pl.reciprocal(jnp.sum(p, axis=-1, keepdims=True), approx=True)
        a = jnp.einsum('hqk,hkd->hqd', p.astype(mm), v.astype(mm),
                       preferred_element_type=jnp.float32)   # (H, Lq, hd)
        # merge heads by per-head output projection + sum over heads (no transpose/concat)
        o = jnp.einsum('hqd,hde->hqe', a.astype(mm), wo,
                       preferred_element_type=jnp.float32)   # (H, Lq, D)
        return jnp.sum(o, axis=0) + bo

    def layernorm(h, g, b):
        mu = jnp.mean(h, axis=-1, keepdims=True)
        var = jnp.mean((h - mu) ** 2, axis=-1, keepdims=True)
        return (h - mu) * jax.lax.rsqrt(var + 1e-6) * g + b

    # per-batch activations held resident in VMEM/vregs for all layers
    hs = [x_ref[b].astype(jnp.float32) for b in range(batch)]
    es = [enc_ref[b].astype(jnp.float32) for b in range(batch)]
    tb = [tbias_ref[b] for b in range(batch)]
    sb = [sbias_ref[b] for b in range(batch)]

    for l in range(num_layers):                       # static unroll over layers
        wq1, bq1 = refs["wq1"][l], refs["bq1"][l]
        wk1, bk1 = refs["wk1"][l], refs["bk1"][l]
        wv1, bv1 = refs["wv1"][l], refs["bv1"][l]
        wo1, bo1 = refs["wo1"][l], refs["bo1"][l]
        g1, be1 = refs["g1"][l], refs["be1"][l]
        wq2, bq2 = refs["wq2"][l], refs["bq2"][l]
        wk2, bk2 = refs["wk2"][l], refs["bk2"][l]
        wv2, bv2 = refs["wv2"][l], refs["bv2"][l]
        wo2, bo2 = refs["wo2"][l], refs["bo2"][l]
        g2, be2 = refs["g2"][l], refs["be2"][l]
        wf1, bf1 = refs["wf1"][l], refs["bf1"][l]
        wf2, bf2 = refs["wf2"][l], refs["bf2"][l]
        g3, be3 = refs["g3"][l], refs["be3"][l]
        for b in range(batch):                        # static unroll over batch
            h = hs[b]
            # self attention + residual + LN   (dropout = identity)
            sa = mha(h, h, tb[b], wq1, bq1, wk1, bk1, wv1, bv1, wo1, bo1)
            h = layernorm(h + sa, g1, be1)
            # cross attention + residual + LN
            ca = mha(h, es[b], sb[b], wq2, bq2, wk2, bk2, wv2, bv2, wo2, bo2)
            h = layernorm(h + ca, g2, be2)
            # FFN + residual + LN
            f = jnp.dot(h.astype(mm), wf1, preferred_element_type=jnp.float32) + bf1
            f = jnp.maximum(f, 0.0)
            f = jnp.dot(f.astype(mm), wf2, preferred_element_type=jnp.float32) + bf2
            hs[b] = layernorm(h + f, g3, be3)

    # LM head (fused into the same kernel)
    fc_w = refs["fc_w"][...]
    fc_b = refs["fc_b"][...]
    for b in range(batch):
        logits = jnp.dot(hs[b].astype(mm), fc_w, preferred_element_type=jnp.float32) + fc_b
        out_ref[b] = logits.astype(out_ref.dtype)


# ----------------------------------------------------------------------------
# Weight preparation: per-head reshapes + bf16 cast + stacking over layers
# ----------------------------------------------------------------------------
def prepare_weights(params, num_heads):
    D = params["tok_emb"].shape[1]
    H = num_heads
    hd = D // H

    def split_qkv_w(w):   # (D, H*hd) -> (H, D, hd)
        return jnp.transpose(w.reshape(D, H, hd), (1, 0, 2)).astype(_MM_DTYPE)

    def split_qkv_b(b):   # (1, H*hd) -> (H, 1, hd)
        return b.reshape(H, hd)[:, None, :].astype(jnp.float32)

    def split_o_w(w):     # (H*hd, D) -> (H, hd, D)
        return w.reshape(H, hd, D).astype(_MM_DTYPE)

    per_layer = []
    for lp in params["layers"]:
        d = {}
        for pre in ("1", "2"):
            d["wq" + pre] = split_qkv_w(lp["wq" + pre]); d["bq" + pre] = split_qkv_b(lp["bq" + pre])
            d["wk" + pre] = split_qkv_w(lp["wk" + pre]); d["bk" + pre] = split_qkv_b(lp["bk" + pre])
            d["wv" + pre] = split_qkv_w(lp["wv" + pre]); d["bv" + pre] = split_qkv_b(lp["bv" + pre])
            d["wo" + pre] = split_o_w(lp["wo" + pre]);   d["bo" + pre] = lp["bo" + pre].astype(jnp.float32)
            d["g" + pre] = lp["g" + pre].astype(jnp.float32)
            d["be" + pre] = lp["be" + pre].astype(jnp.float32)
        d["wf1"] = lp["wf1"].astype(_MM_DTYPE); d["bf1"] = lp["bf1"].astype(jnp.float32)
        d["wf2"] = lp["wf2"].astype(_MM_DTYPE); d["bf2"] = lp["bf2"].astype(jnp.float32)
        d["g3"] = lp["g3"].astype(jnp.float32); d["be3"] = lp["be3"].astype(jnp.float32)
        per_layer.append(d)

    stacked = {n: jnp.stack([d[n] for d in per_layer], axis=0) for n in _STACKED_NAMES}
    fc_w = params["fc_w"].astype(_MM_DTYPE)
    fc_b = params["fc_b"].astype(jnp.float32)
    return stacked, fc_w, fc_b


# ----------------------------------------------------------------------------
# Full Decoder forward (embedding gather is plain-JAX glue; rest is one kernel)
# ----------------------------------------------------------------------------
def decoder_forward(x_ids, enc_output, src_mask, tgt_mask, params, num_heads):
    B, Lt = x_ids.shape
    D = params["tok_emb"].shape[1]
    V = params["fc_w"].shape[1]
    L = len(params["layers"])
    hd = D // num_heads

    # token embedding lookup + positional embedding (glue); dropout = identity
    tok = jnp.take(params["tok_emb"], x_ids, axis=0)          # (B, Lt, D)
    pos = params["pos_emb"][:Lt]                              # (Lt, D)
    h0 = (tok + pos[None, :, :]).astype(jnp.float32)

    # additive attention biases: 0 = attend, -1e30 = masked (no -inf NaN hazard)
    tbias = jnp.where(tgt_mask == 0, -1e30, 0.0).astype(jnp.float32)   # (B, Lt, Lt)
    sbias = jnp.where(src_mask == 0, -1e30, 0.0).astype(jnp.float32)   # (B, Lt, Ls)

    stacked, fc_w, fc_b = prepare_weights(params, num_heads)
    weights = [stacked[n] for n in _STACKED_NAMES] + [fc_w, fc_b]
    inputs = [h0, enc_output.astype(jnp.float32), tbias, sbias] + weights

    def full_spec(a):
        nd = a.ndim
        return pl.BlockSpec(a.shape, lambda *_, _nd=nd: (0,) * _nd)

    kernel = functools.partial(decoder_kernel, num_layers=L, num_heads=num_heads,
                               head_dim=hd, batch=B)

    return pl.pallas_call(
        kernel,
        out_shape=jax.ShapeDtypeStruct((B, Lt, V), jnp.float32),
        grid=(1,),                      # single invocation: everything resident in VMEM
        in_specs=[full_spec(a) for a in inputs],
        out_specs=pl.BlockSpec((B, Lt, V), lambda *_: (0, 0, 0)),
        compiler_params=pltpu.CompilerParams(dimension_semantics=("arbitrary",)),
    )(*inputs)


# ----------------------------------------------------------------------------
# Parameter construction (deterministic, synthetic). Linear weights are (in, out).
# ----------------------------------------------------------------------------
def init_params(key, vocab_size, emb_dim, num_layers, num_heads, forward_dim, max_len):
    def dense(k, d_in, d_out):
        kw, _ = jax.random.split(k)
        w = jax.random.normal(kw, (d_in, d_out), jnp.float32) * 0.02
        b = jnp.zeros((1, d_out), jnp.float32)
        return w, b

    keys = jax.random.split(key, 2 + num_layers)
    params = {
        "tok_emb": jax.random.normal(keys[0], (vocab_size, emb_dim), jnp.float32) * 0.02,
        "pos_emb": get_sinusoid_table(max_len, emb_dim),
        "layers": [],
    }
    for l in range(num_layers):
        lk = jax.random.split(keys[2 + l], 10)
        lp = {}
        lp["wq1"], lp["bq1"] = dense(lk[0], emb_dim, emb_dim)
        lp["wk1"], lp["bk1"] = dense(lk[1], emb_dim, emb_dim)
        lp["wv1"], lp["bv1"] = dense(lk[2], emb_dim, emb_dim)
        lp["wo1"], lp["bo1"] = dense(lk[3], emb_dim, emb_dim)
        lp["g1"], lp["be1"] = jnp.ones((1, emb_dim), jnp.float32), jnp.zeros((1, emb_dim), jnp.float32)
        lp["wq2"], lp["bq2"] = dense(lk[4], emb_dim, emb_dim)
        lp["wk2"], lp["bk2"] = dense(lk[5], emb_dim, emb_dim)
        lp["wv2"], lp["bv2"] = dense(lk[6], emb_dim, emb_dim)
        lp["wo2"], lp["bo2"] = dense(lk[7], emb_dim, emb_dim)
        lp["g2"], lp["be2"] = jnp.ones((1, emb_dim), jnp.float32), jnp.zeros((1, emb_dim), jnp.float32)
        lp["wf1"], lp["bf1"] = dense(lk[8], emb_dim, forward_dim)
        lp["wf2"], lp["bf2"] = dense(lk[9], forward_dim, emb_dim)
        lp["g3"], lp["be3"] = jnp.ones((1, emb_dim), jnp.float32), jnp.zeros((1, emb_dim), jnp.float32)
        params["layers"].append(lp)

    fw, fb = dense(keys[1], emb_dim, vocab_size)
    params["fc_w"], params["fc_b"] = fw, fb
    return params


# ----------------------------------------------------------------------------
# Pure-JAX reference (mirrors the PyTorch module, f32 everywhere)
# ----------------------------------------------------------------------------
def reference_forward(x_ids, enc, src_mask, tgt_mask, params, num_heads):
    D = params["tok_emb"].shape[1]
    H = num_heads
    hd = D // H
    tok = params["tok_emb"][x_ids]
    pos = params["pos_emb"][: x_ids.shape[1]]
    h = tok + pos[None]

    def mha(q_in, kv_in, mask, wq, bq, wk, bk, wv, bv, wo, bo):
        B, Lq, _ = q_in.shape
        Lk = kv_in.shape[1]
        Q = (q_in @ wq + bq).reshape(B, Lq, H, hd).transpose(0, 2, 1, 3)
        K = (kv_in @ wk + bk).reshape(B, Lk, H, hd).transpose(0, 2, 1, 3)
        V = (kv_in @ wv + bv).reshape(B, Lk, H, hd).transpose(0, 2, 1, 3)
        s = Q @ jnp.swapaxes(K, -1, -2) / math.sqrt(hd)
        s = jnp.where(mask[:, None] == 0, -jnp.inf, s)
        p = jax.nn.softmax(s, axis=-1)
        a = (p @ V).transpose(0, 2, 1, 3).reshape(B, Lq, D)
        return a @ wo + bo

    def ln(x, g, b):
        mu = x.mean(-1, keepdims=True)
        var = ((x - mu) ** 2).mean(-1, keepdims=True)
        return (x - mu) / jnp.sqrt(var + 1e-6) * g + b

    for lp in params["layers"]:
        sa = mha(h, h, tgt_mask, lp["wq1"], lp["bq1"], lp["wk1"], lp["bk1"],
                 lp["wv1"], lp["bv1"], lp["wo1"], lp["bo1"])
        h = ln(h + sa, lp["g1"], lp["be1"])
        ca = mha(h, enc, src_mask, lp["wq2"], lp["bq2"], lp["wk2"], lp["bk2"],
                 lp["wv2"], lp["bv2"], lp["wo2"], lp["bo2"])
        h = ln(h + ca, lp["g2"], lp["be2"])
        f = jnp.maximum(h @ lp["wf1"] + lp["bf1"], 0.0)
        f = f @ lp["wf2"] + lp["bf2"]
        h = ln(h + f, lp["g3"], lp["be3"])
    return h @ params["fc_w"] + params["fc_b"]


if __name__ == "__main__":
    vocab_size, emb_dim, num_layers, num_heads = 32, 32, 2, 4
    forward_dim, dropout, max_len = 64, 0.0, 16
    B, Lt, Ls = 2, 8, 8

    key = jax.random.PRNGKey(0)
    k_param, k_ids, k_enc = jax.random.split(key, 3)

    params = init_params(k_param, vocab_size, emb_dim, num_layers, num_heads,
                         forward_dim, max_len)

    x_ids = jax.random.randint(k_ids, (B, Lt), 0, vocab_size, dtype=jnp.int32)
    enc_output = jax.random.normal(k_enc, (B, Ls, emb_dim), jnp.float32)
    # masks: 1 = attend, 0 = masked (PyTorch masked_fill(mask == 0, -inf))
    tgt_mask = jnp.tril(jnp.ones((Lt, Lt), jnp.float32))[None].repeat(B, axis=0)  # causal
    src_mask = jnp.ones((B, Lt, Ls), jnp.float32)

    fwd = jax.jit(functools.partial(decoder_forward, num_heads=num_heads))
    out = fwd(x_ids, enc_output, src_mask, tgt_mask, params)
    out = jax.block_until_ready(out)

    assert out.shape == (B, Lt, vocab_size)
    assert bool(jnp.all(jnp.isfinite(out)))

    # loose tolerance: kernel feeds bf16 operands to the MXU (f32 accumulation)
    ref = reference_forward(x_ids, enc_output, src_mask, tgt_mask, params, num_heads)
    max_err = float(jnp.max(jnp.abs(out - ref)))
    assert max_err < 5e-2, f"max abs err {max_err}"
    print("KERNEL_OK")
</pallas_src>

<mosaic_0001>
module attributes {stable_mosaic.version = 11 : i64} {
  func.func @decoder_kernel(%arg0: i32, %arg1: memref<2x8x32xf32, #tpu.memory_space<vmem>>, %arg2: memref<2x8x32xf32, #tpu.memory_space<vmem>>, %arg3: memref<2x8x8xf32, #tpu.memory_space<vmem>>, %arg4: memref<2x8x8xf32, #tpu.memory_space<vmem>>, %arg5: memref<2x4x32x8xbf16, #tpu.memory_space<vmem>>, %arg6: memref<2x4x1x8xf32, #tpu.memory_space<vmem>>, %arg7: memref<2x4x32x8xbf16, #tpu.memory_space<vmem>>, %arg8: memref<2x4x1x8xf32, #tpu.memory_space<vmem>>, %arg9: memref<2x4x32x8xbf16, #tpu.memory_space<vmem>>, %arg10: memref<2x4x1x8xf32, #tpu.memory_space<vmem>>, %arg11: memref<2x4x8x32xbf16, #tpu.memory_space<vmem>>, %arg12: memref<2x1x32xf32, #tpu.memory_space<vmem>>, %arg13: memref<2x1x32xf32, #tpu.memory_space<vmem>>, %arg14: memref<2x1x32xf32, #tpu.memory_space<vmem>>, %arg15: memref<2x4x32x8xbf16, #tpu.memory_space<vmem>>, %arg16: memref<2x4x1x8xf32, #tpu.memory_space<vmem>>, %arg17: memref<2x4x32x8xbf16, #tpu.memory_space<vmem>>, %arg18: memref<2x4x1x8xf32, #tpu.memory_space<vmem>>, %arg19: memref<2x4x32x8xbf16, #tpu.memory_space<vmem>>, %arg20: memref<2x4x1x8xf32, #tpu.memory_space<vmem>>, %arg21: memref<2x4x8x32xbf16, #tpu.memory_space<vmem>>, %arg22: memref<2x1x32xf32, #tpu.memory_space<vmem>>, %arg23: memref<2x1x32xf32, #tpu.memory_space<vmem>>, %arg24: memref<2x1x32xf32, #tpu.memory_space<vmem>>, %arg25: memref<2x32x64xbf16, #tpu.memory_space<vmem>>, %arg26: memref<2x1x64xf32, #tpu.memory_space<vmem>>, %arg27: memref<2x64x32xbf16, #tpu.memory_space<vmem>>, %arg28: memref<2x1x32xf32, #tpu.memory_space<vmem>>, %arg29: memref<2x1x32xf32, #tpu.memory_space<vmem>>, %arg30: memref<2x1x32xf32, #tpu.memory_space<vmem>>, %arg31: memref<32x32xbf16, #tpu.memory_space<vmem>>, %arg32: memref<1x32xf32, #tpu.memory_space<vmem>>, %arg33: memref<2x8x32xf32, #tpu.memory_space<vmem>>) attributes {dimension_semantics = [#tpu.dimension_semantics<arbitrary>], iteration_bounds = array<i64: 1>, scalar_prefetch = 0 : i64, scratch_operands = 0 : i64, tpu.core_type = #tpu.core_type<tc>, window_params = [{pipeline_mode = #tpu.pipeline_mode<synchronous>, transform_indices = @transform_0, window_bounds = array<i64: 2, 8, 32>}, {pipeline_mode = #tpu.pipeline_mode<synchronous>, transform_indices = @transform_1, window_bounds = array<i64: 2, 8, 32>}, {pipeline_mode = #tpu.pipeline_mode<synchronous>, transform_indices = @transform_2, window_bounds = array<i64: 2, 8, 8>}, {pipeline_mode = #tpu.pipeline_mode<synchronous>, transform_indices = @transform_3, window_bounds = array<i64: 2, 8, 8>}, {pipeline_mode = #tpu.pipeline_mode<synchronous>, transform_indices = @transform_4, window_bounds = array<i64: 2, 4, 32, 8>}, {pipeline_mode = #tpu.pipeline_mode<synchronous>, transform_indices = @transform_5, window_bounds = array<i64: 2, 4, 1, 8>}, {pipeline_mode = #tpu.pipeline_mode<synchronous>, transform_indices = @transform_6, window_bounds = array<i64: 2, 4, 32, 8>}, {pipeline_mode = #tpu.pipeline_mode<synchronous>, transform_indices = @transform_7, window_bounds = array<i64: 2, 4, 1, 8>}, {pipeline_mode = #tpu.pipeline_mode<synchronous>, transform_indices = @transform_8, window_bounds = array<i64: 2, 4, 32, 8>}, {pipeline_mode = #tpu.pipeline_mode<synchronous>, transform_indices = @transform_9, window_bounds = array<i64: 2, 4, 1, 8>}, {pipeline_mode = #tpu.pipeline_mode<synchronous>, transform_indices = @transform_10, window_bounds = array<i64: 2, 4, 8, 32>}, {pipeline_mode = #tpu.pipeline_mode<synchronous>, transform_indices = @transform_11, window_bounds = array<i64: 2, 1, 32>}, {pipeline_mode = #tpu.pipeline_mode<synchronous>, transform_indices = @transform_12, window_bounds = array<i64: 2, 1, 32>}, {pipeline_mode = #tpu.pipeline_mode<synchronous>, transform_indices = @transform_13, window_bounds = array<i64: 2, 1, 32>}, {pipeline_mode = #tpu.pipeline_mode<synchronous>, transform_indices = @transform_14, window_bounds = array<i64: 2, 4, 32, 8>}, {pipeline_mode = #tpu.pipeline_mode<synchronous>, transform_indices = @transform_15, window_bounds = array<i64: 2, 4, 1, 8>}, {pipeline_mode = #tpu.pipeline_mode<synchronous>, transform_indices = @transform_16, window_bounds = array<i64: 2, 4, 32, 8>}, {pipeline_mode = #tpu.pipeline_mode<synchronous>, transform_indices = @transform_17, window_bounds = array<i64: 2, 4, 1, 8>}, {pipeline_mode = #tpu.pipeline_mode<synchronous>, transform_indices = @transform_18, window_bounds = array<i64: 2, 4, 32, 8>}, {pipeline_mode = #tpu.pipeline_mode<synchronous>, transform_indices = @transform_19, window_bounds = array<i64: 2, 4, 1, 8>}, {pipeline_mode = #tpu.pipeline_mode<synchronous>, transform_indices = @transform_20, window_bounds = array<i64: 2, 4, 8, 32>}, {pipeline_mode = #tpu.pipeline_mode<synchronous>, transform_indices = @transform_21, window_bounds = array<i64: 2, 1, 32>}, {pipeline_mode = #tpu.pipeline_mode<synchronous>, transform_indices = @transform_22, window_bounds = array<i64: 2, 1, 32>}, {pipeline_mode = #tpu.pipeline_mode<synchronous>, transform_indices = @transform_23, window_bounds = array<i64: 2, 1, 32>}, {pipeline_mode = #tpu.pipeline_mode<synchronous>, transform_indices = @transform_24, window_bounds = array<i64: 2, 32, 64>}, {pipeline_mode = #tpu.pipeline_mode<synchronous>, transform_indices = @transform_25, window_bounds = array<i64: 2, 1, 64>}, {pipeline_mode = #tpu.pipeline_mode<synchronous>, transform_indices = @transform_26, window_bounds = array<i64: 2, 64, 32>}, {pipeline_mode = #tpu.pipeline_mode<synchronous>, transform_indices = @transform_27, window_bounds = array<i64: 2, 1, 32>}, {pipeline_mode = #tpu.pipeline_mode<synchronous>, transform_indices = @transform_28, window_bounds = array<i64: 2, 1, 32>}, {pipeline_mode = #tpu.pipeline_mode<synchronous>, transform_indices = @transform_29, window_bounds = array<i64: 2, 1, 32>}, {pipeline_mode = #tpu.pipeline_mode<synchronous>, transform_indices = @transform_30, window_bounds = array<i64: 32, 32>}, {pipeline_mode = #tpu.pipeline_mode<synchronous>, transform_indices = @transform_31, window_bounds = array<i64: 1, 32>}, {pipeline_mode = #tpu.pipeline_mode<synchronous>, transform_indices = @transform_32, window_bounds = array<i64: 2, 8, 32>}]} {
    %c0 = arith.constant 0 : index
    %c0_0 = arith.constant 0 : index
    %c0_1 = arith.constant 0 : index
    %0 = vector.load %arg1[%c0, %c0_0, %c0_1] : memref<2x8x32xf32, #tpu.memory_space<vmem>>, vector<1x8x32xf32>
    %1 = vector.shape_cast %0 : vector<1x8x32xf32> to vector<8x32xf32>
    %c1 = arith.constant 1 : index
    %c0_2 = arith.constant 0 : index
    %c0_3 = arith.constant 0 : index
    %2 = vector.load %arg1[%c1, %c0_2, %c0_3] : memref<2x8x32xf32, #tpu.memory_space<vmem>>, vector<1x8x32xf32>
    %3 = vector.shape_cast %2 : vector<1x8x32xf32> to vector<8x32xf32>
    %c0_4 = arith.constant 0 : index
    %c0_5 = arith.constant 0 : index
    %c0_6 = arith.constant 0 : index
    %4 = vector.load %arg2[%c0_4, %c0_5, %c0_6] : memref<2x8x32xf32, #tpu.memory_space<vmem>>, vector<1x8x32xf32>
    %5 = vector.shape_cast %4 : vector<1x8x32xf32> to vector<8x32xf32>
    %c1_7 = arith.constant 1 : index
    %c0_8 = arith.constant 0 : index
    %c0_9 = arith.constant 0 : index
    %6 = vector.load %arg2[%c1_7, %c0_8, %c0_9] : memref<2x8x32xf32, #tpu.memory_space<vmem>>, vector<1x8x32xf32>
    %7 = vector.shape_cast %6 : vector<1x8x32xf32> to vector<8x32xf32>
    %c0_10 = arith.constant 0 : index
    %c0_11 = arith.constant 0 : index
    %c0_12 = arith.constant 0 : index
    %8 = vector.load %arg3[%c0_10, %c0_11, %c0_12] : memref<2x8x8xf32, #tpu.memory_space<vmem>>, vector<1x8x8xf32>
    %9 = vector.shape_cast %8 : vector<1x8x8xf32> to vector<8x8xf32>
    %c1_13 = arith.constant 1 : index
    %c0_14 = arith.constant 0 : index
    %c0_15 = arith.constant 0 : index
    %10 = vector.load %arg3[%c1_13, %c0_14, %c0_15] : memref<2x8x8xf32, #tpu.memory_space<vmem>>, vector<1x8x8xf32>
    %11 = vector.shape_cast %10 : vector<1x8x8xf32> to vector<8x8xf32>
    %c0_16 = arith.constant 0 : index
    %c0_17 = arith.constant 0 : index
    %c0_18 = arith.constant 0 : index
    %12 = vector.load %arg4[%c0_16, %c0_17, %c0_18] : memref<2x8x8xf32, #tpu.memory_space<vmem>>, vector<1x8x8xf32>
    %13 = vector.shape_cast %12 : vector<1x8x8xf32> to vector<8x8xf32>
    %c1_19 = arith.constant 1 : index
    %c0_20 = arith.constant 0 : index
    %c0_21 = arith.constant 0 : index
    %14 = vector.load %arg4[%c1_19, %c0_20, %c0_21] : memref<2x8x8xf32, #tpu.memory_space<vmem>>, vector<1x8x8xf32>
    %15 = vector.shape_cast %14 : vector<1x8x8xf32> to vector<8x8xf32>
    %c0_22 = arith.constant 0 : index
    %c0_23 = arith.constant 0 : index
    %c0_24 = arith.constant 0 : index
    %c0_25 = arith.constant 0 : index
    %16 = vector.load %arg5[%c0_22, %c0_23, %c0_24, %c0_25] : memref<2x4x32x8xbf16, #tpu.memory_space<vmem>>, vector<1x4x32x8xbf16>
    %17 = vector.shape_cast %16 : vector<1x4x32x8xbf16> to vector<4x32x8xbf16>
    %c0_26 = arith.constant 0 : index
    %c0_27 = arith.constant 0 : index
    %c0_28 = arith.constant 0 : index
    %c0_29 = arith.constant 0 : index
    %18 = vector.load %arg6[%c0_26, %c0_27, %c0_28, %c0_29] : memref<2x4x1x8xf32, #tpu.memory_space<vmem>>, vector<1x4x1x8xf32>
    %19 = vector.shape_cast %18 : vector<1x4x1x8xf32> to vector<4x1x8xf32>
    %c0_30 = arith.constant 0 : index
    %c0_31 = arith.constant 0 : index
    %c0_32 = arith.constant 0 : index
    %c0_33 = arith.constant 0 : index
    %20 = vector.load %arg7[%c0_30, %c0_31, %c0_32, %c0_33] : memref<2x4x32x8xbf16, #tpu.memory_space<vmem>>, vector<1x4x32x8xbf16>
    %21 = vector.shape_cast %20 : vector<1x4x32x8xbf16> to vector<4x32x8xbf16>
    %c0_34 = arith.constant 0 : index
    %c0_35 = arith.constant 0 : index
    %c0_36 = arith.constant 0 : index
    %c0_37 = arith.constant 0 : index
    %22 = vector.load %arg8[%c0_34, %c0_35, %c0_36, %c0_37] : memref<2x4x1x8xf32, #tpu.memory_space<vmem>>, vector<1x4x1x8xf32>
    %23 = vector.shape_cast %22 : vector<1x4x1x8xf32> to vector<4x1x8xf32>
    %c0_38 = arith.constant 0 : index
    %c0_39 = arith.constant 0 : index
    %c0_40 = arith.constant 0 : index
    %c0_41 = arith.constant 0 : index
    %24 = vector.load %arg9[%c0_38, %c0_39, %c0_40, %c0_41] : memref<2x4x32x8xbf16, #tpu.memory_space<vmem>>, vector<1x4x32x8xbf16>
    %25 = vector.shape_cast %24 : vector<1x4x32x8xbf16> to vector<4x32x8xbf16>
    %c0_42 = arith.constant 0 : index
    %c0_43 = arith.constant 0 : index
    %c0_44 = arith.constant 0 : index
    %c0_45 = arith.constant 0 : index
    %26 = vector.load %arg10[%c0_42, %c0_43, %c0_44, %c0_45] : memref<2x4x1x8xf32, #tpu.memory_space<vmem>>, vector<1x4x1x8xf32>
    %27 = vector.shape_cast %26 : vector<1x4x1x8xf32> to vector<4x1x8xf32>
    %c0_46 = arith.constant 0 : index
    %c0_47 = arith.constant 0 : index
    %c0_48 = arith.constant 0 : index
    %c0_49 = arith.constant 0 : index
    %28 = vector.load %arg11[%c0_46, %c0_47, %c0_48, %c0_49] : memref<2x4x8x32xbf16, #tpu.memory_space<vmem>>, vector<1x4x8x32xbf16>
    %29 = vector.shape_cast %28 : vector<1x4x8x32xbf16> to vector<4x8x32xbf16>
    %c0_50 = arith.constant 0 : index
    %c0_51 = arith.constant 0 : index
    %c0_52 = arith.constant 0 : index
    %30 = vector.load %arg12[%c0_50, %c0_51, %c0_52] : memref<2x1x32xf32, #tpu.memory_space<vmem>>, vector<1x1x32xf32>
    %31 = vector.shape_cast %30 : vector<1x1x32xf32> to vector<1x32xf32>
    %c0_53 = arith.constant 0 : index
    %c0_54 = arith.constant 0 : index
    %c0_55 = arith.constant 0 : index
    %32 = vector.load %arg13[%c0_53, %c0_54, %c0_55] : memref<2x1x32xf32, #tpu.memory_space<vmem>>, vector<1x1x32xf32>
    %33 = vector.shape_cast %32 : vector<1x1x32xf32> to vector<1x32xf32>
    %c0_56 = arith.constant 0 : index
    %c0_57 = arith.constant 0 : index
    %c0_58 = arith.constant 0 : index
    %34 = vector.load %arg14[%c0_56, %c0_57, %c0_58] : memref<2x1x32xf32, #tpu.memory_space<vmem>>, vector<1x1x32xf32>
    %35 = vector.shape_cast %34 : vector<1x1x32xf32> to vector<1x32xf32>
    %c0_59 = arith.constant 0 : index
    %c0_60 = arith.constant 0 : index
    %c0_61 = arith.constant 0 : index
    %c0_62 = arith.constant 0 : index
    %36 = vector.load %arg15[%c0_59, %c0_60, %c0_61, %c0_62] : memref<2x4x32x8xbf16, #tpu.memory_space<vmem>>, vector<1x4x32x8xbf16>
    %37 = vector.shape_cast %36 : vector<1x4x32x8xbf16> to vector<4x32x8xbf16>
    %c0_63 = arith.constant 0 : index
    %c0_64 = arith.constant 0 : index
    %c0_65 = arith.constant 0 : index
    %c0_66 = arith.constant 0 : index
    %38 = vector.load %arg16[%c0_63, %c0_64, %c0_65, %c0_66] : memref<2x4x1x8xf32, #tpu.memory_space<vmem>>, vector<1x4x1x8xf32>
    %39 = vector.shape_cast %38 : vector<1x4x1x8xf32> to vector<4x1x8xf32>
    %c0_67 = arith.constant 0 : index
    %c0_68 = arith.constant 0 : index
    %c0_69 = arith.constant 0 : index
    %c0_70 = arith.constant 0 : index
    %40 = vector.load %arg17[%c0_67, %c0_68, %c0_69, %c0_70] : memref<2x4x32x8xbf16, #tpu.memory_space<vmem>>, vector<1x4x32x8xbf16>
    %41 = vector.shape_cast %40 : vector<1x4x32x8xbf16> to vector<4x32x8xbf16>
    %c0_71 = arith.constant 0 : index
    %c0_72 = arith.constant 0 : index
    %c0_73 = arith.constant 0 : index
    %c0_74 = arith.constant 0 : index
    %42 = vector.load %arg18[%c0_71, %c0_72, %c0_73, %c0_74] : memref<2x4x1x8xf32, #tpu.memory_space<vmem>>, vector<1x4x1x8xf32>
    %43 = vector.shape_cast %42 : vector<1x4x1x8xf32> to vector<4x1x8xf32>
    %c0_75 = arith.constant 0 : index
    %c0_76 = arith.constant 0 : index
    %c0_77 = arith.constant 0 : index
    %c0_78 = arith.constant 0 : index
    %44 = vector.load %arg19[%c0_75, %c0_76, %c0_77, %c0_78] : memref<2x4x32x8xbf16, #tpu.memory_space<vmem>>, vector<1x4x32x8xbf16>
    %45 = vector.shape_cast %44 : vector<1x4x32x8xbf16> to vector<4x32x8xbf16>
    %c0_79 = arith.constant 0 : index
    %c0_80 = arith.constant 0 : index
    %c0_81 = arith.constant 0 : index
    %c0_82 = arith.constant 0 : index
    %46 = vector.load %arg20[%c0_79, %c0_80, %c0_81, %c0_82] : memref<2x4x1x8xf32, #tpu.memory_space<vmem>>, vector<1x4x1x8xf32>
    %47 = vector.shape_cast %46 : vector<1x4x1x8xf32> to vector<4x1x8xf32>
    %c0_83 = arith.constant 0 : index
    %c0_84 = arith.constant 0 : index
    %c0_85 = arith.constant 0 : index
    %c0_86 = arith.constant 0 : index
    %48 = vector.load %arg21[%c0_83, %c0_84, %c0_85, %c0_86] : memref<2x4x8x32xbf16, #tpu.memory_space<vmem>>, vector<1x4x8x32xbf16>
    %49 = vector.shape_cast %48 : vector<1x4x8x32xbf16> to vector<4x8x32xbf16>
    %c0_87 = arith.constant 0 : index
    %c0_88 = arith.constant 0 : index
    %c0_89 = arith.constant 0 : index
    %50 = vector.load %arg22[%c0_87, %c0_88, %c0_89] : memref<2x1x32xf32, #tpu.memory_space<vmem>>, vector<1x1x32xf32>
    %51 = vector.shape_cast %50 : vector<1x1x32xf32> to vector<1x32xf32>
    %c0_90 = arith.constant 0 : index
    %c0_91 = arith.constant 0 : index
    %c0_92 = arith.constant 0 : index
    %52 = vector.load %arg23[%c0_90, %c0_91, %c0_92] : memref<2x1x32xf32, #tpu.memory_space<vmem>>, vector<1x1x32xf32>
    %53 = vector.shape_cast %52 : vector<1x1x32xf32> to vector<1x32xf32>
    %c0_93 = arith.constant 0 : index
    %c0_94 = arith.constant 0 : index
    %c0_95 = arith.constant 0 : index
    %54 = vector.load %arg24[%c0_93, %c0_94, %c0_95] : memref<2x1x32xf32, #tpu.memory_space<vmem>>, vector<1x1x32xf32>
    %55 = vector.shape_cast %54 : vector<1x1x32xf32> to vector<1x32xf32>
    %c0_96 = arith.constant 0 : index
    %c0_97 = arith.constant 0 : index
    %c0_98 = arith.constant 0 : index
    %56 = vector.load %arg25[%c0_96, %c0_97, %c0_98] : memref<2x32x64xbf16, #tpu.memory_space<vmem>>, vector<1x32x64xbf16>
    %57 = vector.shape_cast %56 : vector<1x32x64xbf16> to vector<32x64xbf16>
    %c0_99 = arith.constant 0 : index
    %c0_100 = arith.constant 0 : index
    %c0_101 = arith.constant 0 : index
    %58 = vector.load %arg26[%c0_99, %c0_100, %c0_101] : memref<2x1x64xf32, #tpu.memory_space<vmem>>, vector<1x1x64xf32>
    %59 = vector.shape_cast %58 : vector<1x1x64xf32> to vector<1x64xf32>
    %c0_102 = arith.constant 0 : index
    %c0_103 = arith.constant 0 : index
    %c0_104 = arith.constant 0 : index
    %60 = vector.load %arg27[%c0_102, %c0_103, %c0_104] : memref<2x64x32xbf16, #tpu.memory_space<vmem>>, vector<1x64x32xbf16>
    %61 = vector.shape_cast %60 : vector<1x64x32xbf16> to vector<64x32xbf16>
    %c0_105 = arith.constant 0 : index
    %c0_106 = arith.constant 0 : index
    %c0_107 = arith.constant 0 : index
    %62 = vector.load %arg28[%c0_105, %c0_106, %c0_107] : memref<2x1x32xf32, #tpu.memory_space<vmem>>, vector<1x1x32xf32>
    %63 = vector.shape_cast %62 : vector<1x1x32xf32> to vector<1x32xf32>
    %c0_108 = arith.constant 0 : index
    %c0_109 = arith.constant 0 : index
    %c0_110 = arith.constant 0 : index
    %64 = vector.load %arg29[%c0_108, %c0_109, %c0_110] : memref<2x1x32xf32, #tpu.memory_space<vmem>>, vector<1x1x32xf32>
    %65 = vector.shape_cast %64 : vector<1x1x32xf32> to vector<1x32xf32>
    %c0_111 = arith.constant 0 : index
    %c0_112 = arith.constant 0 : index
    %c0_113 = arith.constant 0 : index
    %66 = vector.load %arg30[%c0_111, %c0_112, %c0_113] : memref<2x1x32xf32, #tpu.memory_space<vmem>>, vector<1x1x32xf32>
    %67 = vector.shape_cast %66 : vector<1x1x32xf32> to vector<1x32xf32>
    %68 = arith.truncf %1 : vector<8x32xf32> to vector<8x32xbf16>
    %69 = vector.shape_cast %68 : vector<8x32xbf16> to vector<1x8x32xbf16>
    %70 = vector.shape_cast %69 : vector<1x8x32xbf16> to vector<1x8x32xbf16>
    %71 = vector.broadcast %70 : vector<1x8x32xbf16> to vector<4x8x32xbf16>
    "tpu.trace_start"() <{level = 10 : i32, message = "hnd,hdk->hnk"}> : () -> ()
    %cst = arith.constant dense<0.000000e+00> : vector<4x8x8xf32>
    %72 = tpu.matmul %71, %17, %cst {dimension_numbers = #tpu.dot_dimension_numbers<[2], [1], [1], [2], [0, 0, 0, 1, 1, 2], [0], [0]>} : vector<4x8x32xbf16>, vector<4x32x8xbf16>, vector<4x8x8xf32> -> vector<4x8x8xf32>
    "tpu.trace_stop"() : () -> ()
    %73 = vector.broadcast %19 : vector<4x1x8xf32> to vector<4x8x8xf32>
    %74 = arith.addf %72, %73 : vector<4x8x8xf32>
    "tpu.trace_start"() <{level = 10 : i32, message = "hnd,hdk->hnk"}> : () -> ()
    %cst_114 = arith.constant dense<0.000000e+00> : vector<4x8x8xf32>
    %75 = tpu.matmul %71, %21, %cst_114 {dimension_numbers = #tpu.dot_dimension_numbers<[2], [1], [1], [2], [0, 0, 0, 1, 1, 2], [0], [0]>} : vector<4x8x32xbf16>, vector<4x32x8xbf16>, vector<4x8x8xf32> -> vector<4x8x8xf32>
    "tpu.trace_stop"() : () -> ()
    %76 = vector.broadcast %23 : vector<4x1x8xf32> to vector<4x8x8xf32>
    %77 = arith.addf %75, %76 : vector<4x8x8xf32>
    "tpu.trace_start"() <{level = 10 : i32, message = "hnd,hdk->hnk"}> : () -> ()
    %cst_115 = arith.constant dense<0.000000e+00> : vector<4x8x8xf32>
    %78 = tpu.matmul %71, %25, %cst_115 {dimension_numbers = #tpu.dot_dimension_numbers<[2], [1], [1], [2], [0, 0, 0, 1, 1, 2], [0], [0]>} : vector<4x8x32xbf16>, vector<4x32x8xbf16>, vector<4x8x8xf32> -> vector<4x8x8xf32>
    "tpu.trace_stop"() : () -> ()
    %79 = vector.broadcast %27 : vector<4x1x8xf32> to vector<4x8x8xf32>
    %80 = arith.addf %78, %79 : vector<4x8x8xf32>
    %81 = arith.truncf %74 : vector<4x8x8xf32> to vector<4x8x8xbf16>
    %82 = arith.truncf %77 : vector<4x8x8xf32> to vector<4x8x8xbf16>
    "tpu.trace_start"() <{level = 10 : i32, message = "hqd,hkd->hqk"}> : () -> ()
    %cst_116 = arith.constant dense<0.000000e+00> : vector<4x8x8xf32>
    %83 = tpu.matmul %81, %82, %cst_116 {dimension_numbers = #tpu.dot_dimension_numbers<[2], [2], [1], [1], [0, 0, 0, 1, 1, 1], [0], [0]>} : vector<4x8x8xbf16>, vector<4x8x8xbf16>, vector<4x8x8xf32> -> vector<4x8x8xf32>
    "tpu.trace_stop"() : () -> ()
    %cst_117 = arith.constant 0.353553385 : f32
    %84 = vector.broadcast %cst_117 : f32 to vector<4x8x8xf32>
    %85 = arith.mulf %83, %84 : vector<4x8x8xf32>
    %86 = vector.shape_cast %9 : vector<8x8xf32> to vector<1x8x8xf32>
    %87 = vector.broadcast %86 : vector<1x8x8xf32> to vector<4x8x8xf32>
    %88 = arith.addf %85, %87 : vector<4x8x8xf32>
    %cst_118 = arith.constant dense<0xFF800000> : vector<4x8xf32>
    %89 = vector.multi_reduction <maximumf>, %88, %cst_118 [2] : vector<4x8x8xf32> to vector<4x8xf32>
    %90 = vector.shape_cast %89 : vector<4x8xf32> to vector<4x8x1xf32>
    %91 = vector.broadcast %90 : vector<4x8x1xf32> to vector<4x8x8xf32>
    %92 = arith.subf %88, %91 : vector<4x8x8xf32>
    %93 = math.exp %92 : vector<4x8x8xf32>
    %cst_119 = arith.constant dense<0.000000e+00> : vector<4x8xf32>
    %94 = vector.multi_reduction <add>, %93, %cst_119 [2] : vector<4x8x8xf32> to vector<4x8xf32>
    %95 = vector.shape_cast %94 : vector<4x8xf32> to vector<4x8x1xf32>
    %96 = tpu.reciprocal %95 {approx = true} : vector<4x8x1xf32> -> vector<4x8x1xf32>
    %97 = vector.broadcast %96 : vector<4x8x1xf32> to vector<4x8x8xf32>
    %98 = arith.mulf %93, %97 : vector<4x8x8xf32>
    %99 = arith.truncf %98 : vector<4x8x8xf32> to vector<4x8x8xbf16>
    %100 = arith.truncf %80 : vector<4x8x8xf32> to vector<4x8x8xbf16>
    "tpu.trace_start"() <{level = 10 : i32, message = "hqk,hkd->hqd"}> : () -> ()
    %cst_120 = arith.constant dense<0.000000e+00> : vector<4x8x8xf32>
    %101 = tpu.matmul %99, %100, %cst_120 {dimension_numbers = #tpu.dot_dimension_numbers<[2], [1], [1], [2], [0, 0, 0, 1, 1, 2], [0], [0]>} : vector<4x8x8xbf16>, vector<4x8x8xbf16>, vector<4x8x8xf32> -> vector<4x8x8xf32>
    "tpu.trace_stop"() : () -> ()
    %102 = arith.truncf %101 : vector<4x8x8xf32> to vector<4x8x8xbf16>
    "tpu.trace_start"() <{level = 10 : i32, message = "hqd,hde->hqe"}> : () -> ()
    %cst_121 = arith.constant dense<0.000000e+00> : vector<4x8x32xf32>
    %103 = tpu.matmul %102, %29, %cst_121 {dimension_numbers = #tpu.dot_dimension_numbers<[2], [1], [1], [2], [0, 0, 0, 1, 1, 2], [0], [0]>} : vector<4x8x8xbf16>, vector<4x8x32xbf16>, vector<4x8x32xf32> -> vector<4x8x32xf32>
    "tpu.trace_stop"() : () -> ()
    %cst_122 = arith.constant dense<0.000000e+00> : vector<8x32xf32>
    %104 = vector.multi_reduction <add>, %103, %cst_122 [0] : vector<4x8x32xf32> to vector<8x32xf32>
    %105 = vector.broadcast %31 : vector<1x32xf32> to vector<8x32xf32>
    %106 = arith.addf %104, %105 : vector<8x32xf32>
    %107 = arith.addf %1, %106 : vector<8x32xf32>
    %cst_123 = arith.constant dense<0.000000e+00> : vector<8xf32>
    %108 = vector.multi_reduction <add>, %107, %cst_123 [1] : vector<8x32xf32> to vector<8xf32>
    %109 = vector.shape_cast %108 : vector<8xf32> to vector<8x1xf32>
    %cst_124 = arith.constant 3.200000e+01 : f32
    %110 = vector.broadcast %cst_124 : f32 to vector<8x1xf32>
    %111 = arith.divf %109, %110 : vector<8x1xf32>
    %112 = vector.broadcast %111 : vector<8x1xf32> to vector<8x32xf32>
    %113 = arith.subf %107, %112 : vector<8x32xf32>
    %114 = arith.mulf %113, %113 : vector<8x32xf32>
    %cst_125 = arith.constant dense<0.000000e+00> : vector<8xf32>
    %115 = vector.multi_reduction <add>, %114, %cst_125 [1] : vector<8x32xf32> to vector<8xf32>
    %116 = vector.shape_cast %115 : vector<8xf32> to vector<8x1xf32>
    %cst_126 = arith.constant 3.200000e+01 : f32
    %117 = vector.broadcast %cst_126 : f32 to vector<8x1xf32>
    %118 = arith.divf %116, %117 : vector<8x1xf32>
    %119 = vector.broadcast %111 : vector<8x1xf32> to vector<8x32xf32>
    %120 = arith.subf %107, %119 : vector<8x32xf32>
    %cst_127 = arith.constant 9.99999997E-7 : f32
    %121 = vector.broadcast %cst_127 : f32 to vector<8x1xf32>
    %122 = arith.addf %118, %121 : vector<8x1xf32>
    %123 = math.rsqrt %122 : vector<8x1xf32>
    %124 = vector.broadcast %123 : vector<8x1xf32> to vector<8x32xf32>
    %125 = arith.mulf %120, %124 : vector<8x32xf32>
    %126 = vector.broadcast %33 : vector<1x32xf32> to vector<8x32xf32>
    %127 = arith.mulf %125, %126 : vector<8x32xf32>
    %128 = vector.broadcast %35 : vector<1x32xf32> to vector<8x32xf32>
    %129 = arith.addf %127, %128 : vector<8x32xf32>
    %130 = arith.truncf %129 : vector<8x32xf32> to vector<8x32xbf16>
    %131 = vector.shape_cast %130 : vector<8x32xbf16> to vector<1x8x32xbf16>
    %132 = vector.shape_cast %131 : vector<1x8x32xbf16> to vector<1x8x32xbf16>
    %133 = vector.broadcast %132 : vector<1x8x32xbf16> to vector<4x8x32xbf16>
    %134 = arith.truncf %5 : vector<8x32xf32> to vector<8x32xbf16>
    %135 = vector.shape_cast %134 : vector<8x32xbf16> to vector<1x8x32xbf16>
    %136 = vector.shape_cast %135 : vector<1x8x32xbf16> to vector<1x8x32xbf16>
    %137 = vector.broadcast %136 : vector<1x8x32xbf16> to vector<4x8x32xbf16>
    "tpu.trace_start"() <{level = 10 : i32, message = "hnd,hdk->hnk"}> : () -> ()
    %cst_128 = arith.constant dense<0.000000e+00> : vector<4x8x8xf32>
    %138 = tpu.matmul %133, %37, %cst_128 {dimension_numbers = #tpu.dot_dimension_numbers<[2], [1], [1], [2], [0, 0, 0, 1, 1, 2], [0], [0]>} : vector<4x8x32xbf16>, vector<4x32x8xbf16>, vector<4x8x8xf32> -> vector<4x8x8xf32>
    "tpu.trace_stop"() : () -> ()
    %139 = vector.broadcast %39 : vector<4x1x8xf32> to vector<4x8x8xf32>
    %140 = arith.addf %138, %139 : vector<4x8x8xf32>
    "tpu.trace_start"() <{level = 10 : i32, message = "hnd,hdk->hnk"}> : () -> ()
    %cst_129 = arith.constant dense<0.000000e+00> : vector<4x8x8xf32>
    %141 = tpu.matmul %137, %41, %cst_129 {dimension_numbers = #tpu.dot_dimension_numbers<[2], [1], [1], [2], [0, 0, 0, 1, 1, 2], [0], [0]>} : vector<4x8x32xbf16>, vector<4x32x8xbf16>, vector<4x8x8xf32> -> vector<4x8x8xf32>
    "tpu.trace_stop"() : () -> ()
    %142 = vector.broadcast %43 : vector<4x1x8xf32> to vector<4x8x8xf32>
    %143 = arith.addf %141, %142 : vector<4x8x8xf32>
    "tpu.trace_start"() <{level = 10 : i32, message = "hnd,hdk->hnk"}> : () -> ()
    %cst_130 = arith.constant dense<0.000000e+00> : vector<4x8x8xf32>
    %144 = tpu.matmul %137, %45, %cst_130 {dimension_numbers = #tpu.dot_dimension_numbers<[2], [1], [1], [2], [0, 0, 0, 1, 1, 2], [0], [0]>} : vector<4x8x32xbf16>, vector<4x32x8xbf16>, vector<4x8x8xf32> -> vector<4x8x8xf32>
    "tpu.trace_stop"() : () -> ()
    %145 = vector.broadcast %47 : vector<4x1x8xf32> to vector<4x8x8xf32>
    %146 = arith.addf %144, %145 : vector<4x8x8xf32>
    %147 = arith.truncf %140 : vector<4x8x8xf32> to vector<4x8x8xbf16>
    %148 = arith.truncf %143 : vector<4x8x8xf32> to vector<4x8x8xbf16>
    "tpu.trace_start"() <{level = 10 : i32, message = "hqd,hkd->hqk"}> : () -> ()
    %cst_131 = arith.constant dense<0.000000e+00> : vector<4x8x8xf32>
    %149 = tpu.matmul %147, %148, %cst_131 {dimension_numbers = #tpu.dot_dimension_numbers<[2], [2], [1], [1], [0, 0, 0, 1, 1, 1], [0], [0]>} : vector<4x8x8xbf16>, vector<4x8x8xbf16>, vector<4x8x8xf32> -> vector<4x8x8xf32>
    "tpu.trace_stop"() : () -> ()
    %cst_132 = arith.constant 0.353553385 : f32
    %150 = vector.broadcast %cst_132 : f32 to vector<4x8x8xf32>
    %151 = arith.mulf %149, %150 : vector<4x8x8xf32>
    %152 = vector.shape_cast %13 : vector<8x8xf32> to vector<1x8x8xf32>
    %153 = vector.broadcast %152 : vector<1x8x8xf32> to vector<4x8x8xf32>
    %154 = arith.addf %151, %153 : vector<4x8x8xf32>
    %cst_133 = arith.constant dense<0xFF800000> : vector<4x8xf32>
    %155 = vector.multi_reduction <maximumf>, %154, %cst_133 [2] : vector<4x8x8xf32> to vector<4x8xf32>
    %156 = vector.shape_cast %155 : vector<4x8xf32> to vector<4x8x1xf32>
    %157 = vector.broadcast %156 : vector<4x8x1xf32> to vector<4x8x8xf32>
    %158 = arith.subf %154, %157 : vector<4x8x8xf32>
    %159 = math.exp %158 : vector<4x8x8xf32>
    %cst_134 = arith.constant dense<0.000000e+00> : vector<4x8xf32>
    %160 = vector.multi_reduction <add>, %159, %cst_134 [2] : vector<4x8x8xf32> to vector<4x8xf32>
    %161 = vector.shape_cast %160 : vector<4x8xf32> to vector<4x8x1xf32>
    %162 = tpu.reciprocal %161 {approx = true} : vector<4x8x1xf32> -> vector<4x8x1xf32>
    %163 = vector.broadcast %162 : vector<4x8x1xf32> to vector<4x8x8xf32>
    %164 = arith.mulf %159, %163 : vector<4x8x8xf32>
    %165 = arith.truncf %164 : vector<4x8x8xf32> to vector<4x8x8xbf16>
    %166 = arith.truncf %146 : vector<4x8x8xf32> to vector<4x8x8xbf16>
    "tpu.trace_start"() <{level = 10 : i32, message = "hqk,hkd->hqd"}> : () -> ()
    %cst_135 = arith.constant dense<0.000000e+00> : vector<4x8x8xf32>
    %167 = tpu.matmul %165, %166, %cst_135 {dimension_numbers = #tpu.dot_dimension_numbers<[2], [1], [1], [2], [0, 0, 0, 1, 1, 2], [0], [0]>} : vector<4x8x8xbf16>, vector<4x8x8xbf16>, vector<4x8x8xf32> -> vector<4x8x8xf32>
    "tpu.trace_stop"() : () -> ()
    %168 = arith.truncf %167 : vector<4x8x8xf32> to vector<4x8x8xbf16>
    "tpu.trace_start"() <{level = 10 : i32, message = "hqd,hde->hqe"}> : () -> ()
    %cst_136 = arith.constant dense<0.000000e+00> : vector<4x8x32xf32>
    %169 = tpu.matmul %168, %49, %cst_136 {dimension_numbers = #tpu.dot_dimension_numbers<[2], [1], [1], [2], [0, 0, 0, 1, 1, 2], [0], [0]>} : vector<4x8x8xbf16>, vector<4x8x32xbf16>, vector<4x8x32xf32> -> vector<4x8x32xf32>
    "tpu.trace_stop"() : () -> ()
    %cst_137 = arith.constant dense<0.000000e+00> : vector<8x32xf32>
    %170 = vector.multi_reduction <add>, %169, %cst_137 [0] : vector<4x8x32xf32> to vector<8x32xf32>
    %171 = vector.broadcast %51 : vector<1x32xf32> to vector<8x32xf32>
    %172 = arith.addf %170, %171 : vector<8x32xf32>
    %173 = arith.addf %129, %172 : vector<8x32xf32>
    %cst_138 = arith.constant dense<0.000000e+00> : vector<8xf32>
    %174 = vector.multi_reduction <add>, %173, %cst_138 [1] : vector<8x32xf32> to vector<8xf32>
    %175 = vector.shape_cast %174 : vector<8xf32> to vector<8x1xf32>
    %cst_139 = arith.constant 3.200000e+01 : f32
    %176 = vector.broadcast %cst_139 : f32 to vector<8x1xf32>
    %177 = arith.divf %175, %176 : vector<8x1xf32>
    %178 = vector.broadcast %177 : vector<8x1xf32> to vector<8x32xf32>
    %179 = arith.subf %173, %178 : vector<8x32xf32>
    %180 = arith.mulf %179, %179 : vector<8x32xf32>
    %cst_140 = arith.constant dense<0.000000e+00> : vector<8xf32>
    %181 = vector.multi_reduction <add>, %180, %cst_140 [1] : vector<8x32xf32> to vector<8xf32>
    %182 = vector.shape_cast %181 : vector<8xf32> to vector<8x1xf32>
    %cst_141 = arith.constant 3.200000e+01 : f32
    %183 = vector.broadcast %cst_141 : f32 to vector<8x1xf32>
    %184 = arith.divf %182, %183 : vector<8x1xf32>
    %185 = vector.broadcast %177 : vector<8x1xf32> to vector<8x32xf32>
    %186 = arith.subf %173, %185 : vector<8x32xf32>
    %cst_142 = arith.constant 9.99999997E-7 : f32
    %187 = vector.broadcast %cst_142 : f32 to vector<8x1xf32>
    %188 = arith.addf %184, %187 : vector<8x1xf32>
    %189 = math.rsqrt %188 : vector<8x1xf32>
    %190 = vector.broadcast %189 : vector<8x1xf32> to vector<8x32xf32>
    %191 = arith.mulf %186, %190 : vector<8x32xf32>
    %192 = vector.broadcast %53 : vector<1x32xf32> to vector<8x32xf32>
    %193 = arith.mulf %191, %192 : vector<8x32xf32>
    %194 = vector.broadcast %55 : vector<1x32xf32> to vector<8x32xf32>
    %195 = arith.addf %193, %194 : vector<8x32xf32>
    %196 = arith.truncf %195 : vector<8x32xf32> to vector<8x32xbf16>
    %cst_143 = arith.constant dense<0.000000e+00> : vector<8x64xf32>
    %197 = tpu.matmul %196, %57, %cst_143 {dimension_numbers = #tpu.dot_dimension_numbers<[1], [0], [0], [1], [0, 0, 1, 1], [], []>} : vector<8x32xbf16>, vector<32x64xbf16>, vector<8x64xf32> -> vector<8x64xf32>
    %198 = vector.broadcast %59 : vector<1x64xf32> to vector<8x64xf32>
    %199 = arith.addf %197, %198 : vector<8x64xf32>
    %cst_144 = arith.constant 0.000000e+00 : f32
    %200 = vector.broadcast %cst_144 : f32 to vector<8x64xf32>
    %201 = arith.maximumf %199, %200 : vector<8x64xf32>
    %202 = arith.truncf %201 : vector<8x64xf32> to vector<8x64xbf16>
    %cst_145 = arith.constant dense<0.000000e+00> : vector<8x32xf32>
    %203 = tpu.matmul %202, %61, %cst_145 {dimension_numbers = #tpu.dot_dimension_numbers<[1], [0], [0], [1], [0, 0, 1, 1], [], []>} : vector<8x64xbf16>, vector<64x32xbf16>, vector<8x32xf32> -> vector<8x32xf32>
    %204 = vector.broadcast %63 : vector<1x32xf32> to vector<8x32xf32>
    %205 = arith.addf %203, %204 : vector<8x32xf32>
    %206 = arith.addf %195, %205 : vector<8x32xf32>
    %cst_146 = arith.constant dense<0.000000e+00> : vector<8xf32>
    %207 = vector.multi_reduction <add>, %206, %cst_146 [1] : vector<8x32xf32> to vector<8xf32>
    %208 = vector.shape_cast %207 : vector<8xf32> to vector<8x1xf32>
    %cst_147 = arith.constant 3.200000e+01 : f32
    %209 = vector.broadcast %cst_147 : f32 to vector<8x1xf32>
    %210 = arith.divf %208, %209 : vector<8x1xf32>
    %211 = vector.broadcast %210 : vector<8x1xf32> to vector<8x32xf32>
    %212 = arith.subf %206, %211 : vector<8x32xf32>
    %213 = arith.mulf %212, %212 : vector<8x32xf32>
    %cst_148 = arith.constant dense<0.000000e+00> : vector<8xf32>
    %214 = vector.multi_reduction <add>, %213, %cst_148 [1] : vector<8x32xf32> to vector<8xf32>
    %215 = vector.shape_cast %214 : vector<8xf32> to vector<8x1xf32>
    %cst_149 = arith.constant 3.200000e+01 : f32
    %216 = vector.broadcast %cst_149 : f32 to vector<8x1xf32>
    %217 = arith.divf %215, %216 : vector<8x1xf32>
    %218 = vector.broadcast %210 : vector<8x1xf32> to vector<8x32xf32>
    %219 = arith.subf %206, %218 : vector<8x32xf32>
    %cst_150 = arith.constant 9.99999997E-7 : f32
    %220 = vector.broadcast %cst_150 : f32 to vector<8x1xf32>
    %221 = arith.addf %217, %220 : vector<8x1xf32>
    %222 = math.rsqrt %221 : vector<8x1xf32>
    %223 = vector.broadcast %222 : vector<8x1xf32> to vector<8x32xf32>
    %224 = arith.mulf %219, %223 : vector<8x32xf32>
    %225 = vector.broadcast %65 : vector<1x32xf32> to vector<8x32xf32>
    %226 = arith.mulf %224, %225 : vector<8x32xf32>
    %227 = vector.broadcast %67 : vector<1x32xf32> to vector<8x32xf32>
    %228 = arith.addf %226, %227 : vector<8x32xf32>
    %229 = arith.truncf %3 : vector<8x32xf32> to vector<8x32xbf16>
    %230 = vector.shape_cast %229 : vector<8x32xbf16> to vector<1x8x32xbf16>
    %231 = vector.shape_cast %230 : vector<1x8x32xbf16> to vector<1x8x32xbf16>
    %232 = vector.broadcast %231 : vector<1x8x32xbf16> to vector<4x8x32xbf16>
    "tpu.trace_start"() <{level = 10 : i32, message = "hnd,hdk->hnk"}> : () -> ()
    %cst_151 = arith.constant dense<0.000000e+00> : vector<4x8x8xf32>
    %233 = tpu.matmul %232, %17, %cst_151 {dimension_numbers = #tpu.dot_dimension_numbers<[2], [1], [1], [2], [0, 0, 0, 1, 1, 2], [0], [0]>} : vector<4x8x32xbf16>, vector<4x32x8xbf16>, vector<4x8x8xf32> -> vector<4x8x8xf32>
    "tpu.trace_stop"() : () -> ()
    %234 = vector.broadcast %19 : vector<4x1x8xf32> to vector<4x8x8xf32>
    %235 = arith.addf %233, %234 : vector<4x8x8xf32>
    "tpu.trace_start"() <{level = 10 : i32, message = "hnd,hdk->hnk"}> : () -> ()
    %cst_152 = arith.constant dense<0.000000e+00> : vector<4x8x8xf32>
    %236 = tpu.matmul %232, %21, %cst_152 {dimension_numbers = #tpu.dot_dimension_numbers<[2], [1], [1], [2], [0, 0, 0, 1, 1, 2], [0], [0]>} : vector<4x8x32xbf16>, vector<4x32x8xbf16>, vector<4x8x8xf32> -> vector<4x8x8xf32>
    "tpu.trace_stop"() : () -> ()
    %237 = vector.broadcast %23 : vector<4x1x8xf32> to vector<4x8x8xf32>
    %238 = arith.addf %236, %237 : vector<4x8x8xf32>
    "tpu.trace_start"() <{level = 10 : i32, message = "hnd,hdk->hnk"}> : () -> ()
    %cst_153 = arith.constant dense<0.000000e+00> : vector<4x8x8xf32>
    %239 = tpu.matmul %232, %25, %cst_153 {dimension_numbers = #tpu.dot_dimension_numbers<[2], [1], [1], [2], [0, 0, 0, 1, 1, 2], [0], [0]>} : vector<4x8x32xbf16>, vector<4x32x8xbf16>, vector<4x8x8xf32> -> vector<4x8x8xf32>
    "tpu.trace_stop"() : () -> ()
    %240 = vector.broadcast %27 : vector<4x1x8xf32> to vector<4x8x8xf32>
    %241 = arith.addf %239, %240 : vector<4x8x8xf32>
    %242 = arith.truncf %235 : vector<4x8x8xf32> to vector<4x8x8xbf16>
    %243 = arith.truncf %238 : vector<4x8x8xf32> to vector<4x8x8xbf16>
    "tpu.trace_start"() <{level = 10 : i32, message = "hqd,hkd->hqk"}> : () -> ()
    %cst_154 = arith.constant dense<0.000000e+00> : vector<4x8x8xf32>
    %244 = tpu.matmul %242, %243, %cst_154 {dimension_numbers = #tpu.dot_dimension_numbers<[2], [2], [1], [1], [0, 0, 0, 1, 1, 1], [0], [0]>} : vector<4x8x8xbf16>, vector<4x8x8xbf16>, vector<4x8x8xf32> -> vector<4x8x8xf32>
    "tpu.trace_stop"() : () -> ()
    %cst_155 = arith.constant 0.353553385 : f32
    %245 = vector.broadcast %cst_155 : f32 to vector<4x8x8xf32>
    %246 = arith.mulf %244, %245 : vector<4x8x8xf32>
    %247 = vector.shape_cast %11 : vector<8x8xf32> to vector<1x8x8xf32>
    %248 = vector.broadcast %247 : vector<1x8x8xf32> to vector<4x8x8xf32>
    %249 = arith.addf %246, %248 : vector<4x8x8xf32>
    %cst_156 = arith.constant dense<0xFF800000> : vector<4x8xf32>
    %250 = vector.multi_reduction <maximumf>, %249, %cst_156 [2] : vector<4x8x8xf32> to vector<4x8xf32>
    %251 = vector.shape_cast %250 : vector<4x8xf32> to vector<4x8x1xf32>
    %252 = vector.broadcast %251 : vector<4x8x1xf32> to vector<4x8x8xf32>
    %253 = arith.subf %249, %252 : vector<4x8x8xf32>
    %254 = math.exp %253 : vector<4x8x8xf32>
    %cst_157 = arith.constant dense<0.000000e+00> : vector<4x8xf32>
    %255 = vector.multi_reduction <add>, %254, %cst_157 [2] : vector<4x8x8xf32> to vector<4x8xf32>
    %256 = vector.shape_cast %255 : vector<4x8xf32> to vector<4x8x1xf32>
    %257 = tpu.reciprocal %256 {approx = true} : vector<4x8x1xf32> -> vector<4x8x1xf32>
    %258 = vector.broadcast %257 : vector<4x8x1xf32> to vector<4x8x8xf32>
    %259 = arith.mulf %254, %258 : vector<4x8x8xf32>
    %260 = arith.truncf %259 : vector<4x8x8xf32> to vector<4x8x8xbf16>
    %261 = arith.truncf %241 : vector<4x8x8xf32> to vector<4x8x8xbf16>
    "tpu.trace_start"() <{level = 10 : i32, message = "hqk,hkd->hqd"}> : () -> ()
    %cst_158 = arith.constant dense<0.000000e+00> : vector<4x8x8xf32>
    %262 = tpu.matmul %260, %261, %cst_158 {dimension_numbers = #tpu.dot_dimension_numbers<[2], [1], [1], [2], [0, 0, 0, 1, 1, 2], [0], [0]>} : vector<4x8x8xbf16>, vector<4x8x8xbf16>, vector<4x8x8xf32> -> vector<4x8x8xf32>
    "tpu.trace_stop"() : () -> ()
    %263 = arith.truncf %262 : vector<4x8x8xf32> to vector<4x8x8xbf16>
    "tpu.trace_start"() <{level = 10 : i32, message = "hqd,hde->hqe"}> : () -> ()
    %cst_159 = arith.constant dense<0.000000e+00> : vector<4x8x32xf32>
    %264 = tpu.matmul %263, %29, %cst_159 {dimension_numbers = #tpu.dot_dimension_numbers<[2], [1], [1], [2], [0, 0, 0, 1, 1, 2], [0], [0]>} : vector<4x8x8xbf16>, vector<4x8x32xbf16>, vector<4x8x32xf32> -> vector<4x8x32xf32>
    "tpu.trace_stop"() : () -> ()
    %cst_160 = arith.constant dense<0.000000e+00> : vector<8x32xf32>
    %265 = vector.multi_reduction <add>, %264, %cst_160 [0] : vector<4x8x32xf32> to vector<8x32xf32>
    %266 = vector.broadcast %31 : vector<1x32xf32> to vector<8x32xf32>
    %267 = arith.addf %265, %266 : vector<8x32xf32>
    %268 = arith.addf %3, %267 : vector<8x32xf32>
    %cst_161 = arith.constant dense<0.000000e+00> : vector<8xf32>
    %269 = vector.multi_reduction <add>, %268, %cst_161 [1] : vector<8x32xf32> to vector<8xf32>
    %270 = vector.shape_cast %269 : vector<8xf32> to vector<8x1xf32>
    %cst_162 = arith.constant 3.200000e+01 : f32
    %271 = vector.broadcast %cst_162 : f32 to vector<8x1xf32>
    %272 = arith.divf %270, %271 : vector<8x1xf32>
    %273 = vector.broadcast %272 : vector<8x1xf32> to vector<8x32xf32>
    %274 = arith.subf %268, %273 : vector<8x32xf32>
    %275 = arith.mulf %274, %274 : vector<8x32xf32>
    %cst_163 = arith.constant dense<0.000000e+00> : vector<8xf32>
    %276 = vector.multi_reduction <add>, %275, %cst_163 [1] : vector<8x32xf32> to vector<8xf32>
    %277 = vector.shape_cast %276 : vector<8xf32> to vector<8x1xf32>
    %cst_164 = arith.constant 3.200000e+01 : f32
    %278 = vector.broadcast %cst_164 : f32 to vector<8x1xf32>
    %279 = arith.divf %277, %278 : vector<8x1xf32>
    %280 = vector.broadcast %272 : vector<8x1xf32> to vector<8x32xf32>
    %281 = arith.subf %268, %280 : vector<8x32xf32>
    %cst_165 = arith.constant 9.99999997E-7 : f32
    %282 = vector.broadcast %cst_165 : f32 to vector<8x1xf32>
    %283 = arith.addf %279, %282 : vector<8x1xf32>
    %284 = math.rsqrt %283 : vector<8x1xf32>
    %285 = vector.broadcast %284 : vector<8x1xf32> to vector<8x32xf32>
    %286 = arith.mulf %281, %285 : vector<8x32xf32>
    %287 = vector.broadcast %33 : vector<1x32xf32> to vector<8x32xf32>
    %288 = arith.mulf %286, %287 : vector<8x32xf32>
    %289 = vector.broadcast %35 : vector<1x32xf32> to vector<8x32xf32>
    %290 = arith.addf %288, %289 : vector<8x32xf32>
    %291 = arith.truncf %290 : vector<8x32xf32> to vector<8x32xbf16>
    %292 = vector.shape_cast %291 : vector<8x32xbf16> to vector<1x8x32xbf16>
    %293 = vector.shape_cast %292 : vector<1x8x32xbf16> to vector<1x8x32xbf16>
    %294 = vector.broadcast %293 : vector<1x8x32xbf16> to vector<4x8x32xbf16>
    %295 = arith.truncf %7 : vector<8x32xf32> to vector<8x32xbf16>
    %296 = vector.shape_cast %295 : vector<8x32xbf16> to vector<1x8x32xbf16>
    %297 = vector.shape_cast %296 : vector<1x8x32xbf16> to vector<1x8x32xbf16>
    %298 = vector.broadcast %297 : vector<1x8x32xbf16> to vector<4x8x32xbf16>
    "tpu.trace_start"() <{level = 10 : i32, message = "hnd,hdk->hnk"}> : () -> ()
    %cst_166 = arith.constant dense<0.000000e+00> : vector<4x8x8xf32>
    %299 = tpu.matmul %294, %37, %cst_166 {dimension_numbers = #tpu.dot_dimension_numbers<[2], [1], [1], [2], [0, 0, 0, 1, 1, 2], [0], [0]>} : vector<4x8x32xbf16>, vector<4x32x8xbf16>, vector<4x8x8xf32> -> vector<4x8x8xf32>
    "tpu.trace_stop"() : () -> ()
    %300 = vector.broadcast %39 : vector<4x1x8xf32> to vector<4x8x8xf32>
    %301 = arith.addf %299, %300 : vector<4x8x8xf32>
    "tpu.trace_start"() <{level = 10 : i32, message = "hnd,hdk->hnk"}> : () -> ()
    %cst_167 = arith.constant dense<0.000000e+00> : vector<4x8x8xf32>
    %302 = tpu.matmul %298, %41, %cst_167 {dimension_numbers = #tpu.dot_dimension_numbers<[2], [1], [1], [2], [0, 0, 0, 1, 1, 2], [0], [0]>} : vector<4x8x32xbf16>, vector<4x32x8xbf16>, vector<4x8x8xf32> -> vector<4x8x8xf32>
    "tpu.trace_stop"() : () -> ()
    %303 = vector.broadcast %43 : vector<4x1x8xf32> to vector<4x8x8xf32>
    %304 = arith.addf %302, %303 : vector<4x8x8xf32>
    "tpu.trace_start"() <{level = 10 : i32, message = "hnd,hdk->hnk"}> : () -> ()
    %cst_168 = arith.constant dense<0.000000e+00> : vector<4x8x8xf32>
    %305 = tpu.matmul %298, %45, %cst_168 {dimension_numbers = #tpu.dot_dimension_numbers<[2], [1], [1], [2], [0, 0, 0, 1, 1, 2], [0], [0]>} : vector<4x8x32xbf16>, vector<4x32x8xbf16>, vector<4x8x8xf32> -> vector<4x8x8xf32>
    "tpu.trace_stop"() : () -> ()
    %306 = vector.broadcast %47 : vector<4x1x8xf32> to vector<4x8x8xf32>
    %307 = arith.addf %305, %306 : vector<4x8x8xf32>
    %308 = arith.truncf %301 : vector<4x8x8xf32> to vector<4x8x8xbf16>
    %309 = arith.truncf %304 : vector<4x8x8xf32> to vector<4x8x8xbf16>
    "tpu.trace_start"() <{level = 10 : i32, message = "hqd,hkd->hqk"}> : () -> ()
    %cst_169 = arith.constant dense<0.000000e+00> : vector<4x8x8xf32>
    %310 = tpu.matmul %308, %309, %cst_169 {dimension_numbers = #tpu.dot_dimension_numbers<[2], [2], [1], [1], [0, 0, 0, 1, 1, 1], [0], [0]>} : vector<4x8x8xbf16>, vector<4x8x8xbf16>, vector<4x8x8xf32> -> vector<4x8x8xf32>
    "tpu.trace_stop"() : () -> ()
    %cst_170 = arith.constant 0.353553385 : f32
    %311 = vector.broadcast %cst_170 : f32 to vector<4x8x8xf32>
    %312 = arith.mulf %310, %311 : vector<4x8x8xf32>
    %313 = vector.shape_cast %15 : vector<8x8xf32> to vector<1x8x8xf32>
    %314 = vector.broadcast %313 : vector<1x8x8xf32> to vector<4x8x8xf32>
    %315 = arith.addf %312, %314 : vector<4x8x8xf32>
    %cst_171 = arith.constant dense<0xFF800000> : vector<4x8xf32>
    %316 = vector.multi_reduction <maximumf>, %315, %cst_171 [2] : vector<4x8x8xf32> to vector<4x8xf32>
    %317 = vector.shape_cast %316 : vector<4x8xf32> to vector<4x8x1xf32>
    %318 = vector.broadcast %317 : vector<4x8x1xf32> to vector<4x8x8xf32>
    %319 = arith.subf %315, %318 : vector<4x8x8xf32>
    %320 = math.exp %319 : vector<4x8x8xf32>
    %cst_172 = arith.constant dense<0.000000e+00> : vector<4x8xf32>
    %321 = vector.multi_reduction <add>, %320, %cst_172 [2] : vector<4x8x8xf32> to vector<4x8xf32>
    %322 = vector.shape_cast %321 : vector<4x8xf32> to vector<4x8x1xf32>
    %323 = tpu.reciprocal %322 {approx = true} : vector<4x8x1xf32> -> vector<4x8x1xf32>
    %324 = vector.broadcast %323 : vector<4x8x1xf32> to vector<4x8x8xf32>
    %325 = arith.mulf %320, %324 : vector<4x8x8xf32>
    %326 = arith.truncf %325 : vector<4x8x8xf32> to vector<4x8x8xbf16>
    %327 = arith.truncf %307 : vector<4x8x8xf32> to vector<4x8x8xbf16>
    "tpu.trace_start"() <{level = 10 : i32, message = "hqk,hkd->hqd"}> : () -> ()
    %cst_173 = arith.constant dense<0.000000e+00> : vector<4x8x8xf32>
    %328 = tpu.matmul %326, %327, %cst_173 {dimension_numbers = #tpu.dot_dimension_numbers<[2], [1], [1], [2], [0, 0, 0, 1, 1, 2], [0], [0]>} : vector<4x8x8xbf16>, vector<4x8x8xbf16>, vector<4x8x8xf32> -> vector<4x8x8xf32>
    "tpu.trace_stop"() : () -> ()
    %329 = arith.truncf %328 : vector<4x8x8xf32> to vector<4x8x8xbf16>
    "tpu.trace_start"() <{level = 10 : i32, message = "hqd,hde->hqe"}> : () -> ()
    %cst_174 = arith.constant dense<0.000000e+00> : vector<4x8x32xf32>
    %330 = tpu.matmul %329, %49, %cst_174 {dimension_numbers = #tpu.dot_dimension_numbers<[2], [1], [1], [2], [0, 0, 0, 1, 1, 2], [0], [0]>} : vector<4x8x8xbf16>, vector<4x8x32xbf16>, vector<4x8x32xf32> -> vector<4x8x32xf32>
    "tpu.trace_stop"() : () -> ()
    %cst_175 = arith.constant dense<0.000000e+00> : vector<8x32xf32>
    %331 = vector.multi_reduction <add>, %330, %cst_175 [0] : vector<4x8x32xf32> to vector<8x32xf32>
    %332 = vector.broadcast %51 : vector<1x32xf32> to vector<8x32xf32>
    %333 = arith.addf %331, %332 : vector<8x32xf32>
    %334 = arith.addf %290, %333 : vector<8x32xf32>
    %cst_176 = arith.constant dense<0.000000e+00> : vector<8xf32>
    %335 = vector.multi_reduction <add>, %334, %cst_176 [1] : vector<8x32xf32> to vector<8xf32>
    %336 = vector.shape_cast %335 : vector<8xf32> to vector<8x1xf32>
    %cst_177 = arith.constant 3.200000e+01 : f32
    %337 = vector.broadcast %cst_177 : f32 to vector<8x1xf32>
    %338 = arith.divf %336, %337 : vector<8x1xf32>
    %339 = vector.broadcast %338 : vector<8x1xf32> to vector<8x32xf32>
    %340 = arith.subf %334, %339 : vector<8x32xf32>
    %341 = arith.mulf %340, %340 : vector<8x32xf32>
    %cst_178 = arith.constant dense<0.000000e+00> : vector<8xf32>
    %342 = vector.multi_reduction <add>, %341, %cst_178 [1] : vector<8x32xf32> to vector<8xf32>
    %343 = vector.shape_cast %342 : vector<8xf32> to vector<8x1xf32>
    %cst_179 = arith.constant 3.200000e+01 : f32
    %344 = vector.broadcast %cst_179 : f32 to vector<8x1xf32>
    %345 = arith.divf %343, %344 : vector<8x1xf32>
    %346 = vector.broadcast %338 : vector<8x1xf32> to vector<8x32xf32>
    %347 = arith.subf %334, %346 : vector<8x32xf32>
    %cst_180 = arith.constant 9.99999997E-7 : f32
    %348 = vector.broadcast %cst_180 : f32 to vector<8x1xf32>
    %349 = arith.addf %345, %348 : vector<8x1xf32>
    %350 = math.rsqrt %349 : vector<8x1xf32>
    %351 = vector.broadcast %350 : vector<8x1xf32> to vector<8x32xf32>
    %352 = arith.mulf %347, %351 : vector<8x32xf32>
    %353 = vector.broadcast %53 : vector<1x32xf32> to vector<8x32xf32>
    %354 = arith.mulf %352, %353 : vector<8x32xf32>
    %355 = vector.broadcast %55 : vector<1x32xf32> to vector<8x32xf32>
    %356 = arith.addf %354, %355 : vector<8x32xf32>
    %357 = arith.truncf %356 : vector<8x32xf32> to vector<8x32xbf16>
    %cst_181 = arith.constant dense<0.000000e+00> : vector<8x64xf32>
    %358 = tpu.matmul %357, %57, %cst_181 {dimension_numbers = #tpu.dot_dimension_numbers<[1], [0], [0], [1], [0, 0, 1, 1], [], []>} : vector<8x32xbf16>, vector<32x64xbf16>, vector<8x64xf32> -> vector<8x64xf32>
    %359 = vector.broadcast %59 : vector<1x64xf32> to vector<8x64xf32>
    %360 = arith.addf %358, %359 : vector<8x64xf32>
    %cst_182 = arith.constant 0.000000e+00 : f32
    %361 = vector.broadcast %cst_182 : f32 to vector<8x64xf32>
    %362 = arith.maximumf %360, %361 : vector<8x64xf32>
    %363 = arith.truncf %362 : vector<8x64xf32> to vector<8x64xbf16>
    %cst_183 = arith.constant dense<0.000000e+00> : vector<8x32xf32>
    %364 = tpu.matmul %363, %61, %cst_183 {dimension_numbers = #tpu.dot_dimension_numbers<[1], [0], [0], [1], [0, 0, 1, 1], [], []>} : vector<8x64xbf16>, vector<64x32xbf16>, vector<8x32xf32> -> vector<8x32xf32>
    %365 = vector.broadcast %63 : vector<1x32xf32> to vector<8x32xf32>
    %366 = arith.addf %364, %365 : vector<8x32xf32>
    %367 = arith.addf %356, %366 : vector<8x32xf32>
    %cst_184 = arith.constant dense<0.000000e+00> : vector<8xf32>
    %368 = vector.multi_reduction <add>, %367, %cst_184 [1] : vector<8x32xf32> to vector<8xf32>
    %369 = vector.shape_cast %368 : vector<8xf32> to vector<8x1xf32>
    %cst_185 = arith.constant 3.200000e+01 : f32
    %370 = vector.broadcast %cst_185 : f32 to vector<8x1xf32>
    %371 = arith.divf %369, %370 : vector<8x1xf32>
    %372 = vector.broadcast %371 : vector<8x1xf32> to vector<8x32xf32>
    %373 = arith.subf %367, %372 : vector<8x32xf32>
    %374 = arith.mulf %373, %373 : vector<8x32xf32>
    %cst_186 = arith.constant dense<0.000000e+00> : vector<8xf32>
    %375 = vector.multi_reduction <add>, %374, %cst_186 [1] : vector<8x32xf32> to vector<8xf32>
    %376 = vector.shape_cast %375 : vector<8xf32> to vector<8x1xf32>
    %cst_187 = arith.constant 3.200000e+01 : f32
    %377 = vector.broadcast %cst_187 : f32 to vector<8x1xf32>
    %378 = arith.divf %376, %377 : vector<8x1xf32>
    %379 = vector.broadcast %371 : vector<8x1xf32> to vector<8x32xf32>
    %380 = arith.subf %367, %379 : vector<8x32xf32>
    %cst_188 = arith.constant 9.99999997E-7 : f32
    %381 = vector.broadcast %cst_188 : f32 to vector<8x1xf32>
    %382 = arith.addf %378, %381 : vector<8x1xf32>
    %383 = math.rsqrt %382 : vector<8x1xf32>
    %384 = vector.broadcast %383 : vector<8x1xf32> to vector<8x32xf32>
    %385 = arith.mulf %380, %384 : vector<8x32xf32>
    %386 = vector.broadcast %65 : vector<1x32xf32> to vector<8x32xf32>
    %387 = arith.mulf %385, %386 : vector<8x32xf32>
    %388 = vector.broadcast %67 : vector<1x32xf32> to vector<8x32xf32>
    %389 = arith.addf %387, %388 : vector<8x32xf32>
    %c1_189 = arith.constant 1 : index
    %c0_190 = arith.constant 0 : index
    %c0_191 = arith.constant 0 : index
    %c0_192 = arith.constant 0 : index
    %390 = vector.load %arg5[%c1_189, %c0_190, %c0_191, %c0_192] : memref<2x4x32x8xbf16, #tpu.memory_space<vmem>>, vector<1x4x32x8xbf16>
    %391 = vector.shape_cast %390 : vector<1x4x32x8xbf16> to vector<4x32x8xbf16>
    %c1_193 = arith.constant 1 : index
    %c0_194 = arith.constant 0 : index
    %c0_195 = arith.constant 0 : index
    %c0_196 = arith.constant 0 : index
    %392 = vector.load %arg6[%c1_193, %c0_194, %c0_195, %c0_196] : memref<2x4x1x8xf32, #tpu.memory_space<vmem>>, vector<1x4x1x8xf32>
    %393 = vector.shape_cast %392 : vector<1x4x1x8xf32> to vector<4x1x8xf32>
    %c1_197 = arith.constant 1 : index
    %c0_198 = arith.constant 0 : index
    %c0_199 = arith.constant 0 : index
    %c0_200 = arith.constant 0 : index
    %394 = vector.load %arg7[%c1_197, %c0_198, %c0_199, %c0_200] : memref<2x4x32x8xbf16, #tpu.memory_space<vmem>>, vector<1x4x32x8xbf16>
    %395 = vector.shape_cast %394 : vector<1x4x32x8xbf16> to vector<4x32x8xbf16>
    %c1_201 = arith.constant 1 : index
    %c0_202 = arith.constant 0 : index
    %c0_203 = arith.constant 0 : index
    %c0_204 = arith.constant 0 : index
    %396 = vector.load %arg8[%c1_201, %c0_202, %c0_203, %c0_204] : memref<2x4x1x8xf32, #tpu.memory_space<vmem>>, vector<1x4x1x8xf32>
    %397 = vector.shape_cast %396 : vector<1x4x1x8xf32> to vector<4x1x8xf32>
    %c1_205 = arith.constant 1 : index
    %c0_206 = arith.constant 0 : index
    %c0_207 = arith.constant 0 : index
    %c0_208 = arith.constant 0 : index
    %398 = vector.load %arg9[%c1_205, %c0_206, %c0_207, %c0_208] : memref<2x4x32x8xbf16, #tpu.memory_space<vmem>>, vector<1x4x32x8xbf16>
    %399 = vector.shape_cast %398 : vector<1x4x32x8xbf16> to vector<4x32x8xbf16>
    %c1_209 = arith.constant 1 : index
    %c0_210 = arith.constant 0 : index
    %c0_211 = arith.constant 0 : index
    %c0_212 = arith.constant 0 : index
    %400 = vector.load %arg10[%c1_209, %c0_210, %c0_211, %c0_212] : memref<2x4x1x8xf32, #tpu.memory_space<vmem>>, vector<1x4x1x8xf32>
    %401 = vector.shape_cast %400 : vector<1x4x1x8xf32> to vector<4x1x8xf32>
    %c1_213 = arith.constant 1 : index
    %c0_214 = arith.constant 0 : index
    %c0_215 = arith.constant 0 : index
    %c0_216 = arith.constant 0 : index
    %402 = vector.load %arg11[%c1_213, %c0_214, %c0_215, %c0_216] : memref<2x4x8x32xbf16, #tpu.memory_space<vmem>>, vector<1x4x8x32xbf16>
    %403 = vector.shape_cast %402 : vector<1x4x8x32xbf16> to vector<4x8x32xbf16>
    %c1_217 = arith.constant 1 : index
    %c0_218 = arith.constant 0 : index
    %c0_219 = arith.constant 0 : index
    %404 = vector.load %arg12[%c1_217, %c0_218, %c0_219] : memref<2x1x32xf32, #tpu.memory_space<vmem>>, vector<1x1x32xf32>
    %405 = vector.shape_cast %404 : vector<1x1x32xf32> to vector<1x32xf32>
    %c1_220 = arith.constant 1 : index
    %c0_221 = arith.constant 0 : index
    %c0_222 = arith.constant 0 : index
    %406 = vector.load %arg13[%c1_220, %c0_221, %c0_222] : memref<2x1x32xf32, #tpu.memory_space<vmem>>, vector<1x1x32xf32>
    %407 = vector.shape_cast %406 : vector<1x1x32xf32> to vector<1x32xf32>
    %c1_223 = arith.constant 1 : index
    %c0_224 = arith.constant 0 : index
    %c0_225 = arith.constant 0 : index
    %408 = vector.load %arg14[%c1_223, %c0_224, %c0_225] : memref<2x1x32xf32, #tpu.memory_space<vmem>>, vector<1x1x32xf32>
    %409 = vector.shape_cast %408 : vector<1x1x32xf32> to vector<1x32xf32>
    %c1_226 = arith.constant 1 : index
    %c0_227 = arith.constant 0 : index
    %c0_228 = arith.constant 0 : index
    %c0_229 = arith.constant 0 : index
    %410 = vector.load %arg15[%c1_226, %c0_227, %c0_228, %c0_229] : memref<2x4x32x8xbf16, #tpu.memory_space<vmem>>, vector<1x4x32x8xbf16>
    %411 = vector.shape_cast %410 : vector<1x4x32x8xbf16> to vector<4x32x8xbf16>
    %c1_230 = arith.constant 1 : index
    %c0_231 = arith.constant 0 : index
    %c0_232 = arith.constant 0 : index
    %c0_233 = arith.constant 0 : index
    %412 = vector.load %arg16[%c1_230, %c0_231, %c0_232, %c0_233] : memref<2x4x1x8xf32, #tpu.memory_space<vmem>>, vector<1x4x1x8xf32>
    %413 = vector.shape_cast %412 : vector<1x4x1x8xf32> to vector<4x1x8xf32>
    %c1_234 = arith.constant 1 : index
    %c0_235 = arith.constant 0 : index
    %c0_236 = arith.constant 0 : index
    %c0_237 = arith.constant 0 : index
    %414 = vector.load %arg17[%c1_234, %c0_235, %c0_236, %c0_237] : memref<2x4x32x8xbf16, #tpu.memory_space<vmem>>, vector<1x4x32x8xbf16>
    %415 = vector.shape_cast %414 : vector<1x4x32x8xbf16> to vector<4x32x8xbf16>
    %c1_238 = arith.constant 1 : index
    %c0_239 = arith.constant 0 : index
    %c0_240 = arith.constant 0 : index
    %c0_241 = arith.constant 0 : index
    %416 = vector.load %arg18[%c1_238, %c0_239, %c0_240, %c0_241] : memref<2x4x1x8xf32, #tpu.memory_space<vmem>>, vector<1x4x1x8xf32>
    %417 = vector.shape_cast %416 : vector<1x4x1x8xf32> to vector<4x1x8xf32>
    %c1_242 = arith.constant 1 : index
    %c0_243 = arith.constant 0 : index
    %c0_244 = arith.constant 0 : index
    %c0_245 = arith.constant 0 : index
    %418 = vector.load %arg19[%c1_242, %c0_243, %c0_244, %c0_245] : memref<2x4x32x8xbf16, #tpu.memory_space<vmem>>, vector<1x4x32x8xbf16>
    %419 = vector.shape_cast %418 : vector<1x4x32x8xbf16> to vector<4x32x8xbf16>
    %c1_246 = arith.constant 1 : index
    %c0_247 = arith.constant 0 : index
    %c0_248 = arith.constant 0 : index
    %c0_249 = arith.constant 0 : index
    %420 = vector.load %arg20[%c1_246, %c0_247, %c0_248, %c0_249] : memref<2x4x1x8xf32, #tpu.memory_space<vmem>>, vector<1x4x1x8xf32>
    %421 = vector.shape_cast %420 : vector<1x4x1x8xf32> to vector<4x1x8xf32>
    %c1_250 = arith.constant 1 : index
    %c0_251 = arith.constant 0 : index
    %c0_252 = arith.constant 0 : index
    %c0_253 = arith.constant 0 : index
    %422 = vector.load %arg21[%c1_250, %c0_251, %c0_252, %c0_253] : memref<2x4x8x32xbf16, #tpu.memory_space<vmem>>, vector<1x4x8x32xbf16>
    %423 = vector.shape_cast %422 : vector<1x4x8x32xbf16> to vector<4x8x32xbf16>
    %c1_254 = arith.constant 1 : index
    %c0_255 = arith.constant 0 : index
    %c0_256 = arith.constant 0 : index
    %424 = vector.load %arg22[%c1_254, %c0_255, %c0_256] : memref<2x1x32xf32, #tpu.memory_space<vmem>>, vector<1x1x32xf32>
    %425 = vector.shape_cast %424 : vector<1x1x32xf32> to vector<1x32xf32>
    %c1_257 = arith.constant 1 : index
    %c0_258 = arith.constant 0 : index
    %c0_259 = arith.constant 0 : index
    %426 = vector.load %arg23[%c1_257, %c0_258, %c0_259] : memref<2x1x32xf32, #tpu.memory_space<vmem>>, vector<1x1x32xf32>
    %427 = vector.shape_cast %426 : vector<1x1x32xf32> to vector<1x32xf32>
    %c1_260 = arith.constant 1 : index
    %c0_261 = arith.constant 0 : index
    %c0_262 = arith.constant 0 : index
    %428 = vector.load %arg24[%c1_260, %c0_261, %c0_262] : memref<2x1x32xf32, #tpu.memory_space<vmem>>, vector<1x1x32xf32>
    %429 = vector.shape_cast %428 : vector<1x1x32xf32> to vector<1x32xf32>
    %c1_263 = arith.constant 1 : index
    %c0_264 = arith.constant 0 : index
    %c0_265 = arith.constant 0 : index
    %430 = vector.load %arg25[%c1_263, %c0_264, %c0_265] : memref<2x32x64xbf16, #tpu.memory_space<vmem>>, vector<1x32x64xbf16>
    %431 = vector.shape_cast %430 : vector<1x32x64xbf16> to vector<32x64xbf16>
    %c1_266 = arith.constant 1 : index
    %c0_267 = arith.constant 0 : index
    %c0_268 = arith.constant 0 : index
    %432 = vector.load %arg26[%c1_266, %c0_267, %c0_268] : memref<2x1x64xf32, #tpu.memory_space<vmem>>, vector<1x1x64xf32>
    %433 = vector.shape_cast %432 : vector<1x1x64xf32> to vector<1x64xf32>
    %c1_269 = arith.constant 1 : index
    %c0_270 = arith.constant 0 : index
    %c0_271 = arith.constant 0 : index
    %434 = vector.load %arg27[%c1_269, %c0_270, %c0_271] : memref<2x64x32xbf16, #tpu.memory_space<vmem>>, vector<1x64x32xbf16>
    %435 = vector.shape_cast %434 : vector<1x64x32xbf16> to vector<64x32xbf16>
    %c1_272 = arith.constant 1 : index
    %c0_273 = arith.constant 0 : index
    %c0_274 = arith.constant 0 : index
    %436 = vector.load %arg28[%c1_272, %c0_273, %c0_274] : memref<2x1x32xf32, #tpu.memory_space<vmem>>, vector<1x1x32xf32>
    %437 = vector.shape_cast %436 : vector<1x1x32xf32> to vector<1x32xf32>
    %c1_275 = arith.constant 1 : index
    %c0_276 = arith.constant 0 : index
    %c0_277 = arith.constant 0 : index
    %438 = vector.load %arg29[%c1_275, %c0_276, %c0_277] : memref<2x1x32xf32, #tpu.memory_space<vmem>>, vector<1x1x32xf32>
    %439 = vector.shape_cast %438 : vector<1x1x32xf32> to vector<1x32xf32>
    %c1_278 = arith.constant 1 : index
    %c0_279 = arith.constant 0 : index
    %c0_280 = arith.constant 0 : index
    %440 = vector.load %arg30[%c1_278, %c0_279, %c0_280] : memref<2x1x32xf32, #tpu.memory_space<vmem>>, vector<1x1x32xf32>
    %441 = vector.shape_cast %440 : vector<1x1x32xf32> to vector<1x32xf32>
    %442 = arith.truncf %228 : vector<8x32xf32> to vector<8x32xbf16>
    %443 = vector.shape_cast %442 : vector<8x32xbf16> to vector<1x8x32xbf16>
    %444 = vector.shape_cast %443 : vector<1x8x32xbf16> to vector<1x8x32xbf16>
    %445 = vector.broadcast %444 : vector<1x8x32xbf16> to vector<4x8x32xbf16>
    "tpu.trace_start"() <{level = 10 : i32, message = "hnd,hdk->hnk"}> : () -> ()
    %cst_281 = arith.constant dense<0.000000e+00> : vector<4x8x8xf32>
    %446 = tpu.matmul %445, %391, %cst_281 {dimension_numbers = #tpu.dot_dimension_numbers<[2], [1], [1], [2], [0, 0, 0, 1, 1, 2], [0], [0]>} : vector<4x8x32xbf16>, vector<4x32x8xbf16>, vector<4x8x8xf32> -> vector<4x8x8xf32>
    "tpu.trace_stop"() : () -> ()
    %447 = vector.broadcast %393 : vector<4x1x8xf32> to vector<4x8x8xf32>
    %448 = arith.addf %446, %447 : vector<4x8x8xf32>
    "tpu.trace_start"() <{level = 10 : i32, message = "hnd,hdk->hnk"}> : () -> ()
    %cst_282 = arith.constant dense<0.000000e+00> : vector<4x8x8xf32>
    %449 = tpu.matmul %445, %395, %cst_282 {dimension_numbers = #tpu.dot_dimension_numbers<[2], [1], [1], [2], [0, 0, 0, 1, 1, 2], [0], [0]>} : vector<4x8x32xbf16>, vector<4x32x8xbf16>, vector<4x8x8xf32> -> vector<4x8x8xf32>
    "tpu.trace_stop"() : () -> ()
    %450 = vector.broadcast %397 : vector<4x1x8xf32> to vector<4x8x8xf32>
    %451 = arith.addf %449, %450 : vector<4x8x8xf32>
    "tpu.trace_start"() <{level = 10 : i32, message = "hnd,hdk->hnk"}> : () -> ()
    %cst_283 = arith.constant dense<0.000000e+00> : vector<4x8x8xf32>
    %452 = tpu.matmul %445, %399, %cst_283 {dimension_numbers = #tpu.dot_dimension_numbers<[2], [1], [1], [2], [0, 0, 0, 1, 1, 2], [0], [0]>} : vector<4x8x32xbf16>, vector<4x32x8xbf16>, vector<4x8x8xf32> -> vector<4x8x8xf32>
    "tpu.trace_stop"() : () -> ()
    %453 = vector.broadcast %401 : vector<4x1x8xf32> to vector<4x8x8xf32>
    %454 = arith.addf %452, %453 : vector<4x8x8xf32>
    %455 = arith.truncf %448 : vector<4x8x8xf32> to vector<4x8x8xbf16>
    %456 = arith.truncf %451 : vector<4x8x8xf32> to vector<4x8x8xbf16>
    "tpu.trace_start"() <{level = 10 : i32, message = "hqd,hkd->hqk"}> : () -> ()
    %cst_284 = arith.constant dense<0.000000e+00> : vector<4x8x8xf32>
    %457 = tpu.matmul %455, %456, %cst_284 {dimension_numbers = #tpu.dot_dimension_numbers<[2], [2], [1], [1], [0, 0, 0, 1, 1, 1], [0], [0]>} : vector<4x8x8xbf16>, vector<4x8x8xbf16>, vector<4x8x8xf32> -> vector<4x8x8xf32>
    "tpu.trace_stop"() : () -> ()
    %cst_285 = arith.constant 0.353553385 : f32
    %458 = vector.broadcast %cst_285 : f32 to vector<4x8x8xf32>
    %459 = arith.mulf %457, %458 : vector<4x8x8xf32>
    %460 = vector.shape_cast %9 : vector<8x8xf32> to vector<1x8x8xf32>
    %461 = vector.broadcast %460 : vector<1x8x8xf32> to vector<4x8x8xf32>
    %462 = arith.addf %459, %461 : vector<4x8x8xf32>
    %cst_286 = arith.constant dense<0xFF800000> : vector<4x8xf32>
    %463 = vector.multi_reduction <maximumf>, %462, %cst_286 [2] : vector<4x8x8xf32> to vector<4x8xf32>
    %464 = vector.shape_cast %463 : vector<4x8xf32> to vector<4x8x1xf32>
    %465 = vector.broadcast %464 : vector<4x8x1xf32> to vector<4x8x8xf32>
    %466 = arith.subf %462, %465 : vector<4x8x8xf32>
    %467 = math.exp %466 : vector<4x8x8xf32>
    %cst_287 = arith.constant dense<0.000000e+00> : vector<4x8xf32>
    %468 = vector.multi_reduction <add>, %467, %cst_287 [2] : vector<4x8x8xf32> to vector<4x8xf32>
    %469 = vector.shape_cast %468 : vector<4x8xf32> to vector<4x8x1xf32>
    %470 = tpu.reciprocal %469 {approx = true} : vector<4x8x1xf32> -> vector<4x8x1xf32>
    %471 = vector.broadcast %470 : vector<4x8x1xf32> to vector<4x8x8xf32>
    %472 = arith.mulf %467, %471 : vector<4x8x8xf32>
    %473 = arith.truncf %472 : vector<4x8x8xf32> to vector<4x8x8xbf16>
    %474 = arith.truncf %454 : vector<4x8x8xf32> to vector<4x8x8xbf16>
    "tpu.trace_start"() <{level = 10 : i32, message = "hqk,hkd->hqd"}> : () -> ()
    %cst_288 = arith.constant dense<0.000000e+00> : vector<4x8x8xf32>
    %475 = tpu.matmul %473, %474, %cst_288 {dimension_numbers = #tpu.dot_dimension_numbers<[2], [1], [1], [2], [0, 0, 0, 1, 1, 2], [0], [0]>} : vector<4x8x8xbf16>, vector<4x8x8xbf16>, vector<4x8x8xf32> -> vector<4x8x8xf32>
    "tpu.trace_stop"() : () -> ()
    %476 = arith.truncf %475 : vector<4x8x8xf32> to vector<4x8x8xbf16>
    "tpu.trace_start"() <{level = 10 : i32, message = "hqd,hde->hqe"}> : () -> ()
    %cst_289 = arith.constant dense<0.000000e+00> : vector<4x8x32xf32>
    %477 = tpu.matmul %476, %403, %cst_289 {dimension_numbers = #tpu.dot_dimension_numbers<[2], [1], [1], [2], [0, 0, 0, 1, 1, 2], [0], [0]>} : vector<4x8x8xbf16>, vector<4x8x32xbf16>, vector<4x8x32xf32> -> vector<4x8x32xf32>
    "tpu.trace_stop"() : () -> ()
    %cst_290 = arith.constant dense<0.000000e+00> : vector<8x32xf32>
    %478 = vector.multi_reduction <add>, %477, %cst_290 [0] : vector<4x8x32xf32> to vector<8x32xf32>
    %479 = vector.broadcast %405 : vector<1x32xf32> to vector<8x32xf32>
    %480 = arith.addf %478, %479 : vector<8x32xf32>
    %481 = arith.addf %228, %480 : vector<8x32xf32>
    %cst_291 = arith.constant dense<0.000000e+00> : vector<8xf32>
    %482 = vector.multi_reduction <add>, %481, %cst_291 [1] : vector<8x32xf32> to vector<8xf32>
    %483 = vector.shape_cast %482 : vector<8xf32> to vector<8x1xf32>
    %cst_292 = arith.constant 3.200000e+01 : f32
    %484 = vector.broadcast %cst_292 : f32 to vector<8x1xf32>
    %485 = arith.divf %483, %484 : vector<8x1xf32>
    %486 = vector.broadcast %485 : vector<8x1xf32> to vector<8x32xf32>
    %487 = arith.subf %481, %486 : vector<8x32xf32>
    %488 = arith.mulf %487, %487 : vector<8x32xf32>
    %cst_293 = arith.constant dense<0.000000e+00> : vector<8xf32>
    %489 = vector.multi_reduction <add>, %488, %cst_293 [1] : vector<8x32xf32> to vector<8xf32>
    %490 = vector.shape_cast %489 : vector<8xf32> to vector<8x1xf32>
    %cst_294 = arith.constant 3.200000e+01 : f32
    %491 = vector.broadcast %cst_294 : f32 to vector<8x1xf32>
    %492 = arith.divf %490, %491 : vector<8x1xf32>
    %493 = vector.broadcast %485 : vector<8x1xf32> to vector<8x32xf32>
    %494 = arith.subf %481, %493 : vector<8x32xf32>
    %cst_295 = arith.constant 9.99999997E-7 : f32
    %495 = vector.broadcast %cst_295 : f32 to vector<8x1xf32>
    %496 = arith.addf %492, %495 : vector<8x1xf32>
    %497 = math.rsqrt %496 : vector<8x1xf32>
    %498 = vector.broadcast %497 : vector<8x1xf32> to vector<8x32xf32>
    %499 = arith.mulf %494, %498 : vector<8x32xf32>
    %500 = vector.broadcast %407 : vector<1x32xf32> to vector<8x32xf32>
    %501 = arith.mulf %499, %500 : vector<8x32xf32>
    %502 = vector.broadcast %409 : vector<1x32xf32> to vector<8x32xf32>
    %503 = arith.addf %501, %502 : vector<8x32xf32>
    %504 = arith.truncf %503 : vector<8x32xf32> to vector<8x32xbf16>
    %505 = vector.shape_cast %504 : vector<8x32xbf16> to vector<1x8x32xbf16>
    %506 = vector.shape_cast %505 : vector<1x8x32xbf16> to vector<1x8x32xbf16>
    %507 = vector.broadcast %506 : vector<1x8x32xbf16> to vector<4x8x32xbf16>
    %508 = arith.truncf %5 : vector<8x32xf32> to vector<8x32xbf16>
    %509 = vector.shape_cast %508 : vector<8x32xbf16> to vector<1x8x32xbf16>
    %510 = vector.shape_cast %509 : vector<1x8x32xbf16> to vector<1x8x32xbf16>
    %511 = vector.broadcast %510 : vector<1x8x32xbf16> to vector<4x8x32xbf16>
    "tpu.trace_start"() <{level = 10 : i32, message = "hnd,hdk->hnk"}> : () -> ()
    %cst_296 = arith.constant dense<0.000000e+00> : vector<4x8x8xf32>
    %512 = tpu.matmul %507, %411, %cst_296 {dimension_numbers = #tpu.dot_dimension_numbers<[2], [1], [1], [2], [0, 0, 0, 1, 1, 2], [0], [0]>} : vector<4x8x32xbf16>, vector<4x32x8xbf16>, vector<4x8x8xf32> -> vector<4x8x8xf32>
    "tpu.trace_stop"() : () -> ()
    %513 = vector.broadcast %413 : vector<4x1x8xf32> to vector<4x8x8xf32>
    %514 = arith.addf %512, %513 : vector<4x8x8xf32>
    "tpu.trace_start"() <{level = 10 : i32, message = "hnd,hdk->hnk"}> : () -> ()
    %cst_297 = arith.constant dense<0.000000e+00> : vector<4x8x8xf32>
    %515 = tpu.matmul %511, %415, %cst_297 {dimension_numbers = #tpu.dot_dimension_numbers<[2], [1], [1], [2], [0, 0, 0, 1, 1, 2], [0], [0]>} : vector<4x8x32xbf16>, vector<4x32x8xbf16>, vector<4x8x8xf32> -> vector<4x8x8xf32>
    "tpu.trace_stop"() : () -> ()
    %516 = vector.broadcast %417 : vector<4x1x8xf32> to vector<4x8x8xf32>
    %517 = arith.addf %515, %516 : vector<4x8x8xf32>
    "tpu.trace_start"() <{level = 10 : i32, message = "hnd,hdk->hnk"}> : () -> ()
    %cst_298 = arith.constant dense<0.000000e+00> : vector<4x8x8xf32>
    %518 = tpu.matmul %511, %419, %cst_298 {dimension_numbers = #tpu.dot_dimension_numbers<[2], [1], [1], [2], [0, 0, 0, 1, 1, 2], [0], [0]>} : vector<4x8x32xbf16>, vector<4x32x8xbf16>, vector<4x8x8xf32> -> vector<4x8x8xf32>
    "tpu.trace_stop"() : () -> ()
    %519 = vector.broadcast %421 : vector<4x1x8xf32> to vector<4x8x8xf32>
    %520 = arith.addf %518, %519 : vector<4x8x8xf32>
    %521 = arith.truncf %514 : vector<4x8x8xf32> to vector<4x8x8xbf16>
    %522 = arith.truncf %517 : vector<4x8x8xf32> to vector<4x8x8xbf16>
    "tpu.trace_start"() <{level = 10 : i32, message = "hqd,hkd->hqk"}> : () -> ()
    %cst_299 = arith.constant dense<0.000000e+00> : vector<4x8x8xf32>
    %523 = tpu.matmul %521, %522, %cst_299 {dimension_numbers = #tpu.dot_dimension_numbers<[2], [2], [1], [1], [0, 0, 0, 1, 1, 1], [0], [0]>} : vector<4x8x8xbf16>, vector<4x8x8xbf16>, vector<4x8x8xf32> -> vector<4x8x8xf32>
    "tpu.trace_stop"() : () -> ()
    %cst_300 = arith.constant 0.353553385 : f32
    %524 = vector.broadcast %cst_300 : f32 to vector<4x8x8xf32>
    %525 = arith.mulf %523, %524 : vector<4x8x8xf32>
    %526 = vector.shape_cast %13 : vector<8x8xf32> to vector<1x8x8xf32>
    %527 = vector.broadcast %526 : vector<1x8x8xf32> to vector<4x8x8xf32>
    %528 = arith.addf %525, %527 : vector<4x8x8xf32>
    %cst_301 = arith.constant dense<0xFF800000> : vector<4x8xf32>
    %529 = vector.multi_reduction <maximumf>, %528, %cst_301 [2] : vector<4x8x8xf32> to vector<4x8xf32>
    %530 = vector.shape_cast %529 : vector<4x8xf32> to vector<4x8x1xf32>
    %531 = vector.broadcast %530 : vector<4x8x1xf32> to vector<4x8x8xf32>
    %532 = arith.subf %528, %531 : vector<4x8x8xf32>
    %533 = math.exp %532 : vector<4x8x8xf32>
    %cst_302 = arith.constant dense<0.000000e+00> : vector<4x8xf32>
    %534 = vector.multi_reduction <add>, %533, %cst_302 [2] : vector<4x8x8xf32> to vector<4x8xf32>
    %535 = vector.shape_cast %534 : vector<4x8xf32> to vector<4x8x1xf32>
    %536 = tpu.reciprocal %535 {approx = true} : vector<4x8x1xf32> -> vector<4x8x1xf32>
    %537 = vector.broadcast %536 : vector<4x8x1xf32> to vector<4x8x8xf32>
    %538 = arith.mulf %533, %537 : vector<4x8x8xf32>
    %539 = arith.truncf %538 : vector<4x8x8xf32> to vector<4x8x8xbf16>
    %540 = arith.truncf %520 : vector<4x8x8xf32> to vector<4x8x8xbf16>
    "tpu.trace_start"() <{level = 10 : i32, message = "hqk,hkd->hqd"}> : () -> ()
    %cst_303 = arith.constant dense<0.000000e+00> : vector<4x8x8xf32>
    %541 = tpu.matmul %539, %540, %cst_303 {dimension_numbers = #tpu.dot_dimension_numbers<[2], [1], [1], [2], [0, 0, 0, 1, 1, 2], [0], [0]>} : vector<4x8x8xbf16>, vector<4x8x8xbf16>, vector<4x8x8xf32> -> vector<4x8x8xf32>
    "tpu.trace_stop"() : () -> ()
    %542 = arith.truncf %541 : vector<4x8x8xf32> to vector<4x8x8xbf16>
    "tpu.trace_start"() <{level = 10 : i32, message = "hqd,hde->hqe"}> : () -> ()
    %cst_304 = arith.constant dense<0.000000e+00> : vector<4x8x32xf32>
    %543 = tpu.matmul %542, %423, %cst_304 {dimension_numbers = #tpu.dot_dimension_numbers<[2], [1], [1], [2], [0, 0, 0, 1, 1, 2], [0], [0]>} : vector<4x8x8xbf16>, vector<4x8x32xbf16>, vector<4x8x32xf32> -> vector<4x8x32xf32>
    "tpu.trace_stop"() : () -> ()
    %cst_305 = arith.constant dense<0.000000e+00> : vector<8x32xf32>
    %544 = vector.multi_reduction <add>, %543, %cst_305 [0] : vector<4x8x32xf32> to vector<8x32xf32>
    %545 = vector.broadcast %425 : vector<1x32xf32> to vector<8x32xf32>
    %546 = arith.addf %544, %545 : vector<8x32xf32>
    %547 = arith.addf %503, %546 : vector<8x32xf32>
    %cst_306 = arith.constant dense<0.000000e+00> : vector<8xf32>
    %548 = vector.multi_reduction <add>, %547, %cst_306 [1] : vector<8x32xf32> to vector<8xf32>
    %549 = vector.shape_cast %548 : vector<8xf32> to vector<8x1xf32>
    %cst_307 = arith.constant 3.200000e+01 : f32
    %550 = vector.broadcast %cst_307 : f32 to vector<8x1xf32>
    %551 = arith.divf %549, %550 : vector<8x1xf32>
    %552 = vector.broadcast %551 : vector<8x1xf32> to vector<8x32xf32>
    %553 = arith.subf %547, %552 : vector<8x32xf32>
    %554 = arith.mulf %553, %553 : vector<8x32xf32>
    %cst_308 = arith.constant dense<0.000000e+00> : vector<8xf32>
    %555 = vector.multi_reduction <add>, %554, %cst_308 [1] : vector<8x32xf32> to vector<8xf32>
    %556 = vector.shape_cast %555 : vector<8xf32> to vector<8x1xf32>
    %cst_309 = arith.constant 3.200000e+01 : f32
    %557 = vector.broadcast %cst_309 : f32 to vector<8x1xf32>
    %558 = arith.divf %556, %557 : vector<8x1xf32>
    %559 = vector.broadcast %551 : vector<8x1xf32> to vector<8x32xf32>
    %560 = arith.subf %547, %559 : vector<8x32xf32>
    %cst_310 = arith.constant 9.99999997E-7 : f32
    %561 = vector.broadcast %cst_310 : f32 to vector<8x1xf32>
    %562 = arith.addf %558, %561 : vector<8x1xf32>
    %563 = math.rsqrt %562 : vector<8x1xf32>
    %564 = vector.broadcast %563 : vector<8x1xf32> to vector<8x32xf32>
    %565 = arith.mulf %560, %564 : vector<8x32xf32>
    %566 = vector.broadcast %427 : vector<1x32xf32> to vector<8x32xf32>
    %567 = arith.mulf %565, %566 : vector<8x32xf32>
    %568 = vector.broadcast %429 : vector<1x32xf32> to vector<8x32xf32>
    %569 = arith.addf %567, %568 : vector<8x32xf32>
    %570 = arith.truncf %569 : vector<8x32xf32> to vector<8x32xbf16>
    %cst_311 = arith.constant dense<0.000000e+00> : vector<8x64xf32>
    %571 = tpu.matmul %570, %431, %cst_311 {dimension_numbers = #tpu.dot_dimension_numbers<[1], [0], [0], [1], [0, 0, 1, 1], [], []>} : vector<8x32xbf16>, vector<32x64xbf16>, vector<8x64xf32> -> vector<8x64xf32>
    %572 = vector.broadcast %433 : vector<1x64xf32> to vector<8x64xf32>
    %573 = arith.addf %571, %572 : vector<8x64xf32>
    %cst_312 = arith.constant 0.000000e+00 : f32
    %574 = vector.broadcast %cst_312 : f32 to vector<8x64xf32>
    %575 = arith.maximumf %573, %574 : vector<8x64xf32>
    %576 = arith.truncf %575 : vector<8x64xf32> to vector<8x64xbf16>
    %cst_313 = arith.constant dense<0.000000e+00> : vector<8x32xf32>
    %577 = tpu.matmul %576, %435, %cst_313 {dimension_numbers = #tpu.dot_dimension_numbers<[1], [0], [0], [1], [0, 0, 1, 1], [], []>} : vector<8x64xbf16>, vector<64x32xbf16>, vector<8x32xf32> -> vector<8x32xf32>
    %578 = vector.broadcast %437 : vector<1x32xf32> to vector<8x32xf32>
    %579 = arith.addf %577, %578 : vector<8x32xf32>
    %580 = arith.addf %569, %579 : vector<8x32xf32>
    %cst_314 = arith.constant dense<0.000000e+00> : vector<8xf32>
    %581 = vector.multi_reduction <add>, %580, %cst_314 [1] : vector<8x32xf32> to vector<8xf32>
    %582 = vector.shape_cast %581 : vector<8xf32> to vector<8x1xf32>
    %cst_315 = arith.constant 3.200000e+01 : f32
    %583 = vector.broadcast %cst_315 : f32 to vector<8x1xf32>
    %584 = arith.divf %582, %583 : vector<8x1xf32>
    %585 = vector.broadcast %584 : vector<8x1xf32> to vector<8x32xf32>
    %586 = arith.subf %580, %585 : vector<8x32xf32>
    %587 = arith.mulf %586, %586 : vector<8x32xf32>
    %cst_316 = arith.constant dense<0.000000e+00> : vector<8xf32>
    %588 = vector.multi_reduction <add>, %587, %cst_316 [1] : vector<8x32xf32> to vector<8xf32>
    %589 = vector.shape_cast %588 : vector<8xf32> to vector<8x1xf32>
    %cst_317 = arith.constant 3.200000e+01 : f32
    %590 = vector.broadcast %cst_317 : f32 to vector<8x1xf32>
    %591 = arith.divf %589, %590 : vector<8x1xf32>
    %592 = vector.broadcast %584 : vector<8x1xf32> to vector<8x32xf32>
    %593 = arith.subf %580, %592 : vector<8x32xf32>
    %cst_318 = arith.constant 9.99999997E-7 : f32
    %594 = vector.broadcast %cst_318 : f32 to vector<8x1xf32>
    %595 = arith.addf %591, %594 : vector<8x1xf32>
    %596 = math.rsqrt %595 : vector<8x1xf32>
    %597 = vector.broadcast %596 : vector<8x1xf32> to vector<8x32xf32>
    %598 = arith.mulf %593, %597 : vector<8x32xf32>
    %599 = vector.broadcast %439 : vector<1x32xf32> to vector<8x32xf32>
    %600 = arith.mulf %598, %599 : vector<8x32xf32>
    %601 = vector.broadcast %441 : vector<1x32xf32> to vector<8x32xf32>
    %602 = arith.addf %600, %601 : vector<8x32xf32>
    %603 = arith.truncf %389 : vector<8x32xf32> to vector<8x32xbf16>
    %604 = vector.shape_cast %603 : vector<8x32xbf16> to vector<1x8x32xbf16>
    %605 = vector.shape_cast %604 : vector<1x8x32xbf16> to vector<1x8x32xbf16>
    %606 = vector.broadcast %605 : vector<1x8x32xbf16> to vector<4x8x32xbf16>
    "tpu.trace_start"() <{level = 10 : i32, message = "hnd,hdk->hnk"}> : () -> ()
    %cst_319 = arith.constant dense<0.000000e+00> : vector<4x8x8xf32>
    %607 = tpu.matmul %606, %391, %cst_319 {dimension_numbers = #tpu.dot_dimension_numbers<[2], [1], [1], [2], [0, 0, 0, 1, 1, 2], [0], [0]>} : vector<4x8x32xbf16>, vector<4x32x8xbf16>, vector<4x8x8xf32> -> vector<4x8x8xf32>
    "tpu.trace_stop"() : () -> ()
    %608 = vector.broadcast %393 : vector<4x1x8xf32> to vector<4x8x8xf32>
    %609 = arith.addf %607, %608 : vector<4x8x8xf32>
    "tpu.trace_start"() <{level = 10 : i32, message = "hnd,hdk->hnk"}> : () -> ()
    %cst_320 = arith.constant dense<0.000000e+00> : vector<4x8x8xf32>
    %610 = tpu.matmul %606, %395, %cst_320 {dimension_numbers = #tpu.dot_dimension_numbers<[2], [1], [1], [2], [0, 0, 0, 1, 1, 2], [0], [0]>} : vector<4x8x32xbf16>, vector<4x32x8xbf16>, vector<4x8x8xf32> -> vector<4x8x8xf32>
    "tpu.trace_stop"() : () -> ()
    %611 = vector.broadcast %397 : vector<4x1x8xf32> to vector<4x8x8xf32>
    %612 = arith.addf %610, %611 : vector<4x8x8xf32>
    "tpu.trace_start"() <{level = 10 : i32, message = "hnd,hdk->hnk"}> : () -> ()
    %cst_321 = arith.constant dense<0.000000e+00> : vector<4x8x8xf32>
    %613 = tpu.matmul %606, %399, %cst_321 {dimension_numbers = #tpu.dot_dimension_numbers<[2], [1], [1], [2], [0, 0, 0, 1, 1, 2], [0], [0]>} : vector<4x8x32xbf16>, vector<4x32x8xbf16>, vector<4x8x8xf32> -> vector<4x8x8xf32>
    "tpu.trace_stop"() : () -> ()
    %614 = vector.broadcast %401 : vector<4x1x8xf32> to vector<4x8x8xf32>
    %615 = arith.addf %613, %614 : vector<4x8x8xf32>
    %616 = arith.truncf %609 : vector<4x8x8xf32> to vector<4x8x8xbf16>
    %617 = arith.truncf %612 : vector<4x8x8xf32> to vector<4x8x8xbf16>
    "tpu.trace_start"() <{level = 10 : i32, message = "hqd,hkd->hqk"}> : () -> ()
    %cst_322 = arith.constant dense<0.000000e+00> : vector<4x8x8xf32>
    %618 = tpu.matmul %616, %617, %cst_322 {dimension_numbers = #tpu.dot_dimension_numbers<[2], [2], [1], [1], [0, 0, 0, 1, 1, 1], [0], [0]>} : vector<4x8x8xbf16>, vector<4x8x8xbf16>, vector<4x8x8xf32> -> vector<4x8x8xf32>
    "tpu.trace_stop"() : () -> ()
    %cst_323 = arith.constant 0.353553385 : f32
    %619 = vector.broadcast %cst_323 : f32 to vector<4x8x8xf32>
    %620 = arith.mulf %618, %619 : vector<4x8x8xf32>
    %621 = vector.shape_cast %11 : vector<8x8xf32> to vector<1x8x8xf32>
    %622 = vector.broadcast %621 : vector<1x8x8xf32> to vector<4x8x8xf32>
    %623 = arith.addf %620, %622 : vector<4x8x8xf32>
    %cst_324 = arith.constant dense<0xFF800000> : vector<4x8xf32>
    %624 = vector.multi_reduction <maximumf>, %623, %cst_324 [2] : vector<4x8x8xf32> to vector<4x8xf32>
    %625 = vector.shape_cast %624 : vector<4x8xf32> to vector<4x8x1xf32>
    %626 = vector.broadcast %625 : vector<4x8x1xf32> to vector<4x8x8xf32>
    %627 = arith.subf %623, %626 : vector<4x8x8xf32>
    %628 = math.exp %627 : vector<4x8x8xf32>
    %cst_325 = arith.constant dense<0.000000e+00> : vector<4x8xf32>
    %629 = vector.multi_reduction <add>, %628, %cst_325 [2] : vector<4x8x8xf32> to vector<4x8xf32>
    %630 = vector.shape_cast %629 : vector<4x8xf32> to vector<4x8x1xf32>
    %631 = tpu.reciprocal %630 {approx = true} : vector<4x8x1xf32> -> vector<4x8x1xf32>
    %632 = vector.broadcast %631 : vector<4x8x1xf32> to vector<4x8x8xf32>
    %633 = arith.mulf %628, %632 : vector<4x8x8xf32>
    %634 = arith.truncf %633 : vector<4x8x8xf32> to vector<4x8x8xbf16>
    %635 = arith.truncf %615 : vector<4x8x8xf32> to vector<4x8x8xbf16>
    "tpu.trace_start"() <{level = 10 : i32, message = "hqk,hkd->hqd"}> : () -> ()
    %cst_326 = arith.constant dense<0.000000e+00> : vector<4x8x8xf32>
    %636 = tpu.matmul %634, %635, %cst_326 {dimension_numbers = #tpu.dot_dimension_numbers<[2], [1], [1], [2], [0, 0, 0, 1, 1, 2], [0], [0]>} : vector<4x8x8xbf16>, vector<4x8x8xbf16>, vector<4x8x8xf32> -> vector<4x8x8xf32>
    "tpu.trace_stop"() : () -> ()
    %637 = arith.truncf %636 : vector<4x8x8xf32> to vector<4x8x8xbf16>
    "tpu.trace_start"() <{level = 10 : i32, message = "hqd,hde->hqe"}> : () -> ()
    %cst_327 = arith.constant dense<0.000000e+00> : vector<4x8x32xf32>
    %638 = tpu.matmul %637, %403, %cst_327 {dimension_numbers = #tpu.dot_dimension_numbers<[2], [1], [1], [2], [0, 0, 0, 1, 1, 2], [0], [0]>} : vector<4x8x8xbf16>, vector<4x8x32xbf16>, vector<4x8x32xf32> -> vector<4x8x32xf32>
    "tpu.trace_stop"() : () -> ()
    %cst_328 = arith.constant dense<0.000000e+00> : vector<8x32xf32>
    %639 = vector.multi_reduction <add>, %638, %cst_328 [0] : vector<4x8x32xf32> to vector<8x32xf32>
    %640 = vector.broadcast %405 : vector<1x32xf32> to vector<8x32xf32>
    %641 = arith.addf %639, %640 : vector<8x32xf32>
    %642 = arith.addf %389, %641 : vector<8x32xf32>
    %cst_329 = arith.constant dense<0.000000e+00> : vector<8xf32>
    %643 = vector.multi_reduction <add>, %642, %cst_329 [1] : vector<8x32xf32> to vector<8xf32>
    %644 = vector.shape_cast %643 : vector<8xf32> to vector<8x1xf32>
    %cst_330 = arith.constant 3.200000e+01 : f32
    %645 = vector.broadcast %cst_330 : f32 to vector<8x1xf32>
    %646 = arith.divf %644, %645 : vector<8x1xf32>
    %647 = vector.broadcast %646 : vector<8x1xf32> to vector<8x32xf32>
    %648 = arith.subf %642, %647 : vector<8x32xf32>
    %649 = arith.mulf %648, %648 : vector<8x32xf32>
    %cst_331 = arith.constant dense<0.000000e+00> : vector<8xf32>
    %650 = vector.multi_reduction <add>, %649, %cst_331 [1] : vector<8x32xf32> to vector<8xf32>
    %651 = vector.shape_cast %650 : vector<8xf32> to vector<8x1xf32>
    %cst_332 = arith.constant 3.200000e+01 : f32
    %652 = vector.broadcast %cst_332 : f32 to vector<8x1xf32>
    %653 = arith.divf %651, %652 : vector<8x1xf32>
    %654 = vector.broadcast %646 : vector<8x1xf32> to vector<8x32xf32>
    %655 = arith.subf %642, %654 : vector<8x32xf32>
    %cst_333 = arith.constant 9.99999997E-7 : f32
    %656 = vector.broadcast %cst_333 : f32 to vector<8x1xf32>
    %657 = arith.addf %653, %656 : vector<8x1xf32>
    %658 = math.rsqrt %657 : vector<8x1xf32>
    %659 = vector.broadcast %658 : vector<8x1xf32> to vector<8x32xf32>
    %660 = arith.mulf %655, %659 : vector<8x32xf32>
    %661 = vector.broadcast %407 : vector<1x32xf32> to vector<8x32xf32>
    %662 = arith.mulf %660, %661 : vector<8x32xf32>
    %663 = vector.broadcast %409 : vector<1x32xf32> to vector<8x32xf32>
    %664 = arith.addf %662, %663 : vector<8x32xf32>
    %665 = arith.truncf %664 : vector<8x32xf32> to vector<8x32xbf16>
    %666 = vector.shape_cast %665 : vector<8x32xbf16> to vector<1x8x32xbf16>
    %667 = vector.shape_cast %666 : vector<1x8x32xbf16> to vector<1x8x32xbf16>
    %668 = vector.broadcast %667 : vector<1x8x32xbf16> to vector<4x8x32xbf16>
    %669 = arith.truncf %7 : vector<8x32xf32> to vector<8x32xbf16>
    %670 = vector.shape_cast %669 : vector<8x32xbf16> to vector<1x8x32xbf16>
    %671 = vector.shape_cast %670 : vector<1x8x32xbf16> to vector<1x8x32xbf16>
    %672 = vector.broadcast %671 : vector<1x8x32xbf16> to vector<4x8x32xbf16>
    "tpu.trace_start"() <{level = 10 : i32, message = "hnd,hdk->hnk"}> : () -> ()
    %cst_334 = arith.constant dense<0.000000e+00> : vector<4x8x8xf32>
    %673 = tpu.matmul %668, %411, %cst_334 {dimension_numbers = #tpu.dot_dimension_numbers<[2], [1], [1], [2], [0, 0, 0, 1, 1, 2], [0], [0]>} : vector<4x8x32xbf16>, vector<4x32x8xbf16>, vector<4x8x8xf32> -> vector<4x8x8xf32>
    "tpu.trace_stop"() : () -> ()
    %674 = vector.broadcast %413 : vector<4x1x8xf32> to vector<4x8x8xf32>
    %675 = arith.addf %673, %674 : vector<4x8x8xf32>
    "tpu.trace_start"() <{level = 10 : i32, message = "hnd,hdk->hnk"}> : () -> ()
    %cst_335 = arith.constant dense<0.000000e+00> : vector<4x8x8xf32>
    %676 = tpu.matmul %672, %415, %cst_335 {dimension_numbers = #tpu.dot_dimension_numbers<[2], [1], [1], [2], [0, 0, 0, 1, 1, 2], [0], [0]>} : vector<4x8x32xbf16>, vector<4x32x8xbf16>, vector<4x8x8xf32> -> vector<4x8x8xf32>
    "tpu.trace_stop"() : () -> ()
    %677 = vector.broadcast %417 : vector<4x1x8xf32> to vector<4x8x8xf32>
    %678 = arith.addf %676, %677 : vector<4x8x8xf32>
    "tpu.trace_start"() <{level = 10 : i32, message = "hnd,hdk->hnk"}> : () -> ()
    %cst_336 = arith.constant dense<0.000000e+00> : vector<4x8x8xf32>
    %679 = tpu.matmul %672, %419, %cst_336 {dimension_numbers = #tpu.dot_dimension_numbers<[2], [1], [1], [2], [0, 0, 0, 1, 1, 2], [0], [0]>} : vector<4x8x32xbf16>, vector<4x32x8xbf16>, vector<4x8x8xf32> -> vector<4x8x8xf32>
    "tpu.trace_stop"() : () -> ()
    %680 = vector.broadcast %421 : vector<4x1x8xf32> to vector<4x8x8xf32>
    %681 = arith.addf %679, %680 : vector<4x8x8xf32>
    %682 = arith.truncf %675 : vector<4x8x8xf32> to vector<4x8x8xbf16>
    %683 = arith.truncf %678 : vector<4x8x8xf32> to vector<4x8x8xbf16>
    "tpu.trace_start"() <{level = 10 : i32, message = "hqd,hkd->hqk"}> : () -> ()
    %cst_337 = arith.constant dense<0.000000e+00> : vector<4x8x8xf32>
    %684 = tpu.matmul %682, %683, %cst_337 {dimension_numbers = #tpu.dot_dimension_numbers<[2], [2], [1], [1], [0, 0, 0, 1, 1, 1], [0], [0]>} : vector<4x8x8xbf16>, vector<4x8x8xbf16>, vector<4x8x8xf32> -> vector<4x8x8xf32>
    "tpu.trace_stop"() : () -> ()
    %cst_338 = arith.constant 0.353553385 : f32
    %685 = vector.broadcast %cst_338 : f32 to vector<4x8x8xf32>
    %686 = arith.mulf %684, %685 : vector<4x8x8xf32>
    %687 = vector.shape_cast %15 : vector<8x8xf32> to vector<1x8x8xf32>
    %688 = vector.broadcast %687 : vector<1x8x8xf32> to vector<4x8x8xf32>
    %689 = arith.addf %686, %688 : vector<4x8x8xf32>
    %cst_339 = arith.constant dense<0xFF800000> : vector<4x8xf32>
    %690 = vector.multi_reduction <maximumf>, %689, %cst_339 [2] : vector<4x8x8xf32> to vector<4x8xf32>
    %691 = vector.shape_cast %690 : vector<4x8xf32> to vector<4x8x1xf32>
    %692 = vector.broadcast %691 : vector<4x8x1xf32> to vector<4x8x8xf32>
    %693 = arith.subf %689, %692 : vector<4x8x8xf32>
    %694 = math.exp %693 : vector<4x8x8xf32>
    %cst_340 = arith.constant dense<0.000000e+00> : vector<4x8xf32>
    %695 = vector.multi_reduction <add>, %694, %cst_340 [2] : vector<4x8x8xf32> to vector<4x8xf32>
    %696 = vector.shape_cast %695 : vector<4x8xf32> to vector<4x8x1xf32>
    %697 = tpu.reciprocal %696 {approx = true} : vector<4x8x1xf32> -> vector<4x8x1xf32>
    %698 = vector.broadcast %697 : vector<4x8x1xf32> to vector<4x8x8xf32>
    %699 = arith.mulf %694, %698 : vector<4x8x8xf32>
    %700 = arith.truncf %699 : vector<4x8x8xf32> to vector<4x8x8xbf16>
    %701 = arith.truncf %681 : vector<4x8x8xf32> to vector<4x8x8xbf16>
    "tpu.trace_start"() <{level = 10 : i32, message = "hqk,hkd->hqd"}> : () -> ()
    %cst_341 = arith.constant dense<0.000000e+00> : vector<4x8x8xf32>
    %702 = tpu.matmul %700, %701, %cst_341 {dimension_numbers = #tpu.dot_dimension_numbers<[2], [1], [1], [2], [0, 0, 0, 1, 1, 2], [0], [0]>} : vector<4x8x8xbf16>, vector<4x8x8xbf16>, vector<4x8x8xf32> -> vector<4x8x8xf32>
    "tpu.trace_stop"() : () -> ()
    %703 = arith.truncf %702 : vector<4x8x8xf32> to vector<4x8x8xbf16>
    "tpu.trace_start"() <{level = 10 : i32, message = "hqd,hde->hqe"}> : () -> ()
    %cst_342 = arith.constant dense<0.000000e+00> : vector<4x8x32xf32>
    %704 = tpu.matmul %703, %423, %cst_342 {dimension_numbers = #tpu.dot_dimension_numbers<[2], [1], [1], [2], [0, 0, 0, 1, 1, 2], [0], [0]>} : vector<4x8x8xbf16>, vector<4x8x32xbf16>, vector<4x8x32xf32> -> vector<4x8x32xf32>
    "tpu.trace_stop"() : () -> ()
    %cst_343 = arith.constant dense<0.000000e+00> : vector<8x32xf32>
    %705 = vector.multi_reduction <add>, %704, %cst_343 [0] : vector<4x8x32xf32> to vector<8x32xf32>
    %706 = vector.broadcast %425 : vector<1x32xf32> to vector<8x32xf32>
    %707 = arith.addf %705, %706 : vector<8x32xf32>
    %708 = arith.addf %664, %707 : vector<8x32xf32>
    %cst_344 = arith.constant dense<0.000000e+00> : vector<8xf32>
    %709 = vector.multi_reduction <add>, %708, %cst_344 [1] : vector<8x32xf32> to vector<8xf32>
    %710 = vector.shape_cast %709 : vector<8xf32> to vector<8x1xf32>
    %cst_345 = arith.constant 3.200000e+01 : f32
    %711 = vector.broadcast %cst_345 : f32 to vector<8x1xf32>
    %712 = arith.divf %710, %711 : vector<8x1xf32>
    %713 = vector.broadcast %712 : vector<8x1xf32> to vector<8x32xf32>
    %714 = arith.subf %708, %713 : vector<8x32xf32>
    %715 = arith.mulf %714, %714 : vector<8x32xf32>
    %cst_346 = arith.constant dense<0.000000e+00> : vector<8xf32>
    %716 = vector.multi_reduction <add>, %715, %cst_346 [1] : vector<8x32xf32> to vector<8xf32>
    %717 = vector.shape_cast %716 : vector<8xf32> to vector<8x1xf32>
    %cst_347 = arith.constant 3.200000e+01 : f32
    %718 = vector.broadcast %cst_347 : f32 to vector<8x1xf32>
    %719 = arith.divf %717, %718 : vector<8x1xf32>
    %720 = vector.broadcast %712 : vector<8x1xf32> to vector<8x32xf32>
    %721 = arith.subf %708, %720 : vector<8x32xf32>
    %cst_348 = arith.constant 9.99999997E-7 : f32
    %722 = vector.broadcast %cst_348 : f32 to vector<8x1xf32>
    %723 = arith.addf %719, %722 : vector<8x1xf32>
    %724 = math.rsqrt %723 : vector<8x1xf32>
    %725 = vector.broadcast %724 : vector<8x1xf32> to vector<8x32xf32>
    %726 = arith.mulf %721, %725 : vector<8x32xf32>
    %727 = vector.broadcast %427 : vector<1x32xf32> to vector<8x32xf32>
    %728 = arith.mulf %726, %727 : vector<8x32xf32>
    %729 = vector.broadcast %429 : vector<1x32xf32> to vector<8x32xf32>
    %730 = arith.addf %728, %729 : vector<8x32xf32>
    %731 = arith.truncf %730 : vector<8x32xf32> to vector<8x32xbf16>
    %cst_349 = arith.constant dense<0.000000e+00> : vector<8x64xf32>
    %732 = tpu.matmul %731, %431, %cst_349 {dimension_numbers = #tpu.dot_dimension_numbers<[1], [0], [0], [1], [0, 0, 1, 1], [], []>} : vector<8x32xbf16>, vector<32x64xbf16>, vector<8x64xf32> -> vector<8x64xf32>
    %733 = vector.broadcast %433 : vector<1x64xf32> to vector<8x64xf32>
    %734 = arith.addf %732, %733 : vector<8x64xf32>
    %cst_350 = arith.constant 0.000000e+00 : f32
    %735 = vector.broadcast %cst_350 : f32 to vector<8x64xf32>
    %736 = arith.maximumf %734, %735 : vector<8x64xf32>
    %737 = arith.truncf %736 : vector<8x64xf32> to vector<8x64xbf16>
    %cst_351 = arith.constant dense<0.000000e+00> : vector<8x32xf32>
    %738 = tpu.matmul %737, %435, %cst_351 {dimension_numbers = #tpu.dot_dimension_numbers<[1], [0], [0], [1], [0, 0, 1, 1], [], []>} : vector<8x64xbf16>, vector<64x32xbf16>, vector<8x32xf32> -> vector<8x32xf32>
    %739 = vector.broadcast %437 : vector<1x32xf32> to vector<8x32xf32>
    %740 = arith.addf %738, %739 : vector<8x32xf32>
    %741 = arith.addf %730, %740 : vector<8x32xf32>
    %cst_352 = arith.constant dense<0.000000e+00> : vector<8xf32>
    %742 = vector.multi_reduction <add>, %741, %cst_352 [1] : vector<8x32xf32> to vector<8xf32>
    %743 = vector.shape_cast %742 : vector<8xf32> to vector<8x1xf32>
    %cst_353 = arith.constant 3.200000e+01 : f32
    %744 = vector.broadcast %cst_353 : f32 to vector<8x1xf32>
    %745 = arith.divf %743, %744 : vector<8x1xf32>
    %746 = vector.broadcast %745 : vector<8x1xf32> to vector<8x32xf32>
    %747 = arith.subf %741, %746 : vector<8x32xf32>
    %748 = arith.mulf %747, %747 : vector<8x32xf32>
    %cst_354 = arith.constant dense<0.000000e+00> : vector<8xf32>
    %749 = vector.multi_reduction <add>, %748, %cst_354 [1] : vector<8x32xf32> to vector<8xf32>
    %750 = vector.shape_cast %749 : vector<8xf32> to vector<8x1xf32>
    %cst_355 = arith.constant 3.200000e+01 : f32
    %751 = vector.broadcast %cst_355 : f32 to vector<8x1xf32>
    %752 = arith.divf %750, %751 : vector<8x1xf32>
    %753 = vector.broadcast %745 : vector<8x1xf32> to vector<8x32xf32>
    %754 = arith.subf %741, %753 : vector<8x32xf32>
    %cst_356 = arith.constant 9.99999997E-7 : f32
    %755 = vector.broadcast %cst_356 : f32 to vector<8x1xf32>
    %756 = arith.addf %752, %755 : vector<8x1xf32>
    %757 = math.rsqrt %756 : vector<8x1xf32>
    %758 = vector.broadcast %757 : vector<8x1xf32> to vector<8x32xf32>
    %759 = arith.mulf %754, %758 : vector<8x32xf32>
    %760 = vector.broadcast %439 : vector<1x32xf32> to vector<8x32xf32>
    %761 = arith.mulf %759, %760 : vector<8x32xf32>
    %762 = vector.broadcast %441 : vector<1x32xf32> to vector<8x32xf32>
    %763 = arith.addf %761, %762 : vector<8x32xf32>
    %c0_357 = arith.constant 0 : index
    %c0_358 = arith.constant 0 : index
    %764 = vector.load %arg31[%c0_357, %c0_358] : memref<32x32xbf16, #tpu.memory_space<vmem>>, vector<32x32xbf16>
    %c0_359 = arith.constant 0 : index
    %c0_360 = arith.constant 0 : index
    %765 = vector.load %arg32[%c0_359, %c0_360] : memref<1x32xf32, #tpu.memory_space<vmem>>, vector<1x32xf32>
    %766 = arith.truncf %602 : vector<8x32xf32> to vector<8x32xbf16>
    %cst_361 = arith.constant dense<0.000000e+00> : vector<8x32xf32>
    %767 = tpu.matmul %766, %764, %cst_361 {dimension_numbers = #tpu.dot_dimension_numbers<[1], [0], [0], [1], [0, 0, 1, 1], [], []>} : vector<8x32xbf16>, vector<32x32xbf16>, vector<8x32xf32> -> vector<8x32xf32>
    %768 = vector.broadcast %765 : vector<1x32xf32> to vector<8x32xf32>
    %769 = arith.addf %767, %768 : vector<8x32xf32>
    %c0_362 = arith.constant 0 : index
    %c0_363 = arith.constant 0 : index
    %c0_364 = arith.constant 0 : index
    %770 = vector.load %arg33[%c0_362, %c0_363, %c0_364] : memref<2x8x32xf32, #tpu.memory_space<vmem>>, vector<1x8x32xf32>
    %771 = vector.shape_cast %770 : vector<1x8x32xf32> to vector<8x32xf32>
    %772 = vector.shape_cast %769 : vector<8x32xf32> to vector<1x8x32xf32>
    tpu.vector_store %arg33[%c0_362, %c0_363, %c0_364], %772 {strides = array<i32>} : memref<2x8x32xf32, #tpu.memory_space<vmem>>, vector<1x8x32xf32>,
    %773 = arith.truncf %763 : vector<8x32xf32> to vector<8x32xbf16>
    %cst_365 = arith.constant dense<0.000000e+00> : vector<8x32xf32>
    %774 = tpu.matmul %773, %764, %cst_365 {dimension_numbers = #tpu.dot_dimension_numbers<[1], [0], [0], [1], [0, 0, 1, 1], [], []>} : vector<8x32xbf16>, vector<32x32xbf16>, vector<8x32xf32> -> vector<8x32xf32>
    %775 = vector.broadcast %765 : vector<1x32xf32> to vector<8x32xf32>
    %776 = arith.addf %774, %775 : vector<8x32xf32>
    %c1_366 = arith.constant 1 : index
    %c0_367 = arith.constant 0 : index
    %c0_368 = arith.constant 0 : index
    %777 = vector.load %arg33[%c1_366, %c0_367, %c0_368] : memref<2x8x32xf32, #tpu.memory_space<vmem>>, vector<1x8x32xf32>
    %778 = vector.shape_cast %777 : vector<1x8x32xf32> to vector<8x32xf32>
    %779 = vector.shape_cast %776 : vector<8x32xf32> to vector<1x8x32xf32>
    tpu.vector_store %arg33[%c1_366, %c0_367, %c0_368], %779 {strides = array<i32>} : memref<2x8x32xf32, #tpu.memory_space<vmem>>, vector<1x8x32xf32>,
    return
  }
  func.func @transform_0(%arg0: i32) -> (i32, i32, i32) {
    %c0_i32 = arith.constant 0 : i32
    %c0_i32_0 = arith.constant 0 : i32
    %c0_i32_1 = arith.constant 0 : i32
    %c0_i32_2 = arith.constant 0 : i32
    return %c0_i32, %c0_i32_0, %c0_i32_1 : i32, i32, i32
  }
  func.func @transform_1(%arg0: i32) -> (i32, i32, i32) {
    %c0_i32 = arith.constant 0 : i32
    %c0_i32_0 = arith.constant 0 : i32
    %c0_i32_1 = arith.constant 0 : i32
    %c0_i32_2 = arith.constant 0 : i32
    return %c0_i32, %c0_i32_0, %c0_i32_1 : i32, i32, i32
  }
  func.func @transform_2(%arg0: i32) -> (i32, i32, i32) {
    %c0_i32 = arith.constant 0 : i32
    %c0_i32_0 = arith.constant 0 : i32
    %c0_i32_1 = arith.constant 0 : i32
    %c0_i32_2 = arith.constant 0 : i32
    return %c0_i32, %c0_i32_0, %c0_i32_1 : i32, i32, i32
  }
  func.func @transform_3(%arg0: i32) -> (i32, i32, i32) {
    %c0_i32 = arith.constant 0 : i32
    %c0_i32_0 = arith.constant 0 : i32
    %c0_i32_1 = arith.constant 0 : i32
    %c0_i32_2 = arith.constant 0 : i32
    return %c0_i32, %c0_i32_0, %c0_i32_1 : i32, i32, i32
  }
  func.func @transform_4(%arg0: i32) -> (i32, i32, i32, i32) {
    %c0_i32 = arith.constant 0 : i32
    %c0_i32_0 = arith.constant 0 : i32
    %c0_i32_1 = arith.constant 0 : i32
    %c0_i32_2 = arith.constant 0 : i32
    %c0_i32_3 = arith.constant 0 : i32
    return %c0_i32, %c0_i32_0, %c0_i32_1, %c0_i32_2 : i32, i32, i32, i32
  }
  func.func @transform_5(%arg0: i32) -> (i32, i32, i32, i32) {
    %c0_i32 = arith.constant 0 : i32
    %c0_i32_0 = arith.constant 0 : i32
    %c0_i32_1 = arith.constant 0 : i32
    %c0_i32_2 = arith.constant 0 : i32
    %c0_i32_3 = arith.constant 0 : i32
    return %c0_i32, %c0_i32_0, %c0_i32_1, %c0_i32_2 : i32, i32, i32, i32
  }
  func.func @transform_6(%arg0: i32) -> (i32, i32, i32, i32) {
    %c0_i32 = arith.constant 0 : i32
    %c0_i32_0 = arith.constant 0 : i32
    %c0_i32_1 = arith.constant 0 : i32
    %c0_i32_2 = arith.constant 0 : i32
    %c0_i32_3 = arith.constant 0 : i32
    return %c0_i32, %c0_i32_0, %c0_i32_1, %c0_i32_2 : i32, i32, i32, i32
  }
  func.func @transform_7(%arg0: i32) -> (i32, i32, i32, i32) {
    %c0_i32 = arith.constant 0 : i32
    %c0_i32_0 = arith.constant 0 : i32
    %c0_i32_1 = arith.constant 0 : i32
    %c0_i32_2 = arith.constant 0 : i32
    %c0_i32_3 = arith.constant 0 : i32
    return %c0_i32, %c0_i32_0, %c0_i32_1, %c0_i32_2 : i32, i32, i32, i32
  }
  func.func @transform_8(%arg0: i32) -> (i32, i32, i32, i32) {
    %c0_i32 = arith.constant 0 : i32
    %c0_i32_0 = arith.constant 0 : i32
    %c0_i32_1 = arith.constant 0 : i32
    %c0_i32_2 = arith.constant 0 : i32
    %c0_i32_3 = arith.constant 0 : i32
    return %c0_i32, %c0_i32_0, %c0_i32_1, %c0_i32_2 : i32, i32, i32, i32
  }
  func.func @transform_9(%arg0: i32) -> (i32, i32, i32, i32) {
    %c0_i32 = arith.constant 0 : i32
    %c0_i32_0 = arith.constant 0 : i32
    %c0_i32_1 = arith.constant 0 : i32
    %c0_i32_2 = arith.constant 0 : i32
    %c0_i32_3 = arith.constant 0 : i32
    return %c0_i32, %c0_i32_0, %c0_i32_1, %c0_i32_2 : i32, i32, i32, i32
  }
  func.func @transform_10(%arg0: i32) -> (i32, i32, i32, i32) {
    %c0_i32 = arith.constant 0 : i32
    %c0_i32_0 = arith.constant 0 : i32
    %c0_i32_1 = arith.constant 0 : i32
    %c0_i32_2 = arith.constant 0 : i32
    %c0_i32_3 = arith.constant 0 : i32
    return %c0_i32, %c0_i32_0, %c0_i32_1, %c0_i32_2 : i32, i32, i32, i32
  }
  func.func @transform_11(%arg0: i32) -> (i32, i32, i32) {
    %c0_i32 = arith.constant 0 : i32
    %c0_i32_0 = arith.constant 0 : i32
    %c0_i32_1 = arith.constant 0 : i32
    %c0_i32_2 = arith.constant 0 : i32
    return %c0_i32, %c0_i32_0, %c0_i32_1 : i32, i32, i32
  }
  func.func @transform_12(%arg0: i32) -> (i32, i32, i32) {
    %c0_i32 = arith.constant 0 : i32
    %c0_i32_0 = arith.constant 0 : i32
    %c0_i32_1 = arith.constant 0 : i32
    %c0_i32_2 = arith.constant 0 : i32
    return %c0_i32, %c0_i32_0, %c0_i32_1 : i32, i32, i32
  }
  func.func @transform_13(%arg0: i32) -> (i32, i32, i32) {
    %c0_i32 = arith.constant 0 : i32
    %c0_i32_0 = arith.constant 0 : i32
    %c0_i32_1 = arith.constant 0 : i32
    %c0_i32_2 = arith.constant 0 : i32
    return %c0_i32, %c0_i32_0, %c0_i32_1 : i32, i32, i32
  }
  func.func @transform_14(%arg0: i32) -> (i32, i32, i32, i32) {
    %c0_i32 = arith.constant 0 : i32
    %c0_i32_0 = arith.constant 0 : i32
    %c0_i32_1 = arith.constant 0 : i32
    %c0_i32_2 = arith.constant 0 : i32
    %c0_i32_3 = arith.constant 0 : i32
    return %c0_i32, %c0_i32_0, %c0_i32_1, %c0_i32_2 : i32, i32, i32, i32
  }
  func.func @transform_15(%arg0: i32) -> (i32, i32, i32, i32) {
    %c0_i32 = arith.constant 0 : i32
    %c0_i32_0 = arith.constant 0 : i32
    %c0_i32_1 = arith.constant 0 : i32
    %c0_i32_2 = arith.constant 0 : i32
    %c0_i32_3 = arith.constant 0 : i32
    return %c0_i32, %c0_i32_0, %c0_i32_1, %c0_i32_2 : i32, i32, i32, i32
  }
  func.func @transform_16(%arg0: i32) -> (i32, i32, i32, i32) {
    %c0_i32 = arith.constant 0 : i32
    %c0_i32_0 = arith.constant 0 : i32
    %c0_i32_1 = arith.constant 0 : i32
    %c0_i32_2 = arith.constant 0 : i32
    %c0_i32_3 = arith.constant 0 : i32
    return %c0_i32, %c0_i32_0, %c0_i32_1, %c0_i32_2 : i32, i32, i32, i32
  }
  func.func @transform_17(%arg0: i32) -> (i32, i32, i32, i32) {
    %c0_i32 = arith.constant 0 : i32
    %c0_i32_0 = arith.constant 0 : i32
    %c0_i32_1 = arith.constant 0 : i32
    %c0_i32_2 = arith.constant 0 : i32
    %c0_i32_3 = arith.constant 0 : i32
    return %c0_i32, %c0_i32_0, %c0_i32_1, %c0_i32_2 : i32, i32, i32, i32
  }
  func.func @transform_18(%arg0: i32) -> (i32, i32, i32, i32) {
    %c0_i32 = arith.constant 0 : i32
    %c0_i32_0 = arith.constant 0 : i32
    %c0_i32_1 = arith.constant 0 : i32
    %c0_i32_2 = arith.constant 0 : i32
    %c0_i32_3 = arith.constant 0 : i32
    return %c0_i32, %c0_i32_0, %c0_i32_1, %c0_i32_2 : i32, i32, i32, i32
  }
  func.func @transform_19(%arg0: i32) -> (i32, i32, i32, i32) {
    %c0_i32 = arith.constant 0 : i32
    %c0_i32_0 = arith.constant 0 : i32
    %c0_i32_1 = arith.constant 0 : i32
    %c0_i32_2 = arith.constant 0 : i32
    %c0_i32_3 = arith.constant 0 : i32
    return %c0_i32, %c0_i32_0, %c0_i32_1, %c0_i32_2 : i32, i32, i32, i32
  }
  func.func @transform_20(%arg0: i32) -> (i32, i32, i32, i32) {
    %c0_i32 = arith.constant 0 : i32
    %c0_i32_0 = arith.constant 0 : i32
    %c0_i32_1 = arith.constant 0 : i32
    %c0_i32_2 = arith.constant 0 : i32
    %c0_i32_3 = arith.constant 0 : i32
    return %c0_i32, %c0_i32_0, %c0_i32_1, %c0_i32_2 : i32, i32, i32, i32
  }
  func.func @transform_21(%arg0: i32) -> (i32, i32, i32) {
    %c0_i32 = arith.constant 0 : i32
    %c0_i32_0 = arith.constant 0 : i32
    %c0_i32_1 = arith.constant 0 : i32
    %c0_i32_2 = arith.constant 0 : i32
    return %c0_i32, %c0_i32_0, %c0_i32_1 : i32, i32, i32
  }
  func.func @transform_22(%arg0: i32) -> (i32, i32, i32) {
    %c0_i32 = arith.constant 0 : i32
    %c0_i32_0 = arith.constant 0 : i32
    %c0_i32_1 = arith.constant 0 : i32
    %c0_i32_2 = arith.constant 0 : i32
    return %c0_i32, %c0_i32_0, %c0_i32_1 : i32, i32, i32
  }
  func.func @transform_23(%arg0: i32) -> (i32, i32, i32) {
    %c0_i32 = arith.constant 0 : i32
    %c0_i32_0 = arith.constant 0 : i32
    %c0_i32_1 = arith.constant 0 : i32
    %c0_i32_2 = arith.constant 0 : i32
    return %c0_i32, %c0_i32_0, %c0_i32_1 : i32, i32, i32
  }
  func.func @transform_24(%arg0: i32) -> (i32, i32, i32) {
    %c0_i32 = arith.constant 0 : i32
    %c0_i32_0 = arith.constant 0 : i32
    %c0_i32_1 = arith.constant 0 : i32
    %c0_i32_2 = arith.constant 0 : i32
    return %c0_i32, %c0_i32_0, %c0_i32_1 : i32, i32, i32
  }
  func.func @transform_25(%arg0: i32) -> (i32, i32, i32) {
    %c0_i32 = arith.constant 0 : i32
    %c0_i32_0 = arith.constant 0 : i32
    %c0_i32_1 = arith.constant 0 : i32
    %c0_i32_2 = arith.constant 0 : i32
    return %c0_i32, %c0_i32_0, %c0_i32_1 : i32, i32, i32
  }
  func.func @transform_26(%arg0: i32) -> (i32, i32, i32) {
    %c0_i32 = arith.constant 0 : i32
    %c0_i32_0 = arith.constant 0 : i32
    %c0_i32_1 = arith.constant 0 : i32
    %c0_i32_2 = arith.constant 0 : i32
    return %c0_i32, %c0_i32_0, %c0_i32_1 : i32, i32, i32
  }
  func.func @transform_27(%arg0: i32) -> (i32, i32, i32) {
    %c0_i32 = arith.constant 0 : i32
    %c0_i32_0 = arith.constant 0 : i32
    %c0_i32_1 = arith.constant 0 : i32
    %c0_i32_2 = arith.constant 0 : i32
    return %c0_i32, %c0_i32_0, %c0_i32_1 : i32, i32, i32
  }
  func.func @transform_28(%arg0: i32) -> (i32, i32, i32) {
    %c0_i32 = arith.constant 0 : i32
    %c0_i32_0 = arith.constant 0 : i32
    %c0_i32_1 = arith.constant 0 : i32
    %c0_i32_2 = arith.constant 0 : i32
    return %c0_i32, %c0_i32_0, %c0_i32_1 : i32, i32, i32
  }
  func.func @transform_29(%arg0: i32) -> (i32, i32, i32) {
    %c0_i32 = arith.constant 0 : i32
    %c0_i32_0 = arith.constant 0 : i32
    %c0_i32_1 = arith.constant 0 : i32
    %c0_i32_2 = arith.constant 0 : i32
    return %c0_i32, %c0_i32_0, %c0_i32_1 : i32, i32, i32
  }
  func.func @transform_30(%arg0: i32) -> (i32, i32) {
    %c0_i32 = arith.constant 0 : i32
    %c0_i32_0 = arith.constant 0 : i32
    %c0_i32_1 = arith.constant 0 : i32
    return %c0_i32, %c0_i32_0 : i32, i32
  }
  func.func @transform_31(%arg0: i32) -> (i32, i32) {
    %c0_i32 = arith.constant 0 : i32
    %c0_i32_0 = arith.constant 0 : i32
    %c0_i32_1 = arith.constant 0 : i32
    return %c0_i32, %c0_i32_0 : i32, i32
  }
  func.func @transform_32(%arg0: i32) -> (i32, i32, i32) {
    %c0_i32 = arith.constant 0 : i32
    %c0_i32_0 = arith.constant 0 : i32
    %c0_i32_1 = arith.constant 0 : i32
    %c0_i32_2 = arith.constant 0 : i32
    return %c0_i32, %c0_i32_0, %c0_i32_1 : i32, i32, i32
  }
}

</mosaic_0001>

<bundles_post_ra>
// kernel: decoder_forward.1
= control target key start
LH: loop header
LB: loop body
LE: loop exit
PB: predicated region body
PF: predicated region fallthrough
CT: control target
= control target key end

     0   :  { %s14125_s6 = smov 1   ;;  %s14126_s10 = smov 2   ;;  %s16114_s0 = inlined_call_operand.smem [shape: u32[33], index: -1, kind: input, shape index: {}] }
   0x1   :  { %s14170_s5 = sld [smem:[%s16114_s0]]   ;;  %s14127_s14 = smov 3  }
   0x2   :  { %s14175_s9 = sld [smem:[%s16114_s0 + %s14125_s6]]   ;;  %s14128_s18 = smov 4  }
   0x3   :  { %s14180_s13 = sld [smem:[%s16114_s0 + %s14126_s10]]   ;;  %s14129_s22 = smov 5  }
   0x4   :  { %s14185_s17 = sld [smem:[%s16114_s0 + %s14127_s14]]   ;;  %s14130_s26 = smov 6  }
   0x5   :  { %s14190_s21 = sld [smem:[%s16114_s0 + %s14128_s18]]   ;;  %s14131_s30 = smov 7  }
   0x6   :  { %s14195_s25 = sld [smem:[%s16114_s0 + %s14129_s22]]   ;;  %s14132_s4 = smov 8  }
   0x7   :  { %s14200_s29 = sld [smem:[%s16114_s0 + %s14130_s26]]   ;;  %s14133_s10 = smov 9  }
   0x8   :  { %16130 = sst [smem:[#allocation5_spill]] %s14175_s9  ;;  %s14134_s15 = smov 10  }
   0x9   :  { %s14205_s3 = sld [smem:[%s16114_s0 + %s14131_s30]]   ;;  %s14135_s20 = smov 11  }
   0xa   :  { %16131 = sst [smem:[#allocation6_spill]] %s14185_s17  ;;  %s14136_s26 = smov 12  }
   0xb   :  { %s14210_s8 = sld [smem:[%s16114_s0 + %s14132_s4]]   ;;  %s14137_s1 = smov 13  }
   0xc   :  { %s14215_s14 = sld [smem:[%s16114_s0 + %s14133_s10]]   ;;  %s14138_s7 = smov 14  }
   0xd   :  { %s14220_s19 = sld [smem:[%s16114_s0 + %s14134_s15]]   ;;  %s14139_s15 = smov 15  }
   0xe   :  { %s14225_s24 = sld [smem:[%s16114_s0 + %s14135_s20]]   ;;  %s14140_s22 = smov 16  }
   0xf   :  { %s14230_s30 = sld [smem:[%s16114_s0 + %s14136_s26]]   ;;  %s14141_s28 = smov 17  }
  0x10   :  { %s14235_s6 = sld [smem:[%s16114_s0 + %s14137_s1]]  }
  0x11   :  { %s14240_s12 = sld [smem:[%s16114_s0 + %s14138_s7]]   ;;  %s14142_s7 = smov 18  }
  0x12   :  { %s14245_s20 = sld [smem:[%s16114_s0 + %s14139_s15]]   ;;  %s14143_s15 = smov 19  }
  0x13   :  { %s14250_s27 = sld [smem:[%s16114_s0 + %s14140_s22]]   ;;  %s14144_s22 = smov 20  }
  0x14   :  { %s14255_s4 = sld [smem:[%s16114_s0 + %s14141_s28]]   ;;  %s14145_s28 = smov 21  }
  0x15   :  { %s14260_s17 = sld [smem:[%s16114_s0 + %s14142_s7]]   ;;  %s14146_s7 = smov 22  }
  0x16   :  { %s14270_s9 = sld [smem:[%s16114_s0 + %s14144_s22]]   ;;  %s14148_s22 = smov 24  }
  0x18   :  { %16132 = sst [smem:[#allocation7_spill]] %s14245_s20 }
  0x19   :  { %s14265_s20 = sld [smem:[%s16114_s0 + %s14143_s15]]   ;;  %s14147_s15 = smov 23  }
  0x1a   :  { %16133 = sst [smem:[#allocation8_spill]] %s14255_s4 }
  0x1b   :  { %16134 = sst [smem:[#allocation9_spill]] %s14260_s17 }
  0x1c   :  { %16136 = sst [smem:[#allocation11_spill]] %s14270_s9 }
  0x1d   :  { %s14275_s4 = sld [smem:[%s16114_s0 + %s14145_s28]]   ;;  %s14149_s28 = smov 25  }
  0x1e   :  { %s14280_s17 = sld [smem:[%s16114_s0 + %s14146_s7]]   ;;  %s14150_s7 = smov 26  }
  0x1f   :  { %16135 = sst [smem:[#allocation10_spill]] %s14265_s20 }
  0x20   :  { %s14285_s20 = sld [smem:[%s16114_s0 + %s14147_s15]]   ;;  %s14151_s15 = smov 27  }
  0x21   :  { %s14290_s9 = sld [smem:[%s16114_s0 + %s14148_s22]]   ;;  %s14152_s22 = smov 28  }
  0x23   :  { %16137 = sst [smem:[#allocation12_spill]] %s14275_s4 }
  0x24   :  { %16138 = sst [smem:[#allocation13_spill]] %s14280_s17 }
  0x25   :  { %s14295_s4 = sld [smem:[%s16114_s0 + %s14149_s28]]   ;;  %s14153_s28 = smov 29  }
  0x26   :  { %16139 = sst [smem:[#allocation14_spill]] %s14285_s20 }
  0x27   :  { %16140 = sst [smem:[#allocation15_spill]] %s14290_s9 }
  0x28   :  { %s14300_s17 = sld [smem:[%s16114_s0 + %s14150_s7]]   ;;  %s14154_s7 = smov 30  }
  0x29   :  { %s14305_s20 = sld [smem:[%s16114_s0 + %s14151_s15]]   ;;  %s14155_s15 = smov 31  }
  0x2a   :  { %s14310_s9 = sld [smem:[%s16114_s0 + %s14152_s22]]   ;;  %s14156_s22 = smov 32  }
  0x2b   :  { %16141 = sst [smem:[#allocation16_spill]] %s14295_s4 }
  0x2c   :  { %s14315_s4 = sld [smem:[%s16114_s0 + %s14153_s28]]  }
  0x2e   :  { %16142 = sst [smem:[#allocation17_spill]] %s14300_s17 }
  0x2f   :  { %16143 = sst [smem:[#allocation18_spill]] %s14305_s20 }
  0x30   :  { %16144 = sst [smem:[#allocation19_spill]] %s14310_s9 }
  0x31   :  { %s14320_s17 = sld [smem:[%s16114_s0 + %s14154_s7]]  }
  0x32   :  { %s14325_s20 = sld [smem:[%s16114_s0 + %s14155_s15]]  }
  0x33   :  { %s14330_s9 = sld [smem:[%s16114_s0 + %s14156_s22]]  }
  0x34   :  { %v13663_v0 = vld [vmem:[%s14190_s21 + $0x8] sm:$0xff]   ;;  %v14157_v1 = vmov 0.0   ;;  %v13664_v2 = vld [vmem:[%s14190_s21 + $0x18] sm:$0xff]   ;;  %v13665_v3 = vld [vmem:[%s14190_s21] sm:$0xff]   ;;  %vm14158_vm0 = vmmov 0   ;;  %vm335_vm1 = vcmask 261120  }
  0x35   :  { %12186 = vmatprep.subr.bf16.mxu0 %v14157_v1  ;;  %12194 = vmatprep.subr.bf16.mxu1 %v14157_v1  ;;  %v13666_v4 = vld [vmem:[%s14190_s21 + $0x10] sm:$0xff]   ;;  %v136_v5 = vld [vmem:[%s14170_s5] sm:$0xff]  ;;  %v13667_v7 = vld [vmem:[%s14190_s21 + $0x28] sm:$0xff]  }
  0x36   :  { %12187 = vmatpush3.bf16.msra.mxu0 %v13663_v0  ;;  %12190 = vmatprep.mubr.msk.bf16.mxu0 %vm14158_vm0, %v14157_v1  ;;  %v14345_v6 = vpack.c.bf16 %v136_v5, %v136_v5  ;;  %v13668_v8 = vld [vmem:[%s14190_s21 + $0x38] sm:$0xff]   ;;  %v13669_v9 = vld [vmem:[%s14190_s21 + $0x20] sm:$0xff]   ;;  %v13670_v10 = vld [vmem:[%s14190_s21 + $0x30] sm:$0xff]  }
  0x37   :  { %12195 = vmatpush3.bf16.msra.mxu1 %v13664_v2  ;;  %12188 = vmatprep.subr.bf16.mxu0 %v14157_v1  ;;  %v13671_v11 = vld [vmem:[%s14200_s29 + $0x8] sm:$0xff]   ;;  %v13672_v12 = vld [vmem:[%s14200_s29 + $0x18] sm:$0xff]   ;;  %v13673_v13 = vld [vmem:[%s14200_s29] sm:$0xff]  }
  0x38   :  { %12196 = vmatprep.subr.bf16.mxu1 %v14157_v1  ;;  %12198 = vmatprep.mubr.msk.bf16.mxu1 %vm14158_vm0, %v14157_v1  ;;  %v13674_v14 = vld [vmem:[%s14200_s29 + $0x10] sm:$0xff]   ;;  %v13675_v15 = vld [vmem:[%s14200_s29 + $0x28] sm:$0xff]   ;;  %v13676_v16 = vld [vmem:[%s14200_s29 + $0x38] sm:$0xff]  }
  0x39   :  { %v13677_v17 = vld [vmem:[%s14200_s29 + $0x20] sm:$0xff]   ;;  %v13678_v18 = vld [vmem:[%s14200_s29 + $0x30] sm:$0xff]   ;;  %v13679_v19 = vld [vmem:[%s14210_s8 + $0x8] sm:$0xff]  }
  0x3a   :  { %12189 = vmatpush3.bf16.msra.mxu0 %v13665_v3  ;;  %v13680_v20 = vld [vmem:[%s14210_s8] sm:$0xff]   ;;  %v13681_v21 = vld [vmem:[%s14210_s8 + $0x18] sm:$0xff]   ;;  %v13682_v22 = vld [vmem:[%s14210_s8 + $0x10] sm:$0xff]  }
  0x3b   :  { %12197 = vmatpush3.bf16.msra.mxu1 %v13666_v4  ;;  %12202 = vmatprep.subr.bf16.mxu0 %v14157_v1  ;;  %v13683_v23 = vld [vmem:[%s14210_s8 + $0x28] sm:$0xff]  }
  0x3c   :  { %12210 = vmatprep.subr.bf16.mxu1 %v14157_v1 }
  0x3d   :  { %12191 = vmatmul.mubr.msk.bf16.vlgmr.msra.gmra.mxu0 %vm335_vm1, %v14345_v6 }
  0x3e   :  { %12199 = vmatmul.mubr.msk.bf16.vlgmr.msra.gmra.mxu1 %vm335_vm1, %v14345_v6  ;;  %12203 = vmatpush3.bf16.msra.mxu0 %v13667_v7 }
  0x3f   :  { %12211 = vmatpush3.bf16.msra.mxu1 %v13668_v8  ;;  %12204 = vmatprep.subr.bf16.mxu0 %v14157_v1 }
  0x40   :  { %12212 = vmatprep.subr.bf16.mxu1 %v14157_v1  ;;  %12206 = vmatprep.mubr.msk.bf16.mxu0 %vm14158_vm0, %v14157_v1 }
  0x41   :  { %12214 = vmatprep.mubr.msk.bf16.mxu1 %vm14158_vm0, %v14157_v1 }
  0x42   :  { %12205 = vmatpush3.bf16.msra.mxu0 %v13669_v9 }
  0x43   :  { %12213 = vmatpush3.bf16.msra.mxu1 %v13670_v10  ;;  %12218 = vmatprep.subr.bf16.mxu0 %v14157_v1 }
  0x44   :  { %12226 = vmatprep.subr.bf16.mxu1 %v14157_v1 }
  0x45   :  { %12207 = vmatmul.mubr.msk.bf16.vlgmr.msra.gmra.mxu0 %vm335_vm1, %v14345_v6 }
  0x46   :  { %12215 = vmatmul.mubr.msk.bf16.vlgmr.msra.gmra.mxu1 %vm335_vm1, %v14345_v6  ;;  %12219 = vmatpush3.bf16.msra.mxu0 %v13671_v11 }
  0x47   :  { %12227 = vmatpush3.bf16.msra.mxu1 %v13672_v12  ;;  %12220 = vmatprep.subr.bf16.mxu0 %v14157_v1 }
  0x48   :  { %12228 = vmatprep.subr.bf16.mxu1 %v14157_v1  ;;  %12222 = vmatprep.mubr.msk.bf16.mxu0 %vm14158_vm0, %v14157_v1 }
  0x49   :  { %12230 = vmatprep.mubr.msk.bf16.mxu1 %vm14158_vm0, %v14157_v1 }
  0x4a   :  { %12221 = vmatpush3.bf16.msra.mxu0 %v13673_v13 }
  0x4b   :  { %12229 = vmatpush3.bf16.msra.mxu1 %v13674_v14  ;;  %12234 = vmatprep.subr.bf16.mxu0 %v14157_v1 }
  0x4c   :  { %12242 = vmatprep.subr.bf16.mxu1 %v14157_v1 }
  0x4d   :  { %12223 = vmatmul.mubr.msk.bf16.vlgmr.msra.gmra.mxu0 %vm335_vm1, %v14345_v6 }
  0x4e   :  { %12231 = vmatmul.mubr.msk.bf16.vlgmr.msra.gmra.mxu1 %vm335_vm1, %v14345_v6  ;;  %12235 = vmatpush3.bf16.msra.mxu0 %v13675_v15 }
  0x4f   :  { %12243 = vmatpush3.bf16.msra.mxu1 %v13676_v16  ;;  %12236 = vmatprep.subr.bf16.mxu0 %v14157_v1 }
  0x50   :  { %12244 = vmatprep.subr.bf16.mxu1 %v14157_v1  ;;  %12238 = vmatprep.mubr.msk.bf16.mxu0 %vm14158_vm0, %v14157_v1 }
  0x51   :  { %12246 = vmatprep.mubr.msk.bf16.mxu1 %vm14158_vm0, %v14157_v1 }
  0x52   :  { %12237 = vmatpush3.bf16.msra.mxu0 %v13677_v17 }
  0x53   :  { %12245 = vmatpush3.bf16.msra.mxu1 %v13678_v18  ;;  %12250 = vmatprep.subr.bf16.mxu0 %v14157_v1 }
  0x54   :  { %12258 = vmatprep.subr.bf16.mxu1 %v14157_v1 }
  0x55   :  { %12239 = vmatmul.mubr.msk.bf16.vlgmr.msra.gmra.mxu0 %vm335_vm1, %v14345_v6 }
  0x56   :  { %12247 = vmatmul.mubr.msk.bf16.vlgmr.msra.gmra.mxu1 %vm335_vm1, %v14345_v6  ;;  %12254 = vmatprep.mubr.msk.bf16.mxu0 %vm14158_vm0, %v14157_v1 }
  0x57   :  { %12262 = vmatprep.mubr.msk.bf16.mxu1 %vm14158_vm0, %v14157_v1  ;;  %12251 = vmatpush3.bf16.msra.mxu0 %v13679_v19 }
  0x58   :  { %12252 = vmatprep.subr.bf16.mxu0 %v14157_v1  ;;  %12259 = vmatpush3.bf16.msra.mxu1 %v13681_v21 }
  0x59   :  { %12260 = vmatprep.subr.bf16.mxu1 %v14157_v1 }
  0x5b   :  { %12253 = vmatpush3.bf16.msra.mxu0 %v13680_v20 }
  0x5c   :  { %12266 = vmatprep.subr.bf16.mxu0 %v14157_v1 }
  0x5e   :  { %12255 = vmatmul.mubr.msk.bf16.vlgmr.msra.gmra.mxu0 %vm335_vm1, %v14345_v6 }
  0x5f   :  { %70 = vsyncpa [#allocation3], 0  ;;  %12261 = vmatpush3.bf16.msra.mxu1 %v13682_v22  ;;  %12267 = vmatpush3.bf16.msra.mxu0 %v13683_v23  ;;  %v13684_v24 = vld [vmem:[%s14210_s8 + $0x20] sm:$0xff]   ;;  %v13685_v25 = vld [vmem:[%s14210_s8 + $0x38] sm:$0xff]   ;;  %vm1007_vm2 = vcmask 64512   ;;  %vm1255_vm3 = vcmask 1043456  }
  0x60   :  { %12268 = vmatprep.subr.bf16.mxu0 %v14157_v1  ;;  %12274 = vmatprep.subr.bf16.mxu1 %v14157_v1  ;;  %v13686_v26 = vld [vmem:[%s14210_s8 + $0x30] sm:$0xff]   ;;  %v11153_v42 = vld [vmem:[%s14205_s3] ss:$0 sm:$0xff]  ;;  %v11154_v44 = vld [vmem:[%s14205_s3 + $0x1] ss:$0 sm:$0xff]  ;;  %s16145_s0 = sld [smem:[#allocation5_spill]] }
  0x61   :  { %12270 = vmatprep.mubr.msk.bf16.mxu0 %vm14158_vm0, %v14157_v1  ;;  %v11137_v52 = vld [vmem:[%s14195_s25] ss:$0 sm:$0xff]  ;;  %v11138_v55 = vld [vmem:[%s14195_s25 + $0x1] ss:$0 sm:$0xff]  ;;  %v11155_v60 = vld [vmem:[%s14205_s3 + $0x2] ss:$0 sm:$0xff] }
  0x62   :  { %12263 = vmatmul.mubr.msk.bf16.vlgmr.msra.gmra.mxu1 %vm335_vm1, %v14345_v6  ;;  %v11156_v63 = vld [vmem:[%s14205_s3 + $0x3] ss:$0 sm:$0xff]  ;;  %v11139_v11 = vld [vmem:[%s14195_s25 + $0x2] ss:$0 sm:$0xff]  ;;  %s16146_s28 = sld [smem:[#allocation9_spill]]  ;;  %vm3132_vm4 = vcmask 523264  }
  0x63   :  { %12269 = vmatpush3.bf16.msra.mxu0 %v13684_v24  ;;  %12275 = vmatpush3.bf16.msra.mxu1 %v13685_v25  ;;  %v11140_v14 = vld [vmem:[%s14195_s25 + $0x3] ss:$0 sm:$0xff]  ;;  %v11169_v24 = vld [vmem:[%s14215_s14] ss:$0 sm:$0xff]  ;;  %s16147_s1 = sld [smem:[#allocation8_spill]] }
  0x64   :  { %12276 = vmatprep.subr.bf16.mxu1 %v14157_v1  ;;  %12278 = vmatprep.mubr.msk.bf16.mxu1 %vm14158_vm0, %v14157_v1  ;;  %s16148_s2 = sld [smem:[#allocation7_spill]] }
  0x65   :  { %12282 = vmatprep.subr.bf16.mxu0 %v14157_v1  ;;  %s16149_s7 = sld [smem:[#allocation10_spill]] }
  0x66   :  { %12271 = vmatmul.mubr.msk.bf16.vlgmr.msra.gmra.mxu0 %vm335_vm1, %v14345_v6  ;;  %s16150_s10 = sld [smem:[#allocation6_spill]] }
  0x67   :  { %12277 = vmatpush3.bf16.msra.mxu1 %v13686_v26  ;;  %12284 = vmatprep.mubr.msk.bf16.mxu0 %vm14158_vm0, %v14157_v1  ;;  %s16151_s11 = sld [smem:[#allocation11_spill]] }
  0x68   :  { %12288 = vmatprep.subr.bf16.mxu1 %v14157_v1  ;;  %s16152_s15 = sld [smem:[#allocation12_spill]] }
  0x69   :  { %s16153_s16 = sld [smem:[#allocation15_spill]] }
  0x6a   :  { %12279 = vmatmul.mubr.msk.bf16.vlgmr.msra.gmra.mxu1 %vm335_vm1, %v14345_v6  ;;  %s16154_s18 = sld [smem:[#allocation17_spill]] }
  0x6b   :  { %12290 = vmatprep.mubr.msk.bf16.mxu1 %vm14158_vm0, %v14157_v1  ;;  %s16155_s22 = sld [smem:[#allocation13_spill]] }
  0x6c   :  { %s16156_s23 = sld [smem:[#allocation14_spill]] }
  0x6d   :  { %s16158_s26 = sld [smem:[#allocation18_spill]] }
  0xfd   :  { %v373_v27 = vpop.f32.mrf.mxu0 }
  0xfe   :  { %v425_v28 = vpop.f32.mrf.mxu1  ;;  %v374_v61 = vadd.f32 %v11137_v52, %v373_v27 }
  0xff   :  { %v12192_v29 = vpop.f32.mrf.mxu0  ;;  %v426_v0 = vadd.f32 %v11138_v55, %v425_v28  ;;  %v11170_v28 = vld [vmem:[%s14215_s14 + $0x1] ss:$0 sm:$0xff] }
 0x100   :  { %v12200_v30 = vpop.f32.mrf.mxu1  ;;  %v999_v7 = vpack.c.bf16 %v374_v61, %v374_v61 }
 0x101   :  { %v376_v31 = vpop.f32.mrf.mxu0  ;;  %v1000_v10 = vpack.c.bf16 %v426_v0, %v426_v0 }
 0x102   :  { %v428_v32 = vpop.f32.mrf.mxu1 }
 0x103   :  { %v12193_v33 = vpop.f32.mrf.mxu0 }
 0x104   :  { %v12201_v34 = vpop.f32.mrf.mxu1 }
 0x105   :  { %v477_v35 = vpop.f32.mrf.mxu0 }
 0x106   :  { %v529_v36 = vpop.f32.mrf.mxu1  ;;  %v478_v19 = vadd.f32 %v11139_v11, %v477_v35 }
 0x107   :  { %v12208_v37 = vpop.f32.mrf.mxu0  ;;  %v530_v21 = vadd.f32 %v11140_v14, %v529_v36 }
 0x108   :  { %v12216_v38 = vpop.f32.mrf.mxu1  ;;  %v1001_v22 = vpack.c.bf16 %v478_v19, %v478_v19 }
 0x109   :  { %v480_v39 = vpop.f32.mrf.mxu0  ;;  %v1002_v23 = vpack.c.bf16 %v530_v21, %v530_v21 }
 0x10a   :  { %v532_v40 = vpop.f32.mrf.mxu1 }
 0x10b   :  { %v12209_v41 = vpop.f32.mrf.mxu0 }
 0x10c   :  { %v12217_v43 = vpop.f32.mrf.mxu1 }
 0x10d   :  { %v605_v45 = vpop.f32.mrf.mxu0 }
 0x10e   :  { %v606_v46 = vadd.f32 %v11153_v42, %v605_v45  ;;  %v657_v47 = vpop.f32.mrf.mxu1 }
 0x10f   :  { %v658_v48 = vadd.f32 %v11154_v44, %v657_v47  ;;  %v12224_v49 = vpop.f32.mrf.mxu0 }
 0x110   :  { %v1003_v50 = vpack.c.bf16 %v606_v46, %v606_v46  ;;  %v12232_v51 = vpop.f32.mrf.mxu1  ;;  %v142_v49 = vld [vmem:[%s14180_s13] sm:$0xff] }
 0x111   :  { %v1004_v53 = vpack.c.bf16 %v658_v48, %v658_v48  ;;  %v608_v54 = vpop.f32.mrf.mxu0 }
 0x112   :  { %v1012_v56 = vsel %vm1007_vm2, %v1003_v50, 0  ;;  %v660_v57 = vpop.f32.mrf.mxu1 }
 0x113   :  { %v1058_v58 = vsel %vm1007_vm2, %v1004_v53, 0  ;;  %v12225_v59 = vpop.f32.mrf.mxu0  ;;  %12283 = vmatpush3.bf16.xpose.msra.mxu0 %v1012_v56 }
 0x114   :  { %v12233_v62 = vpop.f32.mrf.mxu1  ;;  %12289 = vmatpush3.bf16.xpose.msra.mxu1 %v1058_v58  ;;  %12294 = vmatprep.subr.bf16.mxu0 %v14157_v1 }
 0x115   :  { %v709_v2 = vpop.f32.mrf.mxu0  ;;  %12300 = vmatprep.subr.bf16.mxu1 %v14157_v1 }
 0x116   :  { %v710_v3 = vadd.f32 %v11155_v60, %v709_v2  ;;  %v761_v4 = vpop.f32.mrf.mxu1 }
 0x117   :  { %v762_v5 = vadd.f32 %v11156_v63, %v761_v4  ;;  %v12240_v6 = vpop.f32.mrf.mxu0 }
 0x118   :  { %v1005_v8 = vpack.c.bf16 %v710_v3, %v710_v3  ;;  %v12248_v9 = vpop.f32.mrf.mxu1 }
 0x119   :  { %v1006_v12 = vpack.c.bf16 %v762_v5, %v762_v5  ;;  %v712_v13 = vpop.f32.mrf.mxu0 }
 0x11a   :  { %v1104_v15 = vsel %vm1007_vm2, %v1005_v8, 0  ;;  %v764_v16 = vpop.f32.mrf.mxu1  ;;  %12285 = vmatmul.mubr.msk.bf16.vlgmr.msra.gmra.mxu0 %vm1007_vm2, %v999_v7 }
 0x11b   :  { %v1150_v17 = vsel %vm1007_vm2, %v1006_v12, 0  ;;  %12291 = vmatmul.mubr.msk.bf16.vlgmr.msra.gmra.mxu1 %vm1007_vm2, %v1000_v10  ;;  %v12241_v18 = vpop.f32.mrf.mxu0  ;;  %12295 = vmatpush3.bf16.xpose.msra.mxu0 %v1104_v15 }
 0x11c   :  { %v12249_v20 = vpop.f32.mrf.mxu1  ;;  %12301 = vmatpush3.bf16.xpose.msra.mxu1 %v1150_v17  ;;  %12296 = vmatprep.mubr.msk.bf16.mxu0 %vm14158_vm0, %v14157_v1 }
 0x11d   :  { %12302 = vmatprep.mubr.msk.bf16.mxu1 %vm14158_vm0, %v14157_v1  ;;  %12306 = vmatprep.subr.bf16.mxu0 %v14157_v1 }
 0x11e   :  { %12312 = vmatprep.subr.bf16.mxu1 %v14157_v1  ;;  %v837_v25 = vpop.f32.mrf.mxu0 }
 0x11f   :  { %v838_v26 = vadd.f32 %v11169_v24, %v837_v25 }
 0x120   :  { %v12256_v27 = vpop.f32.mrf.mxu0 }
 0x121   :  { %v1248_v29 = vpack.c.bf16 %v838_v26, %v838_v26 }
 0x122   :  { %12297 = vmatmul.mubr.msk.bf16.vlgmr.msra.gmra.mxu0 %vm1007_vm2, %v1001_v22  ;;  %v840_v30 = vpop.f32.mrf.mxu0  ;;  %v889_v31 = vpop.f32.mrf.mxu1 }
 0x123   :  { %12303 = vmatmul.mubr.msk.bf16.vlgmr.msra.gmra.mxu1 %vm1007_vm2, %v1002_v23  ;;  %12308 = vmatprep.mubr.msk.bf16.mxu0 %vm14158_vm0, %v14157_v1  ;;  %v1257_v32 = vsel %vm1255_vm3, %v1248_v29, 0  ;;  %v890_v33 = vadd.f32 %v11170_v28, %v889_v31 }
 0x124   :  { %12314 = vmatprep.mubr.msk.bf16.mxu1 %vm14158_vm0, %v14157_v1  ;;  %v12257_v34 = vpop.f32.mrf.mxu0  ;;  %v12264_v35 = vpop.f32.mrf.mxu1  ;;  %12307 = vmatpush3.bf16.msra.mxu0 %v1257_v32 }
 0x125   :  { %v1249_v36 = vpack.c.bf16 %v890_v33, %v890_v33  ;;  %12318 = vmatprep.subr.bf16.mxu0 %v14157_v1 }
 0x126   :  { %v892_v37 = vpop.f32.mrf.mxu1  ;;  %v14469_v38 = vpop.f32.mrf.mxu0 }
 0x127   :  { %v1303_v39 = vsel %vm1255_vm3, %v1249_v36, 0  ;;  %v11171_v36 = vld [vmem:[%s14215_s14 + $0x2] ss:$0 sm:$0xff] }
 0x128   :  { %v12265_v40 = vpop.f32.mrf.mxu1  ;;  %v12272_v41 = vpop.f32.mrf.mxu0  ;;  %12313 = vmatpush3.bf16.msra.mxu1 %v1303_v39  ;;  %v942_v39 = vadd.f32 %v11171_v36, %v14469_v38 }
 0x129   :  { %12324 = vmatprep.subr.bf16.mxu1 %v14157_v1  ;;  %v11172_v40 = vld [vmem:[%s14215_s14 + $0x3] ss:$0 sm:$0xff] }
 0x12a   :  { %v944_v42 = vpop.f32.mrf.mxu0  ;;  %v14473_v43 = vpop.f32.mrf.mxu1 }
 0x12c   :  { %v12273_v44 = vpop.f32.mrf.mxu0  ;;  %v12280_v45 = vpop.f32.mrf.mxu1 }
 0x12d   :  { %v1250_v44 = vpack.c.bf16 %v942_v39, %v942_v39  ;;  %v994_v45 = vadd.f32 %v11172_v40, %v14473_v43 }
 0x12e   :  { %v996_v46 = vpop.f32.mrf.mxu1 }
 0x130   :  { %v12281_v47 = vpop.f32.mrf.mxu1 }
 0x1da   :  { %v1048_v48 = vpop.f32.mrf.mxu0 }
 0x1db   :  { %v1192_v50 = vmul.f32 0.35355338, %v1048_v48  ;;  %v1094_v51 = vpop.f32.mrf.mxu1 }
 0x1dc   :  { %v1193_v52 = vmul.f32 0.35355338, %v1094_v51  ;;  %v12286_v53 = vpop.f32.mrf.mxu0 }
 0x1dd   :  { %v12292_v54 = vpop.f32.mrf.mxu1  ;;  %v1196_v55 = vadd.f32 %v1192_v50, %v142_v49  ;;  %v1251_v50 = vpack.c.bf16 %v994_v45, %v994_v45  ;;  %v208_v53 = vld [vmem:[%s14220_s19] sm:$0xf] }
 0x1de   :  { %v1051_v56 = vpop.f32.mrf.mxu0  ;;  %v1197_v59 = vadd.f32 %v1193_v52, %v142_v49 }
 0x1df   :  { %v1097_v57 = vpop.f32.mrf.mxu1  ;;  %v1200_v58 = vsel %vm1007_vm2, %v1196_v55, -inf  ;;  %v1395_v43 = vsel %vm1255_vm3, %v1251_v50, 0  ;;  %v14499_v56 = vsel %vm1255_vm3, %v208_v53, 0  ;;  %v13925_v50 = vld [vmem:[%s14170_s5] sm:$0xff] }
 0x1e0   :  { %1201 = vmax.xlane.f32.xlu0 %v1200_v58  ;;  %v12287_v60 = vpop.f32.mrf.mxu0  ;;  %v1203_v2 = vsel %vm1007_vm2, %v1197_v59, -inf }
 0x1e1   :  { %v12293_v61 = vpop.f32.mrf.mxu1  ;;  %v209_v60 = vld [vmem:[%s14220_s19 + $0x4] sm:$0xf] }
 0x1e2   :  { %v1140_v62 = vpop.f32.mrf.mxu0  ;;  %v14512_v61 = vsel %vm1255_vm3, %v209_v60, 0  ;;  %v13690_v60 = vld [vmem:[%s14240_s12 + $0x10] sm:$0xff]  }
 0x1e3   :  { %v1194_v63 = vmul.f32 0.35355338, %v1140_v62  ;;  %v1186_v0 = vpop.f32.mrf.mxu1  ;;  %v210_v62 = vld [vmem:[%s14220_s19 + $0x8] sm:$0xf] }
 0x1e4   :  { %v1195_v3 = vmul.f32 0.35355338, %v1186_v0  ;;  %1204 = vmax.xlane.f32.xlu0 %v1203_v2  ;;  %v12298_v4 = vpop.f32.mrf.mxu0  ;;  %v14518_v2 = vsel %vm1255_vm3, %v210_v62, 0 }
 0x1e5   :  { %v12304_v5 = vpop.f32.mrf.mxu1  ;;  %v1198_v6 = vadd.f32 %v1194_v63, %v142_v49  ;;  %v211_v4 = vld [vmem:[%s14220_s19 + $0xc] sm:$0xf] }
 0x1e6   :  { %v1143_v7 = vpop.f32.mrf.mxu0  ;;  %v1199_v10 = vadd.f32 %v1195_v3, %v142_v49  ;;  %v1349_v49 = vsel %vm1255_vm3, %v1250_v44, 0 }
 0x1e7   :  { %v1189_v8 = vpop.f32.mrf.mxu1  ;;  %v1206_v9 = vsel %vm1007_vm2, %v1198_v6, -inf }
 0x1e8   :  { %1207 = vmax.xlane.f32.xlu1 %v1206_v9  ;;  %v12299_v11 = vpop.f32.mrf.mxu0  ;;  %v1209_v13 = vsel %vm1007_vm2, %v1199_v10, -inf  ;;  %v14526_v8 = vsel %vm1255_vm3, %v211_v4, 0  ;;  %v11198_v4 = vld [vmem:[%s14230_s30] ss:$0 sm:$0xff] }
 0x1e9   :  { %v12305_v12 = vpop.f32.mrf.mxu1 }
 0x1ec   :  { %1210 = vmax.xlane.f32.xlu1 %v1209_v13 }
 0x269   :  { %v1202_v14 = vpop.xlane.xlu0 %1201 }
 0x26a   :  { %v1212_v15 = vsub.f32 %v1196_v55, %v1202_v14 }
 0x26c   :  { %v1216_v16 = vmul.f32 1.442695, %v1212_v15 }
 0x26d   :  { %v1205_v17 = vpop.xlane.xlu0 %1204 }
 0x26e   :  { %13773 = vpow2.f32 %v1216_v16  ;;  %v1213_v18 = vsub.f32 %v1197_v59, %v1205_v17 }
 0x270   :  { %v1218_v19 = vmul.f32 1.442695, %v1213_v18 }
 0x271   :  { %v1208_v20 = vpop.xlane.xlu1 %1207 }
 0x272   :  { %13775 = vpow2.f32 %v1218_v19  ;;  %v1214_v21 = vsub.f32 %v1198_v6, %v1208_v20 }
 0x274   :  { %v1220_v22 = vmul.f32 1.442695, %v1214_v21 }
 0x275   :  { %v1211_v23 = vpop.xlane.xlu1 %1210 }
 0x276   :  { %13777 = vpow2.f32 %v1220_v22  ;;  %v1215_v24 = vsub.f32 %v1199_v10, %v1211_v23 }
 0x278   :  { %v1222_v25 = vmul.f32 1.442695, %v1215_v24 }
 0x27a   :  { %13779 = vpow2.f32 %v1222_v25 }
 0x27b   :  { %v13774_v26 = vpop.eup %13773 }
 0x27c   :  { %v1224_v27 = vsel %vm1007_vm2, %v13774_v26, 0.0 }
 0x27d   :  { %1225 = vadd.xlane.f32.xlu0 %v1224_v27 }
 0x27f   :  { %v13776_v28 = vpop.eup %13775 }
 0x280   :  { %v1227_v29 = vsel %vm1007_vm2, %v13776_v28, 0.0 }
 0x281   :  { %1228 = vadd.xlane.f32.xlu1 %v1227_v29 }
 0x283   :  { %v13778_v30 = vpop.eup %13777 }
 0x284   :  { %v1230_v31 = vsel %vm1007_vm2, %v13778_v30, 0.0 }
 0x285   :  { %1231 = vadd.xlane.f32.xlu0 %v1230_v31 }
 0x287   :  { %v13780_v32 = vpop.eup %13779 }
 0x288   :  { %v1233_v33 = vsel %vm1007_vm2, %v13780_v32, 0.0 }
 0x289   :  { %1234 = vadd.xlane.f32.xlu1 %v1233_v33 }
 0x306   :  { %v1226_v34 = vpop.xlane.xlu0 %1225 }
 0x307   :  { %13781 = vrcp.f32 %v1226_v34 }
 0x30a   :  { %v1229_v35 = vpop.xlane.xlu1 %1228 }
 0x30b   :  { %13783 = vrcp.f32 %v1229_v35 }
 0x30e   :  { %v1232_v37 = vpop.xlane.xlu0 %1231 }
 0x30f   :  { %13785 = vrcp.f32 %v1232_v37 }
 0x312   :  { %v1235_v41 = vpop.xlane.xlu1 %1234 }
 0x313   :  { %13787 = vrcp.f32 %v1235_v41  ;;  %v11197_v41 = vld [vmem:[%s14225_s24] ss:$0 sm:$0xff] }
 0x314   :  { %v13782_v42 = vpop.eup %13781 }
 0x315   :  { %v1240_v46 = vmul.f32 %v13782_v42, %v13774_v26 }
 0x317   :  { %v1244_v47 = vpack.c.bf16 %v1240_v46, %v1240_v46 }
 0x318   :  { %v13784_v48 = vpop.eup %13783 }
 0x319   :  { %12309 = vmatmul.mubr.msk.bf16.vlgmr.msra.gmra.mxu0 %vm1007_vm2, %v1244_v47  ;;  %v1241_v51 = vmul.f32 %v13784_v48, %v13776_v28 }
 0x31a   :  { %12319 = vmatpush3.bf16.msra.mxu0 %v1349_v49  ;;  %12320 = vmatprep.mubr.msk.bf16.mxu0 %vm14158_vm0, %v14157_v1 }
 0x31b   :  { %v1245_v38 = vpack.c.bf16 %v1241_v51, %v1241_v51  ;;  %12330 = vmatprep.subr.bf16.mxu0 %v14157_v1 }
 0x31c   :  { %v13786_v52 = vpop.eup %13785 }
 0x31d   :  { %12315 = vmatmul.mubr.msk.bf16.vlgmr.msra.gmra.mxu1 %vm1007_vm2, %v1245_v38  ;;  %v1242_v54 = vmul.f32 %v13786_v52, %v13778_v30 }
 0x31e   :  { %12325 = vmatpush3.bf16.msra.mxu1 %v1395_v43  ;;  %12326 = vmatprep.mubr.msk.bf16.mxu1 %vm14158_vm0, %v14157_v1 }
 0x31f   :  { %v1246_v55 = vpack.c.bf16 %v1242_v54, %v1242_v54  ;;  %12336 = vmatprep.subr.bf16.mxu1 %v14157_v1 }
 0x320   :  { %v13788_v57 = vpop.eup %13787 }
 0x321   :  { %12321 = vmatmul.mubr.msk.bf16.vlgmr.msra.gmra.mxu0 %vm1007_vm2, %v1246_v55  ;;  %v1243_v58 = vmul.f32 %v13788_v57, %v13780_v32  ;;  %v13687_v57 = vld [vmem:[%s14240_s12 + $0x8] sm:$0xff]  }
 0x322   :  { %12331 = vmatpush3.bf16.msra.mxu0 %v14499_v56  ;;  %12332 = vmatprep.mubr.msk.bf16.mxu0 %vm14158_vm0, %v14157_v1 }
 0x323   :  { %v1247_v59 = vpack.c.bf16 %v1243_v58, %v1243_v58  ;;  %12342 = vmatprep.subr.bf16.mxu0 %v14157_v1  ;;  %v13688_v58 = vld [vmem:[%s14240_s12 + $0x18] sm:$0xff]  }
 0x325   :  { %12327 = vmatmul.mubr.msk.bf16.vlgmr.msra.gmra.mxu1 %vm1007_vm2, %v1247_v59  ;;  %v13689_v59 = vld [vmem:[%s14240_s12] sm:$0xff]  }
 0x326   :  { %12338 = vmatprep.mubr.msk.bf16.mxu1 %vm14158_vm0, %v14157_v1  ;;  %12337 = vmatpush3.bf16.msra.mxu1 %v14512_v61 }
 0x327   :  { %12348 = vmatprep.subr.bf16.mxu1 %v14157_v1 }
 0x3d9   :  { %v1293_v63 = vpop.f32.mrf.mxu0 }
 0x3da   :  { %v1437_v0 = vpack.c.bf16 %v1293_v63, %v1293_v63 }
 0x3db   :  { %v12310_v3 = vpop.f32.mrf.mxu0 }
 0x3dc   :  { %12333 = vmatmul.mubr.msk.bf16.vlgmr.msra.gmra.mxu0 %vm1007_vm2, %v1437_v0 }
 0x3dd   :  { %v1296_v5 = vpop.f32.mrf.mxu0  ;;  %v1339_v6 = vpop.f32.mrf.mxu1  ;;  %12343 = vmatpush3.bf16.msra.mxu0 %v14518_v2  ;;  %12344 = vmatprep.mubr.msk.bf16.mxu0 %vm14158_vm0, %v14157_v1 }
 0x3de   :  { %v1438_v7 = vpack.c.bf16 %v1339_v6, %v1339_v6  ;;  %12354 = vmatprep.subr.bf16.mxu0 %v14157_v1  ;;  %v11199_v6 = vld [vmem:[%s14235_s6] ss:$0 sm:$0xff] }
 0x3df   :  { %v12311_v9 = vpop.f32.mrf.mxu0  ;;  %v12316_v10 = vpop.f32.mrf.mxu1 }
 0x3e0   :  { %12339 = vmatmul.mubr.msk.bf16.vlgmr.msra.gmra.mxu1 %vm1007_vm2, %v1438_v7  ;;  %v13691_v10 = vld [vmem:[%s14240_s12 + $0x28] sm:$0xff]  }
 0x3e1   :  { %v1342_v11 = vpop.f32.mrf.mxu1  ;;  %v1385_v12 = vpop.f32.mrf.mxu0  ;;  %12349 = vmatpush3.bf16.msra.mxu1 %v14526_v8  ;;  %12350 = vmatprep.mubr.msk.bf16.mxu1 %vm14158_vm0, %v14157_v1 }
 0x3e2   :  { %v1439_v13 = vpack.c.bf16 %v1385_v12, %v1385_v12  ;;  %12362 = vmatprep.subr.bf16.mxu1 %v14157_v1  ;;  %v13692_v11 = vld [vmem:[%s14240_s12 + $0x38] sm:$0xff]  }
 0x3e3   :  { %v12317_v14 = vpop.f32.mrf.mxu1  ;;  %v12322_v15 = vpop.f32.mrf.mxu0 }
 0x3e4   :  { %12345 = vmatmul.mubr.msk.bf16.vlgmr.msra.gmra.mxu0 %vm1007_vm2, %v1439_v13  ;;  %v13693_v13 = vld [vmem:[%s14240_s12 + $0x20] sm:$0xff]   ;;  %v13694_v14 = vld [vmem:[%s14240_s12 + $0x30] sm:$0xff]   ;;  %v13695_v15 = vld [vmem:[%s14250_s27 + $0x8] sm:$0xff]  }
 0x3e5   :  { %v1388_v16 = vpop.f32.mrf.mxu0  ;;  %v1431_v17 = vpop.f32.mrf.mxu1  ;;  %12358 = vmatprep.mubr.msk.bf16.mxu0 %vm14158_vm0, %v14157_v1  ;;  %12355 = vmatpush3.bf16.msra.mxu0 %v13687_v57 }
 0x3e6   :  { %v1440_v18 = vpack.c.bf16 %v1431_v17, %v1431_v17  ;;  %12356 = vmatprep.subr.bf16.mxu0 %v14157_v1  ;;  %v13696_v16 = vld [vmem:[%s14250_s27 + $0x18] sm:$0xff]   ;;  %v13697_v17 = vld [vmem:[%s14250_s27] sm:$0xff]  }
 0x3e7   :  { %v12323_v19 = vpop.f32.mrf.mxu0  ;;  %v12328_v20 = vpop.f32.mrf.mxu1 }
 0x3e8   :  { %12351 = vmatmul.mubr.msk.bf16.vlgmr.msra.gmra.mxu1 %vm1007_vm2, %v1440_v18  ;;  %v13698_v18 = vld [vmem:[%s14250_s27 + $0x10] sm:$0xff]   ;;  %v139_v19 = vld [vmem:[%s16145_s0] sm:$0xff] }
 0x3e9   :  { %v1434_v21 = vpop.f32.mrf.mxu1  ;;  %12366 = vmatprep.mubr.msk.bf16.mxu1 %vm14158_vm0, %v14157_v1  ;;  %12363 = vmatpush3.bf16.msra.mxu1 %v13688_v58  ;;  %v14589_v20 = vpack.c.bf16 %v139_v19, %v139_v19 }
 0x3ea   :  { %12364 = vmatprep.subr.bf16.mxu1 %v14157_v1  ;;  %12357 = vmatpush3.bf16.msra.mxu0 %v13689_v59  ;;  %v13699_v21 = vld [vmem:[%s14250_s27 + $0x28] sm:$0xff]  }
 0x3eb   :  { %v12329_v22 = vpop.f32.mrf.mxu1  ;;  %12370 = vmatprep.subr.bf16.mxu0 %v14157_v1 }
 0x3ec   :  { %v13700_v22 = vld [vmem:[%s14250_s27 + $0x38] sm:$0xff]  }
 0x3ed   :  { %12365 = vmatpush3.bf16.msra.mxu1 %v13690_v60  ;;  %v11200_v60 = vld [vmem:[%s16148_s2] ss:$0 sm:$0xff] }
 0x3ee   :  { %12378 = vmatprep.subr.bf16.mxu1 %v14157_v1 }
 0x49c   :  { %v1481_v23 = vpop.f32.mrf.mxu0 }
 0x49d   :  { %v1625_v32 = vsel %vm335_vm1, %v1481_v23, 0.0  ;;  %v13701_v23 = vld [vmem:[%s14250_s27 + $0x20] sm:$0xff]  }
 0x49e   :  { %v12334_v24 = vpop.f32.mrf.mxu0 }
 0x49f   :  { %v13702_v24 = vld [vmem:[%s14250_s27 + $0x30] sm:$0xff]  }
 0x4a0   :  { %v1484_v25 = vpop.f32.mrf.mxu0  ;;  %v1527_v26 = vpop.f32.mrf.mxu1 }
 0x4a1   :  { %v1626_v29 = vsel %vm335_vm1, %v1527_v26, 0.0  ;;  %v13703_v25 = vld [vmem:[%s16146_s28 + $0x8] sm:$0xff]   ;;  %v13704_v26 = vld [vmem:[%s16146_s28 + $0x18] sm:$0xff]  }
 0x4a2   :  { %v12335_v27 = vpop.f32.mrf.mxu0  ;;  %v12340_v28 = vpop.f32.mrf.mxu1  ;;  %v1627_v34 = vadd.f32 %v1626_v29, %v1625_v32  ;;  %v13707_v29 = vld [vmem:[%s16146_s28 + $0x28] sm:$0xff]   ;;  %v13710_v32 = vld [vmem:[%s16146_s28 + $0x30] sm:$0xff]  }
 0x4a3   :  { %v13705_v27 = vld [vmem:[%s16146_s28] sm:$0xff]   ;;  %v13706_v28 = vld [vmem:[%s16146_s28 + $0x10] sm:$0xff]  }
 0x4a4   :  { %v1530_v30 = vpop.f32.mrf.mxu1  ;;  %v1573_v31 = vpop.f32.mrf.mxu0 }
 0x4a5   :  { %v1628_v33 = vsel %vm335_vm1, %v1573_v31, 0.0  ;;  %v13708_v30 = vld [vmem:[%s16146_s28 + $0x38] sm:$0xff]   ;;  %v13709_v31 = vld [vmem:[%s16146_s28 + $0x20] sm:$0xff]  }
 0x4a6   :  { %v12341_v35 = vpop.f32.mrf.mxu1  ;;  %v12346_v36 = vpop.f32.mrf.mxu0  ;;  %v1629_v37 = vadd.f32 %v1628_v33, %v1627_v34 }
 0x4a8   :  { %v1576_v39 = vpop.f32.mrf.mxu0  ;;  %v1619_v40 = vpop.f32.mrf.mxu1 }
 0x4a9   :  { %v1630_v42 = vsel %vm335_vm1, %v1619_v40, 0.0 }
 0x4aa   :  { %v1631_v44 = vadd.f32 %v1630_v42, %v1629_v37  ;;  %v12347_v45 = vpop.f32.mrf.mxu0  ;;  %v12352_v46 = vpop.f32.mrf.mxu1 }
 0x4ac   :  { %v1638_v47 = vadd.f32 %v11197_v41, %v1631_v44  ;;  %v1622_v48 = vpop.f32.mrf.mxu1 }
 0x4ae   :  { %v12353_v49 = vpop.f32.mrf.mxu1  ;;  %v1639_v51 = vadd.f32 %v13925_v50, %v1638_v47 }
 0x4b0   :  { %v1640_v38 = vsel %vm335_vm1, %v1639_v51, 0.0 }
 0x4b1   :  { %1641 = vadd.xlane.f32.xlu0 %v1640_v38  ;;  %v11217_v38 = vld [vmem:[%s16147_s1 + $0x1] ss:$0 sm:$0xff] }
 0x53a   :  { %v1642_v52 = vpop.xlane.xlu0 %1641 }
 0x53b   :  { %v1644_v53 = vmul.f32 0.03125, %v1642_v52 }
 0x53d   :  { %v1645_v43 = vsub.f32 %v1639_v51, %v1644_v53  ;;  %v11216_v51 = vld [vmem:[%s16147_s1] ss:$0 sm:$0xff] }
 0x53f   :  { %v1646_v54 = vmul.f32 %v1645_v43, %v1645_v43 }
 0x541   :  { %v1647_v55 = vsel %vm335_vm1, %v1646_v54, 0.0 }
 0x542   :  { %1648 = vadd.xlane.f32.xlu1 %v1647_v55 }
 0x5cb   :  { %v1649_v62 = vpop.xlane.xlu1 %1648 }
 0x5cc   :  { %v1650_v63 = vmul.f32 0.03125, %v1649_v62  ;;  %v11201_v62 = vld [vmem:[%s16148_s2 + $0x1] ss:$0 sm:$0xff] }
 0x5ce   :  { %v1651_v0 = vadd.f32 1e-06, %v1650_v63 }
 0x5d0   :  { %13789 = vrsqrt.f32 %v1651_v0 }
 0x5dd   :  { %v13790_v3 = vpop.eup %13789 }
 0x5de   :  { %v1653_v5 = vmul.f32 %v13790_v3, %v1645_v43 }
 0x5e0   :  { %v1660_v7 = vmul.f32 %v11198_v4, %v1653_v5 }
 0x5e2   :  { %v14558_v9 = vadd.f32 %v11199_v6, %v1660_v7  ;;  %v11218_v7 = vld [vmem:[%s16147_s1 + $0x2] ss:$0 sm:$0xff] }
 0x5e4   :  { %v1668_v12 = vpack.c.bf16 %v14558_v9, %v14558_v9 }
 0x5e6   :  { %12359 = vmatmul.mubr.msk.bf16.vlgmr.msra.gmra.mxu0 %vm335_vm1, %v1668_v12  ;;  %12367 = vmatmul.mubr.msk.bf16.vlgmr.msra.gmra.mxu1 %vm335_vm1, %v1668_v12 }
 0x5e7   :  { %12371 = vmatpush3.bf16.msra.mxu0 %v13691_v10  ;;  %12379 = vmatpush3.bf16.msra.mxu1 %v13692_v11  ;;  %v11219_v10 = vld [vmem:[%s16147_s1 + $0x3] ss:$0 sm:$0xff] }
 0x5e8   :  { %12372 = vmatprep.subr.bf16.mxu0 %v14157_v1  ;;  %12380 = vmatprep.subr.bf16.mxu1 %v14157_v1 }
 0x5e9   :  { %12374 = vmatprep.mubr.msk.bf16.mxu0 %vm14158_vm0, %v14157_v1  ;;  %12382 = vmatprep.mubr.msk.bf16.mxu1 %vm14158_vm0, %v14157_v1 }
 0x5eb   :  { %12373 = vmatpush3.bf16.msra.mxu0 %v13693_v13  ;;  %12381 = vmatpush3.bf16.msra.mxu1 %v13694_v14 }
 0x5ec   :  { %12386 = vmatprep.subr.bf16.mxu0 %v14157_v1  ;;  %12394 = vmatprep.subr.bf16.mxu1 %v14157_v1 }
 0x5ee   :  { %12375 = vmatmul.mubr.msk.bf16.vlgmr.msra.gmra.mxu0 %vm335_vm1, %v1668_v12  ;;  %12383 = vmatmul.mubr.msk.bf16.vlgmr.msra.gmra.mxu1 %vm335_vm1, %v1668_v12 }
 0x5ef   :  { %12387 = vmatpush3.bf16.msra.mxu0 %v13695_v15  ;;  %12395 = vmatpush3.bf16.msra.mxu1 %v13696_v16 }
 0x5f0   :  { %12388 = vmatprep.subr.bf16.mxu0 %v14157_v1  ;;  %12396 = vmatprep.subr.bf16.mxu1 %v14157_v1 }
 0x5f1   :  { %12390 = vmatprep.mubr.msk.bf16.mxu0 %vm14158_vm0, %v14157_v1  ;;  %12398 = vmatprep.mubr.msk.bf16.mxu1 %vm14158_vm0, %v14157_v1 }
 0x5f3   :  { %12389 = vmatpush3.bf16.msra.mxu0 %v13697_v17  ;;  %12397 = vmatpush3.bf16.msra.mxu1 %v13698_v18 }
 0x5f4   :  { %12402 = vmatprep.subr.bf16.mxu0 %v14157_v1  ;;  %12410 = vmatprep.subr.bf16.mxu1 %v14157_v1 }
 0x5f6   :  { %12391 = vmatmul.mubr.msk.bf16.vlgmr.msra.gmra.mxu0 %vm335_vm1, %v14589_v20  ;;  %12399 = vmatmul.mubr.msk.bf16.vlgmr.msra.gmra.mxu1 %vm335_vm1, %v14589_v20 }
 0x5f7   :  { %12403 = vmatpush3.bf16.msra.mxu0 %v13699_v21  ;;  %12411 = vmatpush3.bf16.msra.mxu1 %v13700_v22 }
 0x5f8   :  { %12404 = vmatprep.subr.bf16.mxu0 %v14157_v1  ;;  %12412 = vmatprep.subr.bf16.mxu1 %v14157_v1 }
 0x5f9   :  { %12406 = vmatprep.mubr.msk.bf16.mxu0 %vm14158_vm0, %v14157_v1  ;;  %12414 = vmatprep.mubr.msk.bf16.mxu1 %vm14158_vm0, %v14157_v1 }
 0x5fb   :  { %12405 = vmatpush3.bf16.msra.mxu0 %v13701_v23  ;;  %12413 = vmatpush3.bf16.msra.mxu1 %v13702_v24  ;;  %v11202_v24 = vld [vmem:[%s16148_s2 + $0x2] ss:$0 sm:$0xff] }
 0x5fc   :  { %12418 = vmatprep.subr.bf16.mxu0 %v14157_v1  ;;  %12426 = vmatprep.subr.bf16.mxu1 %v14157_v1 }
 0x5fe   :  { %12407 = vmatmul.mubr.msk.bf16.vlgmr.msra.gmra.mxu0 %vm335_vm1, %v14589_v20  ;;  %12415 = vmatmul.mubr.msk.bf16.vlgmr.msra.gmra.mxu1 %vm335_vm1, %v14589_v20 }
 0x5ff   :  { %12422 = vmatprep.mubr.msk.bf16.mxu0 %vm14158_vm0, %v14157_v1  ;;  %12430 = vmatprep.mubr.msk.bf16.mxu1 %vm14158_vm0, %v14157_v1 }
 0x600   :  { %12419 = vmatpush3.bf16.msra.mxu0 %v13703_v25  ;;  %12427 = vmatpush3.bf16.msra.mxu1 %v13704_v26  ;;  %v11203_v25 = vld [vmem:[%s16148_s2 + $0x3] ss:$0 sm:$0xff] }
 0x601   :  { %12420 = vmatprep.subr.bf16.mxu0 %v14157_v1  ;;  %12428 = vmatprep.subr.bf16.mxu1 %v14157_v1 }
 0x604   :  { %12421 = vmatpush3.bf16.msra.mxu0 %v13705_v27  ;;  %12429 = vmatpush3.bf16.msra.mxu1 %v13706_v28 }
 0x605   :  { %12434 = vmatprep.subr.bf16.mxu0 %v14157_v1  ;;  %12442 = vmatprep.subr.bf16.mxu1 %v14157_v1 }
 0x607   :  { %12423 = vmatmul.mubr.msk.bf16.vlgmr.msra.gmra.mxu0 %vm335_vm1, %v14589_v20  ;;  %12431 = vmatmul.mubr.msk.bf16.vlgmr.msra.gmra.mxu1 %vm335_vm1, %v14589_v20 }
 0x608   :  { %12435 = vmatpush3.bf16.msra.mxu0 %v13707_v29  ;;  %12438 = vmatprep.mubr.msk.bf16.mxu0 %vm14158_vm0, %v14157_v1 }
 0x609   :  { %12436 = vmatprep.subr.bf16.mxu0 %v14157_v1  ;;  %12443 = vmatpush3.bf16.msra.mxu1 %v13708_v30 }
 0x60a   :  { %12446 = vmatprep.mubr.msk.bf16.mxu1 %vm14158_vm0, %v14157_v1  ;;  %12444 = vmatprep.subr.bf16.mxu1 %v14157_v1 }
 0x60c   :  { %12437 = vmatpush3.bf16.msra.mxu0 %v13709_v31 }
 0x60d   :  { %12450 = vmatprep.subr.bf16.mxu0 %v14157_v1  ;;  %12445 = vmatpush3.bf16.msra.mxu1 %v13710_v32 }
 0x60e   :  { %12456 = vmatprep.subr.bf16.mxu1 %v14157_v1 }
 0x60f   :  { %12439 = vmatmul.mubr.msk.bf16.vlgmr.msra.gmra.mxu0 %vm335_vm1, %v14589_v20 }
 0x610   :  { %12452 = vmatprep.mubr.msk.bf16.mxu0 %vm14158_vm0, %v14157_v1  ;;  %12447 = vmatmul.mubr.msk.bf16.vlgmr.msra.gmra.mxu1 %vm335_vm1, %v14589_v20 }
 0x611   :  { %12458 = vmatprep.mubr.msk.bf16.mxu1 %vm14158_vm0, %v14157_v1 }
 0x6a6   :  { %v1743_v33 = vpop.f32.mrf.mxu0  ;;  %v1795_v34 = vpop.f32.mrf.mxu1 }
 0x6a7   :  { %v1744_v11 = vadd.f32 %v11200_v60, %v1743_v33  ;;  %v1796_v12 = vadd.f32 %v11201_v62, %v1795_v34 }
 0x6a8   :  { %v12360_v35 = vpop.f32.mrf.mxu0  ;;  %v12368_v36 = vpop.f32.mrf.mxu1 }
 0x6a9   :  { %v2372_v19 = vpack.c.bf16 %v1744_v11, %v1744_v11  ;;  %v2373_v21 = vpack.c.bf16 %v1796_v12, %v1796_v12  ;;  %v11232_v36 = vld [vmem:[%s16149_s7] ss:$0 sm:$0xff] }
 0x6aa   :  { %v1746_v37 = vpop.f32.mrf.mxu0  ;;  %v1798_v39 = vpop.f32.mrf.mxu1 }
 0x6ab   :  { %v11233_v39 = vld [vmem:[%s16149_s7 + $0x1] ss:$0 sm:$0xff] }
 0x6ac   :  { %v12361_v40 = vpop.f32.mrf.mxu0  ;;  %v12369_v41 = vpop.f32.mrf.mxu1 }
 0x6ae   :  { %v1847_v42 = vpop.f32.mrf.mxu0  ;;  %v1899_v44 = vpop.f32.mrf.mxu1 }
 0x6af   :  { %v1848_v32 = vadd.f32 %v11202_v24, %v1847_v42  ;;  %v1900_v33 = vadd.f32 %v11203_v25, %v1899_v44 }
 0x6b0   :  { %v12376_v45 = vpop.f32.mrf.mxu0  ;;  %v12384_v46 = vpop.f32.mrf.mxu1 }
 0x6b1   :  { %v2374_v34 = vpack.c.bf16 %v1848_v32, %v1848_v32  ;;  %v2375_v35 = vpack.c.bf16 %v1900_v33, %v1900_v33 }
 0x6b2   :  { %v1850_v47 = vpop.f32.mrf.mxu0  ;;  %v1902_v48 = vpop.f32.mrf.mxu1 }
 0x6b4   :  { %v12377_v49 = vpop.f32.mrf.mxu0  ;;  %v12385_v50 = vpop.f32.mrf.mxu1 }
 0x6b6   :  { %v1978_v52 = vpop.f32.mrf.mxu0  ;;  %v2030_v53 = vpop.f32.mrf.mxu1 }
 0x6b7   :  { %v1979_v43 = vadd.f32 %v11216_v51, %v1978_v52  ;;  %v2031_v54 = vadd.f32 %v11217_v38, %v2030_v53 }
 0x6b8   :  { %v12392_v55 = vpop.f32.mrf.mxu0  ;;  %v12400_v57 = vpop.f32.mrf.mxu1 }
 0x6b9   :  { %v2376_v58 = vpack.c.bf16 %v1979_v43, %v1979_v43  ;;  %v2377_v59 = vpack.c.bf16 %v2031_v54, %v2031_v54 }
 0x6ba   :  { %v1981_v63 = vpop.f32.mrf.mxu0  ;;  %v2033_v0 = vpop.f32.mrf.mxu1 }
 0x6bb   :  { %v2384_v3 = vsel %vm1007_vm2, %v2376_v58, 0  ;;  %v2430_v4 = vsel %vm1007_vm2, %v2377_v59, 0  ;;  %v145_v0 = vld [vmem:[%s16150_s10] sm:$0xff] }
 0x6bc   :  { %v12393_v5 = vpop.f32.mrf.mxu0  ;;  %v12401_v6 = vpop.f32.mrf.mxu1  ;;  %12451 = vmatpush3.bf16.xpose.msra.mxu0 %v2384_v3  ;;  %12457 = vmatpush3.bf16.xpose.msra.mxu1 %v2430_v4 }
 0x6bd   :  { %12462 = vmatprep.subr.bf16.mxu0 %v14157_v1  ;;  %12468 = vmatprep.subr.bf16.mxu1 %v14157_v1 }
 0x6be   :  { %v2082_v13 = vpop.f32.mrf.mxu0  ;;  %v2134_v14 = vpop.f32.mrf.mxu1 }
 0x6bf   :  { %v2083_v15 = vadd.f32 %v11218_v7, %v2082_v13  ;;  %v2135_v16 = vadd.f32 %v11219_v10, %v2134_v14 }
 0x6c0   :  { %v12408_v17 = vpop.f32.mrf.mxu0  ;;  %v12416_v18 = vpop.f32.mrf.mxu1 }
 0x6c1   :  { %v2378_v22 = vpack.c.bf16 %v2083_v15, %v2083_v15  ;;  %v2379_v23 = vpack.c.bf16 %v2135_v16, %v2135_v16 }
 0x6c2   :  { %v2085_v26 = vpop.f32.mrf.mxu0  ;;  %v2137_v27 = vpop.f32.mrf.mxu1 }
 0x6c3   :  { %v2476_v28 = vsel %vm1007_vm2, %v2378_v22, 0  ;;  %v2522_v29 = vsel %vm1007_vm2, %v2379_v23, 0  ;;  %12453 = vmatmul.mubr.msk.bf16.vlgmr.msra.gmra.mxu0 %vm1007_vm2, %v2372_v19  ;;  %12459 = vmatmul.mubr.msk.bf16.vlgmr.msra.gmra.mxu1 %vm1007_vm2, %v2373_v21 }
 0x6c4   :  { %v12409_v30 = vpop.f32.mrf.mxu0  ;;  %v12417_v31 = vpop.f32.mrf.mxu1  ;;  %12463 = vmatpush3.bf16.xpose.msra.mxu0 %v2476_v28  ;;  %12469 = vmatpush3.bf16.xpose.msra.mxu1 %v2522_v29 }
 0x6c5   :  { %12464 = vmatprep.mubr.msk.bf16.mxu0 %vm14158_vm0, %v14157_v1  ;;  %12470 = vmatprep.mubr.msk.bf16.mxu1 %vm14158_vm0, %v14157_v1 }
 0x6c6   :  { %12474 = vmatprep.subr.bf16.mxu0 %v14157_v1  ;;  %12480 = vmatprep.subr.bf16.mxu1 %v14157_v1 }
 0x6c7   :  { %v2210_v37 = vpop.f32.mrf.mxu0  ;;  %v2262_v42 = vpop.f32.mrf.mxu1 }
 0x6c8   :  { %v2211_v40 = vadd.f32 %v11232_v36, %v2210_v37  ;;  %v2263_v45 = vadd.f32 %v11233_v39, %v2262_v42 }
 0x6c9   :  { %v12424_v41 = vpop.f32.mrf.mxu0  ;;  %v12432_v47 = vpop.f32.mrf.mxu1 }
 0x6ca   :  { %v2620_v44 = vpack.c.bf16 %v2211_v40, %v2211_v40  ;;  %v2621_v49 = vpack.c.bf16 %v2263_v45, %v2263_v45 }
 0x6cb   :  { %12465 = vmatmul.mubr.msk.bf16.vlgmr.msra.gmra.mxu0 %vm1007_vm2, %v2374_v34  ;;  %12471 = vmatmul.mubr.msk.bf16.vlgmr.msra.gmra.mxu1 %vm1007_vm2, %v2375_v35  ;;  %v2213_v46 = vpop.f32.mrf.mxu0  ;;  %v2265_v51 = vpop.f32.mrf.mxu1 }
 0x6cc   :  { %12476 = vmatprep.mubr.msk.bf16.mxu0 %vm14158_vm0, %v14157_v1  ;;  %12482 = vmatprep.mubr.msk.bf16.mxu1 %vm14158_vm0, %v14157_v1  ;;  %v2628_v48 = vsel %vm1255_vm3, %v2620_v44, 0  ;;  %v2674_v38 = vsel %vm1255_vm3, %v2621_v49, 0 }
 0x6cd   :  { %v12425_v50 = vpop.f32.mrf.mxu0  ;;  %12475 = vmatpush3.bf16.msra.mxu0 %v2628_v48  ;;  %v12433_v52 = vpop.f32.mrf.mxu1  ;;  %12481 = vmatpush3.bf16.msra.mxu1 %v2674_v38 }
 0x6ce   :  { %12486 = vmatprep.subr.bf16.mxu0 %v14157_v1  ;;  %12492 = vmatprep.subr.bf16.mxu1 %v14157_v1 }
 0x6cf   :  { %v14682_v53 = vpop.f32.mrf.mxu0 }
 0x6d0   :  { %v14685_v54 = vpop.f32.mrf.mxu1 }
 0x6d1   :  { %v12440_v43 = vpop.f32.mrf.mxu0 }
 0x6d2   :  { %v12448_v57 = vpop.f32.mrf.mxu1 }
 0x6d3   :  { %v2317_v55 = vpop.f32.mrf.mxu0  ;;  %v11235_v57 = vld [vmem:[%s16149_s7 + $0x3] ss:$0 sm:$0xff] }
 0x6d4   :  { %v2369_v59 = vpop.f32.mrf.mxu1 }
 0x6d5   :  { %v12441_v58 = vpop.f32.mrf.mxu0  ;;  %v11234_v59 = vld [vmem:[%s16149_s7 + $0x2] ss:$0 sm:$0xff] }
 0x6d6   :  { %v12449_v60 = vpop.f32.mrf.mxu1 }
 0x783   :  { %v2420_v62 = vpop.f32.mrf.mxu0  ;;  %v2466_v63 = vpop.f32.mrf.mxu1 }
 0x784   :  { %v2564_v3 = vmul.f32 0.35355338, %v2420_v62  ;;  %v2565_v4 = vmul.f32 0.35355338, %v2466_v63  ;;  %v2367_v62 = vadd.f32 %v11235_v57, %v14685_v54  ;;  %v2315_v63 = vadd.f32 %v11234_v59, %v14682_v53  ;;  %v276_v54 = vld [vmem:[%s16151_s11 + $0x4] sm:$0xf] }
 0x785   :  { %v12454_v5 = vpop.f32.mrf.mxu0  ;;  %v12460_v6 = vpop.f32.mrf.mxu1 }
 0x786   :  { %v2569_v7 = vadd.f32 %v2565_v4, %v145_v0  ;;  %v2568_v10 = vadd.f32 %v2564_v3, %v145_v0  ;;  %v2623_v4 = vpack.c.bf16 %v2367_v62, %v2367_v62  ;;  %v2622_v6 = vpack.c.bf16 %v2315_v63, %v2315_v63 }
 0x787   :  { %v2423_v11 = vpop.f32.mrf.mxu0  ;;  %v2469_v12 = vpop.f32.mrf.mxu1 }
 0x788   :  { %v2575_v13 = vsel %vm1007_vm2, %v2569_v7, -inf  ;;  %v2572_v14 = vsel %vm1007_vm2, %v2568_v10, -inf  ;;  %v2766_v12 = vsel %vm1255_vm3, %v2623_v4, 0 }
 0x789   :  { %2576 = vmax.xlane.f32.xlu1 %v2575_v13  ;;  %v12461_v15 = vpop.f32.mrf.mxu1  ;;  %2573 = vmax.xlane.f32.xlu0 %v2572_v14  ;;  %v12455_v16 = vpop.f32.mrf.mxu0  ;;  %v2720_v13 = vsel %vm1255_vm3, %v2622_v6, 0  ;;  %v11260_v6 = vld [vmem:[%s16152_s15] ss:$0 sm:$0xff] }
 0x78a   :  { %v275_v16 = vld [vmem:[%s16151_s11] sm:$0xf] }
 0x78b   :  { %v2512_v17 = vpop.f32.mrf.mxu0  ;;  %v2558_v18 = vpop.f32.mrf.mxu1 }
 0x78c   :  { %v2566_v19 = vmul.f32 0.35355338, %v2512_v17  ;;  %v2567_v21 = vmul.f32 0.35355338, %v2558_v18 }
 0x78d   :  { %v12466_v22 = vpop.f32.mrf.mxu0  ;;  %v12472_v23 = vpop.f32.mrf.mxu1 }
 0x78e   :  { %v2571_v24 = vadd.f32 %v2567_v21, %v145_v0  ;;  %v2570_v25 = vadd.f32 %v2566_v19, %v145_v0  ;;  %v14713_v19 = vsel %vm1255_vm3, %v276_v54, 0  ;;  %v14716_v22 = vsel %vm1255_vm3, %v275_v16, 0  ;;  %v278_v23 = vld [vmem:[%s16151_s11 + $0xc] sm:$0xf] }
 0x78f   :  { %v2515_v26 = vpop.f32.mrf.mxu0  ;;  %v2561_v27 = vpop.f32.mrf.mxu1 }
 0x790   :  { %v2581_v28 = vsel %vm1007_vm2, %v2571_v24, -inf  ;;  %v2578_v29 = vsel %vm1007_vm2, %v2570_v25, -inf }
 0x791   :  { %2582 = vmax.xlane.f32.xlu1 %v2581_v28  ;;  %v12473_v30 = vpop.f32.mrf.mxu1  ;;  %2579 = vmax.xlane.f32.xlu0 %v2578_v29  ;;  %v12467_v31 = vpop.f32.mrf.mxu0  ;;  %v14731_v28 = vsel %vm1255_vm3, %v278_v23, 0 }
 0x812   :  { %v2577_v32 = vpop.xlane.xlu1 %2576  ;;  %v2574_v33 = vpop.xlane.xlu0 %2573 }
 0x813   :  { %v2585_v34 = vsub.f32 %v2569_v7, %v2577_v32  ;;  %v2584_v35 = vsub.f32 %v2568_v10, %v2574_v33 }
 0x815   :  { %v2590_v36 = vmul.f32 1.442695, %v2585_v34  ;;  %v2588_v37 = vmul.f32 1.442695, %v2584_v35 }
 0x817   :  { %13791 = vpow2.f32 %v2590_v36 }
 0x818   :  { %13793 = vpow2.f32 %v2588_v37 }
 0x81a   :  { %v2583_v39 = vpop.xlane.xlu1 %2582  ;;  %v2580_v40 = vpop.xlane.xlu0 %2579 }
 0x81b   :  { %v2587_v41 = vsub.f32 %v2571_v24, %v2583_v39  ;;  %v2586_v42 = vsub.f32 %v2570_v25, %v2580_v40  ;;  %v277_v24 = vld [vmem:[%s16151_s11 + $0x8] sm:$0xf] }
 0x81c   :  { %v14734_v31 = vsel %vm1255_vm3, %v277_v24, 0  ;;  %v13711_v24 = vld [vmem:[%s16153_s16 + $0x8] sm:$0xff]  }
 0x81d   :  { %v2594_v44 = vmul.f32 1.442695, %v2587_v41  ;;  %v2592_v45 = vmul.f32 1.442695, %v2586_v42 }
 0x81f   :  { %13795 = vpow2.f32 %v2594_v44 }
 0x820   :  { %13797 = vpow2.f32 %v2592_v45 }
 0x824   :  { %v13792_v46 = vpop.eup %13791 }
 0x825   :  { %v13794_v47 = vpop.eup %13793  ;;  %v2599_v48 = vsel %vm1007_vm2, %v13792_v46, 0.0 }
 0x826   :  { %2600 = vadd.xlane.f32.xlu1 %v2599_v48  ;;  %v2596_v49 = vsel %vm1007_vm2, %v13794_v47, 0.0 }
 0x827   :  { %2597 = vadd.xlane.f32.xlu0 %v2596_v49 }
 0x82c   :  { %v13796_v50 = vpop.eup %13795 }
 0x82d   :  { %v13798_v51 = vpop.eup %13797  ;;  %v2605_v38 = vsel %vm1007_vm2, %v13796_v50, 0.0 }
 0x82e   :  { %2606 = vadd.xlane.f32.xlu1 %v2605_v38  ;;  %v2602_v52 = vsel %vm1007_vm2, %v13798_v51, 0.0 }
 0x82f   :  { %2603 = vadd.xlane.f32.xlu0 %v2602_v52 }
 0x8af   :  { %v2601_v43 = vpop.xlane.xlu1 %2600 }
 0x8b0   :  { %13799 = vrcp.f32 %v2601_v43  ;;  %v2598_v55 = vpop.xlane.xlu0 %2597 }
 0x8b1   :  { %13801 = vrcp.f32 %v2598_v55 }
 0x8b7   :  { %v2607_v58 = vpop.xlane.xlu1 %2606 }
 0x8b8   :  { %13803 = vrcp.f32 %v2607_v58  ;;  %v2604_v60 = vpop.xlane.xlu0 %2603 }
 0x8b9   :  { %13805 = vrcp.f32 %v2604_v60 }
 0x8bd   :  { %v13800_v0 = vpop.eup %13799 }
 0x8be   :  { %v13802_v3 = vpop.eup %13801  ;;  %v2613_v5 = vmul.f32 %v13800_v0, %v13792_v46 }
 0x8bf   :  { %v2612_v7 = vmul.f32 %v13802_v3, %v13794_v47 }
 0x8c0   :  { %v2617_v10 = vpack.c.bf16 %v2613_v5, %v2613_v5 }
 0x8c1   :  { %v2616_v11 = vpack.c.bf16 %v2612_v7, %v2612_v7 }
 0x8c2   :  { %12483 = vmatmul.mubr.msk.bf16.vlgmr.msra.gmra.mxu1 %vm1007_vm2, %v2617_v10 }
 0x8c3   :  { %12477 = vmatmul.mubr.msk.bf16.vlgmr.msra.gmra.mxu0 %vm1007_vm2, %v2616_v11  ;;  %12493 = vmatpush3.bf16.msra.mxu1 %v2766_v12 }
 0x8c4   :  { %12487 = vmatpush3.bf16.msra.mxu0 %v2720_v13  ;;  %12488 = vmatprep.mubr.msk.bf16.mxu0 %vm14158_vm0, %v14157_v1 }
 0x8c5   :  { %v13804_v53 = vpop.eup %13803  ;;  %12494 = vmatprep.mubr.msk.bf16.mxu1 %vm14158_vm0, %v14157_v1  ;;  %12498 = vmatprep.subr.bf16.mxu0 %v14157_v1 }
 0x8c6   :  { %v13806_v14 = vpop.eup %13805  ;;  %v2615_v15 = vmul.f32 %v13804_v53, %v13796_v50  ;;  %12504 = vmatprep.subr.bf16.mxu1 %v14157_v1 }
 0x8c7   :  { %v2614_v17 = vmul.f32 %v13806_v14, %v13798_v51 }
 0x8c8   :  { %v2619_v18 = vpack.c.bf16 %v2615_v15, %v2615_v15 }
 0x8c9   :  { %v2618_v21 = vpack.c.bf16 %v2614_v17, %v2614_v17 }
 0x8ca   :  { %12495 = vmatmul.mubr.msk.bf16.vlgmr.msra.gmra.mxu1 %vm1007_vm2, %v2619_v18 }
 0x8cb   :  { %12489 = vmatmul.mubr.msk.bf16.vlgmr.msra.gmra.mxu0 %vm1007_vm2, %v2618_v21  ;;  %12505 = vmatpush3.bf16.msra.mxu1 %v14713_v19 }
 0x8cc   :  { %12499 = vmatpush3.bf16.msra.mxu0 %v14716_v22  ;;  %12500 = vmatprep.mubr.msk.bf16.mxu0 %vm14158_vm0, %v14157_v1 }
 0x8cd   :  { %12506 = vmatprep.mubr.msk.bf16.mxu1 %vm14158_vm0, %v14157_v1  ;;  %12510 = vmatprep.subr.bf16.mxu0 %v14157_v1 }
 0x8ce   :  { %12516 = vmatprep.subr.bf16.mxu1 %v14157_v1 }
 0x982   :  { %v2710_v25 = vpop.f32.mrf.mxu1 }
 0x983   :  { %v2664_v26 = vpop.f32.mrf.mxu0  ;;  %v2809_v27 = vpack.c.bf16 %v2710_v25, %v2710_v25  ;;  %v13712_v25 = vld [vmem:[%s16153_s16] sm:$0xff]  }
 0x984   :  { %v2808_v29 = vpack.c.bf16 %v2664_v26, %v2664_v26  ;;  %v12484_v30 = vpop.f32.mrf.mxu1  ;;  %v13714_v26 = vld [vmem:[%s16154_s18 + $0x10] sm:$0xff]  }
 0x985   :  { %v12478_v32 = vpop.f32.mrf.mxu0  ;;  %12507 = vmatmul.mubr.msk.bf16.vlgmr.msra.gmra.mxu1 %vm1007_vm2, %v2809_v27 }
 0x986   :  { %12501 = vmatmul.mubr.msk.bf16.vlgmr.msra.gmra.mxu0 %vm1007_vm2, %v2808_v29  ;;  %v2713_v33 = vpop.f32.mrf.mxu1  ;;  %12517 = vmatpush3.bf16.msra.mxu1 %v14731_v28 }
 0x987   :  { %v2667_v34 = vpop.f32.mrf.mxu0  ;;  %12511 = vmatpush3.bf16.msra.mxu0 %v14734_v31  ;;  %12512 = vmatprep.mubr.msk.bf16.mxu0 %vm14158_vm0, %v14157_v1  ;;  %v11261_v33 = vld [vmem:[%s16155_s22] ss:$0 sm:$0xff] }
 0x988   :  { %v12485_v35 = vpop.f32.mrf.mxu1  ;;  %12518 = vmatprep.mubr.msk.bf16.mxu1 %vm14158_vm0, %v14157_v1  ;;  %12522 = vmatprep.subr.bf16.mxu0 %v14157_v1 }
 0x989   :  { %v12479_v36 = vpop.f32.mrf.mxu0  ;;  %12530 = vmatprep.subr.bf16.mxu1 %v14157_v1  ;;  %v11262_v35 = vld [vmem:[%s16156_s23] ss:$0 sm:$0xff] }
 0x98a   :  { %v2802_v37 = vpop.f32.mrf.mxu1 }
 0x98b   :  { %v2756_v39 = vpop.f32.mrf.mxu0  ;;  %v2811_v40 = vpack.c.bf16 %v2802_v37, %v2802_v37 }
 0x98c   :  { %v2810_v41 = vpack.c.bf16 %v2756_v39, %v2756_v39  ;;  %v12496_v42 = vpop.f32.mrf.mxu1 }
 0x98d   :  { %v12490_v44 = vpop.f32.mrf.mxu0  ;;  %12519 = vmatmul.mubr.msk.bf16.vlgmr.msra.gmra.mxu1 %vm1007_vm2, %v2811_v40  ;;  %v13926_v40 = vld [vmem:[%s14190_s21 + $0x8] sm:$0xff]  }
 0x98e   :  { %12513 = vmatmul.mubr.msk.bf16.vlgmr.msra.gmra.mxu0 %vm1007_vm2, %v2810_v41  ;;  %v2805_v45 = vpop.f32.mrf.mxu1  ;;  %12538 = vmatprep.mubr.msk.bf16.mxu1 %vm14158_vm0, %v14157_v1  ;;  %v14779_v41 = vld [vmem:[%s14170_s5 + $0x8] sm:$0xff]  ;;  %v13927_v44 = vld [vmem:[%s14190_s21] sm:$0xff]   ;;  %s16157_s5 = sld [smem:[#allocation16_spill]] }
 0x98f   :  { %v2759_v46 = vpop.f32.mrf.mxu0  ;;  %12526 = vmatprep.mubr.msk.bf16.mxu0 %vm14158_vm0, %v14157_v1  ;;  %12523 = vmatpush3.bf16.msra.mxu0 %v13711_v24  ;;  %v14784_v42 = vpack.c.bf16 %v14779_v41, %v14779_v41  ;;  %v13928_v45 = vld [vmem:[%s14190_s21 + $0x18] sm:$0xff]  }
 0x990   :  { %v12497_v47 = vpop.f32.mrf.mxu1  ;;  %12524 = vmatprep.subr.bf16.mxu0 %v14157_v1  ;;  %v13929_v46 = vld [vmem:[%s14190_s21 + $0x10] sm:$0xff]  }
 0x991   :  { %v12491_v48 = vpop.f32.mrf.mxu0  ;;  %v13930_v47 = vld [vmem:[%s14190_s21 + $0x38] sm:$0xff]  }
 0x992   :  { %v13931_v48 = vld [vmem:[%s14190_s21 + $0x30] sm:$0xff]  }
 0x993   :  { %12525 = vmatpush3.bf16.msra.mxu0 %v13712_v25 }
 0x994   :  { %12542 = vmatprep.subr.bf16.mxu0 %v14157_v1 }
 0xa45   :  { %v2898_v49 = vpop.f32.mrf.mxu1 }
 0xa46   :  { %v2852_v50 = vpop.f32.mrf.mxu0  ;;  %v2997_v57 = vsel %vm335_vm1, %v2898_v49, 0.0  ;;  %v13932_v49 = vld [vmem:[%s14200_s29 + $0x18] sm:$0xff]  }
 0xa47   :  { %v12508_v51 = vpop.f32.mrf.mxu1  ;;  %v2996_v55 = vsel %vm335_vm1, %v2852_v50, 0.0  ;;  %v13933_v50 = vld [vmem:[%s14200_s29 + $0x10] sm:$0xff]  }
 0xa48   :  { %v12502_v38 = vpop.f32.mrf.mxu0  ;;  %v2998_v62 = vadd.f32 %v2997_v57, %v2996_v55  ;;  %v13934_v51 = vld [vmem:[%s14200_s29 + $0x38] sm:$0xff]   ;;  %v13939_v57 = vld [vmem:[%s14210_s8 + $0x30] sm:$0xff]  }
 0xa49   :  { %v2901_v52 = vpop.f32.mrf.mxu1  ;;  %v13935_v38 = vld [vmem:[%s14200_s29 + $0x30] sm:$0xff]   ;;  %v13938_v55 = vld [vmem:[%s14210_s8 + $0x38] sm:$0xff]  }
 0xa4a   :  { %v2855_v43 = vpop.f32.mrf.mxu0  ;;  %v13936_v52 = vld [vmem:[%s14210_s8 + $0x18] sm:$0xff]  }
 0xa4b   :  { %v12509_v58 = vpop.f32.mrf.mxu1  ;;  %v13937_v43 = vld [vmem:[%s14210_s8 + $0x10] sm:$0xff]  }
 0xa4c   :  { %v12503_v59 = vpop.f32.mrf.mxu0  ;;  %v13715_v58 = vld [vmem:[%s16154_s18 + $0x8] sm:$0xff]  }
 0xa4d   :  { %v2990_v60 = vpop.f32.mrf.mxu1  ;;  %v13716_v59 = vld [vmem:[%s16154_s18] sm:$0xff]  }
 0xa4e   :  { %v2944_v63 = vpop.f32.mrf.mxu0  ;;  %v3001_v7 = vsel %vm335_vm1, %v2990_v60, 0.0  ;;  %v11263_v60 = vld [vmem:[%s16157_s5] ss:$0 sm:$0xff] }
 0xa4f   :  { %v2999_v0 = vsel %vm335_vm1, %v2944_v63, 0.0  ;;  %v12520_v3 = vpop.f32.mrf.mxu1 }
 0xa50   :  { %v3000_v4 = vadd.f32 %v2999_v0, %v2998_v62  ;;  %v12514_v5 = vpop.f32.mrf.mxu0 }
 0xa51   :  { %v2993_v10 = vpop.f32.mrf.mxu1 }
 0xa52   :  { %v3002_v11 = vadd.f32 %v3001_v7, %v3000_v4  ;;  %v2947_v12 = vpop.f32.mrf.mxu0  ;;  %v13940_v10 = vld [vmem:[%s14190_s21 + $0x28] sm:$0xff]  }
 0xa53   :  { %v12521_v13 = vpop.f32.mrf.mxu1 }
 0xa54   :  { %v3009_v53 = vadd.f32 %v11260_v6, %v3002_v11  ;;  %v12515_v54 = vpop.f32.mrf.mxu0  ;;  %v13941_v13 = vld [vmem:[%s14190_s21 + $0x20] sm:$0xff]  }
 0xa56   :  { %v3010_v14 = vadd.f32 %v3009_v53, %v14558_v9  ;;  %v13713_v9 = vld [vmem:[%s16154_s18 + $0x18] sm:$0xff]  }
 0xa57   :  { %12531 = vmatpush3.bf16.msra.mxu1 %v13713_v9  ;;  %v13945_v9 = vld [vmem:[%s14200_s29 + $0x20] sm:$0xff]  }
 0xa58   :  { %v3011_v15 = vsel %vm335_vm1, %v3010_v14, 0.0  ;;  %12532 = vmatprep.subr.bf16.mxu1 %v14157_v1 }
 0xa59   :  { %3012 = vadd.xlane.f32.xlu0 %v3011_v15 }
 0xa5b   :  { %12533 = vmatpush3.bf16.msra.mxu1 %v13714_v26 }
 0xa5c   :  { %12534 = vmatprep.subr.bf16.mxu1 %v14157_v1 }
 0xa5f   :  { %12535 = vmatpush3.bf16.msra.mxu1 %v13715_v58 }
 0xa60   :  { %12536 = vmatprep.subr.bf16.mxu1 %v14157_v1 }
 0xa63   :  { %12537 = vmatpush3.bf16.msra.mxu1 %v13716_v59 }
 0xa64   :  { %12558 = vmatprep.subr.bf16.mxu1 %v14157_v1 }
 0xae2   :  { %v3013_v16 = vpop.xlane.xlu0 %3012 }
 0xae3   :  { %v3014_v17 = vmul.f32 0.03125, %v3013_v16 }
 0xae5   :  { %v3015_v18 = vsub.f32 %v3010_v14, %v3014_v17  ;;  %v13942_v14 = vld [vmem:[%s14200_s29 + $0x8] sm:$0xff]   ;;  %v13943_v17 = vld [vmem:[%s14200_s29] sm:$0xff]  }
 0xae7   :  { %v3016_v21 = vmul.f32 %v3015_v18, %v3015_v18 }
 0xae9   :  { %v3017_v23 = vsel %vm335_vm1, %v3016_v21, 0.0 }
 0xaea   :  { %3018 = vadd.xlane.f32.xlu1 %v3017_v23  ;;  %v13944_v23 = vld [vmem:[%s14200_s29 + $0x28] sm:$0xff]  }
 0xb73   :  { %v3019_v27 = vpop.xlane.xlu1 %3018 }
 0xb74   :  { %v3020_v29 = vmul.f32 0.03125, %v3019_v27 }
 0xb76   :  { %v3021_v30 = vadd.f32 1e-06, %v3020_v29  ;;  %v13946_v29 = vld [vmem:[%s14210_s8 + $0x8] sm:$0xff]  }
 0xb78   :  { %13807 = vrsqrt.f32 %v3021_v30  ;;  %v13947_v30 = vld [vmem:[%s14205_s3 + $0x1] ss:$0 sm:$0xff] }
 0xb85   :  { %v13808_v32 = vpop.eup %13807 }
 0xb86   :  { %v3023_v34 = vmul.f32 %v13808_v32, %v3015_v18 }
 0xb88   :  { %v3030_v36 = vmul.f32 %v11261_v33, %v3023_v34 }
 0xb8a   :  { %v14770_v37 = vadd.f32 %v11262_v35, %v3030_v36  ;;  %v13948_v36 = vld [vmem:[%s14210_s8] sm:$0xff]  }
 0xb8c   :  { %v3038_v39 = vpack.c.bf16 %v14770_v37, %v14770_v37 }
 0xb8e   :  { %12527 = vmatmul.mubr.msk.bf16.vlgmr.msra.gmra.mxu0 %vm335_vm1, %v3038_v39  ;;  %v13949_v39 = vld [vmem:[%s14195_s25 + $0x1] ss:$0 sm:$0xff] }
 0xb8f   :  { %12543 = vmatpush3.bf16.msra.mxu0 %v13926_v40  ;;  %12546 = vmatprep.mubr.msk.bf16.mxu0 %vm14158_vm0, %v14157_v1 }
 0xb90   :  { %12544 = vmatprep.subr.bf16.mxu0 %v14157_v1 }
 0xb93   :  { %12545 = vmatpush3.bf16.msra.mxu0 %v13927_v44 }
 0xb94   :  { %12550 = vmatprep.subr.bf16.mxu0 %v14157_v1 }
 0xb96   :  { %12547 = vmatmul.mubr.msk.bf16.vlgmr.msra.gmra.mxu0 %vm335_vm1, %v14784_v42 }
 0xb97   :  { %12551 = vmatpush3.bf16.msra.mxu0 %v13928_v45  ;;  %12554 = vmatprep.mubr.msk.bf16.mxu0 %vm14158_vm0, %v14157_v1 }
 0xb98   :  { %12552 = vmatprep.subr.bf16.mxu0 %v14157_v1 }
 0xb9b   :  { %12553 = vmatpush3.bf16.msra.mxu0 %v13929_v46 }
 0xb9c   :  { %12566 = vmatprep.subr.bf16.mxu0 %v14157_v1 }
 0xb9e   :  { %12555 = vmatmul.mubr.msk.bf16.vlgmr.msra.gmra.mxu0 %vm335_vm1, %v14784_v42 }
 0xb9f   :  { %12567 = vmatpush3.bf16.msra.mxu0 %v13930_v47  ;;  %12570 = vmatprep.mubr.msk.bf16.mxu0 %vm14158_vm0, %v14157_v1  ;;  %v13950_v47 = vld [vmem:[%s14210_s8 + $0x28] sm:$0xff]  }
 0xba0   :  { %12568 = vmatprep.subr.bf16.mxu0 %v14157_v1 }
 0xba3   :  { %12569 = vmatpush3.bf16.msra.mxu0 %v13931_v48 }
 0xba4   :  { %12582 = vmatprep.subr.bf16.mxu0 %v14157_v1 }
 0xba6   :  { %12571 = vmatmul.mubr.msk.bf16.vlgmr.msra.gmra.mxu0 %vm335_vm1, %v14784_v42 }
 0xba7   :  { %12583 = vmatpush3.bf16.msra.mxu0 %v13932_v49  ;;  %12586 = vmatprep.mubr.msk.bf16.mxu0 %vm14158_vm0, %v14157_v1  ;;  %v13951_v49 = vld [vmem:[%s14205_s3 + $0x3] ss:$0 sm:$0xff] }
 0xba8   :  { %12584 = vmatprep.subr.bf16.mxu0 %v14157_v1 }
 0xbab   :  { %12585 = vmatpush3.bf16.msra.mxu0 %v13933_v50 }
 0xbac   :  { %12598 = vmatprep.subr.bf16.mxu0 %v14157_v1 }
 0xbae   :  { %12587 = vmatmul.mubr.msk.bf16.vlgmr.msra.gmra.mxu0 %vm335_vm1, %v14784_v42 }
 0xbaf   :  { %12599 = vmatpush3.bf16.msra.mxu0 %v13934_v51  ;;  %12602 = vmatprep.mubr.msk.bf16.mxu0 %vm14158_vm0, %v14157_v1 }
 0xbb0   :  { %12600 = vmatprep.subr.bf16.mxu0 %v14157_v1 }
 0xbb3   :  { %12601 = vmatpush3.bf16.msra.mxu0 %v13935_v38 }
 0xbb4   :  { %12614 = vmatprep.subr.bf16.mxu0 %v14157_v1 }
 0xbb6   :  { %12603 = vmatmul.mubr.msk.bf16.vlgmr.msra.gmra.mxu0 %vm335_vm1, %v14784_v42 }
 0xbb7   :  { %12615 = vmatpush3.bf16.msra.mxu0 %v13936_v52  ;;  %12618 = vmatprep.mubr.msk.bf16.mxu0 %vm14158_vm0, %v14157_v1  ;;  %v13952_v52 = vld [vmem:[%s14210_s8 + $0x20] sm:$0xff]  }
 0xbb8   :  { %12616 = vmatprep.subr.bf16.mxu0 %v14157_v1 }
 0xbbb   :  { %12617 = vmatpush3.bf16.msra.mxu0 %v13937_v43 }
 0xbbc   :  { %12630 = vmatprep.subr.bf16.mxu0 %v14157_v1 }
 0xbbe   :  { %12619 = vmatmul.mubr.msk.bf16.vlgmr.msra.gmra.mxu0 %vm335_vm1, %v14784_v42 }
 0xbbf   :  { %12631 = vmatpush3.bf16.msra.mxu0 %v13938_v55  ;;  %12634 = vmatprep.mubr.msk.bf16.mxu0 %vm14158_vm0, %v14157_v1  ;;  %v13953_v55 = vld [vmem:[%s14195_s25 + $0x3] ss:$0 sm:$0xff] }
 0xbc0   :  { %12632 = vmatprep.subr.bf16.mxu0 %v14157_v1 }
 0xbc3   :  { %12633 = vmatpush3.bf16.msra.mxu0 %v13939_v57 }
 0xbc4   :  { %12644 = vmatprep.subr.bf16.mxu0 %v14157_v1 }
 0xbc6   :  { %12635 = vmatmul.mubr.msk.bf16.vlgmr.msra.gmra.mxu0 %vm335_vm1, %v14784_v42 }
 0xbc7   :  { %12646 = vmatprep.mubr.msk.bf16.mxu0 %vm14158_vm0, %v14157_v1 }
 0xc4e   :  { %v3094_v62 = vpop.f32.mrf.mxu0 }
 0xc4f   :  { %v3095_v63 = vadd.f32 %v11263_v60, %v3094_v62 }
 0xc50   :  { %v12528_v0 = vpop.f32.mrf.mxu0 }
 0xc51   :  { %v3100_v3 = vmax.f32 %v3095_v63, 0.0  ;;  %v13954_v63 = vld [vmem:[%s14215_s14 + $0x1] ss:$0 sm:$0xff] }
 0xc52   :  { %v3097_v4 = vpop.f32.mrf.mxu0 }
 0xc53   :  { %v3101_v5 = vpack.c.bf16 %v3100_v3, %v3100_v3 }
 0xc54   :  { %v12529_v6 = vpop.f32.mrf.mxu0 }
 0xc55   :  { %12539 = vmatmul.mubr.msk.bf16.vlgmr.msra.gmra.mxu1 %vm3132_vm4, %v3101_v5 }
 0xc56   :  { %v14846_v7 = vpop.f32.mrf.mxu0  ;;  %12559 = vmatpush3.bf16.msra.mxu1 %v13940_v10  ;;  %12562 = vmatprep.mubr.msk.bf16.mxu1 %vm14158_vm0, %v14157_v1 }
 0xc57   :  { %12560 = vmatprep.subr.bf16.mxu1 %v14157_v1 }
 0xc58   :  { %v12548_v11 = vpop.f32.mrf.mxu0 }
 0xc5a   :  { %v3245_v12 = vpop.f32.mrf.mxu0  ;;  %12561 = vmatpush3.bf16.msra.mxu1 %v13941_v13 }
 0xc5b   :  { %12574 = vmatprep.subr.bf16.mxu1 %v14157_v1 }
 0xc5c   :  { %v12549_v53 = vpop.f32.mrf.mxu0 }
 0xc5d   :  { %12563 = vmatmul.mubr.msk.bf16.vlgmr.msra.gmra.mxu1 %vm335_vm1, %v14784_v42 }
 0xc5e   :  { %v3282_v54 = vpop.f32.mrf.mxu0  ;;  %12575 = vmatpush3.bf16.msra.mxu1 %v13942_v14  ;;  %12578 = vmatprep.mubr.msk.bf16.mxu1 %vm14158_vm0, %v14157_v1 }
 0xc5f   :  { %12576 = vmatprep.subr.bf16.mxu1 %v14157_v1  ;;  %v3283_v40 = vadd.f32 %v13949_v39, %v3282_v54 }
 0xc60   :  { %v12556_v15 = vpop.f32.mrf.mxu0 }
 0xc61   :  { %v3689_v48 = vpack.c.bf16 %v3283_v40, %v3283_v40 }
 0xc62   :  { %v3285_v16 = vpop.f32.mrf.mxu0  ;;  %12577 = vmatpush3.bf16.msra.mxu1 %v13943_v17 }
 0xc63   :  { %12590 = vmatprep.subr.bf16.mxu1 %v14157_v1 }
 0xc64   :  { %v12557_v18 = vpop.f32.mrf.mxu0 }
 0xc65   :  { %12579 = vmatmul.mubr.msk.bf16.vlgmr.msra.gmra.mxu1 %vm335_vm1, %v14784_v42 }
 0xc66   :  { %v3362_v21 = vpop.f32.mrf.mxu0  ;;  %12591 = vmatpush3.bf16.msra.mxu1 %v13944_v23  ;;  %12594 = vmatprep.mubr.msk.bf16.mxu1 %vm14158_vm0, %v14157_v1 }
 0xc67   :  { %12592 = vmatprep.subr.bf16.mxu1 %v14157_v1  ;;  %v3363_v57 = vadd.f32 %v13953_v55, %v3362_v21 }
 0xc68   :  { %v12572_v24 = vpop.f32.mrf.mxu0 }
 0xc69   :  { %v3691_v60 = vpack.c.bf16 %v3363_v57, %v3363_v57  ;;  %v13955_v24 = vld [vmem:[%s14205_s3] ss:$0 sm:$0xff] }
 0xc6a   :  { %v3365_v25 = vpop.f32.mrf.mxu0  ;;  %12593 = vmatpush3.bf16.msra.mxu1 %v13945_v9 }
 0xc6b   :  { %12606 = vmatprep.subr.bf16.mxu1 %v14157_v1 }
 0xc6c   :  { %v12573_v26 = vpop.f32.mrf.mxu0 }
 0xc6d   :  { %12595 = vmatmul.mubr.msk.bf16.vlgmr.msra.gmra.mxu1 %vm335_vm1, %v14784_v42 }
 0xc6e   :  { %v3442_v27 = vpop.f32.mrf.mxu0  ;;  %12607 = vmatpush3.bf16.msra.mxu1 %v13946_v29  ;;  %12610 = vmatprep.mubr.msk.bf16.mxu1 %vm14158_vm0, %v14157_v1 }
 0xc6f   :  { %v3443_v32 = vadd.f32 %v13947_v30, %v3442_v27  ;;  %12608 = vmatprep.subr.bf16.mxu1 %v14157_v1 }
 0xc70   :  { %v12588_v33 = vpop.f32.mrf.mxu0 }
 0xc71   :  { %v3693_v34 = vpack.c.bf16 %v3443_v32, %v3443_v32  ;;  %v13956_v32 = vld [vmem:[%s14195_s25] ss:$0 sm:$0xff] }
 0xc72   :  { %v3445_v35 = vpop.f32.mrf.mxu0  ;;  %12609 = vmatpush3.bf16.msra.mxu1 %v13948_v36  ;;  %v3243_v33 = vadd.f32 %v13956_v32, %v14846_v7  ;;  %v13958_v7 = vld [vmem:[%s14195_s25 + $0x2] ss:$0 sm:$0xff] }
 0xc73   :  { %v3746_v44 = vsel %vm1007_vm2, %v3693_v34, 0  ;;  %12622 = vmatprep.subr.bf16.mxu1 %v14157_v1  ;;  %v13957_v35 = vld [vmem:[%s14205_s3 + $0x2] ss:$0 sm:$0xff] }
 0xc74   :  { %v12589_v45 = vpop.f32.mrf.mxu0  ;;  %12645 = vmatpush3.bf16.xpose.msra.mxu0 %v3746_v44  ;;  %v3688_v40 = vpack.c.bf16 %v3243_v33, %v3243_v33 }
 0xc75   :  { %12656 = vmatprep.subr.bf16.mxu0 %v14157_v1  ;;  %12611 = vmatmul.mubr.msk.bf16.vlgmr.msra.gmra.mxu1 %vm335_vm1, %v14784_v42 }
 0xc76   :  { %v3522_v46 = vpop.f32.mrf.mxu0  ;;  %12623 = vmatpush3.bf16.msra.mxu1 %v13950_v47  ;;  %12626 = vmatprep.mubr.msk.bf16.mxu1 %vm14158_vm0, %v14157_v1 }
 0xc77   :  { %v3523_v50 = vadd.f32 %v13951_v49, %v3522_v46  ;;  %12624 = vmatprep.subr.bf16.mxu1 %v14157_v1 }
 0xc78   :  { %v12604_v51 = vpop.f32.mrf.mxu0 }
 0xc79   :  { %v3695_v38 = vpack.c.bf16 %v3523_v50, %v3523_v50  ;;  %v11135_v51 = vld [vmem:[%s14180_s13 + $0x8] sm:$0xff] }
 0xc7a   :  { %12625 = vmatpush3.bf16.msra.mxu1 %v13952_v52  ;;  %v3525_v43 = vpop.f32.mrf.mxu0 }
 0xc7b   :  { %v3838_v58 = vsel %vm1007_vm2, %v3695_v38, 0  ;;  %12647 = vmatmul.mubr.msk.bf16.vlgmr.msra.gmra.mxu0 %vm1007_vm2, %v3689_v48  ;;  %12638 = vmatprep.subr.bf16.mxu1 %v14157_v1 }
 0xc7c   :  { %12657 = vmatpush3.bf16.xpose.msra.mxu0 %v3838_v58  ;;  %12658 = vmatprep.mubr.msk.bf16.mxu0 %vm14158_vm0, %v14157_v1  ;;  %v12605_v59 = vpop.f32.mrf.mxu0 }
 0xc7d   :  { %12627 = vmatmul.mubr.msk.bf16.vlgmr.msra.gmra.mxu1 %vm335_vm1, %v14784_v42  ;;  %12668 = vmatprep.subr.bf16.mxu0 %v14157_v1 }
 0xc7e   :  { %12640 = vmatprep.mubr.msk.bf16.mxu1 %vm14158_vm0, %v14157_v1  ;;  %v3602_v62 = vpop.f32.mrf.mxu0 }
 0xc7f   :  { %v3603_v0 = vadd.f32 %v13954_v63, %v3602_v62 }
 0xc80   :  { %v12620_v3 = vpop.f32.mrf.mxu0 }
 0xc81   :  { %v3937_v4 = vpack.c.bf16 %v3603_v0, %v3603_v0 }
 0xc82   :  { %v3605_v5 = vpop.f32.mrf.mxu0 }
 0xc83   :  { %12659 = vmatmul.mubr.msk.bf16.vlgmr.msra.gmra.mxu0 %vm1007_vm2, %v3691_v60  ;;  %v3990_v6 = vsel %vm1255_vm3, %v3937_v4, 0 }
 0xc84   :  { %12670 = vmatprep.mubr.msk.bf16.mxu0 %vm14158_vm0, %v14157_v1  ;;  %v12621_v42 = vpop.f32.mrf.mxu0  ;;  %12669 = vmatpush3.bf16.msra.mxu0 %v3990_v6  ;;  %v13959_v6 = vld [vmem:[%s14215_s14] ss:$0 sm:$0xff] }
 0xc85   :  { %12680 = vmatprep.subr.bf16.mxu0 %v14157_v1 }
 0xc86   :  { %v14907_v10 = vpop.f32.mrf.mxu0 }
 0xc88   :  { %v12636_v11 = vpop.f32.mrf.mxu0 }
 0xc8a   :  { %v3685_v12 = vpop.f32.mrf.mxu0 }
 0xc8c   :  { %v12637_v13 = vpop.f32.mrf.mxu0 }
 0xd15   :  { %v14909_v53 = vpop.f32.mrf.mxu1 }
 0xd17   :  { %v12540_v54 = vpop.f32.mrf.mxu1 }
 0xd19   :  { %v3173_v14 = vpop.f32.mrf.mxu1 }
 0xd1b   :  { %v12541_v15 = vpop.f32.mrf.mxu1 }
 0xd1d   :  { %v3322_v16 = vpop.f32.mrf.mxu1 }
 0xd1e   :  { %v3323_v48 = vadd.f32 %v13958_v7, %v3322_v16 }
 0xd1f   :  { %v12564_v17 = vpop.f32.mrf.mxu1 }
 0xd20   :  { %v3690_v49 = vpack.c.bf16 %v3323_v48, %v3323_v48 }
 0xd21   :  { %v3325_v18 = vpop.f32.mrf.mxu1 }
 0xd23   :  { %v12565_v21 = vpop.f32.mrf.mxu1 }
 0xd25   :  { %v3402_v23 = vpop.f32.mrf.mxu1 }
 0xd26   :  { %v3403_v25 = vadd.f32 %v13955_v24, %v3402_v23 }
 0xd27   :  { %v12580_v9 = vpop.f32.mrf.mxu1 }
 0xd28   :  { %v3692_v26 = vpack.c.bf16 %v3403_v25, %v3403_v25 }
 0xd29   :  { %v3405_v27 = vpop.f32.mrf.mxu1 }
 0xd2a   :  { %v3700_v29 = vsel %vm1007_vm2, %v3692_v26, 0 }
 0xd2b   :  { %v12581_v30 = vpop.f32.mrf.mxu1  ;;  %12639 = vmatpush3.bf16.xpose.msra.mxu1 %v3700_v29 }
 0xd2c   :  { %12650 = vmatprep.subr.bf16.mxu1 %v14157_v1 }
 0xd2d   :  { %v3482_v34 = vpop.f32.mrf.mxu1 }
 0xd2e   :  { %v3483_v36 = vadd.f32 %v13957_v35, %v3482_v34 }
 0xd2f   :  { %v12596_v39 = vpop.f32.mrf.mxu1 }
 0xd30   :  { %v3694_v44 = vpack.c.bf16 %v3483_v36, %v3483_v36 }
 0xd31   :  { %v3485_v45 = vpop.f32.mrf.mxu1 }
 0xd32   :  { %v3792_v46 = vsel %vm1007_vm2, %v3694_v44, 0  ;;  %12641 = vmatmul.mubr.msk.bf16.vlgmr.msra.gmra.mxu1 %vm1007_vm2, %v3688_v40 }
 0xd33   :  { %v12597_v47 = vpop.f32.mrf.mxu1  ;;  %12651 = vmatpush3.bf16.xpose.msra.mxu1 %v3792_v46  ;;  %12652 = vmatprep.mubr.msk.bf16.mxu1 %vm14158_vm0, %v14157_v1 }
 0xd34   :  { %12662 = vmatprep.subr.bf16.mxu1 %v14157_v1 }
 0xd35   :  { %v3562_v5 = vpop.f32.mrf.mxu1 }
 0xd36   :  { %v3563_v42 = vadd.f32 %v13959_v6, %v3562_v5 }
 0xd37   :  { %v12612_v11 = vpop.f32.mrf.mxu1 }
 0xd38   :  { %v3936_v12 = vpack.c.bf16 %v3563_v42, %v3563_v42 }
 0xd39   :  { %v3565_v13 = vpop.f32.mrf.mxu1 }
 0xd3a   :  { %12653 = vmatmul.mubr.msk.bf16.vlgmr.msra.gmra.mxu1 %vm1007_vm2, %v3690_v49  ;;  %v3944_v54 = vsel %vm1255_vm3, %v3936_v12, 0 }
 0xd3b   :  { %v3782_v50 = vpop.f32.mrf.mxu0  ;;  %12664 = vmatprep.mubr.msk.bf16.mxu1 %vm14158_vm0, %v14157_v1  ;;  %v12613_v14 = vpop.f32.mrf.mxu1  ;;  %12663 = vmatpush3.bf16.msra.mxu1 %v3944_v54 }
 0xd3c   :  { %v3881_v38 = vmul.f32 0.35355338, %v3782_v50  ;;  %12674 = vmatprep.subr.bf16.mxu1 %v14157_v1 }
 0xd3d   :  { %v12648_v52 = vpop.f32.mrf.mxu0  ;;  %v14932_v15 = vpop.f32.mrf.mxu1 }
 0xd3e   :  { %v3885_v43 = vadd.f32 %v11135_v51, %v3881_v38 }
 0xd3f   :  { %v3785_v55 = vpop.f32.mrf.mxu0  ;;  %v12628_v16 = vpop.f32.mrf.mxu1 }
 0xd40   :  { %v3891_v57 = vsel %vm1007_vm2, %v3885_v43, -inf  ;;  %v13961_v16 = vld [vmem:[%s14215_s14 + $0x2] ss:$0 sm:$0xff] }
 0xd41   :  { %3892 = vmax.xlane.f32.xlu1 %v3891_v57  ;;  %v12649_v58 = vpop.f32.mrf.mxu0  ;;  %v3645_v17 = vpop.f32.mrf.mxu1 }
 0xd42   :  { %v3643_v17 = vadd.f32 %v13961_v16, %v14932_v15 }
 0xd43   :  { %v3874_v59 = vpop.f32.mrf.mxu0  ;;  %v12629_v18 = vpop.f32.mrf.mxu1 }
 0xd44   :  { %v3883_v60 = vmul.f32 0.35355338, %v3874_v59 }
 0xd45   :  { %v12660_v62 = vpop.f32.mrf.mxu0 }
 0xd46   :  { %v3887_v63 = vadd.f32 %v11135_v51, %v3883_v60 }
 0xd47   :  { %v3877_v0 = vpop.f32.mrf.mxu0 }
 0xd48   :  { %v3897_v3 = vsel %vm1007_vm2, %v3887_v63, -inf }
 0xd49   :  { %3898 = vmax.xlane.f32.xlu1 %v3897_v3  ;;  %v12661_v4 = vpop.f32.mrf.mxu0 }
 0xdca   :  { %v3893_v21 = vpop.xlane.xlu1 %3892 }
 0xdcb   :  { %v3901_v23 = vsub.f32 %v3885_v43, %v3893_v21  ;;  %v13960_v43 = vld [vmem:[%s14215_s14 + $0x3] ss:$0 sm:$0xff]  ;;  %v3938_v21 = vpack.c.bf16 %v3643_v17, %v3643_v17 }
 0xdcc   :  { %v3683_v55 = vadd.f32 %v13960_v43, %v14907_v10  ;;  %v13964_v43 = vld [vmem:[%s14240_s12 + $0x8] sm:$0xff]  }
 0xdcd   :  { %v3906_v24 = vmul.f32 1.442695, %v3901_v23 }
 0xdce   :  { %v3939_v58 = vpack.c.bf16 %v3683_v55, %v3683_v55 }
 0xdcf   :  { %13809 = vpow2.f32 %v3906_v24 }
 0xdd0   :  { %v4082_v62 = vsel %vm1255_vm3, %v3939_v58, 0  ;;  %v13965_v58 = vld [vmem:[%s14240_s12] sm:$0xff]  }
 0xdd2   :  { %v3899_v25 = vpop.xlane.xlu1 %3898 }
 0xdd3   :  { %v3903_v9 = vsub.f32 %v3887_v63, %v3899_v25  ;;  %v4036_v25 = vsel %vm1255_vm3, %v3938_v21, 0 }
 0xdd5   :  { %v3910_v26 = vmul.f32 1.442695, %v3903_v9 }
 0xdd7   :  { %13811 = vpow2.f32 %v3910_v26 }
 0xddc   :  { %v13810_v27 = vpop.eup %13809 }
 0xddd   :  { %v3915_v29 = vsel %vm1007_vm2, %v13810_v27, 0.0 }
 0xdde   :  { %3916 = vadd.xlane.f32.xlu1 %v3915_v29 }
 0xde4   :  { %v13812_v30 = vpop.eup %13811 }
 0xde5   :  { %v3921_v32 = vsel %vm1007_vm2, %v13812_v30, 0.0 }
 0xde6   :  { %3922 = vadd.xlane.f32.xlu1 %v3921_v32 }
 0xdf2   :  { %v3736_v33 = vpop.f32.mrf.mxu1 }
 0xdf3   :  { %v3880_v34 = vmul.f32 0.35355338, %v3736_v33 }
 0xdf4   :  { %v12642_v35 = vpop.f32.mrf.mxu1 }
 0xdf5   :  { %v3884_v36 = vadd.f32 %v11135_v51, %v3880_v34 }
 0xdf6   :  { %v3739_v39 = vpop.f32.mrf.mxu1 }
 0xdf7   :  { %v3888_v40 = vsel %vm1007_vm2, %v3884_v36, -inf  ;;  %v13962_v39 = vld [vmem:[%s14240_s12 + $0x18] sm:$0xff]  }
 0xdf8   :  { %3889 = vmax.xlane.f32.xlu0 %v3888_v40  ;;  %v12643_v44 = vpop.f32.mrf.mxu1  ;;  %v13963_v40 = vld [vmem:[%s14240_s12 + $0x10] sm:$0xff]  }
 0xdfa   :  { %v3828_v45 = vpop.f32.mrf.mxu1 }
 0xdfb   :  { %v3882_v46 = vmul.f32 0.35355338, %v3828_v45 }
 0xdfc   :  { %v12654_v47 = vpop.f32.mrf.mxu1 }
 0xdfd   :  { %v3886_v7 = vadd.f32 %v11135_v51, %v3882_v46 }
 0xdfe   :  { %v3831_v48 = vpop.f32.mrf.mxu1 }
 0xdff   :  { %v3894_v49 = vsel %vm1007_vm2, %v3886_v7, -inf }
 0xe00   :  { %3895 = vmax.xlane.f32.xlu0 %v3894_v49  ;;  %v12655_v50 = vpop.f32.mrf.mxu1 }
 0xe67   :  { %v3917_v38 = vpop.xlane.xlu1 %3916 }
 0xe68   :  { %13813 = vrcp.f32 %v3917_v38 }
 0xe6f   :  { %v3923_v52 = vpop.xlane.xlu1 %3922 }
 0xe70   :  { %13815 = vrcp.f32 %v3923_v52 }
 0xe75   :  { %v13814_v57 = vpop.eup %13813 }
 0xe76   :  { %v3929_v59 = vmul.f32 %v13814_v57, %v13810_v27 }
 0xe78   :  { %v3933_v60 = vpack.c.bf16 %v3929_v59, %v3929_v59 }
 0xe7a   :  { %12671 = vmatmul.mubr.msk.bf16.vlgmr.msra.gmra.mxu0 %vm1007_vm2, %v3933_v60 }
 0xe7b   :  { %12681 = vmatpush3.bf16.msra.mxu0 %v4082_v62  ;;  %12682 = vmatprep.mubr.msk.bf16.mxu0 %vm14158_vm0, %v14157_v1 }
 0xe7c   :  { %12692 = vmatprep.subr.bf16.mxu0 %v14157_v1 }
 0xe7d   :  { %v13816_v51 = vpop.eup %13815 }
 0xe7e   :  { %v3931_v63 = vmul.f32 %v13816_v51, %v13812_v30 }
 0xe80   :  { %v3935_v0 = vpack.c.bf16 %v3931_v63, %v3931_v63 }
 0xe81   :  { %v3890_v3 = vpop.xlane.xlu0 %3889 }
 0xe82   :  { %v3900_v4 = vsub.f32 %v3884_v36, %v3890_v3  ;;  %12683 = vmatmul.mubr.msk.bf16.vlgmr.msra.gmra.mxu0 %vm1007_vm2, %v3935_v0 }
 0xe83   :  { %12693 = vmatpush3.bf16.msra.mxu0 %v14512_v61  ;;  %12694 = vmatprep.mubr.msk.bf16.mxu0 %vm14158_vm0, %v14157_v1 }
 0xe84   :  { %v3904_v10 = vmul.f32 1.442695, %v3900_v4  ;;  %12704 = vmatprep.subr.bf16.mxu0 %v14157_v1 }
 0xe86   :  { %13817 = vpow2.f32 %v3904_v10 }
 0xe89   :  { %v3896_v5 = vpop.xlane.xlu0 %3895 }
 0xe8a   :  { %v3902_v6 = vsub.f32 %v3886_v7, %v3896_v5 }
 0xe8c   :  { %v3908_v42 = vmul.f32 1.442695, %v3902_v6 }
 0xe8e   :  { %13819 = vpow2.f32 %v3908_v42 }
 0xe93   :  { %v13818_v11 = vpop.eup %13817 }
 0xe94   :  { %v3912_v12 = vsel %vm1007_vm2, %v13818_v11, 0.0 }
 0xe95   :  { %3913 = vadd.xlane.f32.xlu0 %v3912_v12 }
 0xe9b   :  { %v13820_v13 = vpop.eup %13819 }
 0xe9c   :  { %v3918_v54 = vsel %vm1007_vm2, %v13820_v13, 0.0 }
 0xe9d   :  { %3919 = vadd.xlane.f32.xlu0 %v3918_v54 }
 0xf1e   :  { %v3914_v61 = vpop.xlane.xlu0 %3913 }
 0xf1f   :  { %13821 = vrcp.f32 %v3914_v61 }
 0xf26   :  { %v3920_v14 = vpop.xlane.xlu0 %3919 }
 0xf27   :  { %13823 = vrcp.f32 %v3920_v14 }
 0xf2c   :  { %v13822_v18 = vpop.eup %13821 }
 0xf2d   :  { %v3928_v23 = vmul.f32 %v13822_v18, %v13818_v11  ;;  %v13966_v18 = vld [vmem:[%s14225_s24] ss:$0 sm:$0xff] }
 0xf2f   :  { %v3932_v24 = vpack.c.bf16 %v3928_v23, %v3928_v23 }
 0xf31   :  { %12665 = vmatmul.mubr.msk.bf16.vlgmr.msra.gmra.mxu1 %vm1007_vm2, %v3932_v24 }
 0xf32   :  { %12675 = vmatpush3.bf16.msra.mxu1 %v4036_v25  ;;  %12676 = vmatprep.mubr.msk.bf16.mxu1 %vm14158_vm0, %v14157_v1 }
 0xf33   :  { %12686 = vmatprep.subr.bf16.mxu1 %v14157_v1 }
 0xf34   :  { %v13824_v9 = vpop.eup %13823 }
 0xf35   :  { %v3930_v26 = vmul.f32 %v13824_v9, %v13820_v13 }
 0xf37   :  { %v3934_v27 = vpack.c.bf16 %v3930_v26, %v3930_v26 }
 0xf39   :  { %12677 = vmatmul.mubr.msk.bf16.vlgmr.msra.gmra.mxu1 %vm1007_vm2, %v3934_v27 }
 0xf3a   :  { %v4026_v15 = vpop.f32.mrf.mxu0  ;;  %12687 = vmatpush3.bf16.msra.mxu1 %v14499_v56  ;;  %12688 = vmatprep.mubr.msk.bf16.mxu1 %vm14158_vm0, %v14157_v1 }
 0xf3b   :  { %v4125_v29 = vpack.c.bf16 %v4026_v15, %v4026_v15  ;;  %12698 = vmatprep.subr.bf16.mxu1 %v14157_v1 }
 0xf3c   :  { %v12672_v30 = vpop.f32.mrf.mxu0 }
 0xf3d   :  { %12695 = vmatmul.mubr.msk.bf16.vlgmr.msra.gmra.mxu0 %vm1007_vm2, %v4125_v29 }
 0xf3e   :  { %v4029_v32 = vpop.f32.mrf.mxu0  ;;  %12705 = vmatpush3.bf16.msra.mxu0 %v14526_v8  ;;  %12706 = vmatprep.mubr.msk.bf16.mxu0 %vm14158_vm0, %v14157_v1 }
 0xf3f   :  { %12718 = vmatprep.subr.bf16.mxu0 %v14157_v1 }
 0xf40   :  { %v12673_v56 = vpop.f32.mrf.mxu0 }
 0xf42   :  { %v4118_v33 = vpop.f32.mrf.mxu0 }
 0xf43   :  { %v4127_v34 = vpack.c.bf16 %v4118_v33, %v4118_v33 }
 0xf44   :  { %v12684_v35 = vpop.f32.mrf.mxu0 }
 0xf45   :  { %12707 = vmatmul.mubr.msk.bf16.vlgmr.msra.gmra.mxu0 %vm1007_vm2, %v4127_v34  ;;  %v13968_v35 = vld [vmem:[%s14235_s6] ss:$0 sm:$0xff] }
 0xf46   :  { %v4121_v36 = vpop.f32.mrf.mxu0  ;;  %12719 = vmatpush3.bf16.msra.mxu0 %v13962_v39  ;;  %12722 = vmatprep.mubr.msk.bf16.mxu0 %vm14158_vm0, %v14157_v1 }
 0xf47   :  { %12720 = vmatprep.subr.bf16.mxu0 %v14157_v1 }
 0xf48   :  { %v12685_v8 = vpop.f32.mrf.mxu0 }
 0xf49   :  { %v13969_v8 = vld [vmem:[%s14240_s12 + $0x28] sm:$0xff]  }
 0xf4a   :  { %12721 = vmatpush3.bf16.msra.mxu0 %v13963_v40  ;;  %v13970_v40 = vld [vmem:[%s14240_s12 + $0x38] sm:$0xff]  }
 0xf4b   :  { %12734 = vmatprep.subr.bf16.mxu0 %v14157_v1 }
 0xff1   :  { %v3980_v44 = vpop.f32.mrf.mxu1 }
 0xff2   :  { %v4124_v45 = vpack.c.bf16 %v3980_v44, %v3980_v44  ;;  %v13971_v44 = vld [vmem:[%s14240_s12 + $0x20] sm:$0xff]  }
 0xff3   :  { %v12666_v46 = vpop.f32.mrf.mxu1 }
 0xff4   :  { %12689 = vmatmul.mubr.msk.bf16.vlgmr.msra.gmra.mxu1 %vm1007_vm2, %v4124_v45  ;;  %v13972_v45 = vld [vmem:[%s14240_s12 + $0x30] sm:$0xff]   ;;  %v13973_v46 = vld [vmem:[%s14250_s27 + $0x8] sm:$0xff]  }
 0xff5   :  { %v3983_v47 = vpop.f32.mrf.mxu1  ;;  %12699 = vmatpush3.bf16.msra.mxu1 %v14518_v2  ;;  %12700 = vmatprep.mubr.msk.bf16.mxu1 %vm14158_vm0, %v14157_v1 }
 0xff6   :  { %12710 = vmatprep.subr.bf16.mxu1 %v14157_v1  ;;  %v13974_v47 = vld [vmem:[%s14250_s27 + $0x18] sm:$0xff]  }
 0xff7   :  { %v12667_v7 = vpop.f32.mrf.mxu1 }
 0xff8   :  { %v11134_v7 = vld [vmem:[%s16145_s0 + $0x8] sm:$0xff]  ;;  %s16159_s0 = sld [smem:[#allocation19_spill]] }
 0xff9   :  { %v4072_v48 = vpop.f32.mrf.mxu1 }
 0xffa   :  { %v4126_v49 = vpack.c.bf16 %v4072_v48, %v4072_v48  ;;  %v15027_v48 = vpack.c.bf16 %v11134_v7, %v11134_v7 }
 0xffb   :  { %v12678_v50 = vpop.f32.mrf.mxu1 }
 0xffc   :  { %12701 = vmatmul.mubr.msk.bf16.vlgmr.msra.gmra.mxu1 %vm1007_vm2, %v4126_v49  ;;  %v13975_v49 = vld [vmem:[%s14250_s27] sm:$0xff]   ;;  %v13976_v50 = vld [vmem:[%s14250_s27 + $0x10] sm:$0xff]  }
 0xffd   :  { %v4075_v38 = vpop.f32.mrf.mxu1  ;;  %v4208_v52 = vpop.f32.mrf.mxu0  ;;  %12711 = vmatpush3.bf16.msra.mxu1 %v13964_v43  ;;  %12714 = vmatprep.mubr.msk.bf16.mxu1 %vm14158_vm0, %v14157_v1  ;;  %v13979_v43 = vld [vmem:[%s14250_s27 + $0x20] sm:$0xff]  }
 0xffe   :  { %12712 = vmatprep.subr.bf16.mxu1 %v14157_v1  ;;  %v4301_v6 = vsel %vm335_vm1, %v4208_v52, 0.0  ;;  %v13977_v38 = vld [vmem:[%s14250_s27 + $0x28] sm:$0xff]   ;;  %v13978_v52 = vld [vmem:[%s14250_s27 + $0x38] sm:$0xff]  }
 0xfff   :  { %v12679_v2 = vpop.f32.mrf.mxu1  ;;  %v12696_v55 = vpop.f32.mrf.mxu0 }
0x1000   :  { %v13980_v2 = vld [vmem:[%s14250_s27 + $0x30] sm:$0xff]   ;;  %v13981_v55 = vld [vmem:[%s16146_s28 + $0x8] sm:$0xff]  }
0x1001   :  { %v4211_v57 = vpop.f32.mrf.mxu0  ;;  %12713 = vmatpush3.bf16.msra.mxu1 %v13965_v58  ;;  %v13983_v58 = vld [vmem:[%s16146_s28] sm:$0xff]  }
0x1002   :  { %12726 = vmatprep.subr.bf16.mxu1 %v14157_v1  ;;  %v13982_v57 = vld [vmem:[%s16146_s28 + $0x18] sm:$0xff]  }
0x1003   :  { %v12697_v59 = vpop.f32.mrf.mxu0 }
0x1004   :  { %v13984_v59 = vld [vmem:[%s16146_s28 + $0x10] sm:$0xff]  }
0x1005   :  { %v4294_v60 = vpop.f32.mrf.mxu0 }
0x1006   :  { %v4305_v61 = vsel %vm335_vm1, %v4294_v60, 0.0  ;;  %v13985_v60 = vld [vmem:[%s16146_s28 + $0x28] sm:$0xff]  }
0x1007   :  { %v12708_v62 = vpop.f32.mrf.mxu0 }
0x1008   :  { %v13986_v62 = vld [vmem:[%s16146_s28 + $0x38] sm:$0xff]  }
0x1009   :  { %v4297_v51 = vpop.f32.mrf.mxu0 }
0x100a   :  { %v13987_v51 = vld [vmem:[%s16146_s28 + $0x20] sm:$0xff]  }
0x100b   :  { %v12709_v63 = vpop.f32.mrf.mxu0 }
0x100c   :  { %v13988_v63 = vld [vmem:[%s16146_s28 + $0x30] sm:$0xff]  }
0x10b4   :  { %v4165_v0 = vpop.f32.mrf.mxu1 }
0x10b5   :  { %v4300_v10 = vsel %vm335_vm1, %v4165_v0, 0.0 }
0x10b6   :  { %v12690_v3 = vpop.f32.mrf.mxu1  ;;  %v4302_v42 = vadd.f32 %v4301_v6, %v4300_v10 }
0x10b8   :  { %v4168_v4 = vpop.f32.mrf.mxu1 }
0x10ba   :  { %v12691_v5 = vpop.f32.mrf.mxu1 }
0x10bc   :  { %v4251_v11 = vpop.f32.mrf.mxu1 }
0x10bd   :  { %v4303_v12 = vsel %vm335_vm1, %v4251_v11, 0.0 }
0x10be   :  { %v4304_v13 = vadd.f32 %v4303_v12, %v4302_v42  ;;  %v12702_v54 = vpop.f32.mrf.mxu1 }
0x10c0   :  { %v4306_v14 = vadd.f32 %v4305_v61, %v4304_v13  ;;  %v4254_v16 = vpop.f32.mrf.mxu1 }
0x10c2   :  { %v12703_v17 = vpop.f32.mrf.mxu1  ;;  %v4307_v21 = vadd.f32 %v13966_v18, %v4306_v14 }
0x10c4   :  { %v4308_v23 = vadd.f32 %v14779_v41, %v4307_v21  ;;  %v13967_v41 = vld [vmem:[%s14230_s30] ss:$0 sm:$0xff] }
0x10c6   :  { %v4309_v24 = vsel %vm335_vm1, %v4308_v23, 0.0 }
0x10c7   :  { %4310 = vadd.xlane.f32.xlu0 %v4309_v24  ;;  %v13989_v24 = vld [vmem:[%s16147_s1] ss:$0 sm:$0xff] }
0x1150   :  { %v4311_v25 = vpop.xlane.xlu0 %4310 }
0x1151   :  { %v4312_v9 = vmul.f32 0.03125, %v4311_v25 }
0x1153   :  { %v4313_v26 = vsub.f32 %v4308_v23, %v4312_v9  ;;  %v13990_v9 = vld [vmem:[%s16147_s1 + $0x1] ss:$0 sm:$0xff] }
0x1155   :  { %v4314_v27 = vmul.f32 %v4313_v26, %v4313_v26 }
0x1157   :  { %v4315_v15 = vsel %vm335_vm1, %v4314_v27, 0.0 }
0x1158   :  { %4316 = vadd.xlane.f32.xlu1 %v4315_v15 }
0x11e1   :  { %v4317_v29 = vpop.xlane.xlu1 %4316 }
0x11e2   :  { %v4318_v30 = vmul.f32 0.03125, %v4317_v29 }
0x11e4   :  { %v4319_v32 = vadd.f32 1e-06, %v4318_v30 }
0x11e6   :  { %13825 = vrsqrt.f32 %v4319_v32 }
0x11f3   :  { %v13826_v56 = vpop.eup %13825 }
0x11f4   :  { %v4321_v33 = vmul.f32 %v13826_v56, %v4313_v26 }
0x11f6   :  { %v4322_v34 = vmul.f32 %v13967_v41, %v4321_v33 }
0x11f8   :  { %v14998_v36 = vadd.f32 %v13968_v35, %v4322_v34 }
0x11fa   :  { %v4324_v39 = vpack.c.bf16 %v14998_v36, %v14998_v36 }
0x11fc   :  { %12715 = vmatmul.mubr.msk.bf16.vlgmr.msra.gmra.mxu1 %vm335_vm1, %v4324_v39  ;;  %12723 = vmatmul.mubr.msk.bf16.vlgmr.msra.gmra.mxu0 %vm335_vm1, %v4324_v39 }
0x11fd   :  { %12727 = vmatpush3.bf16.msra.mxu1 %v13969_v8  ;;  %12735 = vmatpush3.bf16.msra.mxu0 %v13970_v40  ;;  %v13992_v40 = vld [vmem:[%s16148_s2 + $0x1] ss:$0 sm:$0xff] }
0x11fe   :  { %12728 = vmatprep.subr.bf16.mxu1 %v14157_v1  ;;  %12736 = vmatprep.subr.bf16.mxu0 %v14157_v1 }
0x11ff   :  { %12730 = vmatprep.mubr.msk.bf16.mxu1 %vm14158_vm0, %v14157_v1  ;;  %12738 = vmatprep.mubr.msk.bf16.mxu0 %vm14158_vm0, %v14157_v1 }
0x1201   :  { %12729 = vmatpush3.bf16.msra.mxu1 %v13971_v44  ;;  %12737 = vmatpush3.bf16.msra.mxu0 %v13972_v45 }
0x1202   :  { %12742 = vmatprep.subr.bf16.mxu1 %v14157_v1  ;;  %12750 = vmatprep.subr.bf16.mxu0 %v14157_v1 }
0x1204   :  { %12731 = vmatmul.mubr.msk.bf16.vlgmr.msra.gmra.mxu1 %vm335_vm1, %v4324_v39  ;;  %12739 = vmatmul.mubr.msk.bf16.vlgmr.msra.gmra.mxu0 %vm335_vm1, %v4324_v39  ;;  %v13991_v39 = vld [vmem:[%s16148_s2] ss:$0 sm:$0xff] }
0x1205   :  { %12743 = vmatpush3.bf16.msra.mxu1 %v13973_v46  ;;  %12751 = vmatpush3.bf16.msra.mxu0 %v13974_v47  ;;  %v13993_v47 = vld [vmem:[%s16147_s1 + $0x2] ss:$0 sm:$0xff] }
0x1206   :  { %12744 = vmatprep.subr.bf16.mxu1 %v14157_v1  ;;  %12752 = vmatprep.subr.bf16.mxu0 %v14157_v1 }
0x1207   :  { %12746 = vmatprep.mubr.msk.bf16.mxu1 %vm14158_vm0, %v14157_v1  ;;  %12754 = vmatprep.mubr.msk.bf16.mxu0 %vm14158_vm0, %v14157_v1 }
0x1209   :  { %12745 = vmatpush3.bf16.msra.mxu1 %v13975_v49  ;;  %12753 = vmatpush3.bf16.msra.mxu0 %v13976_v50  ;;  %v13994_v49 = vld [vmem:[%s16147_s1 + $0x3] ss:$0 sm:$0xff] }
0x120a   :  { %12758 = vmatprep.subr.bf16.mxu1 %v14157_v1  ;;  %12766 = vmatprep.subr.bf16.mxu0 %v14157_v1 }
0x120c   :  { %12747 = vmatmul.mubr.msk.bf16.vlgmr.msra.gmra.mxu1 %vm335_vm1, %v15027_v48  ;;  %12755 = vmatmul.mubr.msk.bf16.vlgmr.msra.gmra.mxu0 %vm335_vm1, %v15027_v48 }
0x120d   :  { %12759 = vmatpush3.bf16.msra.mxu1 %v13977_v38  ;;  %12767 = vmatpush3.bf16.msra.mxu0 %v13978_v52 }
0x120e   :  { %12760 = vmatprep.subr.bf16.mxu1 %v14157_v1  ;;  %12768 = vmatprep.subr.bf16.mxu0 %v14157_v1 }
0x120f   :  { %12762 = vmatprep.mubr.msk.bf16.mxu1 %vm14158_vm0, %v14157_v1  ;;  %12770 = vmatprep.mubr.msk.bf16.mxu0 %vm14158_vm0, %v14157_v1 }
0x1211   :  { %12761 = vmatpush3.bf16.msra.mxu1 %v13979_v43  ;;  %12769 = vmatpush3.bf16.msra.mxu0 %v13980_v2 }
0x1212   :  { %12774 = vmatprep.subr.bf16.mxu1 %v14157_v1  ;;  %12782 = vmatprep.subr.bf16.mxu0 %v14157_v1 }
0x1214   :  { %12763 = vmatmul.mubr.msk.bf16.vlgmr.msra.gmra.mxu1 %vm335_vm1, %v15027_v48  ;;  %12771 = vmatmul.mubr.msk.bf16.vlgmr.msra.gmra.mxu0 %vm335_vm1, %v15027_v48 }
0x1215   :  { %12775 = vmatpush3.bf16.msra.mxu1 %v13981_v55  ;;  %12783 = vmatpush3.bf16.msra.mxu0 %v13982_v57 }
0x1216   :  { %12776 = vmatprep.subr.bf16.mxu1 %v14157_v1  ;;  %12784 = vmatprep.subr.bf16.mxu0 %v14157_v1 }
0x1217   :  { %12778 = vmatprep.mubr.msk.bf16.mxu1 %vm14158_vm0, %v14157_v1  ;;  %12786 = vmatprep.mubr.msk.bf16.mxu0 %vm14158_vm0, %v14157_v1 }
0x1219   :  { %12777 = vmatpush3.bf16.msra.mxu1 %v13983_v58  ;;  %12785 = vmatpush3.bf16.msra.mxu0 %v13984_v59 }
0x121a   :  { %12790 = vmatprep.subr.bf16.mxu1 %v14157_v1  ;;  %12798 = vmatprep.subr.bf16.mxu0 %v14157_v1 }
0x121c   :  { %12779 = vmatmul.mubr.msk.bf16.vlgmr.msra.gmra.mxu1 %vm335_vm1, %v15027_v48  ;;  %12787 = vmatmul.mubr.msk.bf16.vlgmr.msra.gmra.mxu0 %vm335_vm1, %v15027_v48 }
0x121d   :  { %12791 = vmatpush3.bf16.msra.mxu1 %v13985_v60  ;;  %12799 = vmatpush3.bf16.msra.mxu0 %v13986_v62 }
0x121e   :  { %12792 = vmatprep.subr.bf16.mxu1 %v14157_v1  ;;  %12800 = vmatprep.subr.bf16.mxu0 %v14157_v1 }
0x121f   :  { %12794 = vmatprep.mubr.msk.bf16.mxu1 %vm14158_vm0, %v14157_v1  ;;  %12802 = vmatprep.mubr.msk.bf16.mxu0 %vm14158_vm0, %v14157_v1 }
0x1221   :  { %12793 = vmatpush3.bf16.msra.mxu1 %v13987_v51  ;;  %12801 = vmatpush3.bf16.msra.mxu0 %v13988_v63 }
0x1222   :  { %12806 = vmatprep.subr.bf16.mxu1 %v14157_v1  ;;  %12812 = vmatprep.subr.bf16.mxu0 %v14157_v1 }
0x1224   :  { %12795 = vmatmul.mubr.msk.bf16.vlgmr.msra.gmra.mxu1 %vm335_vm1, %v15027_v48  ;;  %12803 = vmatmul.mubr.msk.bf16.vlgmr.msra.gmra.mxu0 %vm335_vm1, %v15027_v48 }
0x1225   :  { %12808 = vmatprep.mubr.msk.bf16.mxu1 %vm14158_vm0, %v14157_v1  ;;  %12814 = vmatprep.mubr.msk.bf16.mxu0 %vm14158_vm0, %v14157_v1 }
0x12bc   :  { %v4363_v0 = vpop.f32.mrf.mxu1  ;;  %v4403_v3 = vpop.f32.mrf.mxu0 }
0x12bd   :  { %v4364_v8 = vadd.f32 %v13991_v39, %v4363_v0  ;;  %v4404_v44 = vadd.f32 %v13992_v40, %v4403_v3  ;;  %v13995_v0 = vld [vmem:[%s16148_s2 + $0x2] ss:$0 sm:$0xff]  ;;  %v11136_v39 = vld [vmem:[%s16150_s10 + $0x8] sm:$0xff] }
0x12be   :  { %v12716_v4 = vpop.f32.mrf.mxu1  ;;  %v12724_v10 = vpop.f32.mrf.mxu0 }
0x12bf   :  { %v4812_v43 = vpack.c.bf16 %v4364_v8, %v4364_v8  ;;  %v4813_v2 = vpack.c.bf16 %v4404_v44, %v4404_v44  ;;  %v13996_v4 = vld [vmem:[%s16148_s2 + $0x3] ss:$0 sm:$0xff] }
0x12c0   :  { %v4366_v5 = vpop.f32.mrf.mxu1  ;;  %v4406_v6 = vpop.f32.mrf.mxu0 }
0x12c2   :  { %v12717_v42 = vpop.f32.mrf.mxu1  ;;  %v12725_v11 = vpop.f32.mrf.mxu0 }
0x12c3   :  { %v13997_v42 = vld [vmem:[%s16149_s7] ss:$0 sm:$0xff] }
0x12c4   :  { %v4443_v12 = vpop.f32.mrf.mxu1  ;;  %v4483_v13 = vpop.f32.mrf.mxu0 }
0x12c5   :  { %v4444_v3 = vadd.f32 %v13995_v0, %v4443_v12  ;;  %v4484_v10 = vadd.f32 %v13996_v4, %v4483_v13 }
0x12c6   :  { %v12732_v54 = vpop.f32.mrf.mxu1  ;;  %v12740_v61 = vpop.f32.mrf.mxu0 }
0x12c7   :  { %v13998_v54 = vld [vmem:[%s16149_s7 + $0x1] ss:$0 sm:$0xff]  ;;  %v4815_v13 = vpack.c.bf16 %v4484_v10, %v4484_v10 }
0x12c8   :  { %v4446_v14 = vpop.f32.mrf.mxu1  ;;  %v4486_v16 = vpop.f32.mrf.mxu0 }
0x12c9   :  { %v4814_v16 = vpack.c.bf16 %v4444_v3, %v4444_v3 }
0x12ca   :  { %v12733_v17 = vpop.f32.mrf.mxu1  ;;  %v12741_v18 = vpop.f32.mrf.mxu0 }
0x12cc   :  { %v4526_v21 = vpop.f32.mrf.mxu1  ;;  %v4566_v23 = vpop.f32.mrf.mxu0 }
0x12cd   :  { %v4527_v25 = vadd.f32 %v13989_v24, %v4526_v21  ;;  %v4567_v26 = vadd.f32 %v13990_v9, %v4566_v23 }
0x12ce   :  { %v12748_v27 = vpop.f32.mrf.mxu1  ;;  %v12756_v15 = vpop.f32.mrf.mxu0 }
0x12cf   :  { %v4816_v29 = vpack.c.bf16 %v4527_v25, %v4527_v25  ;;  %v4817_v30 = vpack.c.bf16 %v4567_v26, %v4567_v26 }
0x12d0   :  { %v4529_v32 = vpop.f32.mrf.mxu1  ;;  %v4569_v56 = vpop.f32.mrf.mxu0 }
0x12d1   :  { %v4824_v33 = vsel %vm1007_vm2, %v4816_v29, 0  ;;  %v4870_v41 = vsel %vm1007_vm2, %v4817_v30, 0 }
0x12d2   :  { %v12749_v34 = vpop.f32.mrf.mxu1  ;;  %v12757_v35 = vpop.f32.mrf.mxu0  ;;  %12807 = vmatpush3.bf16.xpose.msra.mxu1 %v4824_v33  ;;  %12813 = vmatpush3.bf16.xpose.msra.mxu0 %v4870_v41 }
0x12d3   :  { %12818 = vmatprep.subr.bf16.mxu1 %v14157_v1  ;;  %12824 = vmatprep.subr.bf16.mxu0 %v14157_v1 }
0x12d4   :  { %v4606_v45 = vpop.f32.mrf.mxu1  ;;  %v4646_v46 = vpop.f32.mrf.mxu0 }
0x12d5   :  { %v4607_v7 = vadd.f32 %v13993_v47, %v4606_v45  ;;  %v4647_v50 = vadd.f32 %v13994_v49, %v4646_v46 }
0x12d6   :  { %v12764_v38 = vpop.f32.mrf.mxu1  ;;  %v12772_v52 = vpop.f32.mrf.mxu0 }
0x12d7   :  { %v4818_v55 = vpack.c.bf16 %v4607_v7, %v4607_v7  ;;  %v4819_v57 = vpack.c.bf16 %v4647_v50, %v4647_v50 }
0x12d8   :  { %v4609_v58 = vpop.f32.mrf.mxu1  ;;  %v4649_v59 = vpop.f32.mrf.mxu0 }
0x12d9   :  { %v4916_v60 = vsel %vm1007_vm2, %v4818_v55, 0  ;;  %v4962_v62 = vsel %vm1007_vm2, %v4819_v57, 0  ;;  %12809 = vmatmul.mubr.msk.bf16.vlgmr.msra.gmra.mxu1 %vm1007_vm2, %v4812_v43  ;;  %12815 = vmatmul.mubr.msk.bf16.vlgmr.msra.gmra.mxu0 %vm1007_vm2, %v4813_v2 }
0x12da   :  { %v12765_v51 = vpop.f32.mrf.mxu1  ;;  %v12773_v63 = vpop.f32.mrf.mxu0  ;;  %12819 = vmatpush3.bf16.xpose.msra.mxu1 %v4916_v60  ;;  %12825 = vmatpush3.bf16.xpose.msra.mxu0 %v4962_v62 }
0x12db   :  { %12820 = vmatprep.mubr.msk.bf16.mxu1 %vm14158_vm0, %v14157_v1  ;;  %12826 = vmatprep.mubr.msk.bf16.mxu0 %vm14158_vm0, %v14157_v1 }
0x12dc   :  { %v4686_v5 = vpop.f32.mrf.mxu1  ;;  %v4726_v6 = vpop.f32.mrf.mxu0  ;;  %12830 = vmatprep.subr.bf16.mxu1 %v14157_v1  ;;  %12836 = vmatprep.subr.bf16.mxu0 %v14157_v1 }
0x12dd   :  { %v4687_v11 = vadd.f32 %v13997_v42, %v4686_v5  ;;  %v4727_v61 = vadd.f32 %v13998_v54, %v4726_v6 }
0x12de   :  { %v12780_v14 = vpop.f32.mrf.mxu1  ;;  %v12788_v12 = vpop.f32.mrf.mxu0 }
0x12df   :  { %v5060_v17 = vpack.c.bf16 %v4687_v11, %v4687_v11  ;;  %v5061_v18 = vpack.c.bf16 %v4727_v61, %v4727_v61 }
0x12e0   :  { %v4689_v21 = vpop.f32.mrf.mxu1  ;;  %v4729_v23 = vpop.f32.mrf.mxu0 }
0x12e1   :  { %12821 = vmatmul.mubr.msk.bf16.vlgmr.msra.gmra.mxu1 %vm1007_vm2, %v4814_v16  ;;  %12827 = vmatmul.mubr.msk.bf16.vlgmr.msra.gmra.mxu0 %vm1007_vm2, %v4815_v13  ;;  %v5068_v24 = vsel %vm1255_vm3, %v5060_v17, 0  ;;  %v5114_v25 = vsel %vm1255_vm3, %v5061_v18, 0 }
0x12e2   :  { %v12781_v9 = vpop.f32.mrf.mxu1  ;;  %v12789_v26 = vpop.f32.mrf.mxu0  ;;  %12831 = vmatpush3.bf16.msra.mxu1 %v5068_v24  ;;  %12837 = vmatpush3.bf16.msra.mxu0 %v5114_v25 }
0x12e3   :  { %12832 = vmatprep.mubr.msk.bf16.mxu1 %vm14158_vm0, %v14157_v1  ;;  %12838 = vmatprep.mubr.msk.bf16.mxu0 %vm14158_vm0, %v14157_v1 }
0x12e4   :  { %v15121_v27 = vpop.f32.mrf.mxu1  ;;  %v15123_v15 = vpop.f32.mrf.mxu0  ;;  %12842 = vmatprep.subr.bf16.mxu1 %v14157_v1  ;;  %12848 = vmatprep.subr.bf16.mxu0 %v14157_v1 }
0x12e6   :  { %v12796_v29 = vpop.f32.mrf.mxu1  ;;  %v12804_v30 = vpop.f32.mrf.mxu0 }
0x12e8   :  { %v4769_v32 = vpop.f32.mrf.mxu1  ;;  %v4809_v56 = vpop.f32.mrf.mxu0 }
0x12ea   :  { %v12797_v33 = vpop.f32.mrf.mxu1  ;;  %v12805_v41 = vpop.f32.mrf.mxu0 }
0x1399   :  { %v4860_v34 = vpop.f32.mrf.mxu1  ;;  %v4906_v35 = vpop.f32.mrf.mxu0 }
0x139a   :  { %v5004_v8 = vmul.f32 0.35355338, %v4860_v34  ;;  %v5005_v40 = vmul.f32 0.35355338, %v4906_v35  ;;  %v13999_v35 = vld [vmem:[%s16149_s7 + $0x2] ss:$0 sm:$0xff] }
0x139b   :  { %v12810_v44 = vpop.f32.mrf.mxu1  ;;  %v12816_v45 = vpop.f32.mrf.mxu0 }
0x139c   :  { %v5008_v46 = vadd.f32 %v11136_v39, %v5004_v8  ;;  %v5009_v47 = vadd.f32 %v11136_v39, %v5005_v40  ;;  %v14000_v8 = vld [vmem:[%s16149_s7 + $0x3] ss:$0 sm:$0xff] }
0x139d   :  { %v4863_v7 = vpop.f32.mrf.mxu1  ;;  %v4909_v49 = vpop.f32.mrf.mxu0  ;;  %v4807_v40 = vadd.f32 %v14000_v8, %v15123_v15 }
0x139e   :  { %v5012_v50 = vsel %vm1007_vm2, %v5008_v46, -inf  ;;  %v5015_v38 = vsel %vm1007_vm2, %v5009_v47, -inf }
0x139f   :  { %5013 = vmax.xlane.f32.xlu0 %v5012_v50  ;;  %v12811_v52 = vpop.f32.mrf.mxu1  ;;  %5016 = vmax.xlane.f32.xlu1 %v5015_v38  ;;  %v12817_v43 = vpop.f32.mrf.mxu0  ;;  %v5063_v7 = vpack.c.bf16 %v4807_v40, %v4807_v40 }
0x13a1   :  { %v4952_v2 = vpop.f32.mrf.mxu1  ;;  %v4998_v55 = vpop.f32.mrf.mxu0  ;;  %v5206_v43 = vsel %vm1255_vm3, %v5063_v7, 0 }
0x13a2   :  { %v5006_v57 = vmul.f32 0.35355338, %v4952_v2  ;;  %v5007_v58 = vmul.f32 0.35355338, %v4998_v55 }
0x13a3   :  { %v12822_v59 = vpop.f32.mrf.mxu1  ;;  %v12828_v60 = vpop.f32.mrf.mxu0 }
0x13a4   :  { %v5010_v62 = vadd.f32 %v11136_v39, %v5006_v57  ;;  %v5011_v51 = vadd.f32 %v11136_v39, %v5007_v58  ;;  %v4767_v39 = vadd.f32 %v13999_v35, %v15121_v27 }
0x13a5   :  { %v4955_v63 = vpop.f32.mrf.mxu1  ;;  %v5001_v0 = vpop.f32.mrf.mxu0 }
0x13a6   :  { %v5018_v3 = vsel %vm1007_vm2, %v5010_v62, -inf  ;;  %v5021_v4 = vsel %vm1007_vm2, %v5011_v51, -inf }
0x13a7   :  { %5019 = vmax.xlane.f32.xlu0 %v5018_v3  ;;  %v12823_v10 = vpop.f32.mrf.mxu1  ;;  %5022 = vmax.xlane.f32.xlu1 %v5021_v4  ;;  %v12829_v5 = vpop.f32.mrf.mxu0 }
0x1428   :  { %v5014_v6 = vpop.xlane.xlu0 %5013  ;;  %v5017_v42 = vpop.xlane.xlu1 %5016 }
0x1429   :  { %v5024_v11 = vsub.f32 %v5008_v46, %v5014_v6  ;;  %v5025_v54 = vsub.f32 %v5009_v47, %v5017_v42  ;;  %v5062_v46 = vpack.c.bf16 %v4767_v39, %v4767_v39 }
0x142b   :  { %v5028_v61 = vmul.f32 1.442695, %v5024_v11  ;;  %v5030_v14 = vmul.f32 1.442695, %v5025_v54  ;;  %v5160_v52 = vsel %vm1255_vm3, %v5062_v46, 0  ;;  %v14001_v54 = vld [vmem:[%s16153_s16 + $0x8] sm:$0xff]  }
0x142d   :  { %13827 = vpow2.f32 %v5028_v61 }
0x142e   :  { %13829 = vpow2.f32 %v5030_v14 }
0x1430   :  { %v5020_v12 = vpop.xlane.xlu0 %5019  ;;  %v5023_v16 = vpop.xlane.xlu1 %5022 }
0x1431   :  { %v5026_v13 = vsub.f32 %v5010_v62, %v5020_v12  ;;  %v5027_v17 = vsub.f32 %v5011_v51, %v5023_v16  ;;  %v14002_v12 = vld [vmem:[%s16154_s18 + $0x18] sm:$0xff]  }
0x1433   :  { %v5032_v18 = vmul.f32 1.442695, %v5026_v13  ;;  %v5034_v21 = vmul.f32 1.442695, %v5027_v17  ;;  %v14003_v13 = vld [vmem:[%s16153_s16] sm:$0xff]   ;;  %v14004_v17 = vld [vmem:[%s16154_s18 + $0x10] sm:$0xff]  }
0x1435   :  { %13831 = vpow2.f32 %v5032_v18  ;;  %v14005_v18 = vld [vmem:[%s16154_s18 + $0x8] sm:$0xff]  }
0x1436   :  { %13833 = vpow2.f32 %v5034_v21  ;;  %v14006_v21 = vld [vmem:[%s16154_s18] sm:$0xff]  }
0x143a   :  { %v13828_v23 = vpop.eup %13827 }
0x143b   :  { %v13830_v24 = vpop.eup %13829  ;;  %v5036_v25 = vsel %vm1007_vm2, %v13828_v23, 0.0 }
0x143c   :  { %5037 = vadd.xlane.f32.xlu0 %v5036_v25  ;;  %v5039_v9 = vsel %vm1007_vm2, %v13830_v24, 0.0 }
0x143d   :  { %5040 = vadd.xlane.f32.xlu1 %v5039_v9 }
0x1442   :  { %v13832_v26 = vpop.eup %13831 }
0x1443   :  { %v13834_v29 = vpop.eup %13833  ;;  %v5042_v30 = vsel %vm1007_vm2, %v13832_v26, 0.0 }
0x1444   :  { %5043 = vadd.xlane.f32.xlu0 %v5042_v30  ;;  %v5045_v32 = vsel %vm1007_vm2, %v13834_v29, 0.0 }
0x1445   :  { %5046 = vadd.xlane.f32.xlu1 %v5045_v32 }
0x14c5   :  { %v5038_v56 = vpop.xlane.xlu0 %5037 }
0x14c6   :  { %13835 = vrcp.f32 %v5038_v56  ;;  %v5041_v33 = vpop.xlane.xlu1 %5040 }
0x14c7   :  { %13837 = vrcp.f32 %v5041_v33 }
0x14cd   :  { %v5044_v41 = vpop.xlane.xlu0 %5043 }
0x14ce   :  { %13839 = vrcp.f32 %v5044_v41  ;;  %v5047_v34 = vpop.xlane.xlu1 %5046 }
0x14cf   :  { %13841 = vrcp.f32 %v5047_v34 }
0x14d3   :  { %v13836_v44 = vpop.eup %13835 }
0x14d4   :  { %v13838_v45 = vpop.eup %13837  ;;  %v5052_v47 = vmul.f32 %v13836_v44, %v13828_v23  ;;  %v11267_v44 = vld [vmem:[%s16158_s26] ss:$0 sm:$0xff] }
0x14d5   :  { %v5053_v49 = vmul.f32 %v13838_v45, %v13830_v24 }
0x14d6   :  { %v5056_v50 = vpack.c.bf16 %v5052_v47, %v5052_v47 }
0x14d7   :  { %v5057_v38 = vpack.c.bf16 %v5053_v49, %v5053_v49 }
0x14d8   :  { %12833 = vmatmul.mubr.msk.bf16.vlgmr.msra.gmra.mxu1 %vm1007_vm2, %v5056_v50  ;;  %v3171_v50 = vadd.f32 %v11267_v44, %v14909_v53 }
0x14d9   :  { %12839 = vmatmul.mubr.msk.bf16.vlgmr.msra.gmra.mxu0 %vm1007_vm2, %v5057_v38  ;;  %12843 = vmatpush3.bf16.msra.mxu1 %v5160_v52  ;;  %v14007_v38 = vld [vmem:[%s16152_s15] ss:$0 sm:$0xff] }
0x14da   :  { %12849 = vmatpush3.bf16.msra.mxu0 %v5206_v43  ;;  %12844 = vmatprep.mubr.msk.bf16.mxu1 %vm14158_vm0, %v14157_v1 }
0x14db   :  { %v13840_v27 = vpop.eup %13839  ;;  %12850 = vmatprep.mubr.msk.bf16.mxu0 %vm14158_vm0, %v14157_v1  ;;  %12854 = vmatprep.subr.bf16.mxu1 %v14157_v1 }
0x14dc   :  { %v13842_v15 = vpop.eup %13841  ;;  %v5054_v2 = vmul.f32 %v13840_v27, %v13832_v26  ;;  %12860 = vmatprep.subr.bf16.mxu0 %v14157_v1 }
0x14dd   :  { %v5055_v55 = vmul.f32 %v13842_v15, %v13834_v29 }
0x14de   :  { %v5058_v57 = vpack.c.bf16 %v5054_v2, %v5054_v2 }
0x14df   :  { %v5059_v58 = vpack.c.bf16 %v5055_v55, %v5055_v55  ;;  %v3176_v55 = vadd.f32 %v3171_v50, %v14770_v37 }
0x14e0   :  { %12845 = vmatmul.mubr.msk.bf16.vlgmr.msra.gmra.mxu1 %vm1007_vm2, %v5058_v57 }
0x14e1   :  { %12851 = vmatmul.mubr.msk.bf16.vlgmr.msra.gmra.mxu0 %vm1007_vm2, %v5059_v58  ;;  %12855 = vmatpush3.bf16.msra.mxu1 %v14716_v22  ;;  %v3177_v57 = vsel %vm335_vm1, %v3176_v55, 0.0 }
0x14e2   :  { %12861 = vmatpush3.bf16.msra.mxu0 %v14713_v19  ;;  %12856 = vmatprep.mubr.msk.bf16.mxu1 %vm14158_vm0, %v14157_v1 }
0x14e3   :  { %12862 = vmatprep.mubr.msk.bf16.mxu0 %vm14158_vm0, %v14157_v1  ;;  %12866 = vmatprep.subr.bf16.mxu1 %v14157_v1 }
0x14e4   :  { %12872 = vmatprep.subr.bf16.mxu0 %v14157_v1 }
0x1598   :  { %v5104_v59 = vpop.f32.mrf.mxu1 }
0x1599   :  { %v5248_v60 = vpack.c.bf16 %v5104_v59, %v5104_v59  ;;  %v5150_v62 = vpop.f32.mrf.mxu0 }
0x159a   :  { %v5249_v51 = vpack.c.bf16 %v5150_v62, %v5150_v62  ;;  %v12834_v63 = vpop.f32.mrf.mxu1 }
0x159b   :  { %v12840_v0 = vpop.f32.mrf.mxu0  ;;  %12857 = vmatmul.mubr.msk.bf16.vlgmr.msra.gmra.mxu1 %vm1007_vm2, %v5248_v60 }
0x159c   :  { %12863 = vmatmul.mubr.msk.bf16.vlgmr.msra.gmra.mxu0 %vm1007_vm2, %v5249_v51  ;;  %v5107_v19 = vpop.f32.mrf.mxu1  ;;  %12867 = vmatpush3.bf16.msra.mxu1 %v14734_v31 }
0x159d   :  { %v5153_v22 = vpop.f32.mrf.mxu0  ;;  %12873 = vmatpush3.bf16.msra.mxu0 %v14731_v28  ;;  %12868 = vmatprep.mubr.msk.bf16.mxu1 %vm14158_vm0, %v14157_v1 }
0x159e   :  { %v12835_v3 = vpop.f32.mrf.mxu1  ;;  %12874 = vmatprep.mubr.msk.bf16.mxu0 %vm14158_vm0, %v14157_v1  ;;  %12878 = vmatprep.subr.bf16.mxu1 %v14157_v1 }
0x159f   :  { %v12841_v4 = vpop.f32.mrf.mxu0  ;;  %12886 = vmatprep.subr.bf16.mxu0 %v14157_v1 }
0x15a0   :  { %v5196_v10 = vpop.f32.mrf.mxu1 }
0x15a1   :  { %v5250_v5 = vpack.c.bf16 %v5196_v10, %v5196_v10  ;;  %v5242_v31 = vpop.f32.mrf.mxu0 }
0x15a2   :  { %v5251_v6 = vpack.c.bf16 %v5242_v31, %v5242_v31  ;;  %v12846_v42 = vpop.f32.mrf.mxu1 }
0x15a3   :  { %v12852_v28 = vpop.f32.mrf.mxu0  ;;  %12869 = vmatmul.mubr.msk.bf16.vlgmr.msra.gmra.mxu1 %vm1007_vm2, %v5250_v5  ;;  %v14008_v42 = vld [vmem:[%s16155_s22] ss:$0 sm:$0xff] }
0x15a4   :  { %12875 = vmatmul.mubr.msk.bf16.vlgmr.msra.gmra.mxu0 %vm1007_vm2, %v5251_v6  ;;  %v5199_v11 = vpop.f32.mrf.mxu1  ;;  %12879 = vmatpush3.bf16.msra.mxu1 %v14001_v54  ;;  %v11273_v54 = vld [vmem:[%s16159_s0] ss:$0 sm:$0xff] }
0x15a5   :  { %v5245_v61 = vpop.f32.mrf.mxu0  ;;  %12880 = vmatprep.subr.bf16.mxu1 %v14157_v1  ;;  %12882 = vmatprep.mubr.msk.bf16.mxu1 %vm14158_vm0, %v14157_v1 }
0x15a6   :  { %v12847_v14 = vpop.f32.mrf.mxu1  ;;  %12887 = vmatpush3.bf16.msra.mxu0 %v14002_v12  ;;  %12894 = vmatprep.mubr.msk.bf16.mxu0 %vm14158_vm0, %v14157_v1 }
0x15a7   :  { %v12853_v16 = vpop.f32.mrf.mxu0  ;;  %12888 = vmatprep.subr.bf16.mxu0 %v14157_v1  ;;  %v14009_v14 = vld [vmem:[%s16156_s23] ss:$0 sm:$0xff] }
0x15a8   :  { %12881 = vmatpush3.bf16.msra.mxu1 %v14003_v13  ;;  %v13717_v16 = vld [vmem:[%s14190_s21 + $0x48] sm:$0xff]  }
0x15a9   :  { %12898 = vmatprep.subr.bf16.mxu1 %v14157_v1 }
0x15aa   :  { %12889 = vmatpush3.bf16.msra.mxu0 %v14004_v17 }
0x15ab   :  { %12890 = vmatprep.subr.bf16.mxu0 %v14157_v1 }
0x15ae   :  { %12891 = vmatpush3.bf16.msra.mxu0 %v14005_v18  ;;  %v11274_v18 = vld [vmem:[%s14315_s4] ss:$0 sm:$0xff] }
0x15af   :  { %12892 = vmatprep.subr.bf16.mxu0 %v14157_v1 }
0x15b2   :  { %12893 = vmatpush3.bf16.msra.mxu0 %v14006_v21  ;;  %v13718_v21 = vld [vmem:[%s14190_s21 + $0x40] sm:$0xff]  }
0x15b3   :  { %12914 = vmatprep.subr.bf16.mxu0 %v14157_v1 }
0x165b   :  { %v5289_v23 = vpop.f32.mrf.mxu1 }
0x165c   :  { %v5332_v24 = vpop.f32.mrf.mxu0  ;;  %v5424_v29 = vsel %vm335_vm1, %v5289_v23, 0.0 }
0x165d   :  { %v12858_v25 = vpop.f32.mrf.mxu1  ;;  %v5425_v30 = vsel %vm335_vm1, %v5332_v24, 0.0  ;;  %v13719_v24 = vld [vmem:[%s14190_s21 + $0x58] sm:$0xff]  }
0x165e   :  { %v12864_v9 = vpop.f32.mrf.mxu0  ;;  %v5426_v41 = vadd.f32 %v5425_v30, %v5424_v29  ;;  %v13722_v29 = vld [vmem:[%s14190_s21 + $0x70] sm:$0xff]   ;;  %v13723_v30 = vld [vmem:[%s14200_s29 + $0x58] sm:$0xff]  }
0x165f   :  { %v5292_v26 = vpop.f32.mrf.mxu1  ;;  %v13720_v9 = vld [vmem:[%s14190_s21 + $0x50] sm:$0xff]  }
0x1660   :  { %v5335_v32 = vpop.f32.mrf.mxu0  ;;  %v13721_v26 = vld [vmem:[%s14190_s21 + $0x78] sm:$0xff]  }
0x1661   :  { %v12859_v56 = vpop.f32.mrf.mxu1  ;;  %v13724_v32 = vld [vmem:[%s14200_s29 + $0x50] sm:$0xff]  }
0x1662   :  { %v12865_v33 = vpop.f32.mrf.mxu0  ;;  %v13725_v56 = vld [vmem:[%s14200_s29 + $0x78] sm:$0xff]  }
0x1663   :  { %v5375_v34 = vpop.f32.mrf.mxu1  ;;  %v13726_v33 = vld [vmem:[%s14200_s29 + $0x70] sm:$0xff]  }
0x1664   :  { %v5427_v35 = vsel %vm335_vm1, %v5375_v34, 0.0  ;;  %v5418_v39 = vpop.f32.mrf.mxu0  ;;  %v13728_v34 = vld [vmem:[%s14210_s8 + $0x50] sm:$0xff]  }
0x1665   :  { %v5428_v8 = vadd.f32 %v5427_v35, %v5426_v41  ;;  %v12870_v40 = vpop.f32.mrf.mxu1  ;;  %v5429_v45 = vsel %vm335_vm1, %v5418_v39, 0.0  ;;  %v13727_v41 = vld [vmem:[%s14210_s8 + $0x58] sm:$0xff]   ;;  %v13730_v39 = vld [vmem:[%s14210_s8 + $0x70] sm:$0xff]  }
0x1666   :  { %v12876_v46 = vpop.f32.mrf.mxu0  ;;  %v13729_v35 = vld [vmem:[%s14210_s8 + $0x78] sm:$0xff]   ;;  %v14010_v40 = vld [vmem:[%s16157_s5] ss:$0 sm:$0xff] }
0x1667   :  { %v5430_v47 = vadd.f32 %v5429_v45, %v5428_v8  ;;  %v5378_v7 = vpop.f32.mrf.mxu1 }
0x1668   :  { %v5421_v49 = vpop.f32.mrf.mxu0  ;;  %v13731_v7 = vld [vmem:[%s14190_s21 + $0x68] sm:$0xff]  }
0x1669   :  { %v5431_v52 = vadd.f32 %v14007_v38, %v5430_v47  ;;  %v12871_v43 = vpop.f32.mrf.mxu1 }
0x166a   :  { %v12877_v27 = vpop.f32.mrf.mxu0 }
0x166b   :  { %v5432_v15 = vadd.f32 %v5431_v52, %v14998_v36  ;;  %v13732_v52 = vld [vmem:[%s14190_s21 + $0x60] sm:$0xff]  }
0x166d   :  { %v5433_v2 = vsel %vm335_vm1, %v5432_v15, 0.0 }
0x166e   :  { %5434 = vadd.xlane.f32.xlu0 %v5433_v2 }
0x1672   :  { %3178 = vadd.xlane.f32.xlu0 %v3177_v57  ;;  %v13734_v57 = vld [vmem:[%s14200_s29 + $0x40] sm:$0xff]  }
0x16f7   :  { %v5435_v58 = vpop.xlane.xlu0 %5434 }
0x16f8   :  { %v5436_v59 = vmul.f32 0.03125, %v5435_v58 }
0x16fa   :  { %v5437_v60 = vsub.f32 %v5432_v15, %v5436_v59  ;;  %v13733_v15 = vld [vmem:[%s14200_s29 + $0x48] sm:$0xff]  }
0x16fb   :  { %v3179_v62 = vpop.xlane.xlu0 %3178 }
0x16fc   :  { %v3180_v51 = vmul.f32 0.03125, %v3179_v62  ;;  %v5438_v53 = vmul.f32 %v5437_v60, %v5437_v60 }
0x16fe   :  { %v3181_v63 = vsub.f32 %v3176_v55, %v3180_v51  ;;  %v5439_v0 = vsel %vm335_vm1, %v5438_v53, 0.0  ;;  %v13736_v53 = vld [vmem:[%s14200_s29 + $0x60] sm:$0xff]  }
0x16ff   :  { %5440 = vadd.xlane.f32.xlu1 %v5439_v0 }
0x1700   :  { %v3182_v36 = vmul.f32 %v3181_v63, %v3181_v63 }
0x1702   :  { %v3183_v19 = vsel %vm335_vm1, %v3182_v36, 0.0  ;;  %v13737_v36 = vld [vmem:[%s14210_s8 + $0x48] sm:$0xff]  }
0x1703   :  { %3184 = vadd.xlane.f32.xlu1 %v3183_v19 }
0x1788   :  { %v5441_v37 = vpop.xlane.xlu1 %5440 }
0x1789   :  { %v5442_v22 = vmul.f32 0.03125, %v5441_v37  ;;  %v11492_v37 = vld [vmem:[%s14205_s3 + $0x5] ss:$0 sm:$0xff] }
0x178b   :  { %v5443_v3 = vadd.f32 1e-06, %v5442_v22 }
0x178c   :  { %v3185_v4 = vpop.xlane.xlu1 %3184 }
0x178d   :  { %13843 = vrsqrt.f32 %v5443_v3  ;;  %v3186_v10 = vmul.f32 0.03125, %v3185_v4  ;;  %v13738_v3 = vld [vmem:[%s14210_s8 + $0x40] sm:$0xff]  }
0x178f   :  { %v3187_v5 = vadd.f32 1e-06, %v3186_v10 }
0x1791   :  { %13845 = vrsqrt.f32 %v3187_v5 }
0x179a   :  { %v13844_v31 = vpop.eup %13843 }
0x179b   :  { %v5445_v6 = vmul.f32 %v13844_v31, %v5437_v60  ;;  %v13735_v60 = vld [vmem:[%s14200_s29 + $0x68] sm:$0xff]   ;;  %v11476_v31 = vld [vmem:[%s14195_s25 + $0x5] ss:$0 sm:$0xff] }
0x179d   :  { %v5446_v28 = vmul.f32 %v14008_v42, %v5445_v6  ;;  %v13739_v42 = vld [vmem:[%s14210_s8 + $0x68] sm:$0xff]  }
0x179e   :  { %v13846_v11 = vpop.eup %13845 }
0x179f   :  { %v3189_v61 = vmul.f32 %v13846_v11, %v3181_v63  ;;  %v15204_v12 = vadd.f32 %v14009_v14, %v5446_v28 }
0x17a1   :  { %v3196_v13 = vmul.f32 %v11273_v54, %v3189_v61  ;;  %v5448_v17 = vpack.c.bf16 %v15204_v12, %v15204_v12  ;;  %v11494_v54 = vld [vmem:[%s14205_s3 + $0x7] ss:$0 sm:$0xff] }
0x17a3   :  { %12883 = vmatmul.mubr.msk.bf16.vlgmr.msra.gmra.mxu1 %vm335_vm1, %v5448_v17  ;;  %v15214_v23 = vadd.f32 %v11274_v18, %v3196_v13 }
0x17a4   :  { %12899 = vmatpush3.bf16.msra.mxu1 %v13717_v16  ;;  %12902 = vmatprep.mubr.msk.bf16.mxu1 %vm14158_vm0, %v14157_v1  ;;  %v13740_v16 = vld [vmem:[%s14210_s8 + $0x60] sm:$0xff]  }
0x17a5   :  { %12900 = vmatprep.subr.bf16.mxu1 %v14157_v1  ;;  %v15220_v25 = vpack.c.bf16 %v15214_v23, %v15214_v23 }
0x17a8   :  { %12901 = vmatpush3.bf16.msra.mxu1 %v13718_v21 }
0x17a9   :  { %12906 = vmatprep.subr.bf16.mxu1 %v14157_v1 }
0x17ab   :  { %12903 = vmatmul.mubr.msk.bf16.vlgmr.msra.gmra.mxu1 %vm335_vm1, %v15220_v25 }
0x17ac   :  { %12907 = vmatpush3.bf16.msra.mxu1 %v13719_v24  ;;  %12910 = vmatprep.mubr.msk.bf16.mxu1 %vm14158_vm0, %v14157_v1  ;;  %v11478_v24 = vld [vmem:[%s14195_s25 + $0x7] ss:$0 sm:$0xff] }
0x17ad   :  { %12908 = vmatprep.subr.bf16.mxu1 %v14157_v1 }
0x17b0   :  { %12909 = vmatpush3.bf16.msra.mxu1 %v13720_v9 }
0x17b1   :  { %12922 = vmatprep.subr.bf16.mxu1 %v14157_v1 }
0x17b3   :  { %12911 = vmatmul.mubr.msk.bf16.vlgmr.msra.gmra.mxu1 %vm335_vm1, %v15220_v25 }
0x17b4   :  { %12923 = vmatpush3.bf16.msra.mxu1 %v13721_v26  ;;  %12926 = vmatprep.mubr.msk.bf16.mxu1 %vm14158_vm0, %v14157_v1 }
0x17b5   :  { %12924 = vmatprep.subr.bf16.mxu1 %v14157_v1 }
0x17b8   :  { %12925 = vmatpush3.bf16.msra.mxu1 %v13722_v29 }
0x17b9   :  { %12938 = vmatprep.subr.bf16.mxu1 %v14157_v1 }
0x17bb   :  { %12927 = vmatmul.mubr.msk.bf16.vlgmr.msra.gmra.mxu1 %vm335_vm1, %v15220_v25 }
0x17bc   :  { %12939 = vmatpush3.bf16.msra.mxu1 %v13723_v30  ;;  %12942 = vmatprep.mubr.msk.bf16.mxu1 %vm14158_vm0, %v14157_v1  ;;  %v11508_v30 = vld [vmem:[%s14215_s14 + $0x5] ss:$0 sm:$0xff] }
0x17bd   :  { %12940 = vmatprep.subr.bf16.mxu1 %v14157_v1 }
0x17c0   :  { %12941 = vmatpush3.bf16.msra.mxu1 %v13724_v32 }
0x17c1   :  { %12954 = vmatprep.subr.bf16.mxu1 %v14157_v1 }
0x17c3   :  { %12943 = vmatmul.mubr.msk.bf16.vlgmr.msra.gmra.mxu1 %vm335_vm1, %v15220_v25 }
0x17c4   :  { %12955 = vmatpush3.bf16.msra.mxu1 %v13725_v56  ;;  %12958 = vmatprep.mubr.msk.bf16.mxu1 %vm14158_vm0, %v14157_v1 }
0x17c5   :  { %12956 = vmatprep.subr.bf16.mxu1 %v14157_v1 }
0x17c8   :  { %12957 = vmatpush3.bf16.msra.mxu1 %v13726_v33 }
0x17c9   :  { %12970 = vmatprep.subr.bf16.mxu1 %v14157_v1 }
0x17cb   :  { %12959 = vmatmul.mubr.msk.bf16.vlgmr.msra.gmra.mxu1 %vm335_vm1, %v15220_v25 }
0x17cc   :  { %12971 = vmatpush3.bf16.msra.mxu1 %v13727_v41  ;;  %12974 = vmatprep.mubr.msk.bf16.mxu1 %vm14158_vm0, %v14157_v1 }
0x17cd   :  { %12972 = vmatprep.subr.bf16.mxu1 %v14157_v1 }
0x17d0   :  { %12973 = vmatpush3.bf16.msra.mxu1 %v13728_v34 }
0x17d1   :  { %12986 = vmatprep.subr.bf16.mxu1 %v14157_v1 }
0x17d3   :  { %12975 = vmatmul.mubr.msk.bf16.vlgmr.msra.gmra.mxu1 %vm335_vm1, %v15220_v25 }
0x17d4   :  { %12987 = vmatpush3.bf16.msra.mxu1 %v13729_v35  ;;  %12990 = vmatprep.mubr.msk.bf16.mxu1 %vm14158_vm0, %v14157_v1 }
0x17d5   :  { %12988 = vmatprep.subr.bf16.mxu1 %v14157_v1 }
0x17d8   :  { %12989 = vmatpush3.bf16.msra.mxu1 %v13730_v39 }
0x17d9   :  { %13000 = vmatprep.subr.bf16.mxu1 %v14157_v1 }
0x17db   :  { %12991 = vmatmul.mubr.msk.bf16.vlgmr.msra.gmra.mxu1 %vm335_vm1, %v15220_v25 }
0x17dc   :  { %13002 = vmatprep.mubr.msk.bf16.mxu1 %vm14158_vm0, %v14157_v1 }
0x1863   :  { %v5486_v8 = vpop.f32.mrf.mxu1 }
0x1864   :  { %v5487_v44 = vadd.f32 %v14010_v40, %v5486_v8 }
0x1865   :  { %v12884_v45 = vpop.f32.mrf.mxu1 }
0x1866   :  { %v5492_v46 = vmax.f32 %v5487_v44, 0.0 }
0x1867   :  { %v5489_v47 = vpop.f32.mrf.mxu1 }
0x1868   :  { %v5493_v49 = vpack.c.bf16 %v5492_v46, %v5492_v46 }
0x1869   :  { %v12885_v50 = vpop.f32.mrf.mxu1 }
0x186a   :  { %12895 = vmatmul.mubr.msk.bf16.vlgmr.msra.gmra.mxu0 %vm3132_vm4, %v5493_v49 }
0x186b   :  { %v15277_v38 = vpop.f32.mrf.mxu1  ;;  %12915 = vmatpush3.bf16.msra.mxu0 %v13731_v7  ;;  %12918 = vmatprep.mubr.msk.bf16.mxu0 %vm14158_vm0, %v14157_v1 }
0x186c   :  { %12916 = vmatprep.subr.bf16.mxu0 %v14157_v1 }
0x186d   :  { %v12904_v43 = vpop.f32.mrf.mxu1 }
0x186f   :  { %v5806_v27 = vpop.f32.mrf.mxu1  ;;  %12917 = vmatpush3.bf16.msra.mxu0 %v13732_v52 }
0x1870   :  { %12930 = vmatprep.subr.bf16.mxu0 %v14157_v1 }
0x1871   :  { %v12905_v2 = vpop.f32.mrf.mxu1 }
0x1872   :  { %12919 = vmatmul.mubr.msk.bf16.vlgmr.msra.gmra.mxu0 %vm335_vm1, %v15220_v25  ;;  %v11491_v2 = vld [vmem:[%s14205_s3 + $0x4] ss:$0 sm:$0xff] }
0x1873   :  { %v5855_v55 = vpop.f32.mrf.mxu1  ;;  %12931 = vmatpush3.bf16.msra.mxu0 %v13733_v15  ;;  %12934 = vmatprep.mubr.msk.bf16.mxu0 %vm14158_vm0, %v14157_v1 }
0x1874   :  { %12932 = vmatprep.subr.bf16.mxu0 %v14157_v1  ;;  %v5856_v61 = vadd.f32 %v11476_v31, %v5855_v55 }
0x1875   :  { %v12912_v58 = vpop.f32.mrf.mxu1 }
0x1876   :  { %v6430_v18 = vpack.c.bf16 %v5856_v61, %v5856_v61 }
0x1877   :  { %v5858_v59 = vpop.f32.mrf.mxu1  ;;  %12933 = vmatpush3.bf16.msra.mxu0 %v13734_v57 }
0x1878   :  { %12946 = vmatprep.subr.bf16.mxu0 %v14157_v1 }
0x1879   :  { %v12913_v62 = vpop.f32.mrf.mxu1 }
0x187a   :  { %12935 = vmatmul.mubr.msk.bf16.vlgmr.msra.gmra.mxu0 %vm335_vm1, %v15220_v25 }
0x187b   :  { %v5959_v51 = vpop.f32.mrf.mxu1  ;;  %12947 = vmatpush3.bf16.msra.mxu0 %v13735_v60  ;;  %12950 = vmatprep.mubr.msk.bf16.mxu0 %vm14158_vm0, %v14157_v1  ;;  %v11475_v60 = vld [vmem:[%s14195_s25 + $0x4] ss:$0 sm:$0xff] }
0x187c   :  { %12948 = vmatprep.subr.bf16.mxu0 %v14157_v1  ;;  %v5960_v32 = vadd.f32 %v11478_v24, %v5959_v51 }
0x187d   :  { %v12928_v63 = vpop.f32.mrf.mxu1 }
0x187e   :  { %v6432_v34 = vpack.c.bf16 %v5960_v32, %v5960_v32  ;;  %v11493_v63 = vld [vmem:[%s14205_s3 + $0x6] ss:$0 sm:$0xff] }
0x187f   :  { %v5962_v0 = vpop.f32.mrf.mxu1  ;;  %12949 = vmatpush3.bf16.msra.mxu0 %v13736_v53 }
0x1880   :  { %12962 = vmatprep.subr.bf16.mxu0 %v14157_v1  ;;  %v5804_v0 = vadd.f32 %v11475_v60, %v15277_v38 }
0x1881   :  { %v12929_v19 = vpop.f32.mrf.mxu1 }
0x1882   :  { %12951 = vmatmul.mubr.msk.bf16.vlgmr.msra.gmra.mxu0 %vm335_vm1, %v15220_v25 }
0x1883   :  { %v6087_v22 = vpop.f32.mrf.mxu1  ;;  %12963 = vmatpush3.bf16.msra.mxu0 %v13737_v36  ;;  %12966 = vmatprep.mubr.msk.bf16.mxu0 %vm14158_vm0, %v14157_v1 }
0x1884   :  { %v6088_v4 = vadd.f32 %v11492_v37, %v6087_v22  ;;  %12964 = vmatprep.subr.bf16.mxu0 %v14157_v1  ;;  %v6429_v22 = vpack.c.bf16 %v5804_v0, %v5804_v0 }
0x1885   :  { %v12944_v10 = vpop.f32.mrf.mxu1 }
0x1886   :  { %v6434_v5 = vpack.c.bf16 %v6088_v4, %v6088_v4  ;;  %v11477_v4 = vld [vmem:[%s14195_s25 + $0x6] ss:$0 sm:$0xff] }
0x1887   :  { %v6090_v6 = vpop.f32.mrf.mxu1  ;;  %12965 = vmatpush3.bf16.msra.mxu0 %v13738_v3 }
0x1888   :  { %v6487_v28 = vsel %vm1007_vm2, %v6434_v5, 0  ;;  %12978 = vmatprep.subr.bf16.mxu0 %v14157_v1  ;;  %v11507_v6 = vld [vmem:[%s14215_s14 + $0x4] ss:$0 sm:$0xff] }
0x1889   :  { %v12945_v11 = vpop.f32.mrf.mxu1  ;;  %13001 = vmatpush3.bf16.xpose.msra.mxu1 %v6487_v28 }
0x188a   :  { %12967 = vmatmul.mubr.msk.bf16.vlgmr.msra.gmra.mxu0 %vm335_vm1, %v15220_v25  ;;  %13012 = vmatprep.subr.bf16.mxu1 %v14157_v1 }
0x188b   :  { %v6191_v14 = vpop.f32.mrf.mxu1  ;;  %12979 = vmatpush3.bf16.msra.mxu0 %v13739_v42  ;;  %12982 = vmatprep.mubr.msk.bf16.mxu0 %vm14158_vm0, %v14157_v1 }
0x188c   :  { %v6192_v13 = vadd.f32 %v11494_v54, %v6191_v14  ;;  %12980 = vmatprep.subr.bf16.mxu0 %v14157_v1 }
0x188d   :  { %v12960_v17 = vpop.f32.mrf.mxu1 }
0x188e   :  { %v6436_v21 = vpack.c.bf16 %v6192_v13, %v6192_v13 }
0x188f   :  { %v6194_v9 = vpop.f32.mrf.mxu1  ;;  %12981 = vmatpush3.bf16.msra.mxu0 %v13740_v16 }
0x1890   :  { %v6579_v26 = vsel %vm1007_vm2, %v6436_v21, 0  ;;  %13003 = vmatmul.mubr.msk.bf16.vlgmr.msra.gmra.mxu1 %vm1007_vm2, %v6430_v18  ;;  %12994 = vmatprep.subr.bf16.mxu0 %v14157_v1  ;;  %v14011_v9 = vld [vmem:[%s14180_s13] sm:$0xff] }
0x1891   :  { %v12961_v29 = vpop.f32.mrf.mxu1  ;;  %13013 = vmatpush3.bf16.xpose.msra.mxu1 %v6579_v26  ;;  %13014 = vmatprep.mubr.msk.bf16.mxu1 %vm14158_vm0, %v14157_v1 }
0x1892   :  { %12983 = vmatmul.mubr.msk.bf16.vlgmr.msra.gmra.mxu0 %vm335_vm1, %v15220_v25  ;;  %13024 = vmatprep.subr.bf16.mxu1 %v14157_v1 }
0x1893   :  { %v6319_v56 = vpop.f32.mrf.mxu1  ;;  %12996 = vmatprep.mubr.msk.bf16.mxu0 %vm14158_vm0, %v14157_v1 }
0x1894   :  { %v6320_v33 = vadd.f32 %v11508_v30, %v6319_v56 }
0x1895   :  { %v12976_v41 = vpop.f32.mrf.mxu1 }
0x1896   :  { %v6678_v35 = vpack.c.bf16 %v6320_v33, %v6320_v33 }
0x1897   :  { %v6322_v39 = vpop.f32.mrf.mxu1 }
0x1898   :  { %v6731_v8 = vsel %vm1255_vm3, %v6678_v35, 0  ;;  %13015 = vmatmul.mubr.msk.bf16.vlgmr.msra.gmra.mxu1 %vm1007_vm2, %v6432_v34 }
0x1899   :  { %v12977_v40 = vpop.f32.mrf.mxu1  ;;  %13025 = vmatpush3.bf16.msra.mxu1 %v6731_v8  ;;  %13026 = vmatprep.mubr.msk.bf16.mxu1 %vm14158_vm0, %v14157_v1 }
0x189a   :  { %13036 = vmatprep.subr.bf16.mxu1 %v14157_v1 }
0x189b   :  { %v15337_v25 = vpop.f32.mrf.mxu1 }
0x189d   :  { %v12992_v44 = vpop.f32.mrf.mxu1 }
0x189f   :  { %v6426_v45 = vpop.f32.mrf.mxu1 }
0x18a1   :  { %v12993_v46 = vpop.f32.mrf.mxu1 }
0x192a   :  { %v15339_v47 = vpop.f32.mrf.mxu0 }
0x192c   :  { %v12896_v7 = vpop.f32.mrf.mxu0 }
0x192e   :  { %v5534_v49 = vpop.f32.mrf.mxu0 }
0x1930   :  { %v12897_v50 = vpop.f32.mrf.mxu0 }
0x1932   :  { %v5907_v52 = vpop.f32.mrf.mxu0 }
0x1933   :  { %v5908_v38 = vadd.f32 %v11477_v4, %v5907_v52 }
0x1934   :  { %v12920_v43 = vpop.f32.mrf.mxu0 }
0x1935   :  { %v6431_v54 = vpack.c.bf16 %v5908_v38, %v5908_v38 }
0x1936   :  { %v5910_v27 = vpop.f32.mrf.mxu0 }
0x1938   :  { %v12921_v15 = vpop.f32.mrf.mxu0 }
0x193a   :  { %v6035_v55 = vpop.f32.mrf.mxu0 }
0x193b   :  { %v6036_v57 = vadd.f32 %v11491_v2, %v6035_v55 }
0x193c   :  { %v12936_v58 = vpop.f32.mrf.mxu0 }
0x193d   :  { %v6433_v59 = vpack.c.bf16 %v6036_v57, %v6036_v57 }
0x193e   :  { %v6038_v62 = vpop.f32.mrf.mxu0 }
0x193f   :  { %v6441_v51 = vsel %vm1007_vm2, %v6433_v59, 0 }
0x1940   :  { %v12937_v53 = vpop.f32.mrf.mxu0  ;;  %12995 = vmatpush3.bf16.xpose.msra.mxu0 %v6441_v51 }
0x1941   :  { %13006 = vmatprep.subr.bf16.mxu0 %v14157_v1 }
0x1942   :  { %v6139_v36 = vpop.f32.mrf.mxu0 }
0x1943   :  { %v6140_v19 = vadd.f32 %v11493_v63, %v6139_v36 }
0x1944   :  { %v12952_v37 = vpop.f32.mrf.mxu0 }
0x1945   :  { %v6435_v3 = vpack.c.bf16 %v6140_v19, %v6140_v19 }
0x1946   :  { %v6142_v10 = vpop.f32.mrf.mxu0 }
0x1947   :  { %v6533_v5 = vsel %vm1007_vm2, %v6435_v3, 0  ;;  %12997 = vmatmul.mubr.msk.bf16.vlgmr.msra.gmra.mxu0 %vm1007_vm2, %v6429_v22  ;;  %v11510_v10 = vld [vmem:[%s14215_s14 + $0x7] ss:$0 sm:$0xff] }
0x1948   :  { %v12953_v31 = vpop.f32.mrf.mxu0  ;;  %13007 = vmatpush3.bf16.xpose.msra.mxu0 %v6533_v5  ;;  %13008 = vmatprep.mubr.msk.bf16.mxu0 %vm14158_vm0, %v14157_v1 }
0x1949   :  { %13018 = vmatprep.subr.bf16.mxu0 %v14157_v1  ;;  %v6424_v31 = vadd.f32 %v11510_v10, %v15337_v25 }
0x194a   :  { %v6267_v42 = vpop.f32.mrf.mxu0 }
0x194b   :  { %v6268_v28 = vadd.f32 %v11507_v6, %v6267_v42  ;;  %v6680_v38 = vpack.c.bf16 %v6424_v31, %v6424_v31 }
0x194c   :  { %v12968_v11 = vpop.f32.mrf.mxu0 }
0x194d   :  { %v6677_v61 = vpack.c.bf16 %v6268_v28, %v6268_v28  ;;  %v6823_v11 = vsel %vm1255_vm3, %v6680_v38, 0 }
0x194e   :  { %v6270_v14 = vpop.f32.mrf.mxu0 }
0x194f   :  { %v6685_v16 = vsel %vm1255_vm3, %v6677_v61, 0  ;;  %13009 = vmatmul.mubr.msk.bf16.vlgmr.msra.gmra.mxu0 %vm1007_vm2, %v6431_v54 }
0x1950   :  { %v12969_v13 = vpop.f32.mrf.mxu0  ;;  %v6523_v17 = vpop.f32.mrf.mxu1  ;;  %13019 = vmatpush3.bf16.msra.mxu0 %v6685_v16  ;;  %13020 = vmatprep.mubr.msk.bf16.mxu0 %vm14158_vm0, %v14157_v1 }
0x1951   :  { %v6622_v18 = vmul.f32 0.35355338, %v6523_v17  ;;  %13030 = vmatprep.subr.bf16.mxu0 %v14157_v1 }
0x1952   :  { %v15359_v21 = vpop.f32.mrf.mxu0  ;;  %v13004_v24 = vpop.f32.mrf.mxu1 }
0x1953   :  { %v6626_v26 = vadd.f32 %v14011_v9, %v6622_v18 }
0x1954   :  { %v12984_v29 = vpop.f32.mrf.mxu0  ;;  %v6526_v30 = vpop.f32.mrf.mxu1 }
0x1955   :  { %v6632_v32 = vsel %vm1007_vm2, %v6626_v26, -inf }
0x1956   :  { %6633 = vmax.xlane.f32.xlu1 %v6632_v32  ;;  %v6374_v56 = vpop.f32.mrf.mxu0  ;;  %v13005_v33 = vpop.f32.mrf.mxu1  ;;  %v11386_v32 = vld [vmem:[%s14220_s19 + $0x14] sm:$0xf] }
0x1957   :  { %v15382_v56 = vsel %vm1255_vm3, %v11386_v32, 0 }
0x1958   :  { %v12985_v41 = vpop.f32.mrf.mxu0  ;;  %v6615_v34 = vpop.f32.mrf.mxu1 }
0x1959   :  { %v6624_v35 = vmul.f32 0.35355338, %v6615_v34  ;;  %v11509_v41 = vld [vmem:[%s14215_s14 + $0x6] ss:$0 sm:$0xff] }
0x195a   :  { %v13016_v39 = vpop.f32.mrf.mxu1 }
0x195b   :  { %v6628_v8 = vadd.f32 %v14011_v9, %v6624_v35  ;;  %v6372_v35 = vadd.f32 %v11509_v41, %v15359_v21  ;;  %v11535_v41 = vld [vmem:[%s14225_s24 + $0x1] ss:$0 sm:$0xff] }
0x195c   :  { %v6618_v40 = vpop.f32.mrf.mxu1 }
0x195d   :  { %v6638_v44 = vsel %vm1007_vm2, %v6628_v8, -inf }
0x195e   :  { %6639 = vmax.xlane.f32.xlu1 %v6638_v44  ;;  %v13017_v45 = vpop.f32.mrf.mxu1 }
0x19df   :  { %v6634_v46 = vpop.xlane.xlu1 %6633 }
0x19e0   :  { %v6642_v7 = vsub.f32 %v6626_v26, %v6634_v46 }
0x19e2   :  { %v6647_v49 = vmul.f32 1.442695, %v6642_v7  ;;  %v11385_v7 = vld [vmem:[%s14220_s19 + $0x10] sm:$0xf] }
0x19e3   :  { %v15395_v21 = vsel %vm1255_vm3, %v11385_v7, 0 }
0x19e4   :  { %13847 = vpow2.f32 %v6647_v49 }
0x19e7   :  { %v6640_v50 = vpop.xlane.xlu1 %6639 }
0x19e8   :  { %v6644_v52 = vsub.f32 %v6628_v8, %v6640_v50  ;;  %v6679_v8 = vpack.c.bf16 %v6372_v35, %v6372_v35 }
0x19ea   :  { %v6651_v43 = vmul.f32 1.442695, %v6644_v52  ;;  %v6777_v45 = vsel %vm1255_vm3, %v6679_v8, 0  ;;  %v11388_v52 = vld [vmem:[%s14220_s19 + $0x1c] sm:$0xf] }
0x19ec   :  { %13849 = vpow2.f32 %v6651_v43 }
0x19f1   :  { %v13848_v27 = vpop.eup %13847 }
0x19f2   :  { %v6656_v15 = vsel %vm1007_vm2, %v13848_v27, 0.0 }
0x19f3   :  { %6657 = vadd.xlane.f32.xlu1 %v6656_v15  ;;  %v15403_v15 = vsel %vm1255_vm3, %v11388_v52, 0  ;;  %v13741_v52 = vld [vmem:[%s14240_s12 + $0x48] sm:$0xff]  }
0x19f9   :  { %v13850_v2 = vpop.eup %13849 }
0x19fa   :  { %v6662_v55 = vsel %vm1007_vm2, %v13850_v2, 0.0 }
0x19fb   :  { %6663 = vadd.xlane.f32.xlu1 %v6662_v55 }
0x1a07   :  { %v6477_v57 = vpop.f32.mrf.mxu0 }
0x1a08   :  { %v6621_v58 = vmul.f32 0.35355338, %v6477_v57 }
0x1a09   :  { %v12998_v59 = vpop.f32.mrf.mxu0 }
0x1a0a   :  { %v6625_v60 = vadd.f32 %v14011_v9, %v6621_v58 }
0x1a0b   :  { %v6480_v62 = vpop.f32.mrf.mxu0 }
0x1a0c   :  { %v6629_v51 = vsel %vm1007_vm2, %v6625_v60, -inf }
0x1a0d   :  { %6630 = vmax.xlane.f32.xlu0 %v6629_v51  ;;  %v12999_v53 = vpop.f32.mrf.mxu0 }
0x1a0e   :  { %v11387_v53 = vld [vmem:[%s14220_s19 + $0x18] sm:$0xf] }
0x1a0f   :  { %v6569_v63 = vpop.f32.mrf.mxu0 }
0x1a10   :  { %v6623_v0 = vmul.f32 0.35355338, %v6569_v63 }
0x1a11   :  { %v13010_v36 = vpop.f32.mrf.mxu0 }
0x1a12   :  { %v6627_v19 = vadd.f32 %v14011_v9, %v6623_v0  ;;  %v15416_v36 = vsel %vm1255_vm3, %v11387_v53, 0 }
0x1a13   :  { %v6572_v37 = vpop.f32.mrf.mxu0 }
0x1a14   :  { %v6635_v22 = vsel %vm1007_vm2, %v6627_v19, -inf }
0x1a15   :  { %6636 = vmax.xlane.f32.xlu0 %v6635_v22  ;;  %v13011_v3 = vpop.f32.mrf.mxu0 }
0x1a7c   :  { %v6658_v4 = vpop.xlane.xlu1 %6657 }
0x1a7d   :  { %13851 = vrcp.f32 %v6658_v4 }
0x1a84   :  { %v6664_v5 = vpop.xlane.xlu1 %6663 }
0x1a85   :  { %13853 = vrcp.f32 %v6664_v5 }
0x1a8a   :  { %v13852_v6 = vpop.eup %13851 }
0x1a8b   :  { %v6670_v42 = vmul.f32 %v13852_v6, %v13848_v27 }
0x1a8d   :  { %v6674_v28 = vpack.c.bf16 %v6670_v42, %v6670_v42 }
0x1a8f   :  { %13027 = vmatmul.mubr.msk.bf16.vlgmr.msra.gmra.mxu1 %vm1007_vm2, %v6674_v28 }
0x1a90   :  { %13037 = vmatpush3.bf16.msra.mxu1 %v6823_v11  ;;  %13038 = vmatprep.mubr.msk.bf16.mxu1 %vm14158_vm0, %v14157_v1 }
0x1a91   :  { %13048 = vmatprep.subr.bf16.mxu1 %v14157_v1 }
0x1a92   :  { %v13854_v54 = vpop.eup %13853 }
0x1a93   :  { %v6672_v61 = vmul.f32 %v13854_v54, %v13850_v2 }
0x1a95   :  { %v6676_v14 = vpack.c.bf16 %v6672_v61, %v6672_v61 }
0x1a96   :  { %v6631_v16 = vpop.xlane.xlu0 %6630 }
0x1a97   :  { %v6641_v25 = vsub.f32 %v6625_v60, %v6631_v16  ;;  %13039 = vmatmul.mubr.msk.bf16.vlgmr.msra.gmra.mxu1 %vm1007_vm2, %v6676_v14 }
0x1a98   :  { %13050 = vmatprep.mubr.msk.bf16.mxu1 %vm14158_vm0, %v14157_v1  ;;  %13049 = vmatpush3.bf16.msra.mxu1 %v15382_v56 }
0x1a99   :  { %v6645_v13 = vmul.f32 1.442695, %v6641_v25  ;;  %13060 = vmatprep.subr.bf16.mxu1 %v14157_v1 }
0x1a9b   :  { %13855 = vpow2.f32 %v6645_v13 }
0x1a9e   :  { %v6637_v17 = vpop.xlane.xlu0 %6636 }
0x1a9f   :  { %v6643_v18 = vsub.f32 %v6627_v19, %v6637_v17 }
0x1aa1   :  { %v6649_v24 = vmul.f32 1.442695, %v6643_v18 }
0x1aa3   :  { %13857 = vpow2.f32 %v6649_v24 }
0x1aa8   :  { %v13856_v9 = vpop.eup %13855 }
0x1aa9   :  { %v6653_v26 = vsel %vm1007_vm2, %v13856_v9, 0.0 }
0x1aaa   :  { %6654 = vadd.xlane.f32.xlu0 %v6653_v26 }
0x1ab0   :  { %v13858_v29 = vpop.eup %13857 }
0x1ab1   :  { %v6659_v30 = vsel %vm1007_vm2, %v13858_v29, 0.0 }
0x1ab2   :  { %6660 = vadd.xlane.f32.xlu0 %v6659_v30 }
0x1b33   :  { %v6655_v33 = vpop.xlane.xlu0 %6654 }
0x1b34   :  { %13859 = vrcp.f32 %v6655_v33 }
0x1b3b   :  { %v6661_v34 = vpop.xlane.xlu0 %6660 }
0x1b3c   :  { %13861 = vrcp.f32 %v6661_v34 }
0x1b41   :  { %v13860_v39 = vpop.eup %13859 }
0x1b42   :  { %v6669_v40 = vmul.f32 %v13860_v39, %v13856_v9 }
0x1b44   :  { %v6673_v44 = vpack.c.bf16 %v6669_v40, %v6669_v40 }
0x1b46   :  { %13021 = vmatmul.mubr.msk.bf16.vlgmr.msra.gmra.mxu0 %vm1007_vm2, %v6673_v44 }
0x1b47   :  { %13031 = vmatpush3.bf16.msra.mxu0 %v6777_v45  ;;  %13032 = vmatprep.mubr.msk.bf16.mxu0 %vm14158_vm0, %v14157_v1 }
0x1b48   :  { %13042 = vmatprep.subr.bf16.mxu0 %v14157_v1 }
0x1b49   :  { %v13862_v46 = vpop.eup %13861 }
0x1b4a   :  { %v6671_v49 = vmul.f32 %v13862_v46, %v13858_v29 }
0x1b4c   :  { %v6675_v50 = vpack.c.bf16 %v6671_v49, %v6671_v49 }
0x1b4e   :  { %13033 = vmatmul.mubr.msk.bf16.vlgmr.msra.gmra.mxu0 %vm1007_vm2, %v6675_v50 }
0x1b4f   :  { %v6767_v43 = vpop.f32.mrf.mxu1  ;;  %13043 = vmatpush3.bf16.msra.mxu0 %v15395_v21  ;;  %13044 = vmatprep.mubr.msk.bf16.mxu0 %vm14158_vm0, %v14157_v1 }
0x1b50   :  { %v6866_v27 = vpack.c.bf16 %v6767_v43, %v6767_v43  ;;  %13054 = vmatprep.subr.bf16.mxu0 %v14157_v1  ;;  %v13742_v43 = vld [vmem:[%s14240_s12 + $0x58] sm:$0xff]  }
0x1b51   :  { %v13028_v2 = vpop.f32.mrf.mxu1 }
0x1b52   :  { %13051 = vmatmul.mubr.msk.bf16.vlgmr.msra.gmra.mxu1 %vm1007_vm2, %v6866_v27  ;;  %v13743_v27 = vld [vmem:[%s14240_s12 + $0x40] sm:$0xff]   ;;  %v13744_v2 = vld [vmem:[%s14240_s12 + $0x50] sm:$0xff]  }
0x1b53   :  { %v6770_v55 = vpop.f32.mrf.mxu1  ;;  %13061 = vmatpush3.bf16.msra.mxu1 %v15403_v15  ;;  %13062 = vmatprep.mubr.msk.bf16.mxu1 %vm14158_vm0, %v14157_v1 }
0x1b54   :  { %13074 = vmatprep.subr.bf16.mxu1 %v14157_v1 }
0x1b55   :  { %v13029_v57 = vpop.f32.mrf.mxu1 }
0x1b57   :  { %v6859_v58 = vpop.f32.mrf.mxu1 }
0x1b58   :  { %v6868_v59 = vpack.c.bf16 %v6859_v58, %v6859_v58 }
0x1b59   :  { %v13040_v60 = vpop.f32.mrf.mxu1 }
0x1b5a   :  { %13063 = vmatmul.mubr.msk.bf16.vlgmr.msra.gmra.mxu1 %vm1007_vm2, %v6868_v59  ;;  %v11536_v59 = vld [vmem:[%s14230_s30 + $0x1] ss:$0 sm:$0xff] }
0x1b5b   :  { %v6862_v62 = vpop.f32.mrf.mxu1  ;;  %13078 = vmatprep.mubr.msk.bf16.mxu1 %vm14158_vm0, %v14157_v1  ;;  %13075 = vmatpush3.bf16.msra.mxu1 %v13742_v43 }
0x1b5c   :  { %13076 = vmatprep.subr.bf16.mxu1 %v14157_v1  ;;  %v11537_v62 = vld [vmem:[%s14235_s6 + $0x1] ss:$0 sm:$0xff] }
0x1b5d   :  { %v13041_v51 = vpop.f32.mrf.mxu1 }
0x1b5f   :  { %13077 = vmatpush3.bf16.msra.mxu1 %v13744_v2 }
0x1b60   :  { %13090 = vmatprep.subr.bf16.mxu1 %v14157_v1 }
0x1c06   :  { %v6721_v63 = vpop.f32.mrf.mxu0 }
0x1c07   :  { %v6865_v0 = vpack.c.bf16 %v6721_v63, %v6721_v63  ;;  %v13745_v63 = vld [vmem:[%s14240_s12 + $0x68] sm:$0xff]  }
0x1c08   :  { %v13022_v19 = vpop.f32.mrf.mxu0 }
0x1c09   :  { %13045 = vmatmul.mubr.msk.bf16.vlgmr.msra.gmra.mxu0 %vm1007_vm2, %v6865_v0  ;;  %v13746_v0 = vld [vmem:[%s14240_s12 + $0x78] sm:$0xff]  }
0x1c0a   :  { %v6724_v37 = vpop.f32.mrf.mxu0  ;;  %13055 = vmatpush3.bf16.msra.mxu0 %v15416_v36  ;;  %13056 = vmatprep.mubr.msk.bf16.mxu0 %vm14158_vm0, %v14157_v1 }
0x1c0b   :  { %13066 = vmatprep.subr.bf16.mxu0 %v14157_v1  ;;  %v13747_v37 = vld [vmem:[%s14240_s12 + $0x60] sm:$0xff]  }
0x1c0c   :  { %v13023_v22 = vpop.f32.mrf.mxu0 }
0x1c0d   :  { %v13748_v22 = vld [vmem:[%s14240_s12 + $0x70] sm:$0xff]  }
0x1c0e   :  { %v6813_v3 = vpop.f32.mrf.mxu0 }
0x1c0f   :  { %v6867_v4 = vpack.c.bf16 %v6813_v3, %v6813_v3  ;;  %v13749_v3 = vld [vmem:[%s14250_s27 + $0x48] sm:$0xff]  }
0x1c10   :  { %v13034_v10 = vpop.f32.mrf.mxu0 }
0x1c11   :  { %13057 = vmatmul.mubr.msk.bf16.vlgmr.msra.gmra.mxu0 %vm1007_vm2, %v6867_v4  ;;  %v13750_v4 = vld [vmem:[%s14250_s27 + $0x58] sm:$0xff]   ;;  %v13751_v10 = vld [vmem:[%s14250_s27 + $0x40] sm:$0xff]  }
0x1c12   :  { %v6816_v5 = vpop.f32.mrf.mxu0  ;;  %v6955_v31 = vpop.f32.mrf.mxu1  ;;  %13070 = vmatprep.mubr.msk.bf16.mxu0 %vm14158_vm0, %v14157_v1  ;;  %13067 = vmatpush3.bf16.msra.mxu0 %v13741_v52 }
0x1c13   :  { %v7054_v24 = vsel %vm335_vm1, %v6955_v31, 0.0  ;;  %13068 = vmatprep.subr.bf16.mxu0 %v14157_v1  ;;  %v13752_v5 = vld [vmem:[%s14250_s27 + $0x50] sm:$0xff]   ;;  %v13753_v31 = vld [vmem:[%s14250_s27 + $0x68] sm:$0xff]  }
0x1c14   :  { %v13035_v6 = vpop.f32.mrf.mxu0  ;;  %v13052_v38 = vpop.f32.mrf.mxu1 }
0x1c15   :  { %v13754_v6 = vld [vmem:[%s14250_s27 + $0x78] sm:$0xff]   ;;  %v13755_v38 = vld [vmem:[%s14250_s27 + $0x60] sm:$0xff]  }
0x1c16   :  { %v6958_v42 = vpop.f32.mrf.mxu1  ;;  %13069 = vmatpush3.bf16.msra.mxu0 %v13743_v27 }
0x1c17   :  { %13082 = vmatprep.subr.bf16.mxu0 %v14157_v1  ;;  %v13756_v42 = vld [vmem:[%s14250_s27 + $0x70] sm:$0xff]  }
0x1c18   :  { %v13053_v28 = vpop.f32.mrf.mxu1 }
0x1c19   :  { %v13757_v28 = vld [vmem:[%s16146_s28 + $0x48] sm:$0xff]  }
0x1c1a   :  { %v7047_v11 = vpop.f32.mrf.mxu1 }
0x1c1b   :  { %v7058_v33 = vsel %vm335_vm1, %v7047_v11, 0.0  ;;  %v13758_v11 = vld [vmem:[%s16146_s28 + $0x58] sm:$0xff]  }
0x1c1c   :  { %v13064_v54 = vpop.f32.mrf.mxu1 }
0x1c1d   :  { %v13759_v54 = vld [vmem:[%s16146_s28 + $0x40] sm:$0xff]  }
0x1c1e   :  { %v7050_v61 = vpop.f32.mrf.mxu1 }
0x1c1f   :  { %v13760_v61 = vld [vmem:[%s16146_s28 + $0x50] sm:$0xff]  }
0x1c20   :  { %v13065_v14 = vpop.f32.mrf.mxu1 }
0x1c21   :  { %v13761_v14 = vld [vmem:[%s16146_s28 + $0x68] sm:$0xff]  }
0x1cc9   :  { %v6909_v16 = vpop.f32.mrf.mxu0 }
0x1cca   :  { %v7053_v17 = vsel %vm335_vm1, %v6909_v16, 0.0  ;;  %v13762_v16 = vld [vmem:[%s16146_s28 + $0x78] sm:$0xff]  }
0x1ccb   :  { %v13046_v25 = vpop.f32.mrf.mxu0  ;;  %v7055_v9 = vadd.f32 %v7054_v24, %v7053_v17 }
0x1ccc   :  { %v13763_v25 = vld [vmem:[%s16146_s28 + $0x60] sm:$0xff]  }
0x1ccd   :  { %v6912_v13 = vpop.f32.mrf.mxu0 }
0x1cce   :  { %v13764_v13 = vld [vmem:[%s16146_s28 + $0x70] sm:$0xff]  }
0x1ccf   :  { %v13047_v18 = vpop.f32.mrf.mxu0 }
0x1cd1   :  { %v7001_v26 = vpop.f32.mrf.mxu0 }
0x1cd2   :  { %v7056_v29 = vsel %vm335_vm1, %v7001_v26, 0.0 }
0x1cd3   :  { %v7057_v30 = vadd.f32 %v7056_v29, %v7055_v9  ;;  %v13058_v32 = vpop.f32.mrf.mxu0 }
0x1cd5   :  { %v7059_v34 = vadd.f32 %v7058_v33, %v7057_v30  ;;  %v7004_v35 = vpop.f32.mrf.mxu0 }
0x1cd7   :  { %v13059_v39 = vpop.f32.mrf.mxu0  ;;  %v7066_v8 = vadd.f32 %v11535_v41, %v7059_v34 }
0x1cd9   :  { %v7067_v40 = vadd.f32 %v7066_v8, %v15214_v23 }
0x1cdb   :  { %v7068_v44 = vsel %vm335_vm1, %v7067_v40, 0.0 }
0x1cdc   :  { %7069 = vadd.xlane.f32.xlu0 %v7068_v44  ;;  %v11554_v44 = vld [vmem:[%s16147_s1 + $0x4] ss:$0 sm:$0xff] }
0x1d65   :  { %v7070_v45 = vpop.xlane.xlu0 %7069 }
0x1d66   :  { %v7071_v46 = vmul.f32 0.03125, %v7070_v45  ;;  %v11555_v45 = vld [vmem:[%s16147_s1 + $0x5] ss:$0 sm:$0xff] }
0x1d68   :  { %v7072_v7 = vsub.f32 %v7067_v40, %v7071_v46 }
0x1d6a   :  { %v7073_v49 = vmul.f32 %v7072_v7, %v7072_v7 }
0x1d6c   :  { %v7074_v50 = vsel %vm335_vm1, %v7073_v49, 0.0 }
0x1d6d   :  { %7075 = vadd.xlane.f32.xlu1 %v7074_v50 }
0x1df6   :  { %v7076_v23 = vpop.xlane.xlu1 %7075 }
0x1df7   :  { %v7077_v55 = vmul.f32 0.03125, %v7076_v23  ;;  %v11538_v23 = vld [vmem:[%s16148_s2 + $0x4] ss:$0 sm:$0xff] }
0x1df9   :  { %v7078_v57 = vadd.f32 1e-06, %v7077_v55  ;;  %v11539_v55 = vld [vmem:[%s16148_s2 + $0x5] ss:$0 sm:$0xff] }
0x1dfb   :  { %13863 = vrsqrt.f32 %v7078_v57 }
0x1e08   :  { %v13864_v58 = vpop.eup %13863 }
0x1e09   :  { %v7080_v60 = vmul.f32 %v13864_v58, %v7072_v7 }
0x1e0b   :  { %v7087_v51 = vmul.f32 %v11536_v59, %v7080_v60 }
0x1e0d   :  { %v15444_v53 = vadd.f32 %v11537_v62, %v7087_v51 }
0x1e0f   :  { %v7095_v19 = vpack.c.bf16 %v15444_v53, %v15444_v53 }
0x1e11   :  { %13071 = vmatmul.mubr.msk.bf16.vlgmr.msra.gmra.mxu0 %vm335_vm1, %v7095_v19  ;;  %13079 = vmatmul.mubr.msk.bf16.vlgmr.msra.gmra.mxu1 %vm335_vm1, %v7095_v19 }
0x1e12   :  { %13083 = vmatpush3.bf16.msra.mxu0 %v13745_v63  ;;  %13091 = vmatpush3.bf16.msra.mxu1 %v13746_v0  ;;  %v11556_v63 = vld [vmem:[%s16147_s1 + $0x6] ss:$0 sm:$0xff]  ;;  %v11557_v0 = vld [vmem:[%s16147_s1 + $0x7] ss:$0 sm:$0xff] }
0x1e13   :  { %13084 = vmatprep.subr.bf16.mxu0 %v14157_v1  ;;  %13092 = vmatprep.subr.bf16.mxu1 %v14157_v1 }
0x1e14   :  { %13086 = vmatprep.mubr.msk.bf16.mxu0 %vm14158_vm0, %v14157_v1  ;;  %13094 = vmatprep.mubr.msk.bf16.mxu1 %vm14158_vm0, %v14157_v1 }
0x1e16   :  { %13085 = vmatpush3.bf16.msra.mxu0 %v13747_v37  ;;  %13093 = vmatpush3.bf16.msra.mxu1 %v13748_v22 }
0x1e17   :  { %13098 = vmatprep.subr.bf16.mxu0 %v14157_v1  ;;  %13106 = vmatprep.subr.bf16.mxu1 %v14157_v1 }
0x1e19   :  { %13087 = vmatmul.mubr.msk.bf16.vlgmr.msra.gmra.mxu0 %vm335_vm1, %v7095_v19  ;;  %13095 = vmatmul.mubr.msk.bf16.vlgmr.msra.gmra.mxu1 %vm335_vm1, %v7095_v19 }
0x1e1a   :  { %13099 = vmatpush3.bf16.msra.mxu0 %v13749_v3  ;;  %13107 = vmatpush3.bf16.msra.mxu1 %v13750_v4 }
0x1e1b   :  { %13100 = vmatprep.subr.bf16.mxu0 %v14157_v1  ;;  %13108 = vmatprep.subr.bf16.mxu1 %v14157_v1 }
0x1e1c   :  { %13102 = vmatprep.mubr.msk.bf16.mxu0 %vm14158_vm0, %v14157_v1  ;;  %13110 = vmatprep.mubr.msk.bf16.mxu1 %vm14158_vm0, %v14157_v1 }
0x1e1e   :  { %13101 = vmatpush3.bf16.msra.mxu0 %v13751_v10  ;;  %13109 = vmatpush3.bf16.msra.mxu1 %v13752_v5 }
0x1e1f   :  { %13114 = vmatprep.subr.bf16.mxu0 %v14157_v1  ;;  %13122 = vmatprep.subr.bf16.mxu1 %v14157_v1 }
0x1e21   :  { %13103 = vmatmul.mubr.msk.bf16.vlgmr.msra.gmra.mxu0 %vm335_vm1, %v14589_v20  ;;  %13111 = vmatmul.mubr.msk.bf16.vlgmr.msra.gmra.mxu1 %vm335_vm1, %v14589_v20 }
0x1e22   :  { %13115 = vmatpush3.bf16.msra.mxu0 %v13753_v31  ;;  %13123 = vmatpush3.bf16.msra.mxu1 %v13754_v6 }
0x1e23   :  { %13116 = vmatprep.subr.bf16.mxu0 %v14157_v1  ;;  %13124 = vmatprep.subr.bf16.mxu1 %v14157_v1 }
0x1e24   :  { %13118 = vmatprep.mubr.msk.bf16.mxu0 %vm14158_vm0, %v14157_v1  ;;  %13126 = vmatprep.mubr.msk.bf16.mxu1 %vm14158_vm0, %v14157_v1 }
0x1e26   :  { %13117 = vmatpush3.bf16.msra.mxu0 %v13755_v38  ;;  %13125 = vmatpush3.bf16.msra.mxu1 %v13756_v42 }
0x1e27   :  { %13130 = vmatprep.subr.bf16.mxu0 %v14157_v1  ;;  %13138 = vmatprep.subr.bf16.mxu1 %v14157_v1 }
0x1e29   :  { %13119 = vmatmul.mubr.msk.bf16.vlgmr.msra.gmra.mxu0 %vm335_vm1, %v14589_v20  ;;  %13127 = vmatmul.mubr.msk.bf16.vlgmr.msra.gmra.mxu1 %vm335_vm1, %v14589_v20 }
0x1e2a   :  { %13134 = vmatprep.mubr.msk.bf16.mxu0 %vm14158_vm0, %v14157_v1  ;;  %13142 = vmatprep.mubr.msk.bf16.mxu1 %vm14158_vm0, %v14157_v1 }
0x1e2b   :  { %13131 = vmatpush3.bf16.msra.mxu0 %v13757_v28  ;;  %13139 = vmatpush3.bf16.msra.mxu1 %v13758_v11  ;;  %v11540_v11 = vld [vmem:[%s16148_s2 + $0x6] ss:$0 sm:$0xff] }
0x1e2c   :  { %13132 = vmatprep.subr.bf16.mxu0 %v14157_v1  ;;  %13140 = vmatprep.subr.bf16.mxu1 %v14157_v1 }
0x1e2f   :  { %13133 = vmatpush3.bf16.msra.mxu0 %v13759_v54  ;;  %13141 = vmatpush3.bf16.msra.mxu1 %v13760_v61  ;;  %v11541_v54 = vld [vmem:[%s16148_s2 + $0x7] ss:$0 sm:$0xff] }
0x1e30   :  { %13146 = vmatprep.subr.bf16.mxu0 %v14157_v1  ;;  %13154 = vmatprep.subr.bf16.mxu1 %v14157_v1 }
0x1e32   :  { %13135 = vmatmul.mubr.msk.bf16.vlgmr.msra.gmra.mxu0 %vm335_vm1, %v14589_v20  ;;  %13143 = vmatmul.mubr.msk.bf16.vlgmr.msra.gmra.mxu1 %vm335_vm1, %v14589_v20 }
0x1e33   :  { %13147 = vmatpush3.bf16.msra.mxu0 %v13761_v14  ;;  %13150 = vmatprep.mubr.msk.bf16.mxu0 %vm14158_vm0, %v14157_v1 }
0x1e34   :  { %13148 = vmatprep.subr.bf16.mxu0 %v14157_v1  ;;  %13155 = vmatpush3.bf16.msra.mxu1 %v13762_v16 }
0x1e35   :  { %13158 = vmatprep.mubr.msk.bf16.mxu1 %vm14158_vm0, %v14157_v1  ;;  %13156 = vmatprep.subr.bf16.mxu1 %v14157_v1 }
0x1e37   :  { %13149 = vmatpush3.bf16.msra.mxu0 %v13763_v25 }
0x1e38   :  { %13162 = vmatprep.subr.bf16.mxu0 %v14157_v1  ;;  %13157 = vmatpush3.bf16.msra.mxu1 %v13764_v13 }
0x1e39   :  { %13168 = vmatprep.subr.bf16.mxu1 %v14157_v1 }
0x1e3a   :  { %13151 = vmatmul.mubr.msk.bf16.vlgmr.msra.gmra.mxu0 %vm335_vm1, %v14589_v20 }
0x1e3b   :  { %13164 = vmatprep.mubr.msk.bf16.mxu0 %vm14158_vm0, %v14157_v1  ;;  %13159 = vmatmul.mubr.msk.bf16.vlgmr.msra.gmra.mxu1 %vm335_vm1, %v14589_v20 }
0x1e3c   :  { %13170 = vmatprep.mubr.msk.bf16.mxu1 %vm14158_vm0, %v14157_v1 }
0x1ed1   :  { %v7169_v17 = vpop.f32.mrf.mxu0  ;;  %v7221_v18 = vpop.f32.mrf.mxu1 }
0x1ed2   :  { %v7170_v19 = vadd.f32 %v11538_v23, %v7169_v17  ;;  %v7222_v37 = vadd.f32 %v11539_v55, %v7221_v18 }
0x1ed3   :  { %v13072_v24 = vpop.f32.mrf.mxu0  ;;  %v13080_v9 = vpop.f32.mrf.mxu1 }
0x1ed4   :  { %v7795_v6 = vpack.c.bf16 %v7170_v19, %v7170_v19  ;;  %v7796_v38 = vpack.c.bf16 %v7222_v37, %v7222_v37 }
0x1ed5   :  { %v7172_v26 = vpop.f32.mrf.mxu0  ;;  %v7224_v29 = vpop.f32.mrf.mxu1 }
0x1ed6   :  { %v11570_v29 = vld [vmem:[%s16149_s7 + $0x4] ss:$0 sm:$0xff] }
0x1ed7   :  { %v13073_v30 = vpop.f32.mrf.mxu0  ;;  %v13081_v32 = vpop.f32.mrf.mxu1 }
0x1ed8   :  { %v11571_v32 = vld [vmem:[%s16149_s7 + $0x5] ss:$0 sm:$0xff] }
0x1ed9   :  { %v7273_v33 = vpop.f32.mrf.mxu0  ;;  %v7325_v41 = vpop.f32.mrf.mxu1 }
0x1eda   :  { %v7274_v18 = vadd.f32 %v11540_v11, %v7273_v33  ;;  %v7326_v24 = vadd.f32 %v11541_v54, %v7325_v41 }
0x1edb   :  { %v13088_v34 = vpop.f32.mrf.mxu0  ;;  %v13096_v35 = vpop.f32.mrf.mxu1 }
0x1edc   :  { %v7797_v9 = vpack.c.bf16 %v7274_v18, %v7274_v18  ;;  %v7798_v26 = vpack.c.bf16 %v7326_v24, %v7326_v24 }
0x1edd   :  { %v7276_v20 = vpop.f32.mrf.mxu0  ;;  %v7328_v39 = vpop.f32.mrf.mxu1 }
0x1edf   :  { %v13089_v8 = vpop.f32.mrf.mxu0  ;;  %v13097_v40 = vpop.f32.mrf.mxu1 }
0x1ee1   :  { %v7401_v46 = vpop.f32.mrf.mxu0  ;;  %v7453_v7 = vpop.f32.mrf.mxu1 }
0x1ee2   :  { %v7402_v49 = vadd.f32 %v11554_v44, %v7401_v46  ;;  %v7454_v50 = vadd.f32 %v11555_v45, %v7453_v7 }
0x1ee3   :  { %v13104_v52 = vpop.f32.mrf.mxu0  ;;  %v13112_v43 = vpop.f32.mrf.mxu1 }
0x1ee4   :  { %v7799_v27 = vpack.c.bf16 %v7402_v49, %v7402_v49  ;;  %v7800_v2 = vpack.c.bf16 %v7454_v50, %v7454_v50 }
0x1ee5   :  { %v7404_v57 = vpop.f32.mrf.mxu0  ;;  %v7456_v58 = vpop.f32.mrf.mxu1 }
0x1ee6   :  { %v7807_v59 = vsel %vm1007_vm2, %v7799_v27, 0  ;;  %v7853_v60 = vsel %vm1007_vm2, %v7800_v2, 0 }
0x1ee7   :  { %v13105_v62 = vpop.f32.mrf.mxu0  ;;  %v13113_v51 = vpop.f32.mrf.mxu1  ;;  %13163 = vmatpush3.bf16.xpose.msra.mxu0 %v7807_v59  ;;  %13169 = vmatpush3.bf16.xpose.msra.mxu1 %v7853_v60 }
0x1ee8   :  { %13174 = vmatprep.subr.bf16.mxu0 %v14157_v1  ;;  %13180 = vmatprep.subr.bf16.mxu1 %v14157_v1 }
0x1ee9   :  { %v7505_v22 = vpop.f32.mrf.mxu0  ;;  %v7557_v3 = vpop.f32.mrf.mxu1 }
0x1eea   :  { %v7506_v4 = vadd.f32 %v11556_v63, %v7505_v22  ;;  %v7558_v10 = vadd.f32 %v11557_v0, %v7557_v3  ;;  %v14012_v0 = vld [vmem:[%s16150_s10] sm:$0xff] }
0x1eeb   :  { %v13120_v5 = vpop.f32.mrf.mxu0  ;;  %v13128_v31 = vpop.f32.mrf.mxu1 }
0x1eec   :  { %v7801_v42 = vpack.c.bf16 %v7506_v4, %v7506_v4  ;;  %v7802_v28 = vpack.c.bf16 %v7558_v10, %v7558_v10 }
0x1eed   :  { %v7508_v61 = vpop.f32.mrf.mxu0  ;;  %v7560_v14 = vpop.f32.mrf.mxu1 }
0x1eee   :  { %v7899_v16 = vsel %vm1007_vm2, %v7801_v42, 0  ;;  %v7945_v25 = vsel %vm1007_vm2, %v7802_v28, 0  ;;  %13165 = vmatmul.mubr.msk.bf16.vlgmr.msra.gmra.mxu0 %vm1007_vm2, %v7795_v6  ;;  %13171 = vmatmul.mubr.msk.bf16.vlgmr.msra.gmra.mxu1 %vm1007_vm2, %v7796_v38 }
0x1eef   :  { %v13121_v13 = vpop.f32.mrf.mxu0  ;;  %v13129_v17 = vpop.f32.mrf.mxu1  ;;  %13175 = vmatpush3.bf16.xpose.msra.mxu0 %v7899_v16  ;;  %13181 = vmatpush3.bf16.xpose.msra.mxu1 %v7945_v25 }
0x1ef0   :  { %13176 = vmatprep.mubr.msk.bf16.mxu0 %vm14158_vm0, %v14157_v1  ;;  %13182 = vmatprep.mubr.msk.bf16.mxu1 %vm14158_vm0, %v14157_v1 }
0x1ef1   :  { %13186 = vmatprep.subr.bf16.mxu0 %v14157_v1  ;;  %13192 = vmatprep.subr.bf16.mxu1 %v14157_v1 }
0x1ef2   :  { %v7633_v30 = vpop.f32.mrf.mxu0  ;;  %v7685_v34 = vpop.f32.mrf.mxu1 }
0x1ef3   :  { %v7634_v33 = vadd.f32 %v11570_v29, %v7633_v30  ;;  %v7686_v20 = vadd.f32 %v11571_v32, %v7685_v34 }
0x1ef4   :  { %v13136_v41 = vpop.f32.mrf.mxu0  ;;  %v13144_v8 = vpop.f32.mrf.mxu1 }
0x1ef5   :  { %v8043_v35 = vpack.c.bf16 %v7634_v33, %v7634_v33  ;;  %v8044_v44 = vpack.c.bf16 %v7686_v20, %v7686_v20 }
0x1ef6   :  { %13177 = vmatmul.mubr.msk.bf16.vlgmr.msra.gmra.mxu0 %vm1007_vm2, %v7797_v9  ;;  %13183 = vmatmul.mubr.msk.bf16.vlgmr.msra.gmra.mxu1 %vm1007_vm2, %v7798_v26  ;;  %v7636_v39 = vpop.f32.mrf.mxu0  ;;  %v7688_v46 = vpop.f32.mrf.mxu1 }
0x1ef7   :  { %13188 = vmatprep.mubr.msk.bf16.mxu0 %vm14158_vm0, %v14157_v1  ;;  %13194 = vmatprep.mubr.msk.bf16.mxu1 %vm14158_vm0, %v14157_v1  ;;  %v8051_v40 = vsel %vm1255_vm3, %v8043_v35, 0  ;;  %v8097_v7 = vsel %vm1255_vm3, %v8044_v44, 0 }
0x1ef8   :  { %v13137_v45 = vpop.f32.mrf.mxu0  ;;  %13187 = vmatpush3.bf16.msra.mxu0 %v8051_v40  ;;  %v13145_v49 = vpop.f32.mrf.mxu1  ;;  %13193 = vmatpush3.bf16.msra.mxu1 %v8097_v7 }
0x1ef9   :  { %13198 = vmatprep.subr.bf16.mxu0 %v14157_v1  ;;  %13204 = vmatprep.subr.bf16.mxu1 %v14157_v1 }
0x1efa   :  { %v15565_v50 = vpop.f32.mrf.mxu0 }
0x1efb   :  { %v15568_v43 = vpop.f32.mrf.mxu1 }
0x1efc   :  { %v13152_v52 = vpop.f32.mrf.mxu0 }
0x1efd   :  { %v13160_v2 = vpop.f32.mrf.mxu1 }
0x1efe   :  { %v7740_v27 = vpop.f32.mrf.mxu0 }
0x1eff   :  { %v7792_v55 = vpop.f32.mrf.mxu1 }
0x1f00   :  { %v13153_v23 = vpop.f32.mrf.mxu0  ;;  %v11573_v55 = vld [vmem:[%s16149_s7 + $0x7] ss:$0 sm:$0xff] }
0x1f01   :  { %v13161_v57 = vpop.f32.mrf.mxu1 }
0x1fae   :  { %v7843_v58 = vpop.f32.mrf.mxu0  ;;  %v7889_v59 = vpop.f32.mrf.mxu1 }
0x1faf   :  { %v7987_v60 = vmul.f32 0.35355338, %v7843_v58  ;;  %v7988_v62 = vmul.f32 0.35355338, %v7889_v59  ;;  %v11572_v58 = vld [vmem:[%s16149_s7 + $0x6] ss:$0 sm:$0xff] }
0x1fb0   :  { %v13166_v51 = vpop.f32.mrf.mxu0  ;;  %v13172_v63 = vpop.f32.mrf.mxu1 }
0x1fb1   :  { %v7992_v19 = vadd.f32 %v14012_v0, %v7988_v62  ;;  %v7991_v37 = vadd.f32 %v14012_v0, %v7987_v60  ;;  %v7790_v60 = vadd.f32 %v11573_v55, %v15568_v43  ;;  %v7738_v62 = vadd.f32 %v11572_v58, %v15565_v50  ;;  %v11453_v43 = vld [vmem:[%s16151_s11 + $0x14] sm:$0xf] }
0x1fb2   :  { %v7846_v22 = vpop.f32.mrf.mxu0  ;;  %v7892_v3 = vpop.f32.mrf.mxu1 }
0x1fb3   :  { %v7998_v4 = vsel %vm1007_vm2, %v7992_v19, -inf  ;;  %v7995_v10 = vsel %vm1007_vm2, %v7991_v37, -inf }
0x1fb4   :  { %7999 = vmax.xlane.f32.xlu1 %v7998_v4  ;;  %v13173_v5 = vpop.f32.mrf.mxu1  ;;  %7996 = vmax.xlane.f32.xlu0 %v7995_v10  ;;  %v13167_v31 = vpop.f32.mrf.mxu0 }
0x1fb6   :  { %v7935_v6 = vpop.f32.mrf.mxu0  ;;  %v7981_v38 = vpop.f32.mrf.mxu1 }
0x1fb7   :  { %v7989_v42 = vmul.f32 0.35355338, %v7935_v6  ;;  %v7990_v28 = vmul.f32 0.35355338, %v7981_v38  ;;  %v11452_v38 = vld [vmem:[%s16151_s11 + $0x10] sm:$0xf] }
0x1fb8   :  { %v13178_v11 = vpop.f32.mrf.mxu0  ;;  %v13184_v54 = vpop.f32.mrf.mxu1 }
0x1fb9   :  { %v7994_v61 = vadd.f32 %v14012_v0, %v7990_v28  ;;  %v7993_v14 = vadd.f32 %v14012_v0, %v7989_v42  ;;  %v8046_v0 = vpack.c.bf16 %v7790_v60, %v7790_v60  ;;  %v15596_v11 = vsel %vm1255_vm3, %v11453_v43, 0 }
0x1fba   :  { %v7938_v16 = vpop.f32.mrf.mxu0  ;;  %v7984_v25 = vpop.f32.mrf.mxu1 }
0x1fbb   :  { %v8004_v13 = vsel %vm1007_vm2, %v7994_v61, -inf  ;;  %v8001_v17 = vsel %vm1007_vm2, %v7993_v14, -inf  ;;  %v8189_v10 = vsel %vm1255_vm3, %v8046_v0, 0  ;;  %v11454_v16 = vld [vmem:[%s16151_s11 + $0x18] sm:$0xf] }
0x1fbc   :  { %8005 = vmax.xlane.f32.xlu1 %v8004_v13  ;;  %v13185_v18 = vpop.f32.mrf.mxu1  ;;  %8002 = vmax.xlane.f32.xlu0 %v8001_v17  ;;  %v13179_v24 = vpop.f32.mrf.mxu0 }
0x203d   :  { %v8000_v9 = vpop.xlane.xlu1 %7999  ;;  %v7997_v26 = vpop.xlane.xlu0 %7996 }
0x203e   :  { %v8008_v29 = vsub.f32 %v7992_v19, %v8000_v9  ;;  %v8007_v30 = vsub.f32 %v7991_v37, %v7997_v26  ;;  %v8045_v37 = vpack.c.bf16 %v7738_v62, %v7738_v62  ;;  %v15617_v26 = vsel %vm1255_vm3, %v11454_v16, 0 }
0x2040   :  { %v8013_v32 = vmul.f32 1.442695, %v8008_v29  ;;  %v8011_v33 = vmul.f32 1.442695, %v8007_v30  ;;  %v8143_v5 = vsel %vm1255_vm3, %v8045_v37, 0 }
0x2042   :  { %13865 = vpow2.f32 %v8013_v32 }
0x2043   :  { %13867 = vpow2.f32 %v8011_v33 }
0x2045   :  { %v8006_v41 = vpop.xlane.xlu1 %8005  ;;  %v8003_v34 = vpop.xlane.xlu0 %8002 }
0x2046   :  { %v8010_v35 = vsub.f32 %v7994_v61, %v8006_v41  ;;  %v8009_v20 = vsub.f32 %v7993_v14, %v8003_v34  ;;  %v15599_v61 = vsel %vm1255_vm3, %v11452_v38, 0  ;;  %v11455_v14 = vld [vmem:[%s16151_s11 + $0x1c] sm:$0xf] }
0x2047   :  { %v15614_v18 = vsel %vm1255_vm3, %v11455_v14, 0 }
0x2048   :  { %v8017_v39 = vmul.f32 1.442695, %v8010_v35  ;;  %v8015_v8 = vmul.f32 1.442695, %v8009_v20 }
0x204a   :  { %13869 = vpow2.f32 %v8017_v39 }
0x204b   :  { %13871 = vpow2.f32 %v8015_v8 }
0x204f   :  { %v13866_v40 = vpop.eup %13865 }
0x2050   :  { %v13868_v44 = vpop.eup %13867  ;;  %v8022_v45 = vsel %vm1007_vm2, %v13866_v40, 0.0 }
0x2051   :  { %8023 = vadd.xlane.f32.xlu1 %v8022_v45  ;;  %v8019_v46 = vsel %vm1007_vm2, %v13868_v44, 0.0 }
0x2052   :  { %8020 = vadd.xlane.f32.xlu0 %v8019_v46 }
0x2057   :  { %v13870_v7 = vpop.eup %13869 }
0x2058   :  { %v13872_v49 = vpop.eup %13871  ;;  %v8028_v52 = vsel %vm1007_vm2, %v13870_v7, 0.0 }
0x2059   :  { %8029 = vadd.xlane.f32.xlu1 %v8028_v52  ;;  %v8025_v27 = vsel %vm1007_vm2, %v13872_v49, 0.0 }
0x205a   :  { %8026 = vadd.xlane.f32.xlu0 %v8025_v27 }
0x20da   :  { %v8024_v2 = vpop.xlane.xlu1 %8023 }
0x20db   :  { %13873 = vrcp.f32 %v8024_v2  ;;  %v8021_v23 = vpop.xlane.xlu0 %8020 }
0x20dc   :  { %13875 = vrcp.f32 %v8021_v23 }
0x20e2   :  { %v8030_v57 = vpop.xlane.xlu1 %8029 }
0x20e3   :  { %13877 = vrcp.f32 %v8030_v57  ;;  %v8027_v59 = vpop.xlane.xlu0 %8026 }
0x20e4   :  { %13879 = vrcp.f32 %v8027_v59 }
0x20e8   :  { %v13874_v51 = vpop.eup %13873 }
0x20e9   :  { %v13876_v63 = vpop.eup %13875  ;;  %v8036_v19 = vmul.f32 %v13874_v51, %v13866_v40 }
0x20ea   :  { %v8035_v22 = vmul.f32 %v13876_v63, %v13868_v44 }
0x20eb   :  { %v8040_v3 = vpack.c.bf16 %v8036_v19, %v8036_v19 }
0x20ec   :  { %v8039_v4 = vpack.c.bf16 %v8035_v22, %v8035_v22 }
0x20ed   :  { %13195 = vmatmul.mubr.msk.bf16.vlgmr.msra.gmra.mxu1 %vm1007_vm2, %v8040_v3  ;;  %v11598_v3 = vld [vmem:[%s16152_s15 + $0x1] ss:$0 sm:$0xff] }
0x20ee   :  { %13189 = vmatmul.mubr.msk.bf16.vlgmr.msra.gmra.mxu0 %vm1007_vm2, %v8039_v4  ;;  %13205 = vmatpush3.bf16.msra.mxu1 %v8189_v10 }
0x20ef   :  { %13199 = vmatpush3.bf16.msra.mxu0 %v8143_v5  ;;  %13200 = vmatprep.mubr.msk.bf16.mxu0 %vm14158_vm0, %v14157_v1 }
0x20f0   :  { %v13878_v50 = vpop.eup %13877  ;;  %13206 = vmatprep.mubr.msk.bf16.mxu1 %vm14158_vm0, %v14157_v1  ;;  %13210 = vmatprep.subr.bf16.mxu0 %v14157_v1 }
0x20f1   :  { %v13880_v31 = vpop.eup %13879  ;;  %v8038_v6 = vmul.f32 %v13878_v50, %v13870_v7  ;;  %13216 = vmatprep.subr.bf16.mxu1 %v14157_v1 }
0x20f2   :  { %v8037_v42 = vmul.f32 %v13880_v31, %v13872_v49  ;;  %v14013_v31 = vld [vmem:[%s16158_s26] ss:$0 sm:$0xff] }
0x20f3   :  { %v8042_v28 = vpack.c.bf16 %v8038_v6, %v8038_v6  ;;  %v5532_v6 = vadd.f32 %v14013_v31, %v15339_v47  ;;  %v14028_v31 = vld [vmem:[%s14210_s8 + $0x78] sm:$0xff]  }
0x20f4   :  { %v8041_v54 = vpack.c.bf16 %v8037_v42, %v8037_v42 }
0x20f5   :  { %13207 = vmatmul.mubr.msk.bf16.vlgmr.msra.gmra.mxu1 %vm1007_vm2, %v8042_v28  ;;  %v5537_v14 = vadd.f32 %v5532_v6, %v15204_v12  ;;  %v14029_v6 = vld [vmem:[%s14210_s8 + $0x70] sm:$0xff]  }
0x20f6   :  { %13201 = vmatmul.mubr.msk.bf16.vlgmr.msra.gmra.mxu0 %vm1007_vm2, %v8041_v54  ;;  %13217 = vmatpush3.bf16.msra.mxu1 %v15596_v11 }
0x20f7   :  { %13211 = vmatpush3.bf16.msra.mxu0 %v15599_v61  ;;  %13212 = vmatprep.mubr.msk.bf16.mxu0 %vm14158_vm0, %v14157_v1  ;;  %v5538_v16 = vsel %vm335_vm1, %v5537_v14, 0.0 }
0x20f8   :  { %13218 = vmatprep.mubr.msk.bf16.mxu1 %vm14158_vm0, %v14157_v1  ;;  %13222 = vmatprep.subr.bf16.mxu0 %v14157_v1 }
0x20f9   :  { %13228 = vmatprep.subr.bf16.mxu1 %v14157_v1 }
0x21ad   :  { %v8133_v25 = vpop.f32.mrf.mxu1 }
0x21ae   :  { %v8087_v13 = vpop.f32.mrf.mxu0  ;;  %v8232_v17 = vpack.c.bf16 %v8133_v25, %v8133_v25 }
0x21af   :  { %v8231_v24 = vpack.c.bf16 %v8087_v13, %v8087_v13  ;;  %v13196_v9 = vpop.f32.mrf.mxu1 }
0x21b0   :  { %v13190_v29 = vpop.f32.mrf.mxu0  ;;  %13219 = vmatmul.mubr.msk.bf16.vlgmr.msra.gmra.mxu1 %vm1007_vm2, %v8232_v17 }
0x21b1   :  { %13213 = vmatmul.mubr.msk.bf16.vlgmr.msra.gmra.mxu0 %vm1007_vm2, %v8231_v24  ;;  %v8136_v30 = vpop.f32.mrf.mxu1  ;;  %13229 = vmatpush3.bf16.msra.mxu1 %v15614_v18 }
0x21b2   :  { %v8090_v32 = vpop.f32.mrf.mxu0  ;;  %13223 = vmatpush3.bf16.msra.mxu0 %v15617_v26  ;;  %13224 = vmatprep.mubr.msk.bf16.mxu0 %vm14158_vm0, %v14157_v1 }
0x21b3   :  { %v13197_v33 = vpop.f32.mrf.mxu1  ;;  %13230 = vmatprep.mubr.msk.bf16.mxu1 %vm14158_vm0, %v14157_v1  ;;  %13234 = vmatprep.subr.bf16.mxu0 %v14157_v1  ;;  %v13765_v32 = vld [vmem:[%s16153_s16 + $0x18] sm:$0xff]  }
0x21b4   :  { %v13191_v41 = vpop.f32.mrf.mxu0  ;;  %13242 = vmatprep.subr.bf16.mxu1 %v14157_v1  ;;  %v13766_v33 = vld [vmem:[%s16153_s16 + $0x10] sm:$0xff]  }
0x21b5   :  { %v8225_v34 = vpop.f32.mrf.mxu1  ;;  %v13767_v41 = vld [vmem:[%s16154_s18 + $0x38] sm:$0xff]  }
0x21b6   :  { %v8179_v35 = vpop.f32.mrf.mxu0  ;;  %v8234_v20 = vpack.c.bf16 %v8225_v34, %v8225_v34  ;;  %v13768_v34 = vld [vmem:[%s16154_s18 + $0x30] sm:$0xff]  }
0x21b7   :  { %v8233_v39 = vpack.c.bf16 %v8179_v35, %v8179_v35  ;;  %v13208_v8 = vpop.f32.mrf.mxu1 }
0x21b8   :  { %v13202_v40 = vpop.f32.mrf.mxu0  ;;  %13231 = vmatmul.mubr.msk.bf16.vlgmr.msra.gmra.mxu1 %vm1007_vm2, %v8234_v20 }
0x21b9   :  { %13225 = vmatmul.mubr.msk.bf16.vlgmr.msra.gmra.mxu0 %vm1007_vm2, %v8233_v39  ;;  %v8228_v44 = vpop.f32.mrf.mxu1  ;;  %13250 = vmatprep.mubr.msk.bf16.mxu1 %vm14158_vm0, %v14157_v1 }
0x21ba   :  { %v8182_v45 = vpop.f32.mrf.mxu0  ;;  %13238 = vmatprep.mubr.msk.bf16.mxu0 %vm14158_vm0, %v14157_v1  ;;  %13235 = vmatpush3.bf16.msra.mxu0 %v13765_v32 }
0x21bb   :  { %v13209_v46 = vpop.f32.mrf.mxu1  ;;  %13236 = vmatprep.subr.bf16.mxu0 %v14157_v1  ;;  %13243 = vmatpush3.bf16.msra.mxu1 %v13767_v41 }
0x21bc   :  { %v13203_v7 = vpop.f32.mrf.mxu0  ;;  %13244 = vmatprep.subr.bf16.mxu1 %v14157_v1  ;;  %v11599_v46 = vld [vmem:[%s16155_s22 + $0x1] ss:$0 sm:$0xff] }
0x21be   :  { %13237 = vmatpush3.bf16.msra.mxu0 %v13766_v33  ;;  %v14032_v33 = vld [vmem:[%s14200_s29 + $0x48] sm:$0xff]  }
0x21bf   :  { %13254 = vmatprep.subr.bf16.mxu0 %v14157_v1  ;;  %13245 = vmatpush3.bf16.msra.mxu1 %v13768_v34 }
0x21c0   :  { %13246 = vmatprep.subr.bf16.mxu1 %v14157_v1 }
0x2270   :  { %v8321_v49 = vpop.f32.mrf.mxu1 }
0x2271   :  { %v8275_v52 = vpop.f32.mrf.mxu0  ;;  %v8420_v58 = vsel %vm335_vm1, %v8321_v49, 0.0  ;;  %v11600_v49 = vld [vmem:[%s16156_s23 + $0x1] ss:$0 sm:$0xff] }
0x2272   :  { %v13220_v27 = vpop.f32.mrf.mxu1  ;;  %v8419_v57 = vsel %vm335_vm1, %v8275_v52, 0.0 }
0x2273   :  { %v13214_v2 = vpop.f32.mrf.mxu0  ;;  %v8421_v51 = vadd.f32 %v8420_v58, %v8419_v57 }
0x2274   :  { %v8324_v23 = vpop.f32.mrf.mxu1 }
0x2275   :  { %v8278_v55 = vpop.f32.mrf.mxu0 }
0x2276   :  { %v13221_v59 = vpop.f32.mrf.mxu1  ;;  %v14014_v55 = vld [vmem:[%s16159_s0] ss:$0 sm:$0xff] }
0x2277   :  { %v13215_v60 = vpop.f32.mrf.mxu0  ;;  %v14015_v59 = vld [vmem:[%s14190_s21 + $0x48] sm:$0xff]  }
0x2278   :  { %v8413_v62 = vpop.f32.mrf.mxu1  ;;  %v14016_v60 = vld [vmem:[%s14315_s4] ss:$0 sm:$0xff] }
0x2279   :  { %v8367_v63 = vpop.f32.mrf.mxu0  ;;  %v8424_v4 = vsel %vm335_vm1, %v8413_v62, 0.0 }
0x227a   :  { %v8422_v0 = vsel %vm335_vm1, %v8367_v63, 0.0  ;;  %v13232_v19 = vpop.f32.mrf.mxu1 }
0x227b   :  { %v8423_v37 = vadd.f32 %v8422_v0, %v8421_v51  ;;  %v13226_v22 = vpop.f32.mrf.mxu0  ;;  %v14017_v51 = vld [vmem:[%s14190_s21 + $0x40] sm:$0xff]   ;;  %v14018_v0 = vld [vmem:[%s14190_s21 + $0x58] sm:$0xff]   ;;  %v14019_v19 = vld [vmem:[%s14190_s21 + $0x50] sm:$0xff]  }
0x227c   :  { %v8416_v10 = vpop.f32.mrf.mxu1  ;;  %v14021_v22 = vld [vmem:[%s14190_s21 + $0x70] sm:$0xff]  }
0x227d   :  { %v8425_v5 = vadd.f32 %v8424_v4, %v8423_v37  ;;  %v8370_v50 = vpop.f32.mrf.mxu0  ;;  %v14020_v37 = vld [vmem:[%s14190_s21 + $0x78] sm:$0xff]   ;;  %v14023_v4 = vld [vmem:[%s14200_s29 + $0x50] sm:$0xff]  }
0x227e   :  { %v13233_v43 = vpop.f32.mrf.mxu1  ;;  %v14024_v10 = vld [vmem:[%s14200_s29 + $0x78] sm:$0xff]  }
0x227f   :  { %v8432_v38 = vadd.f32 %v11598_v3, %v8425_v5  ;;  %v13227_v42 = vpop.f32.mrf.mxu0  ;;  %v14022_v3 = vld [vmem:[%s14200_s29 + $0x58] sm:$0xff]   ;;  %v14025_v5 = vld [vmem:[%s14200_s29 + $0x70] sm:$0xff]  }
0x2280   :  { %v14026_v50 = vld [vmem:[%s14210_s8 + $0x58] sm:$0xff]   ;;  %v14027_v43 = vld [vmem:[%s14210_s8 + $0x50] sm:$0xff]   ;;  %v13770_v42 = vld [vmem:[%s16154_s18 + $0x20] sm:$0xff]  }
0x2281   :  { %v8433_v28 = vadd.f32 %v8432_v38, %v15444_v53  ;;  %v13769_v38 = vld [vmem:[%s16154_s18 + $0x28] sm:$0xff]  }
0x2282   :  { %13247 = vmatpush3.bf16.msra.mxu1 %v13769_v38  ;;  %v14043_v38 = vld [vmem:[%s14195_s25 + $0x7] ss:$0 sm:$0xff] }
0x2283   :  { %v8434_v54 = vsel %vm335_vm1, %v8433_v28, 0.0  ;;  %13248 = vmatprep.subr.bf16.mxu1 %v14157_v1 }
0x2284   :  { %8435 = vadd.xlane.f32.xlu0 %v8434_v54 }
0x2286   :  { %13249 = vmatpush3.bf16.msra.mxu1 %v13770_v42 }
0x2287   :  { %13270 = vmatprep.subr.bf16.mxu1 %v14157_v1 }
0x2288   :  { %5539 = vadd.xlane.f32.xlu0 %v5538_v16 }
0x230d   :  { %v8436_v25 = vpop.xlane.xlu0 %8435 }
0x230e   :  { %v8437_v13 = vmul.f32 0.03125, %v8436_v25 }
0x2310   :  { %v8438_v17 = vsub.f32 %v8433_v28, %v8437_v13  ;;  %v11601_v28 = vld [vmem:[%s16157_s5 + $0x1] ss:$0 sm:$0xff] }
0x2311   :  { %v5540_v24 = vpop.xlane.xlu0 %5539 }
0x2312   :  { %v5541_v47 = vmul.f32 0.03125, %v5540_v24  ;;  %v8439_v9 = vmul.f32 %v8438_v17, %v8438_v17 }
0x2314   :  { %v5542_v29 = vsub.f32 %v5537_v14, %v5541_v47  ;;  %v8440_v53 = vsel %vm335_vm1, %v8439_v9, 0.0  ;;  %v14030_v9 = vld [vmem:[%s14190_s21 + $0x68] sm:$0xff]  }
0x2315   :  { %8441 = vadd.xlane.f32.xlu1 %v8440_v53 }
0x2316   :  { %v5543_v30 = vmul.f32 %v5542_v29, %v5542_v29 }
0x2318   :  { %v5544_v12 = vsel %vm335_vm1, %v5543_v30, 0.0  ;;  %v14031_v30 = vld [vmem:[%s14190_s21 + $0x60] sm:$0xff]  }
0x2319   :  { %5545 = vadd.xlane.f32.xlu1 %v5544_v12 }
0x239e   :  { %v8442_v35 = vpop.xlane.xlu1 %8441 }
0x239f   :  { %v8443_v20 = vmul.f32 0.03125, %v8442_v35  ;;  %v14033_v35 = vld [vmem:[%s14200_s29 + $0x40] sm:$0xff]  }
0x23a1   :  { %v8444_v39 = vadd.f32 1e-06, %v8443_v20 }
0x23a2   :  { %v5546_v8 = vpop.xlane.xlu1 %5545 }
0x23a3   :  { %13881 = vrsqrt.f32 %v8444_v39  ;;  %v5547_v40 = vmul.f32 0.03125, %v5546_v8  ;;  %v14034_v8 = vld [vmem:[%s14200_s29 + $0x68] sm:$0xff]  }
0x23a5   :  { %v5548_v44 = vadd.f32 1e-06, %v5547_v40 }
0x23a7   :  { %13883 = vrsqrt.f32 %v5548_v44 }
0x23b0   :  { %v13882_v45 = vpop.eup %13881 }
0x23b1   :  { %v8446_v7 = vmul.f32 %v13882_v45, %v8438_v17  ;;  %v14035_v45 = vld [vmem:[%s14200_s29 + $0x60] sm:$0xff]  }
0x23b3   :  { %v8453_v52 = vmul.f32 %v11599_v46, %v8446_v7 }
0x23b4   :  { %v13884_v27 = vpop.eup %13883 }
0x23b5   :  { %v5550_v2 = vmul.f32 %v13884_v27, %v5542_v29  ;;  %v15658_v23 = vadd.f32 %v11600_v49, %v8453_v52  ;;  %v14036_v49 = vld [vmem:[%s14210_s8 + $0x48] sm:$0xff]   ;;  %v14037_v52 = vld [vmem:[%s14205_s3 + $0x5] ss:$0 sm:$0xff] }
0x23b7   :  { %v5551_v57 = vmul.f32 %v14014_v55, %v5550_v2  ;;  %v8461_v58 = vpack.c.bf16 %v15658_v23, %v15658_v23 }
0x23b9   :  { %13239 = vmatmul.mubr.msk.bf16.vlgmr.msra.gmra.mxu0 %vm335_vm1, %v8461_v58  ;;  %v15668_v62 = vadd.f32 %v14016_v60, %v5551_v57  ;;  %v14038_v58 = vld [vmem:[%s14210_s8 + $0x40] sm:$0xff]  }
0x23ba   :  { %13255 = vmatpush3.bf16.msra.mxu0 %v14015_v59  ;;  %13258 = vmatprep.mubr.msk.bf16.mxu0 %vm14158_vm0, %v14157_v1 }
0x23bb   :  { %13256 = vmatprep.subr.bf16.mxu0 %v14157_v1  ;;  %v15674_v63 = vpack.c.bf16 %v15668_v62, %v15668_v62 }
0x23be   :  { %13257 = vmatpush3.bf16.msra.mxu0 %v14017_v51  ;;  %v14039_v51 = vld [vmem:[%s14195_s25 + $0x5] ss:$0 sm:$0xff] }
0x23bf   :  { %13262 = vmatprep.subr.bf16.mxu0 %v14157_v1 }
0x23c1   :  { %13259 = vmatmul.mubr.msk.bf16.vlgmr.msra.gmra.mxu0 %vm335_vm1, %v15674_v63 }
0x23c2   :  { %13263 = vmatpush3.bf16.msra.mxu0 %v14018_v0  ;;  %13266 = vmatprep.mubr.msk.bf16.mxu0 %vm14158_vm0, %v14157_v1 }
0x23c3   :  { %13264 = vmatprep.subr.bf16.mxu0 %v14157_v1 }
0x23c6   :  { %13265 = vmatpush3.bf16.msra.mxu0 %v14019_v19 }
0x23c7   :  { %13278 = vmatprep.subr.bf16.mxu0 %v14157_v1 }
0x23c9   :  { %13267 = vmatmul.mubr.msk.bf16.vlgmr.msra.gmra.mxu0 %vm335_vm1, %v15674_v63 }
0x23ca   :  { %13279 = vmatpush3.bf16.msra.mxu0 %v14020_v37  ;;  %13282 = vmatprep.mubr.msk.bf16.mxu0 %vm14158_vm0, %v14157_v1  ;;  %v14040_v37 = vld [vmem:[%s14210_s8 + $0x68] sm:$0xff]  }
0x23cb   :  { %13280 = vmatprep.subr.bf16.mxu0 %v14157_v1 }
0x23ce   :  { %13281 = vmatpush3.bf16.msra.mxu0 %v14021_v22  ;;  %v14041_v22 = vld [vmem:[%s14205_s3 + $0x7] ss:$0 sm:$0xff] }
0x23cf   :  { %13294 = vmatprep.subr.bf16.mxu0 %v14157_v1 }
0x23d1   :  { %13283 = vmatmul.mubr.msk.bf16.vlgmr.msra.gmra.mxu0 %vm335_vm1, %v15674_v63 }
0x23d2   :  { %13295 = vmatpush3.bf16.msra.mxu0 %v14022_v3  ;;  %13298 = vmatprep.mubr.msk.bf16.mxu0 %vm14158_vm0, %v14157_v1 }
0x23d3   :  { %13296 = vmatprep.subr.bf16.mxu0 %v14157_v1 }
0x23d6   :  { %13297 = vmatpush3.bf16.msra.mxu0 %v14023_v4 }
0x23d7   :  { %13310 = vmatprep.subr.bf16.mxu0 %v14157_v1 }
0x23d9   :  { %13299 = vmatmul.mubr.msk.bf16.vlgmr.msra.gmra.mxu0 %vm335_vm1, %v15674_v63 }
0x23da   :  { %13311 = vmatpush3.bf16.msra.mxu0 %v14024_v10  ;;  %13314 = vmatprep.mubr.msk.bf16.mxu0 %vm14158_vm0, %v14157_v1 }
0x23db   :  { %13312 = vmatprep.subr.bf16.mxu0 %v14157_v1 }
0x23de   :  { %13313 = vmatpush3.bf16.msra.mxu0 %v14025_v5 }
0x23df   :  { %13326 = vmatprep.subr.bf16.mxu0 %v14157_v1 }
0x23e1   :  { %13315 = vmatmul.mubr.msk.bf16.vlgmr.msra.gmra.mxu0 %vm335_vm1, %v15674_v63 }
0x23e2   :  { %13327 = vmatpush3.bf16.msra.mxu0 %v14026_v50  ;;  %13330 = vmatprep.mubr.msk.bf16.mxu0 %vm14158_vm0, %v14157_v1 }
0x23e3   :  { %13328 = vmatprep.subr.bf16.mxu0 %v14157_v1 }
0x23e6   :  { %13329 = vmatpush3.bf16.msra.mxu0 %v14027_v43  ;;  %v14042_v43 = vld [vmem:[%s14210_s8 + $0x60] sm:$0xff]  }
0x23e7   :  { %13342 = vmatprep.subr.bf16.mxu0 %v14157_v1 }
0x23e9   :  { %13331 = vmatmul.mubr.msk.bf16.vlgmr.msra.gmra.mxu0 %vm335_vm1, %v15674_v63 }
0x23ea   :  { %13343 = vmatpush3.bf16.msra.mxu0 %v14028_v31  ;;  %13346 = vmatprep.mubr.msk.bf16.mxu0 %vm14158_vm0, %v14157_v1 }
0x23eb   :  { %13344 = vmatprep.subr.bf16.mxu0 %v14157_v1 }
0x23ee   :  { %13345 = vmatpush3.bf16.msra.mxu0 %v14029_v6 }
0x23ef   :  { %13356 = vmatprep.subr.bf16.mxu0 %v14157_v1 }
0x23f1   :  { %13347 = vmatmul.mubr.msk.bf16.vlgmr.msra.gmra.mxu0 %vm335_vm1, %v15674_v63 }
0x23f2   :  { %13358 = vmatprep.mubr.msk.bf16.mxu0 %vm14158_vm0, %v14157_v1 }
0x2479   :  { %v8517_v54 = vpop.f32.mrf.mxu0 }
0x247a   :  { %v8518_v14 = vadd.f32 %v11601_v28, %v8517_v54  ;;  %v14044_v54 = vld [vmem:[%s14215_s14 + $0x5] ss:$0 sm:$0xff] }
0x247b   :  { %v13240_v16 = vpop.f32.mrf.mxu0 }
0x247c   :  { %v8523_v25 = vmax.f32 %v8518_v14, 0.0 }
0x247d   :  { %v8520_v13 = vpop.f32.mrf.mxu0 }
0x247e   :  { %v8524_v17 = vpack.c.bf16 %v8523_v25, %v8523_v25 }
0x247f   :  { %v13241_v24 = vpop.f32.mrf.mxu0 }
0x2480   :  { %13251 = vmatmul.mubr.msk.bf16.vlgmr.msra.gmra.mxu1 %vm3132_vm4, %v8524_v17 }
0x2481   :  { %v15735_v47 = vpop.f32.mrf.mxu0  ;;  %13271 = vmatpush3.bf16.msra.mxu1 %v14030_v9  ;;  %13274 = vmatprep.mubr.msk.bf16.mxu1 %vm14158_vm0, %v14157_v1 }
0x2482   :  { %13272 = vmatprep.subr.bf16.mxu1 %v14157_v1 }
0x2483   :  { %v13260_v29 = vpop.f32.mrf.mxu0 }
0x2485   :  { %v8667_v53 = vpop.f32.mrf.mxu0  ;;  %13273 = vmatpush3.bf16.msra.mxu1 %v14031_v30 }
0x2486   :  { %13286 = vmatprep.subr.bf16.mxu1 %v14157_v1 }
0x2487   :  { %v13261_v12 = vpop.f32.mrf.mxu0 }
0x2488   :  { %13275 = vmatmul.mubr.msk.bf16.vlgmr.msra.gmra.mxu1 %vm335_vm1, %v15674_v63 }
0x2489   :  { %v8704_v32 = vpop.f32.mrf.mxu0  ;;  %13287 = vmatpush3.bf16.msra.mxu1 %v14032_v33  ;;  %13290 = vmatprep.mubr.msk.bf16.mxu1 %vm14158_vm0, %v14157_v1 }
0x248a   :  { %13288 = vmatprep.subr.bf16.mxu1 %v14157_v1  ;;  %v8705_v0 = vadd.f32 %v14039_v51, %v8704_v32 }
0x248b   :  { %v13268_v41 = vpop.f32.mrf.mxu0 }
0x248c   :  { %v9111_v10 = vpack.c.bf16 %v8705_v0, %v8705_v0 }
0x248d   :  { %v8707_v34 = vpop.f32.mrf.mxu0  ;;  %13289 = vmatpush3.bf16.msra.mxu1 %v14033_v35 }
0x248e   :  { %13302 = vmatprep.subr.bf16.mxu1 %v14157_v1 }
0x248f   :  { %v13269_v20 = vpop.f32.mrf.mxu0 }
0x2490   :  { %13291 = vmatmul.mubr.msk.bf16.vlgmr.msra.gmra.mxu1 %vm335_vm1, %v15674_v63 }
0x2491   :  { %v8784_v39 = vpop.f32.mrf.mxu0  ;;  %13303 = vmatpush3.bf16.msra.mxu1 %v14034_v8  ;;  %13306 = vmatprep.mubr.msk.bf16.mxu1 %vm14158_vm0, %v14157_v1 }
0x2492   :  { %13304 = vmatprep.subr.bf16.mxu1 %v14157_v1  ;;  %v8785_v42 = vadd.f32 %v14043_v38, %v8784_v39 }
0x2493   :  { %v13284_v40 = vpop.f32.mrf.mxu0 }
0x2494   :  { %v9113_v25 = vpack.c.bf16 %v8785_v42, %v8785_v42  ;;  %v14045_v40 = vld [vmem:[%s14205_s3 + $0x4] ss:$0 sm:$0xff] }
0x2495   :  { %v8787_v44 = vpop.f32.mrf.mxu0  ;;  %13305 = vmatpush3.bf16.msra.mxu1 %v14035_v45 }
0x2496   :  { %13318 = vmatprep.subr.bf16.mxu1 %v14157_v1 }
0x2497   :  { %v13285_v46 = vpop.f32.mrf.mxu0 }
0x2498   :  { %13307 = vmatmul.mubr.msk.bf16.vlgmr.msra.gmra.mxu1 %vm335_vm1, %v15674_v63 }
0x2499   :  { %v8864_v7 = vpop.f32.mrf.mxu0  ;;  %13319 = vmatpush3.bf16.msra.mxu1 %v14036_v49  ;;  %13322 = vmatprep.mubr.msk.bf16.mxu1 %vm14158_vm0, %v14157_v1 }
0x249a   :  { %v8865_v27 = vadd.f32 %v14037_v52, %v8864_v7  ;;  %13320 = vmatprep.subr.bf16.mxu1 %v14157_v1 }
0x249b   :  { %v13300_v2 = vpop.f32.mrf.mxu0 }
0x249c   :  { %v9115_v55 = vpack.c.bf16 %v8865_v27, %v8865_v27  ;;  %v14046_v27 = vld [vmem:[%s14195_s25 + $0x4] ss:$0 sm:$0xff] }
0x249d   :  { %v8867_v57 = vpop.f32.mrf.mxu0  ;;  %13321 = vmatpush3.bf16.msra.mxu1 %v14038_v58  ;;  %v8665_v2 = vadd.f32 %v14046_v27, %v15735_v47  ;;  %v14048_v47 = vld [vmem:[%s14195_s25 + $0x6] ss:$0 sm:$0xff] }
0x249e   :  { %v9168_v59 = vsel %vm1007_vm2, %v9115_v55, 0  ;;  %13334 = vmatprep.subr.bf16.mxu1 %v14157_v1  ;;  %v14047_v57 = vld [vmem:[%s14205_s3 + $0x6] ss:$0 sm:$0xff] }
0x249f   :  { %v13301_v60 = vpop.f32.mrf.mxu0  ;;  %13357 = vmatpush3.bf16.xpose.msra.mxu0 %v9168_v59 }
0x24a0   :  { %13323 = vmatmul.mubr.msk.bf16.vlgmr.msra.gmra.mxu1 %vm335_vm1, %v15674_v63  ;;  %13368 = vmatprep.subr.bf16.mxu0 %v14157_v1  ;;  %v9110_v60 = vpack.c.bf16 %v8665_v2, %v8665_v2 }
0x24a1   :  { %v8944_v19 = vpop.f32.mrf.mxu0  ;;  %13335 = vmatpush3.bf16.msra.mxu1 %v14040_v37  ;;  %13338 = vmatprep.mubr.msk.bf16.mxu1 %vm14158_vm0, %v14157_v1 }
0x24a2   :  { %v8945_v3 = vadd.f32 %v14041_v22, %v8944_v19  ;;  %13336 = vmatprep.subr.bf16.mxu1 %v14157_v1 }
0x24a3   :  { %v13316_v4 = vpop.f32.mrf.mxu0 }
0x24a4   :  { %v9117_v5 = vpack.c.bf16 %v8945_v3, %v8945_v3  ;;  %v14049_v4 = vld [vmem:[%s14215_s14 + $0x4] ss:$0 sm:$0xff] }
0x24a5   :  { %v8947_v50 = vpop.f32.mrf.mxu0  ;;  %13337 = vmatpush3.bf16.msra.mxu1 %v14042_v43 }
0x24a6   :  { %v9260_v31 = vsel %vm1007_vm2, %v9117_v5, 0  ;;  %13359 = vmatmul.mubr.msk.bf16.vlgmr.msra.gmra.mxu0 %vm1007_vm2, %v9111_v10  ;;  %13350 = vmatprep.subr.bf16.mxu1 %v14157_v1 }
0x24a7   :  { %v13317_v6 = vpop.f32.mrf.mxu0  ;;  %13369 = vmatpush3.bf16.xpose.msra.mxu0 %v9260_v31  ;;  %13370 = vmatprep.mubr.msk.bf16.mxu0 %vm14158_vm0, %v14157_v1 }
0x24a8   :  { %13339 = vmatmul.mubr.msk.bf16.vlgmr.msra.gmra.mxu1 %vm335_vm1, %v15674_v63  ;;  %13380 = vmatprep.subr.bf16.mxu0 %v14157_v1 }
0x24a9   :  { %v9024_v28 = vpop.f32.mrf.mxu0  ;;  %13352 = vmatprep.mubr.msk.bf16.mxu1 %vm14158_vm0, %v14157_v1 }
0x24aa   :  { %v9025_v14 = vadd.f32 %v14044_v54, %v9024_v28 }
0x24ab   :  { %v13332_v16 = vpop.f32.mrf.mxu0 }
0x24ac   :  { %v9359_v13 = vpack.c.bf16 %v9025_v14, %v9025_v14  ;;  %v14050_v16 = vld [vmem:[%s14180_s13 + $0x8] sm:$0xff]  ;;  %s14159_s13 = smov [#allocation2]  }
0x24ad   :  { %v9027_v17 = vpop.f32.mrf.mxu0 }
0x24ae   :  { %v9412_v24 = vsel %vm1255_vm3, %v9359_v13, 0  ;;  %13371 = vmatmul.mubr.msk.bf16.vlgmr.msra.gmra.mxu0 %vm1007_vm2, %v9113_v25 }
0x24af   :  { %v13333_v9 = vpop.f32.mrf.mxu0  ;;  %13381 = vmatpush3.bf16.msra.mxu0 %v9412_v24  ;;  %13382 = vmatprep.mubr.msk.bf16.mxu0 %vm14158_vm0, %v14157_v1 }
0x24b0   :  { %13392 = vmatprep.subr.bf16.mxu0 %v14157_v1 }
0x24b1   :  { %v15796_v63 = vpop.f32.mrf.mxu0 }
0x24b3   :  { %v13348_v29 = vpop.f32.mrf.mxu0 }
0x24b5   :  { %v9107_v53 = vpop.f32.mrf.mxu0 }
0x24b7   :  { %v13349_v30 = vpop.f32.mrf.mxu0 }
0x2540   :  { %v15798_v12 = vpop.f32.mrf.mxu1 }
0x2542   :  { %v13252_v32 = vpop.f32.mrf.mxu1 }
0x2544   :  { %v8595_v33 = vpop.f32.mrf.mxu1 }
0x2546   :  { %v13253_v41 = vpop.f32.mrf.mxu1 }
0x2548   :  { %v8744_v34 = vpop.f32.mrf.mxu1 }
0x2549   :  { %v8745_v22 = vadd.f32 %v14048_v47, %v8744_v34 }
0x254a   :  { %v13276_v35 = vpop.f32.mrf.mxu1 }
0x254b   :  { %v9112_v50 = vpack.c.bf16 %v8745_v22, %v8745_v22 }
0x254c   :  { %v8747_v20 = vpop.f32.mrf.mxu1 }
0x254e   :  { %v13277_v39 = vpop.f32.mrf.mxu1 }
0x2550   :  { %v8824_v8 = vpop.f32.mrf.mxu1 }
0x2551   :  { %v8825_v44 = vadd.f32 %v14045_v40, %v8824_v8 }
0x2552   :  { %v13292_v45 = vpop.f32.mrf.mxu1 }
0x2553   :  { %v9114_v46 = vpack.c.bf16 %v8825_v44, %v8825_v44 }
0x2554   :  { %v8827_v7 = vpop.f32.mrf.mxu1 }
0x2555   :  { %v9122_v49 = vsel %vm1007_vm2, %v9114_v46, 0 }
0x2556   :  { %v13293_v52 = vpop.f32.mrf.mxu1  ;;  %13351 = vmatpush3.bf16.xpose.msra.mxu1 %v9122_v49 }
0x2557   :  { %13362 = vmatprep.subr.bf16.mxu1 %v14157_v1 }
0x2558   :  { %v8904_v55 = vpop.f32.mrf.mxu1 }
0x2559   :  { %v8905_v58 = vadd.f32 %v14047_v57, %v8904_v55 }
0x255a   :  { %v13308_v59 = vpop.f32.mrf.mxu1 }
0x255b   :  { %v9116_v51 = vpack.c.bf16 %v8905_v58, %v8905_v58 }
0x255c   :  { %v8907_v0 = vpop.f32.mrf.mxu1 }
0x255d   :  { %v9214_v19 = vsel %vm1007_vm2, %v9116_v51, 0  ;;  %13353 = vmatmul.mubr.msk.bf16.vlgmr.msra.gmra.mxu1 %vm1007_vm2, %v9110_v60 }
0x255e   :  { %v13309_v37 = vpop.f32.mrf.mxu1  ;;  %13363 = vmatpush3.bf16.xpose.msra.mxu1 %v9214_v19  ;;  %13364 = vmatprep.mubr.msk.bf16.mxu1 %vm14158_vm0, %v14157_v1 }
0x255f   :  { %13374 = vmatprep.subr.bf16.mxu1 %v14157_v1 }
0x2560   :  { %v8984_v3 = vpop.f32.mrf.mxu1 }
0x2561   :  { %v8985_v10 = vadd.f32 %v14049_v4, %v8984_v3 }
0x2562   :  { %v13324_v5 = vpop.f32.mrf.mxu1 }
0x2563   :  { %v9358_v43 = vpack.c.bf16 %v8985_v10, %v8985_v10 }
0x2564   :  { %v8987_v31 = vpop.f32.mrf.mxu1 }
0x2565   :  { %v9366_v6 = vsel %vm1255_vm3, %v9358_v43, 0  ;;  %13365 = vmatmul.mubr.msk.bf16.vlgmr.msra.gmra.mxu1 %vm1007_vm2, %v9112_v50  ;;  %v14051_v50 = vld [vmem:[%s14215_s14 + $0x7] ss:$0 sm:$0xff] }
0x2566   :  { %v13325_v38 = vpop.f32.mrf.mxu1  ;;  %v9204_v42 = vpop.f32.mrf.mxu0  ;;  %13375 = vmatpush3.bf16.msra.mxu1 %v9366_v6  ;;  %13376 = vmatprep.mubr.msk.bf16.mxu1 %vm14158_vm0, %v14157_v1  ;;  %v9105_v43 = vadd.f32 %v14051_v50, %v15796_v63  ;;  %v14055_v50 = vld [vmem:[%s14240_s12 + $0x48] sm:$0xff]  }
0x2567   :  { %v9303_v28 = vmul.f32 0.35355338, %v9204_v42  ;;  %13386 = vmatprep.subr.bf16.mxu1 %v14157_v1 }
0x2568   :  { %v15818_v54 = vpop.f32.mrf.mxu1  ;;  %v13360_v14 = vpop.f32.mrf.mxu0  ;;  %v9361_v6 = vpack.c.bf16 %v9105_v43, %v9105_v43 }
0x2569   :  { %v9307_v25 = vadd.f32 %v14050_v16, %v9303_v28 }
0x256a   :  { %v13340_v13 = vpop.f32.mrf.mxu1  ;;  %v9207_v17 = vpop.f32.mrf.mxu0  ;;  %v9504_v28 = vsel %vm1255_vm3, %v9361_v6, 0  ;;  %v14056_v6 = vld [vmem:[%s14240_s12 + $0x40] sm:$0xff]  }
0x256b   :  { %v9313_v24 = vsel %vm1007_vm2, %v9307_v25, -inf }
0x256c   :  { %v9067_v9 = vpop.f32.mrf.mxu1  ;;  %9314 = vmax.xlane.f32.xlu1 %v9313_v24  ;;  %v13361_v29 = vpop.f32.mrf.mxu0 }
0x256e   :  { %v13341_v53 = vpop.f32.mrf.mxu1  ;;  %v9296_v30 = vpop.f32.mrf.mxu0 }
0x256f   :  { %v9305_v32 = vmul.f32 0.35355338, %v9296_v30 }
0x2570   :  { %v13372_v33 = vpop.f32.mrf.mxu0 }
0x2571   :  { %v9309_v41 = vadd.f32 %v14050_v16, %v9305_v32 }
0x2572   :  { %v9299_v34 = vpop.f32.mrf.mxu0 }
0x2573   :  { %v9319_v35 = vsel %vm1007_vm2, %v9309_v41, -inf  ;;  %v14052_v34 = vld [vmem:[%s14215_s14 + $0x6] ss:$0 sm:$0xff] }
0x2574   :  { %9320 = vmax.xlane.f32.xlu1 %v9319_v35  ;;  %v13373_v20 = vpop.f32.mrf.mxu0  ;;  %v9065_v35 = vadd.f32 %v14052_v34, %v15818_v54 }
0x25f5   :  { %v9315_v39 = vpop.xlane.xlu1 %9314 }
0x25f6   :  { %v9323_v8 = vsub.f32 %v9307_v25, %v9315_v39  ;;  %v9360_v39 = vpack.c.bf16 %v9065_v35, %v9065_v35 }
0x25f8   :  { %v9328_v40 = vmul.f32 1.442695, %v9323_v8 }
0x25fa   :  { %13885 = vpow2.f32 %v9328_v40 }
0x25fd   :  { %v9321_v44 = vpop.xlane.xlu1 %9320 }
0x25fe   :  { %v9325_v45 = vsub.f32 %v9309_v41, %v9321_v44  ;;  %v9458_v44 = vsel %vm1255_vm3, %v9360_v39, 0 }
0x2600   :  { %v9332_v46 = vmul.f32 1.442695, %v9325_v45 }
0x2602   :  { %13887 = vpow2.f32 %v9332_v46 }
0x2607   :  { %v13886_v7 = vpop.eup %13885 }
0x2608   :  { %v9337_v49 = vsel %vm1007_vm2, %v13886_v7, 0.0 }
0x2609   :  { %9338 = vadd.xlane.f32.xlu1 %v9337_v49 }
0x260f   :  { %v13888_v52 = vpop.eup %13887 }
0x2610   :  { %v9343_v27 = vsel %vm1007_vm2, %v13888_v52, 0.0 }
0x2611   :  { %9344 = vadd.xlane.f32.xlu1 %v9343_v27 }
0x261d   :  { %v9158_v2 = vpop.f32.mrf.mxu1 }
0x261e   :  { %v9302_v55 = vmul.f32 0.35355338, %v9158_v2 }
0x261f   :  { %v13354_v57 = vpop.f32.mrf.mxu1 }
0x2620   :  { %v9306_v58 = vadd.f32 %v14050_v16, %v9302_v55 }
0x2621   :  { %v9161_v59 = vpop.f32.mrf.mxu1 }
0x2622   :  { %v9310_v60 = vsel %vm1007_vm2, %v9306_v58, -inf  ;;  %v14053_v59 = vld [vmem:[%s14240_s12 + $0x58] sm:$0xff]  }
0x2623   :  { %9311 = vmax.xlane.f32.xlu0 %v9310_v60  ;;  %v13355_v51 = vpop.f32.mrf.mxu1  ;;  %v14054_v60 = vld [vmem:[%s14240_s12 + $0x50] sm:$0xff]  }
0x2625   :  { %v9250_v0 = vpop.f32.mrf.mxu1 }
0x2626   :  { %v9304_v19 = vmul.f32 0.35355338, %v9250_v0 }
0x2627   :  { %v13366_v37 = vpop.f32.mrf.mxu1 }
0x2628   :  { %v9308_v47 = vadd.f32 %v14050_v16, %v9304_v19 }
0x2629   :  { %v9253_v22 = vpop.f32.mrf.mxu1 }
0x262a   :  { %v9316_v3 = vsel %vm1007_vm2, %v9308_v47, -inf }
0x262b   :  { %9317 = vmax.xlane.f32.xlu0 %v9316_v3  ;;  %v13367_v4 = vpop.f32.mrf.mxu1 }
0x2692   :  { %v9339_v10 = vpop.xlane.xlu1 %9338 }
0x2693   :  { %13889 = vrcp.f32 %v9339_v10 }
0x269a   :  { %v9345_v5 = vpop.xlane.xlu1 %9344 }
0x269b   :  { %13891 = vrcp.f32 %v9345_v5 }
0x26a0   :  { %v13890_v31 = vpop.eup %13889 }
0x26a1   :  { %v9351_v38 = vmul.f32 %v13890_v31, %v13886_v7 }
0x26a3   :  { %v9355_v42 = vpack.c.bf16 %v9351_v38, %v9351_v38 }
0x26a5   :  { %13383 = vmatmul.mubr.msk.bf16.vlgmr.msra.gmra.mxu0 %vm1007_vm2, %v9355_v42 }
0x26a6   :  { %13393 = vmatpush3.bf16.msra.mxu0 %v9504_v28  ;;  %13394 = vmatprep.mubr.msk.bf16.mxu0 %vm14158_vm0, %v14157_v1 }
0x26a7   :  { %13404 = vmatprep.subr.bf16.mxu0 %v14157_v1 }
0x26a8   :  { %v13892_v14 = vpop.eup %13891 }
0x26a9   :  { %v9353_v16 = vmul.f32 %v13892_v14, %v13888_v52 }
0x26ab   :  { %v9357_v25 = vpack.c.bf16 %v9353_v16, %v9353_v16 }
0x26ac   :  { %v9312_v13 = vpop.xlane.xlu0 %9311 }
0x26ad   :  { %v9322_v17 = vsub.f32 %v9306_v58, %v9312_v13  ;;  %13395 = vmatmul.mubr.msk.bf16.vlgmr.msra.gmra.mxu0 %vm1007_vm2, %v9357_v25 }
0x26ae   :  { %13405 = vmatpush3.bf16.msra.mxu0 %v15382_v56  ;;  %13406 = vmatprep.mubr.msk.bf16.mxu0 %vm14158_vm0, %v14157_v1 }
0x26af   :  { %v9326_v63 = vmul.f32 1.442695, %v9322_v17  ;;  %13416 = vmatprep.subr.bf16.mxu0 %v14157_v1 }
0x26b1   :  { %13893 = vpow2.f32 %v9326_v63 }
0x26b4   :  { %v9318_v24 = vpop.xlane.xlu0 %9317 }
0x26b5   :  { %v9324_v9 = vsub.f32 %v9308_v47, %v9318_v24 }
0x26b7   :  { %v9330_v29 = vmul.f32 1.442695, %v9324_v9 }
0x26b9   :  { %13895 = vpow2.f32 %v9330_v29 }
0x26be   :  { %v13894_v53 = vpop.eup %13893 }
0x26bf   :  { %v9334_v30 = vsel %vm1007_vm2, %v13894_v53, 0.0 }
0x26c0   :  { %9335 = vadd.xlane.f32.xlu0 %v9334_v30 }
0x26c6   :  { %v13896_v32 = vpop.eup %13895 }
0x26c7   :  { %v9340_v33 = vsel %vm1007_vm2, %v13896_v32, 0.0 }
0x26c8   :  { %9341 = vadd.xlane.f32.xlu0 %v9340_v33 }
0x2749   :  { %v9336_v56 = vpop.xlane.xlu0 %9335 }
0x274a   :  { %13897 = vrcp.f32 %v9336_v56 }
0x2751   :  { %v9342_v41 = vpop.xlane.xlu0 %9341 }
0x2752   :  { %13899 = vrcp.f32 %v9342_v41 }
0x2757   :  { %v13898_v20 = vpop.eup %13897 }
0x2758   :  { %v9350_v8 = vmul.f32 %v13898_v20, %v13894_v53  ;;  %v14057_v20 = vld [vmem:[%s14225_s24 + $0x1] ss:$0 sm:$0xff] }
0x275a   :  { %v9354_v40 = vpack.c.bf16 %v9350_v8, %v9350_v8 }
0x275c   :  { %13377 = vmatmul.mubr.msk.bf16.vlgmr.msra.gmra.mxu1 %vm1007_vm2, %v9354_v40 }
0x275d   :  { %13387 = vmatpush3.bf16.msra.mxu1 %v9458_v44  ;;  %13388 = vmatprep.mubr.msk.bf16.mxu1 %vm14158_vm0, %v14157_v1 }
0x275e   :  { %13398 = vmatprep.subr.bf16.mxu1 %v14157_v1 }
0x275f   :  { %v13900_v45 = vpop.eup %13899 }
0x2760   :  { %v9352_v46 = vmul.f32 %v13900_v45, %v13896_v32 }
0x2762   :  { %v9356_v7 = vpack.c.bf16 %v9352_v46, %v9352_v46 }
0x2764   :  { %13389 = vmatmul.mubr.msk.bf16.vlgmr.msra.gmra.mxu1 %vm1007_vm2, %v9356_v7 }
0x2765   :  { %v9448_v54 = vpop.f32.mrf.mxu0  ;;  %13399 = vmatpush3.bf16.msra.mxu1 %v15395_v21  ;;  %13400 = vmatprep.mubr.msk.bf16.mxu1 %vm14158_vm0, %v14157_v1 }
0x2766   :  { %v9547_v49 = vpack.c.bf16 %v9448_v54, %v9448_v54  ;;  %13410 = vmatprep.subr.bf16.mxu1 %v14157_v1 }
0x2767   :  { %v13384_v52 = vpop.f32.mrf.mxu0 }
0x2768   :  { %13407 = vmatmul.mubr.msk.bf16.vlgmr.msra.gmra.mxu0 %vm1007_vm2, %v9547_v49 }
0x2769   :  { %v9451_v27 = vpop.f32.mrf.mxu0  ;;  %13417 = vmatpush3.bf16.msra.mxu0 %v15403_v15  ;;  %13418 = vmatprep.mubr.msk.bf16.mxu0 %vm14158_vm0, %v14157_v1 }
0x276a   :  { %13430 = vmatprep.subr.bf16.mxu0 %v14157_v1 }
0x276b   :  { %v13385_v21 = vpop.f32.mrf.mxu0 }
0x276d   :  { %v9540_v2 = vpop.f32.mrf.mxu0 }
0x276e   :  { %v9549_v55 = vpack.c.bf16 %v9540_v2, %v9540_v2 }
0x276f   :  { %v13396_v57 = vpop.f32.mrf.mxu0 }
0x2770   :  { %13419 = vmatmul.mubr.msk.bf16.vlgmr.msra.gmra.mxu0 %vm1007_vm2, %v9549_v55  ;;  %v14059_v57 = vld [vmem:[%s14235_s6 + $0x1] ss:$0 sm:$0xff] }
0x2771   :  { %v9543_v58 = vpop.f32.mrf.mxu0  ;;  %13431 = vmatpush3.bf16.msra.mxu0 %v14053_v59  ;;  %13434 = vmatprep.mubr.msk.bf16.mxu0 %vm14158_vm0, %v14157_v1 }
0x2772   :  { %13432 = vmatprep.subr.bf16.mxu0 %v14157_v1 }
0x2773   :  { %v13397_v15 = vpop.f32.mrf.mxu0 }
0x2774   :  { %v14060_v15 = vld [vmem:[%s14240_s12 + $0x68] sm:$0xff]  }
0x2775   :  { %13433 = vmatpush3.bf16.msra.mxu0 %v14054_v60  ;;  %v14061_v60 = vld [vmem:[%s14240_s12 + $0x78] sm:$0xff]  }
0x2776   :  { %13446 = vmatprep.subr.bf16.mxu0 %v14157_v1 }
0x281c   :  { %v9402_v51 = vpop.f32.mrf.mxu1 }
0x281d   :  { %v9546_v0 = vpack.c.bf16 %v9402_v51, %v9402_v51  ;;  %v14062_v51 = vld [vmem:[%s14240_s12 + $0x60] sm:$0xff]  }
0x281e   :  { %v13378_v19 = vpop.f32.mrf.mxu1 }
0x281f   :  { %13401 = vmatmul.mubr.msk.bf16.vlgmr.msra.gmra.mxu1 %vm1007_vm2, %v9546_v0  ;;  %v14063_v0 = vld [vmem:[%s14240_s12 + $0x70] sm:$0xff]   ;;  %v14064_v19 = vld [vmem:[%s14250_s27 + $0x48] sm:$0xff]  }
0x2820   :  { %v9405_v37 = vpop.f32.mrf.mxu1  ;;  %13411 = vmatpush3.bf16.msra.mxu1 %v15416_v36  ;;  %13412 = vmatprep.mubr.msk.bf16.mxu1 %vm14158_vm0, %v14157_v1 }
0x2821   :  { %13422 = vmatprep.subr.bf16.mxu1 %v14157_v1  ;;  %v14065_v37 = vld [vmem:[%s14250_s27 + $0x58] sm:$0xff]  }
0x2822   :  { %v13379_v47 = vpop.f32.mrf.mxu1 }
0x2823   :  { %v14066_v47 = vld [vmem:[%s14250_s27 + $0x40] sm:$0xff]  }
0x2824   :  { %v9494_v22 = vpop.f32.mrf.mxu1 }
0x2825   :  { %v9548_v3 = vpack.c.bf16 %v9494_v22, %v9494_v22  ;;  %v14067_v22 = vld [vmem:[%s14250_s27 + $0x50] sm:$0xff]  }
0x2826   :  { %v13390_v4 = vpop.f32.mrf.mxu1 }
0x2827   :  { %13413 = vmatmul.mubr.msk.bf16.vlgmr.msra.gmra.mxu1 %vm1007_vm2, %v9548_v3  ;;  %v14068_v3 = vld [vmem:[%s14250_s27 + $0x68] sm:$0xff]   ;;  %v14069_v4 = vld [vmem:[%s14250_s27 + $0x78] sm:$0xff]  }
0x2828   :  { %v9497_v10 = vpop.f32.mrf.mxu1  ;;  %v9630_v5 = vpop.f32.mrf.mxu0  ;;  %13423 = vmatpush3.bf16.msra.mxu1 %v14055_v50  ;;  %13426 = vmatprep.mubr.msk.bf16.mxu1 %vm14158_vm0, %v14157_v1  ;;  %v14072_v50 = vld [vmem:[%s16146_s28 + $0x48] sm:$0xff]  }
0x2829   :  { %13424 = vmatprep.subr.bf16.mxu1 %v14157_v1  ;;  %v9723_v9 = vsel %vm335_vm1, %v9630_v5, 0.0  ;;  %v14070_v10 = vld [vmem:[%s14250_s27 + $0x60] sm:$0xff]   ;;  %v14071_v5 = vld [vmem:[%s14250_s27 + $0x70] sm:$0xff]  }
0x282a   :  { %v13391_v36 = vpop.f32.mrf.mxu1  ;;  %v13408_v43 = vpop.f32.mrf.mxu0 }
0x282b   :  { %v14073_v36 = vld [vmem:[%s16146_s28 + $0x58] sm:$0xff]   ;;  %v14074_v43 = vld [vmem:[%s16146_s28 + $0x40] sm:$0xff]  }
0x282c   :  { %v9633_v31 = vpop.f32.mrf.mxu0  ;;  %13425 = vmatpush3.bf16.msra.mxu1 %v14056_v6  ;;  %v14076_v6 = vld [vmem:[%s16146_s28 + $0x68] sm:$0xff]  }
0x282d   :  { %13438 = vmatprep.subr.bf16.mxu1 %v14157_v1  ;;  %v14075_v31 = vld [vmem:[%s16146_s28 + $0x50] sm:$0xff]  }
0x282e   :  { %v13409_v38 = vpop.f32.mrf.mxu0 }
0x282f   :  { %v14077_v38 = vld [vmem:[%s16146_s28 + $0x78] sm:$0xff]  }
0x2830   :  { %v9716_v42 = vpop.f32.mrf.mxu0 }
0x2831   :  { %v9727_v56 = vsel %vm335_vm1, %v9716_v42, 0.0  ;;  %v14078_v42 = vld [vmem:[%s16146_s28 + $0x60] sm:$0xff]  }
0x2832   :  { %v13420_v28 = vpop.f32.mrf.mxu0 }
0x2833   :  { %v14079_v28 = vld [vmem:[%s16146_s28 + $0x70] sm:$0xff]  }
0x2834   :  { %v9719_v14 = vpop.f32.mrf.mxu0 }
0x2836   :  { %v13421_v16 = vpop.f32.mrf.mxu0 }
0x28df   :  { %v9587_v25 = vpop.f32.mrf.mxu1 }
0x28e0   :  { %v9722_v63 = vsel %vm335_vm1, %v9587_v25, 0.0 }
0x28e1   :  { %v13402_v13 = vpop.f32.mrf.mxu1  ;;  %v9724_v29 = vadd.f32 %v9723_v9, %v9722_v63 }
0x28e3   :  { %v9590_v17 = vpop.f32.mrf.mxu1 }
0x28e5   :  { %v13403_v24 = vpop.f32.mrf.mxu1 }
0x28e7   :  { %v9673_v53 = vpop.f32.mrf.mxu1 }
0x28e8   :  { %v9725_v30 = vsel %vm335_vm1, %v9673_v53, 0.0 }
0x28e9   :  { %v9726_v32 = vadd.f32 %v9725_v30, %v9724_v29  ;;  %v13414_v33 = vpop.f32.mrf.mxu1 }
0x28eb   :  { %v9728_v41 = vadd.f32 %v9727_v56, %v9726_v32  ;;  %v9676_v34 = vpop.f32.mrf.mxu1 }
0x28ed   :  { %v13415_v35 = vpop.f32.mrf.mxu1  ;;  %v9729_v39 = vadd.f32 %v14057_v20, %v9728_v41  ;;  %v14080_v20 = vld [vmem:[%s16147_s1 + $0x4] ss:$0 sm:$0xff] }
0x28ef   :  { %v9730_v8 = vadd.f32 %v9729_v39, %v15668_v62  ;;  %v14058_v62 = vld [vmem:[%s14230_s30 + $0x1] ss:$0 sm:$0xff] }
0x28f1   :  { %v9731_v40 = vsel %vm335_vm1, %v9730_v8, 0.0 }
0x28f2   :  { %9732 = vadd.xlane.f32.xlu0 %v9731_v40 }
0x297b   :  { %v9733_v44 = vpop.xlane.xlu0 %9732 }
0x297c   :  { %v9734_v45 = vmul.f32 0.03125, %v9733_v44 }
0x297e   :  { %v9735_v46 = vsub.f32 %v9730_v8, %v9734_v45  ;;  %v14081_v8 = vld [vmem:[%s16147_s1 + $0x5] ss:$0 sm:$0xff] }
0x2980   :  { %v9736_v7 = vmul.f32 %v9735_v46, %v9735_v46 }
0x2982   :  { %v9737_v54 = vsel %vm335_vm1, %v9736_v7, 0.0 }
0x2983   :  { %9738 = vadd.xlane.f32.xlu1 %v9737_v54 }
0x2a0c   :  { %v9739_v49 = vpop.xlane.xlu1 %9738 }
0x2a0d   :  { %v9740_v52 = vmul.f32 0.03125, %v9739_v49 }
0x2a0f   :  { %v9741_v27 = vadd.f32 1e-06, %v9740_v52 }
0x2a11   :  { %13901 = vrsqrt.f32 %v9741_v27 }
0x2a1e   :  { %v13902_v21 = vpop.eup %13901 }
0x2a1f   :  { %v9743_v2 = vmul.f32 %v13902_v21, %v9735_v46 }
0x2a21   :  { %v9744_v55 = vmul.f32 %v14058_v62, %v9743_v2  ;;  %v14082_v62 = vld [vmem:[%s16148_s2 + $0x4] ss:$0 sm:$0xff] }
0x2a23   :  { %v15887_v58 = vadd.f32 %v14059_v57, %v9744_v55  ;;  %v14083_v57 = vld [vmem:[%s16148_s2 + $0x5] ss:$0 sm:$0xff] }
0x2a25   :  { %v9746_v59 = vpack.c.bf16 %v15887_v58, %v15887_v58 }
0x2a27   :  { %13427 = vmatmul.mubr.msk.bf16.vlgmr.msra.gmra.mxu1 %vm335_vm1, %v9746_v59  ;;  %13435 = vmatmul.mubr.msk.bf16.vlgmr.msra.gmra.mxu0 %vm335_vm1, %v9746_v59 }
0x2a28   :  { %13439 = vmatpush3.bf16.msra.mxu1 %v14060_v15  ;;  %13447 = vmatpush3.bf16.msra.mxu0 %v14061_v60 }
0x2a29   :  { %13440 = vmatprep.subr.bf16.mxu1 %v14157_v1  ;;  %13448 = vmatprep.subr.bf16.mxu0 %v14157_v1 }
0x2a2a   :  { %13442 = vmatprep.mubr.msk.bf16.mxu1 %vm14158_vm0, %v14157_v1  ;;  %13450 = vmatprep.mubr.msk.bf16.mxu0 %vm14158_vm0, %v14157_v1 }
0x2a2c   :  { %13441 = vmatpush3.bf16.msra.mxu1 %v14062_v51  ;;  %13449 = vmatpush3.bf16.msra.mxu0 %v14063_v0  ;;  %v14084_v51 = vld [vmem:[%s16147_s1 + $0x6] ss:$0 sm:$0xff] }
0x2a2d   :  { %13454 = vmatprep.subr.bf16.mxu1 %v14157_v1  ;;  %13462 = vmatprep.subr.bf16.mxu0 %v14157_v1 }
0x2a2f   :  { %13443 = vmatmul.mubr.msk.bf16.vlgmr.msra.gmra.mxu1 %vm335_vm1, %v9746_v59  ;;  %13451 = vmatmul.mubr.msk.bf16.vlgmr.msra.gmra.mxu0 %vm335_vm1, %v9746_v59 }
0x2a30   :  { %13455 = vmatpush3.bf16.msra.mxu1 %v14064_v19  ;;  %13463 = vmatpush3.bf16.msra.mxu0 %v14065_v37  ;;  %v14085_v19 = vld [vmem:[%s16147_s1 + $0x7] ss:$0 sm:$0xff] }
0x2a31   :  { %13456 = vmatprep.subr.bf16.mxu1 %v14157_v1  ;;  %13464 = vmatprep.subr.bf16.mxu0 %v14157_v1 }
0x2a32   :  { %13458 = vmatprep.mubr.msk.bf16.mxu1 %vm14158_vm0, %v14157_v1  ;;  %13466 = vmatprep.mubr.msk.bf16.mxu0 %vm14158_vm0, %v14157_v1 }
0x2a34   :  { %13457 = vmatpush3.bf16.msra.mxu1 %v14066_v47  ;;  %13465 = vmatpush3.bf16.msra.mxu0 %v14067_v22 }
0x2a35   :  { %13470 = vmatprep.subr.bf16.mxu1 %v14157_v1  ;;  %13478 = vmatprep.subr.bf16.mxu0 %v14157_v1 }
0x2a37   :  { %13459 = vmatmul.mubr.msk.bf16.vlgmr.msra.gmra.mxu1 %vm335_vm1, %v15027_v48  ;;  %13467 = vmatmul.mubr.msk.bf16.vlgmr.msra.gmra.mxu0 %vm335_vm1, %v15027_v48 }
0x2a38   :  { %13471 = vmatpush3.bf16.msra.mxu1 %v14068_v3  ;;  %13479 = vmatpush3.bf16.msra.mxu0 %v14069_v4 }
0x2a39   :  { %13472 = vmatprep.subr.bf16.mxu1 %v14157_v1  ;;  %13480 = vmatprep.subr.bf16.mxu0 %v14157_v1 }
0x2a3a   :  { %13474 = vmatprep.mubr.msk.bf16.mxu1 %vm14158_vm0, %v14157_v1  ;;  %13482 = vmatprep.mubr.msk.bf16.mxu0 %vm14158_vm0, %v14157_v1 }
0x2a3c   :  { %13473 = vmatpush3.bf16.msra.mxu1 %v14070_v10  ;;  %13481 = vmatpush3.bf16.msra.mxu0 %v14071_v5 }
0x2a3d   :  { %13486 = vmatprep.subr.bf16.mxu1 %v14157_v1  ;;  %13494 = vmatprep.subr.bf16.mxu0 %v14157_v1 }
0x2a3f   :  { %13475 = vmatmul.mubr.msk.bf16.vlgmr.msra.gmra.mxu1 %vm335_vm1, %v15027_v48  ;;  %13483 = vmatmul.mubr.msk.bf16.vlgmr.msra.gmra.mxu0 %vm335_vm1, %v15027_v48 }
0x2a40   :  { %13487 = vmatpush3.bf16.msra.mxu1 %v14072_v50  ;;  %13495 = vmatpush3.bf16.msra.mxu0 %v14073_v36 }
0x2a41   :  { %13488 = vmatprep.subr.bf16.mxu1 %v14157_v1  ;;  %13496 = vmatprep.subr.bf16.mxu0 %v14157_v1 }
0x2a42   :  { %13490 = vmatprep.mubr.msk.bf16.mxu1 %vm14158_vm0, %v14157_v1  ;;  %13498 = vmatprep.mubr.msk.bf16.mxu0 %vm14158_vm0, %v14157_v1 }
0x2a44   :  { %13489 = vmatpush3.bf16.msra.mxu1 %v14074_v43  ;;  %13497 = vmatpush3.bf16.msra.mxu0 %v14075_v31 }
0x2a45   :  { %13502 = vmatprep.subr.bf16.mxu1 %v14157_v1  ;;  %13510 = vmatprep.subr.bf16.mxu0 %v14157_v1 }
0x2a47   :  { %13491 = vmatmul.mubr.msk.bf16.vlgmr.msra.gmra.mxu1 %vm335_vm1, %v15027_v48  ;;  %13499 = vmatmul.mubr.msk.bf16.vlgmr.msra.gmra.mxu0 %vm335_vm1, %v15027_v48 }
0x2a48   :  { %13503 = vmatpush3.bf16.msra.mxu1 %v14076_v6  ;;  %13511 = vmatpush3.bf16.msra.mxu0 %v14077_v38 }
0x2a49   :  { %13504 = vmatprep.subr.bf16.mxu1 %v14157_v1  ;;  %13512 = vmatprep.subr.bf16.mxu0 %v14157_v1 }
0x2a4a   :  { %13506 = vmatprep.mubr.msk.bf16.mxu1 %vm14158_vm0, %v14157_v1  ;;  %13514 = vmatprep.mubr.msk.bf16.mxu0 %vm14158_vm0, %v14157_v1 }
0x2a4c   :  { %13505 = vmatpush3.bf16.msra.mxu1 %v14078_v42  ;;  %13513 = vmatpush3.bf16.msra.mxu0 %v14079_v28  ;;  %v14086_v42 = vld [vmem:[%s16148_s2 + $0x6] ss:$0 sm:$0xff] }
0x2a4d   :  { %13518 = vmatprep.subr.bf16.mxu1 %v14157_v1  ;;  %13524 = vmatprep.subr.bf16.mxu0 %v14157_v1 }
0x2a4f   :  { %13507 = vmatmul.mubr.msk.bf16.vlgmr.msra.gmra.mxu1 %vm335_vm1, %v15027_v48  ;;  %13515 = vmatmul.mubr.msk.bf16.vlgmr.msra.gmra.mxu0 %vm335_vm1, %v15027_v48 }
0x2a50   :  { %13520 = vmatprep.mubr.msk.bf16.mxu1 %vm14158_vm0, %v14157_v1  ;;  %13526 = vmatprep.mubr.msk.bf16.mxu0 %vm14158_vm0, %v14157_v1 }
0x2ae7   :  { %v9784_v14 = vpop.f32.mrf.mxu1  ;;  %v9824_v16 = vpop.f32.mrf.mxu0 }
0x2ae8   :  { %v9785_v55 = vadd.f32 %v14082_v62, %v9784_v14  ;;  %v9825_v59 = vadd.f32 %v14083_v57, %v9824_v16  ;;  %v14087_v14 = vld [vmem:[%s16148_s2 + $0x7] ss:$0 sm:$0xff]  ;;  %v14090_v57 = vld [vmem:[%s16150_s10 + $0x8] sm:$0xff] }
0x2ae9   :  { %v13428_v25 = vpop.f32.mrf.mxu1  ;;  %v13436_v13 = vpop.f32.mrf.mxu0 }
0x2aea   :  { %v10230_v3 = vpack.c.bf16 %v9785_v55, %v9785_v55  ;;  %v10231_v4 = vpack.c.bf16 %v9825_v59, %v9825_v59 }
0x2aeb   :  { %v9787_v17 = vpop.f32.mrf.mxu1  ;;  %v9827_v63 = vpop.f32.mrf.mxu0 }
0x2aec   :  { %v14088_v17 = vld [vmem:[%s16149_s7 + $0x4] ss:$0 sm:$0xff] }
0x2aed   :  { %v13429_v24 = vpop.f32.mrf.mxu1  ;;  %v13437_v9 = vpop.f32.mrf.mxu0 }
0x2aee   :  { %v14089_v24 = vld [vmem:[%s16149_s7 + $0x5] ss:$0 sm:$0xff] }
0x2aef   :  { %v9864_v29 = vpop.f32.mrf.mxu1  ;;  %v9904_v53 = vpop.f32.mrf.mxu0 }
0x2af0   :  { %v9865_v28 = vadd.f32 %v14086_v42, %v9864_v29  ;;  %v9905_v16 = vadd.f32 %v14087_v14, %v9904_v53 }
0x2af1   :  { %v13444_v30 = vpop.f32.mrf.mxu1  ;;  %v13452_v48 = vpop.f32.mrf.mxu0 }
0x2af2   :  { %v10232_v48 = vpack.c.bf16 %v9865_v28, %v9865_v28  ;;  %v10233_v53 = vpack.c.bf16 %v9905_v16, %v9905_v16 }
0x2af3   :  { %v9867_v32 = vpop.f32.mrf.mxu1  ;;  %v9907_v33 = vpop.f32.mrf.mxu0 }
0x2af5   :  { %v13445_v56 = vpop.f32.mrf.mxu1  ;;  %v13453_v41 = vpop.f32.mrf.mxu0 }
0x2af7   :  { %v9944_v34 = vpop.f32.mrf.mxu1  ;;  %v9984_v35 = vpop.f32.mrf.mxu0 }
0x2af8   :  { %v9945_v39 = vadd.f32 %v14080_v20, %v9944_v34  ;;  %v9985_v40 = vadd.f32 %v14081_v8, %v9984_v35 }
0x2af9   :  { %v13460_v44 = vpop.f32.mrf.mxu1  ;;  %v13468_v45 = vpop.f32.mrf.mxu0 }
0x2afa   :  { %v10234_v46 = vpack.c.bf16 %v9945_v39, %v9945_v39  ;;  %v10235_v7 = vpack.c.bf16 %v9985_v40, %v9985_v40 }
0x2afb   :  { %v9947_v54 = vpop.f32.mrf.mxu1  ;;  %v9987_v49 = vpop.f32.mrf.mxu0 }
0x2afc   :  { %v10242_v52 = vsel %vm1007_vm2, %v10234_v46, 0  ;;  %v10288_v27 = vsel %vm1007_vm2, %v10235_v7, 0 }
0x2afd   :  { %v13461_v21 = vpop.f32.mrf.mxu1  ;;  %v13469_v2 = vpop.f32.mrf.mxu0  ;;  %13519 = vmatpush3.bf16.xpose.msra.mxu1 %v10242_v52  ;;  %13525 = vmatpush3.bf16.xpose.msra.mxu0 %v10288_v27 }
0x2afe   :  { %13530 = vmatprep.subr.bf16.mxu1 %v14157_v1  ;;  %13536 = vmatprep.subr.bf16.mxu0 %v14157_v1 }
0x2aff   :  { %v10024_v15 = vpop.f32.mrf.mxu1  ;;  %v10064_v60 = vpop.f32.mrf.mxu0 }
0x2b00   :  { %v10025_v0 = vadd.f32 %v14084_v51, %v10024_v15  ;;  %v10065_v37 = vadd.f32 %v14085_v19, %v10064_v60 }
0x2b01   :  { %v13476_v47 = vpop.f32.mrf.mxu1  ;;  %v13484_v22 = vpop.f32.mrf.mxu0 }
0x2b02   :  { %v10236_v10 = vpack.c.bf16 %v10025_v0, %v10025_v0  ;;  %v10237_v5 = vpack.c.bf16 %v10065_v37, %v10065_v37 }
0x2b03   :  { %v10027_v50 = vpop.f32.mrf.mxu1  ;;  %v10067_v36 = vpop.f32.mrf.mxu0 }
0x2b04   :  { %v10334_v43 = vsel %vm1007_vm2, %v10236_v10, 0  ;;  %v10380_v31 = vsel %vm1007_vm2, %v10237_v5, 0  ;;  %13521 = vmatmul.mubr.msk.bf16.vlgmr.msra.gmra.mxu1 %vm1007_vm2, %v10230_v3  ;;  %13527 = vmatmul.mubr.msk.bf16.vlgmr.msra.gmra.mxu0 %vm1007_vm2, %v10231_v4 }
0x2b05   :  { %v13477_v6 = vpop.f32.mrf.mxu1  ;;  %v13485_v38 = vpop.f32.mrf.mxu0  ;;  %13531 = vmatpush3.bf16.xpose.msra.mxu1 %v10334_v43  ;;  %13537 = vmatpush3.bf16.xpose.msra.mxu0 %v10380_v31 }
0x2b06   :  { %13532 = vmatprep.mubr.msk.bf16.mxu1 %vm14158_vm0, %v14157_v1  ;;  %13538 = vmatprep.mubr.msk.bf16.mxu0 %vm14158_vm0, %v14157_v1 }
0x2b07   :  { %v10104_v25 = vpop.f32.mrf.mxu1  ;;  %v10144_v13 = vpop.f32.mrf.mxu0  ;;  %13542 = vmatprep.subr.bf16.mxu1 %v14157_v1  ;;  %13548 = vmatprep.subr.bf16.mxu0 %v14157_v1 }
0x2b08   :  { %v10105_v63 = vadd.f32 %v14088_v17, %v10104_v25  ;;  %v10145_v9 = vadd.f32 %v14089_v24, %v10144_v13 }
0x2b09   :  { %v13492_v30 = vpop.f32.mrf.mxu1  ;;  %v13500_v29 = vpop.f32.mrf.mxu0 }
0x2b0a   :  { %v10478_v32 = vpack.c.bf16 %v10105_v63, %v10105_v63  ;;  %v10479_v33 = vpack.c.bf16 %v10145_v9, %v10145_v9 }
0x2b0b   :  { %v10107_v56 = vpop.f32.mrf.mxu1  ;;  %v10147_v41 = vpop.f32.mrf.mxu0 }
0x2b0c   :  { %13533 = vmatmul.mubr.msk.bf16.vlgmr.msra.gmra.mxu1 %vm1007_vm2, %v10232_v48  ;;  %13539 = vmatmul.mubr.msk.bf16.vlgmr.msra.gmra.mxu0 %vm1007_vm2, %v10233_v53  ;;  %v10486_v34 = vsel %vm1255_vm3, %v10478_v32, 0  ;;  %v10532_v35 = vsel %vm1255_vm3, %v10479_v33, 0 }
0x2b0d   :  { %v13493_v20 = vpop.f32.mrf.mxu1  ;;  %v13501_v39 = vpop.f32.mrf.mxu0  ;;  %13543 = vmatpush3.bf16.msra.mxu1 %v10486_v34  ;;  %13549 = vmatpush3.bf16.msra.mxu0 %v10532_v35 }
0x2b0e   :  { %13544 = vmatprep.mubr.msk.bf16.mxu1 %vm14158_vm0, %v14157_v1  ;;  %13550 = vmatprep.mubr.msk.bf16.mxu0 %vm14158_vm0, %v14157_v1 }
0x2b0f   :  { %v16007_v8 = vpop.f32.mrf.mxu1  ;;  %v16009_v40 = vpop.f32.mrf.mxu0  ;;  %13554 = vmatprep.subr.bf16.mxu1 %v14157_v1  ;;  %13560 = vmatprep.subr.bf16.mxu0 %v14157_v1 }
0x2b11   :  { %v13508_v44 = vpop.f32.mrf.mxu1  ;;  %v13516_v45 = vpop.f32.mrf.mxu0 }
0x2b13   :  { %v10187_v46 = vpop.f32.mrf.mxu1  ;;  %v10227_v7 = vpop.f32.mrf.mxu0 }
0x2b15   :  { %v13509_v54 = vpop.f32.mrf.mxu1  ;;  %v13517_v49 = vpop.f32.mrf.mxu0 }
0x2b16   :  { %v14091_v49 = vld [vmem:[%s16149_s7 + $0x6] ss:$0 sm:$0xff] }
0x2bc4   :  { %v10278_v52 = vpop.f32.mrf.mxu1  ;;  %v10324_v27 = vpop.f32.mrf.mxu0 }
0x2bc5   :  { %v10422_v21 = vmul.f32 0.35355338, %v10278_v52  ;;  %v10423_v2 = vmul.f32 0.35355338, %v10324_v27  ;;  %v10185_v52 = vadd.f32 %v14091_v49, %v16007_v8  ;;  %v14092_v27 = vld [vmem:[%s16149_s7 + $0x7] ss:$0 sm:$0xff] }
0x2bc6   :  { %v13522_v62 = vpop.f32.mrf.mxu1  ;;  %v13528_v55 = vpop.f32.mrf.mxu0 }
0x2bc7   :  { %v10426_v59 = vadd.f32 %v14090_v57, %v10422_v21  ;;  %v10427_v15 = vadd.f32 %v14090_v57, %v10423_v2  ;;  %v10225_v21 = vadd.f32 %v14092_v27, %v16009_v40  ;;  %v10480_v55 = vpack.c.bf16 %v10185_v52, %v10185_v52  ;;  %v16077_v27 = vld [vmem:[%s16158_s26 + $0x1] ss:$0 sm:$0xff] }
0x2bc8   :  { %v10281_v60 = vpop.f32.mrf.mxu1  ;;  %v10327_v51 = vpop.f32.mrf.mxu0 }
0x2bc9   :  { %v10430_v0 = vsel %vm1007_vm2, %v10426_v59, -inf  ;;  %v10433_v19 = vsel %vm1007_vm2, %v10427_v15, -inf }
0x2bca   :  { %10431 = vmax.xlane.f32.xlu0 %v10430_v0  ;;  %v13523_v37 = vpop.f32.mrf.mxu1  ;;  %10434 = vmax.xlane.f32.xlu1 %v10433_v19  ;;  %v13529_v47 = vpop.f32.mrf.mxu0  ;;  %v10578_v0 = vsel %vm1255_vm3, %v10480_v55, 0 }
0x2bcc   :  { %v10370_v22 = vpop.f32.mrf.mxu1  ;;  %v10416_v3 = vpop.f32.mrf.mxu0 }
0x2bcd   :  { %v10424_v4 = vmul.f32 0.35355338, %v10370_v22  ;;  %v10425_v10 = vmul.f32 0.35355338, %v10416_v3 }
0x2bce   :  { %v13534_v5 = vpop.f32.mrf.mxu1  ;;  %v13540_v50 = vpop.f32.mrf.mxu0 }
0x2bcf   :  { %v10428_v36 = vadd.f32 %v14090_v57, %v10424_v4  ;;  %v10429_v43 = vadd.f32 %v14090_v57, %v10425_v10 }
0x2bd0   :  { %v10373_v31 = vpop.f32.mrf.mxu1  ;;  %v10419_v6 = vpop.f32.mrf.mxu0 }
0x2bd1   :  { %v10436_v38 = vsel %vm1007_vm2, %v10428_v36, -inf  ;;  %v10439_v42 = vsel %vm1007_vm2, %v10429_v43, -inf }
0x2bd2   :  { %10437 = vmax.xlane.f32.xlu0 %v10436_v38  ;;  %v13535_v28 = vpop.f32.mrf.mxu1  ;;  %10440 = vmax.xlane.f32.xlu1 %v10439_v42  ;;  %v13541_v14 = vpop.f32.mrf.mxu0 }
0x2c53   :  { %v10432_v16 = vpop.xlane.xlu0 %10431  ;;  %v10435_v25 = vpop.xlane.xlu1 %10434 }
0x2c54   :  { %v10442_v13 = vsub.f32 %v10426_v59, %v10432_v16  ;;  %v10443_v17 = vsub.f32 %v10427_v15, %v10435_v25  ;;  %v10481_v59 = vpack.c.bf16 %v10225_v21, %v10225_v21  ;;  %v14093_v25 = vld [vmem:[%s16153_s16 + $0x18] sm:$0xff]  }
0x2c56   :  { %v10446_v63 = vmul.f32 1.442695, %v10442_v13  ;;  %v10448_v24 = vmul.f32 1.442695, %v10443_v17  ;;  %v10624_v19 = vsel %vm1255_vm3, %v10481_v59, 0  ;;  %v8593_v59 = vadd.f32 %v16077_v27, %v15798_v12 }
0x2c58   :  { %13903 = vpow2.f32 %v10446_v63  ;;  %v14094_v63 = vld [vmem:[%s16154_s18 + $0x38] sm:$0xff]  }
0x2c59   :  { %13905 = vpow2.f32 %v10448_v24 }
0x2c5b   :  { %v10438_v9 = vpop.xlane.xlu0 %10437  ;;  %v10441_v30 = vpop.xlane.xlu1 %10440 }
0x2c5c   :  { %v10444_v29 = vsub.f32 %v10428_v36, %v10438_v9  ;;  %v10445_v48 = vsub.f32 %v10429_v43, %v10441_v30  ;;  %v14095_v9 = vld [vmem:[%s16153_s16 + $0x10] sm:$0xff]  }
0x2c5d   :  { %v14096_v30 = vld [vmem:[%s16154_s18 + $0x30] sm:$0xff]  }
0x2c5e   :  { %v10450_v53 = vmul.f32 1.442695, %v10444_v29  ;;  %v10452_v32 = vmul.f32 1.442695, %v10445_v48  ;;  %v14097_v29 = vld [vmem:[%s16154_s18 + $0x28] sm:$0xff]   ;;  %v14098_v48 = vld [vmem:[%s16154_s18 + $0x20] sm:$0xff]  }
0x2c60   :  { %13907 = vpow2.f32 %v10450_v53 }
0x2c61   :  { %13909 = vpow2.f32 %v10452_v32 }
0x2c65   :  { %v13904_v33 = vpop.eup %13903 }
0x2c66   :  { %v13906_v56 = vpop.eup %13905  ;;  %v10454_v41 = vsel %vm1007_vm2, %v13904_v33, 0.0 }
0x2c67   :  { %10455 = vadd.xlane.f32.xlu0 %v10454_v41  ;;  %v10457_v34 = vsel %vm1007_vm2, %v13906_v56, 0.0 }
0x2c68   :  { %10458 = vadd.xlane.f32.xlu1 %v10457_v34 }
0x2c6d   :  { %v13908_v35 = vpop.eup %13907 }
0x2c6e   :  { %v13910_v20 = vpop.eup %13909  ;;  %v10460_v39 = vsel %vm1007_vm2, %v13908_v35, 0.0 }
0x2c6f   :  { %10461 = vadd.xlane.f32.xlu0 %v10460_v39  ;;  %v10463_v44 = vsel %vm1007_vm2, %v13910_v20, 0.0 }
0x2c70   :  { %10464 = vadd.xlane.f32.xlu1 %v10463_v44 }
0x2cf0   :  { %v10456_v45 = vpop.xlane.xlu0 %10455 }
0x2cf1   :  { %13911 = vrcp.f32 %v10456_v45  ;;  %v10459_v46 = vpop.xlane.xlu1 %10458 }
0x2cf2   :  { %13913 = vrcp.f32 %v10459_v46 }
0x2cf8   :  { %v10462_v7 = vpop.xlane.xlu0 %10461 }
0x2cf9   :  { %13915 = vrcp.f32 %v10462_v7  ;;  %v10465_v54 = vpop.xlane.xlu1 %10464 }
0x2cfa   :  { %13917 = vrcp.f32 %v10465_v54 }
0x2cfe   :  { %v13912_v2 = vpop.eup %13911 }
0x2cff   :  { %v13914_v62 = vpop.eup %13913  ;;  %v10470_v57 = vmul.f32 %v13912_v2, %v13904_v33 }
0x2d00   :  { %v10471_v15 = vmul.f32 %v13914_v62, %v13906_v56 }
0x2d01   :  { %v10474_v60 = vpack.c.bf16 %v10470_v57, %v10470_v57 }
0x2d02   :  { %v10475_v51 = vpack.c.bf16 %v10471_v15, %v10471_v15  ;;  %v14099_v15 = vld [vmem:[%s16152_s15 + $0x1] ss:$0 sm:$0xff] }
0x2d03   :  { %13545 = vmatmul.mubr.msk.bf16.vlgmr.msra.gmra.mxu1 %vm1007_vm2, %v10474_v60 }
0x2d04   :  { %13551 = vmatmul.mubr.msk.bf16.vlgmr.msra.gmra.mxu0 %vm1007_vm2, %v10475_v51  ;;  %13555 = vmatpush3.bf16.msra.mxu1 %v10578_v0 }
0x2d05   :  { %13561 = vmatpush3.bf16.msra.mxu0 %v10624_v19  ;;  %13556 = vmatprep.mubr.msk.bf16.mxu1 %vm14158_vm0, %v14157_v1 }
0x2d06   :  { %v13916_v8 = vpop.eup %13915  ;;  %13562 = vmatprep.mubr.msk.bf16.mxu0 %vm14158_vm0, %v14157_v1  ;;  %13566 = vmatprep.subr.bf16.mxu1 %v14157_v1 }
0x2d07   :  { %v13918_v40 = vpop.eup %13917  ;;  %v10472_v37 = vmul.f32 %v13916_v8, %v13908_v35  ;;  %13572 = vmatprep.subr.bf16.mxu0 %v14157_v1 }
0x2d08   :  { %v10473_v47 = vmul.f32 %v13918_v40, %v13910_v20  ;;  %v8598_v40 = vadd.f32 %v8593_v59, %v15658_v23 }
0x2d09   :  { %v10476_v22 = vpack.c.bf16 %v10472_v37, %v10472_v37 }
0x2d0a   :  { %v10477_v3 = vpack.c.bf16 %v10473_v47, %v10473_v47  ;;  %v8599_v37 = vsel %vm335_vm1, %v8598_v40, 0.0 }
0x2d0b   :  { %13557 = vmatmul.mubr.msk.bf16.vlgmr.msra.gmra.mxu1 %vm1007_vm2, %v10476_v22 }
0x2d0c   :  { %13563 = vmatmul.mubr.msk.bf16.vlgmr.msra.gmra.mxu0 %vm1007_vm2, %v10477_v3  ;;  %13567 = vmatpush3.bf16.msra.mxu1 %v15599_v61 }
0x2d0d   :  { %13573 = vmatpush3.bf16.msra.mxu0 %v15596_v11  ;;  %13568 = vmatprep.mubr.msk.bf16.mxu1 %vm14158_vm0, %v14157_v1 }
0x2d0e   :  { %13574 = vmatprep.mubr.msk.bf16.mxu0 %vm14158_vm0, %v14157_v1  ;;  %13578 = vmatprep.subr.bf16.mxu1 %v14157_v1 }
0x2d0f   :  { %13584 = vmatprep.subr.bf16.mxu0 %v14157_v1 }
0x2dc3   :  { %v10522_v4 = vpop.f32.mrf.mxu1 }
0x2dc4   :  { %v10666_v10 = vpack.c.bf16 %v10522_v4, %v10522_v4  ;;  %v10568_v5 = vpop.f32.mrf.mxu0 }
0x2dc5   :  { %v10667_v50 = vpack.c.bf16 %v10568_v5, %v10568_v5  ;;  %v13546_v36 = vpop.f32.mrf.mxu1 }
0x2dc6   :  { %v13552_v43 = vpop.f32.mrf.mxu0  ;;  %13569 = vmatmul.mubr.msk.bf16.vlgmr.msra.gmra.mxu1 %vm1007_vm2, %v10666_v10 }
0x2dc7   :  { %13575 = vmatmul.mubr.msk.bf16.vlgmr.msra.gmra.mxu0 %vm1007_vm2, %v10667_v50  ;;  %v10525_v11 = vpop.f32.mrf.mxu1  ;;  %13579 = vmatpush3.bf16.msra.mxu1 %v15617_v26 }
0x2dc8   :  { %v10571_v61 = vpop.f32.mrf.mxu0  ;;  %13585 = vmatpush3.bf16.msra.mxu0 %v15614_v18  ;;  %13580 = vmatprep.mubr.msk.bf16.mxu1 %vm14158_vm0, %v14157_v1 }
0x2dc9   :  { %v13547_v31 = vpop.f32.mrf.mxu1  ;;  %13586 = vmatprep.mubr.msk.bf16.mxu0 %vm14158_vm0, %v14157_v1  ;;  %13590 = vmatprep.subr.bf16.mxu1 %v14157_v1 }
0x2dca   :  { %v13553_v6 = vpop.f32.mrf.mxu0  ;;  %13598 = vmatprep.subr.bf16.mxu0 %v14157_v1 }
0x2dcb   :  { %v10614_v38 = vpop.f32.mrf.mxu1 }
0x2dcc   :  { %v10668_v42 = vpack.c.bf16 %v10614_v38, %v10614_v38  ;;  %v10660_v26 = vpop.f32.mrf.mxu0 }
0x2dcd   :  { %v10669_v28 = vpack.c.bf16 %v10660_v26, %v10660_v26  ;;  %v13558_v14 = vpop.f32.mrf.mxu1  ;;  %v14100_v26 = vld [vmem:[%s16155_s22 + $0x1] ss:$0 sm:$0xff] }
0x2dce   :  { %v13564_v18 = vpop.f32.mrf.mxu0  ;;  %13581 = vmatmul.mubr.msk.bf16.vlgmr.msra.gmra.mxu1 %vm1007_vm2, %v10668_v42 }
0x2dcf   :  { %13587 = vmatmul.mubr.msk.bf16.vlgmr.msra.gmra.mxu0 %vm1007_vm2, %v10669_v28  ;;  %v10617_v16 = vpop.f32.mrf.mxu1  ;;  %13591 = vmatpush3.bf16.msra.mxu1 %v14093_v25  ;;  %v11611_v18 = vld [vmem:[%s16159_s0 + $0x1] ss:$0 sm:$0xff] }
0x2dd0   :  { %v10663_v13 = vpop.f32.mrf.mxu0  ;;  %13592 = vmatprep.subr.bf16.mxu1 %v14157_v1  ;;  %13594 = vmatprep.mubr.msk.bf16.mxu1 %vm14158_vm0, %v14157_v1  ;;  %v14101_v25 = vld [vmem:[%s16156_s23 + $0x1] ss:$0 sm:$0xff] }
0x2dd1   :  { %v13559_v17 = vpop.f32.mrf.mxu1  ;;  %13599 = vmatpush3.bf16.msra.mxu0 %v14094_v63  ;;  %13606 = vmatprep.mubr.msk.bf16.mxu0 %vm14158_vm0, %v14157_v1 }
0x2dd2   :  { %v13565_v24 = vpop.f32.mrf.mxu0  ;;  %13600 = vmatprep.subr.bf16.mxu0 %v14157_v1  ;;  %v13771_v17 = vld [vmem:[%s14320_s17 + $0x8] sm:$0xff]  }
0x2dd3   :  { %13593 = vmatpush3.bf16.msra.mxu1 %v14095_v9  ;;  %v11612_v9 = vld [vmem:[%s14315_s4 + $0x1] ss:$0 sm:$0xff] }
0x2dd4   :  { %13610 = vmatprep.subr.bf16.mxu1 %v14157_v1 }
0x2dd5   :  { %13601 = vmatpush3.bf16.msra.mxu0 %v14096_v30  ;;  %v13772_v30 = vld [vmem:[%s14320_s17] sm:$0xff]   ;;  %s11090_s17 = sshll.u32 %s14159_s13, 4  ;;  %s11091_s17 = int_to_ptr.vmem [resolvable:$true] %s11090_s17 }
0x2dd6   :  { %13602 = vmatprep.subr.bf16.mxu0 %v14157_v1  ;;  %s14103_s21 = scalar_lea.vmem %s11091_s17, 256  ;;  %p14108_p1 = scmp.lt.s32.totalorder %s11091_s17, %s11091_s17 }
0x2dd7   :  { %p14104_p0 = scmp.ne.s32.totalorder %s11091_s17, %s14103_s21  ;;  %p14109_p2 = scmp.lt.s32.totalorder %s14103_s21, %s14103_s21 }
0x2dd9   :  { %13603 = vmatpush3.bf16.msra.mxu0 %v14097_v29  ;;  %p14110_p3 = por %p14109_p2, %p14108_p1 }
0x2dda   :  { %13604 = vmatprep.subr.bf16.mxu0 %v14157_v1 }
0x2ddb   :  { %p14111_p4 = pnand %p14110_p3, %p14104_p0 }
0x2ddd   :  { %13605 = vmatpush3.bf16.msra.mxu0 %v14098_v48 }
0x2e86   :  { %v10707_v53 = vpop.f32.mrf.mxu1 }
0x2e87   :  { %v10750_v32 = vpop.f32.mrf.mxu0  ;;  %v10842_v34 = vsel %vm335_vm1, %v10707_v53, 0.0 }
0x2e88   :  { %v13570_v33 = vpop.f32.mrf.mxu1  ;;  %v10843_v35 = vsel %vm335_vm1, %v10750_v32, 0.0  ;;  %v14102_v32 = vld [vmem:[%s16157_s5 + $0x1] ss:$0 sm:$0xff] }
0x2e89   :  { %v13576_v56 = vpop.f32.mrf.mxu0  ;;  %v10844_v45 = vadd.f32 %v10843_v35, %v10842_v34 }
0x2e8a   :  { %v10710_v41 = vpop.f32.mrf.mxu1 }
0x2e8b   :  { %v10753_v20 = vpop.f32.mrf.mxu0 }
0x2e8c   :  { %v13571_v39 = vpop.f32.mrf.mxu1 }
0x2e8d   :  { %v13577_v44 = vpop.f32.mrf.mxu0  ;;  %v11663_v39 = vld [vmem:[%s14325_s20] ss:$0 sm:$0xff] }
0x2e8e   :  { %v10793_v46 = vpop.f32.mrf.mxu1 }
0x2e8f   :  { %v10845_v7 = vsel %vm335_vm1, %v10793_v46, 0.0  ;;  %v10836_v54 = vpop.f32.mrf.mxu0 }
0x2e90   :  { %v10846_v49 = vadd.f32 %v10845_v7, %v10844_v45  ;;  %v13582_v52 = vpop.f32.mrf.mxu1  ;;  %v10847_v21 = vsel %vm335_vm1, %v10836_v54, 0.0 }
0x2e91   :  { %v13588_v2 = vpop.f32.mrf.mxu0 }
0x2e92   :  { %v10848_v62 = vadd.f32 %v10847_v21, %v10846_v49  ;;  %v10796_v55 = vpop.f32.mrf.mxu1 }
0x2e93   :  { %v10839_v57 = vpop.f32.mrf.mxu0 }
0x2e94   :  { %v10849_v60 = vadd.f32 %v14099_v15, %v10848_v62  ;;  %v13583_v51 = vpop.f32.mrf.mxu1 }
0x2e95   :  { %v13589_v0 = vpop.f32.mrf.mxu0 }
0x2e96   :  { %v10850_v19 = vadd.f32 %v10849_v60, %v15887_v58 }
0x2e98   :  { %v10851_v8 = vsel %vm335_vm1, %v10850_v19, 0.0 }
0x2e99   :  { %10852 = vadd.xlane.f32.xlu0 %v10851_v8 }
0x2e9d   :  { %8600 = vadd.xlane.f32.xlu0 %v8599_v37 }
0x2f22   :  { %v10853_v47 = vpop.xlane.xlu0 %10852 }
0x2f23   :  { %v10854_v22 = vmul.f32 0.03125, %v10853_v47 }
0x2f25   :  { %v10855_v3 = vsub.f32 %v10850_v19, %v10854_v22 }
0x2f26   :  { %v8601_v4 = vpop.xlane.xlu0 %8600 }
0x2f27   :  { %v8602_v10 = vmul.f32 0.03125, %v8601_v4  ;;  %v10856_v12 = vmul.f32 %v10855_v3, %v10855_v3 }
0x2f29   :  { %v8603_v5 = vsub.f32 %v8598_v40, %v8602_v10  ;;  %v10857_v50 = vsel %vm335_vm1, %v10856_v12, 0.0 }
0x2f2a   :  { %10858 = vadd.xlane.f32.xlu1 %v10857_v50 }
0x2f2b   :  { %v8604_v58 = vmul.f32 %v8603_v5, %v8603_v5 }
0x2f2d   :  { %v8605_v36 = vsel %vm335_vm1, %v8604_v58, 0.0 }
0x2f2e   :  { %8606 = vadd.xlane.f32.xlu0 %v8605_v36 }
0x2fb3   :  { %v10859_v23 = vpop.xlane.xlu1 %10858 }
0x2fb4   :  { %v10860_v43 = vmul.f32 0.03125, %v10859_v23 }
0x2fb6   :  { %v10861_v11 = vadd.f32 1e-06, %v10860_v43 }
0x2fb7   :  { %v8607_v61 = vpop.xlane.xlu0 %8606 }
0x2fb8   :  { %13919 = vrsqrt.f32 %v10861_v11  ;;  %v8608_v31 = vmul.f32 0.03125, %v8607_v61 }
0x2fba   :  { %v8609_v6 = vadd.f32 1e-06, %v8608_v31 }
0x2fbc   :  { %13921 = vrsqrt.f32 %v8609_v6 }
0x2fc5   :  { %v13920_v38 = vpop.eup %13919 }
0x2fc6   :  { %v10863_v42 = vmul.f32 %v13920_v38, %v10855_v3 }
0x2fc8   :  { %v10864_v28 = vmul.f32 %v14100_v26, %v10863_v42 }
0x2fc9   :  { %v13922_v14 = vpop.eup %13921 }
0x2fca   :  { %v8611_v16 = vmul.f32 %v13922_v14, %v8603_v5  ;;  %v10865_v13 = vadd.f32 %v14101_v25, %v10864_v28 }
0x2fcc   :  { %v8618_v63 = vmul.f32 %v11611_v18, %v8611_v16  ;;  %v10866_v24 = vpack.c.bf16 %v10865_v13, %v10865_v13 }
0x2fce   :  { %13595 = vmatmul.mubr.msk.bf16.vlgmr.msra.gmra.mxu1 %vm335_vm1, %v10866_v24  ;;  %v8625_v29 = vadd.f32 %v11612_v9, %v8618_v63 }
0x2fcf   :  { %13611 = vmatpush3.bf16.msra.mxu1 %v13771_v17  ;;  %13614 = vmatprep.mubr.msk.bf16.mxu1 %vm14158_vm0, %v14157_v1 }
0x2fd0   :  { %13612 = vmatprep.subr.bf16.mxu1 %v14157_v1  ;;  %v10976_v48 = vpack.c.bf16 %v8625_v29, %v8625_v29 }
0x2fd3   :  { %13613 = vmatpush3.bf16.msra.mxu1 %v13772_v30 }
0x2fd4   :  { %13618 = vmatprep.subr.bf16.mxu1 %v14157_v1 }
0x2fd6   :  { %13615 = vmatmul.mubr.msk.bf16.vlgmr.msra.gmra.mxu1 %vm335_vm1, %v10976_v48 }
0x2fd7   :  { %13619 = vmatpush3.bf16.msra.mxu1 %v13771_v17  ;;  %13622 = vmatprep.mubr.msk.bf16.mxu1 %vm14158_vm0, %v14157_v1 }
0x2fd8   :  { %13620 = vmatprep.subr.bf16.mxu1 %v14157_v1 }
0x2fdb   :  { %13621 = vmatpush3.bf16.msra.mxu1 %v13772_v30 }
0x308e   :  { %v10904_v53 = vpop.f32.mrf.mxu1 }
0x308f   :  { %v10905_v33 = vadd.f32 %v14102_v32, %v10904_v53 }
0x3090   :  { %v13596_v56 = vpop.f32.mrf.mxu1 }
0x3091   :  { %v10910_v41 = vmax.f32 %v10905_v33, 0.0 }
0x3092   :  { %v10907_v34 = vpop.f32.mrf.mxu1 }
0x3093   :  { %v10911_v35 = vpack.c.bf16 %v10910_v41, %v10910_v41 }
0x3094   :  { %v13597_v20 = vpop.f32.mrf.mxu1 }
0x3095   :  { %13607 = vmatmul.mubr.msk.bf16.vlgmr.msra.gmra.mxu0 %vm3132_vm4, %v10911_v35 }
0x3096   :  { %v11032_v44 = vpop.f32.mrf.mxu1 }
0x3097   :  { %v11033_v45 = vadd.f32 %v11663_v39, %v11032_v44 }
0x3098   :  { %v13616_v46 = vpop.f32.mrf.mxu1 }
0x3099   :  { %11038 = vst.msk [vmem:[#allocation2] sm:$0xff] %vm335_vm1, %v11033_v45 }
0x309a   :  { %v11035_v7 = vpop.f32.mrf.mxu1 }
0x309c   :  { %v13617_v54 = vpop.f32.mrf.mxu1 }
0x3155   :  { %v10949_v1 = vpop.f32.mrf.mxu0 }
0x3156   :  { %v10950_v49 = vadd.f32 %v16077_v27, %v10949_v1 }
0x3157   :  { %v13608_v52 = vpop.f32.mrf.mxu0 }
0x3158   :  { %v10955_v21 = vadd.f32 %v10950_v49, %v10865_v13 }
0x3159   :  { %v10952_v2 = vpop.f32.mrf.mxu0 }
0x315a   :  { %v10956_v62 = vsel %vm335_vm1, %v10955_v21, 0.0 }
0x315b   :  { %10957 = vadd.xlane.f32.xlu1 %v10956_v62  ;;  %v13609_v55 = vpop.f32.mrf.mxu0 }
0x31e4   :  { %v10958_v57 = vpop.xlane.xlu1 %10957 }
0x31e5   :  { %v10959_v59 = vmul.f32 0.03125, %v10958_v57 }
0x31e7   :  { %v10960_v15 = vsub.f32 %v10955_v21, %v10959_v59 }
0x31e9   :  { %v10961_v60 = vmul.f32 %v10960_v15, %v10960_v15 }
0x31eb   :  { %v10962_v51 = vsel %vm335_vm1, %v10961_v60, 0.0 }
0x31ec   :  { %10963 = vadd.xlane.f32.xlu1 %v10962_v51 }
0x3275   :  { %v10964_v0 = vpop.xlane.xlu1 %10963 }
0x3276   :  { %v10965_v19 = vmul.f32 0.03125, %v10964_v0 }
0x3278   :  { %v10966_v8 = vadd.f32 1e-06, %v10965_v19 }
0x327a   :  { %13923 = vrsqrt.f32 %v10966_v8 }
0x3287   :  { %v13924_v40 = vpop.eup %13923 }
0x3288   :  { %v10968_v27 = vmul.f32 %v13924_v40, %v10960_v15 }
0x328a   :  { %v10969_v37 = vmul.f32 %v11611_v18, %v10968_v27 }
0x328c   :  { %v10970_v47 = vadd.f32 %v11612_v9, %v10969_v37 }
0x328e   :  { %v11039_v22 = vpack.c.bf16 %v10970_v47, %v10970_v47 }
0x3290   :  { %13623 = vmatmul.mubr.msk.bf16.vlgmr.msra.gmra.mxu1 %vm335_vm1, %v11039_v22 }
0x3350   :  { %v11077_v3 = vpop.f32.mrf.mxu1 }
0x3351   :  { %v11078_v4 = vadd.f32 %v11663_v39, %v11077_v3 }
0x3352   :  { %v13624_v10 = vpop.f32.mrf.mxu1 }
0x3353   :  { %11084 = vst.msk [vmem:[#allocation2 + $0x8] sm:$0xff] %vm335_vm1, %v11078_v4 }
0x3354   :  { %v11080_v12 = vpop.f32.mrf.mxu1 }
0x3355   :  { %14114 = shalt.err (!%p14111_p4)
}
0x3356   :  { %s14160_s25 = smov 128   ;;  %s14161_s29 = smov 8   ;;  %v13625_v5 = vpop.f32.mrf.mxu1 }
0x3357   :  { %11096 = dma.vmem_to_hbm [thread:$0]  %s11091_s17, 256, %s14330_s9, [#allocation3], %s14160_s25, %s14160_s25, %s14161_s29  }
0x3358   :  { %14123 = dma.done.wait [#allocation3], 256  }
0x3359   :  { %14124 = vsyncadd [#allocation3], 4294967040 }
0x335a   :  { %11100 = vsyncpa [#allocation3], 1 }

</bundles_post_ra>
